<compile_context>
chip_gen: v7x
topology: tpu7x:2x2x1
jax: 0.10.0
libtpu: 0.0.40
codegen_flags: <defaults>
</compile_context>

<pallas_src>
import jax
import jax.numpy as jnp
from jax.experimental import pallas as pl
from jax.experimental.pallas import tpu as pltpu


C1_PAD = 128  # conv1 out-channels padded 96 -> 128 for lane-dense tiles


# ---------------------------------------------------------------------------
# Pallas kernels
# ---------------------------------------------------------------------------
def _conv_bias_relu_pool_kernel(a_ref, w_ref, b_ref, o_ref):
    """Fused conv-as-matmul + 2x2 max-pool + bias + ReLU epilogue.

    a_ref: (4, tg, K) bf16  -- im2col patches for the 4 positions of each 2x2
                               pooling window (same pooled output rows).
    w_ref: (K, Cout) bf16, b_ref: (1, Cout) f32, o_ref: (tg, Cout).
    """
    a = a_ref[...]                                   # (4, tg, K)
    tg, K = a.shape[1], a.shape[2]
    # Merge the 4 pool partners into the row (sublane) dim: tg % 8 == 0, so this
    # is a layout-preserving no-op, and the MXU sees ONE matmul with 4*tg rows
    # (weights pushed once instead of 4 times).
    acc = jnp.dot(a.reshape(4 * tg, K), w_ref[...],
                  preferred_element_type=jnp.float32)       # (4*tg, Cout)
    acc = acc.reshape(4, tg, acc.shape[-1])
    pooled = jnp.max(acc, axis=0) + b_ref[...]              # 3 VPU maxes + 1 add
    o_ref[...] = jnp.maximum(pooled, 0.0).astype(o_ref.dtype)


def _fc_tail_kernel(x_ref, w1_ref, b1_ref, w2_ref, b2_ref, w3_ref, b3_ref, o_ref):
    """fc1 -> relu -> fc2 -> relu -> fc3, all resident in VMEM."""
    h = jnp.dot(x_ref[...], w1_ref[...], preferred_element_type=jnp.float32) + b1_ref[...]
    h = jnp.maximum(h, 0.0)
    h = jnp.dot(h, w2_ref[...], preferred_element_type=jnp.float32) + b2_ref[...]
    h = jnp.maximum(h, 0.0)
    y = jnp.dot(h, w3_ref[...], preferred_element_type=jnp.float32) + b3_ref[...]
    o_ref[...] = y.astype(o_ref.dtype)


# ---------------------------------------------------------------------------
# Wrappers
# ---------------------------------------------------------------------------
def _pick_tile(G, K, elem_bytes=2, budget_bytes=4 * 1024 * 1024):
    """Row-tile for the pooled output: multiple of 16, (4, tg, K) fits `budget`."""
    if G <= 16:
        return G                                # full dim (always ok as a block dim)
    cap = max(16, (budget_bytes // (4 * K * elem_bytes)) // 16 * 16)
    cap = min(cap, 512)
    if G % 16 == 0 and G <= cap:
        return G
    best, d = 16, 16
    while d <= min(G, cap):
        if G % d == 0:
            best = d
        d += 16
    return best


def conv_bias_relu_pool(x_nhwc, w_mat, bias, kh, kw, *, out_dtype):
    """x: (N,H,W,C) NHWC; w_mat: (kh*kw*C, Cout); bias: (1, Cout).

    Returns pooled, ReLU'd activations as (N*Hp*Wp, Cout), rows ordered (n,hp,wp)."""
    N, H, W, C = x_nhwc.shape
    Ho, Wo = H - kh + 1, W - kw + 1
    Hp, Wp = Ho // 2, Wo // 2
    K, Cout = w_mat.shape
    assert K == kh * kw * C

    # im2col (XLA glue, fused slices/concat); patch order (kh, kw, c).
    pat = jnp.concatenate(
        [x_nhwc[:, i:i + Ho, j:j + Wo, :] for i in range(kh) for j in range(kw)],
        axis=-1,
    )  # (N, Ho, Wo, K)

    # 4 pool-window positions, each (N*Hp*Wp, K) with rows ordered (n, hp, wp).
    blocks = jnp.stack(
        [
            pat[:, di:di + 2 * Hp:2, dj:dj + 2 * Wp:2, :].reshape(N * Hp * Wp, K)
            for di in (0, 1)
            for dj in (0, 1)
        ],
        axis=0,
    ).astype(jnp.bfloat16)  # (4, G, K)

    G = N * Hp * Wp
    tg = _pick_tile(G, K)

    return pl.pallas_call(
        _conv_bias_relu_pool_kernel,
        out_shape=jax.ShapeDtypeStruct((G, Cout), out_dtype),
        grid=(pl.cdiv(G, tg),),
        in_specs=[
            pl.BlockSpec((4, tg, K), lambda m: (0, m, 0)),
            pl.BlockSpec((K, Cout), lambda m: (0, 0)),
            pl.BlockSpec((1, Cout), lambda m: (0, 0)),
        ],
        out_specs=pl.BlockSpec((tg, Cout), lambda m: (m, 0)),
        compiler_params=pltpu.CompilerParams(
            dimension_semantics=("parallel",),
            vmem_limit_bytes=32 * 1024 * 1024,
        ),
    )(blocks, w_mat.astype(jnp.bfloat16), bias.astype(jnp.float32))


def fc_tail(flat, w1, b1, w2, b2, w3, b3):
    N, D = flat.shape
    n_out = w3.shape[1]
    tb = N if N <= 128 else 128  # full dim for small batch, else 8-aligned tile

    def full_spec(a):
        return pl.BlockSpec(a.shape, lambda i, nd=a.ndim: (0,) * nd)

    weights = (w1, b1, w2, b2, w3, b3)
    return pl.pallas_call(
        _fc_tail_kernel,
        out_shape=jax.ShapeDtypeStruct((N, n_out), jnp.float32),
        grid=(pl.cdiv(N, tb),),
        in_specs=[pl.BlockSpec((tb, D), lambda i: (i, 0))]
                 + [full_spec(a) for a in weights],
        out_specs=pl.BlockSpec((tb, n_out), lambda i: (i, 0)),
        compiler_params=pltpu.CompilerParams(
            dimension_semantics=("parallel",),
            vmem_limit_bytes=32 * 1024 * 1024,
        ),
    )(flat, *weights)


# ---------------------------------------------------------------------------
# Parameters (PyTorch layout) + one-time conversion to kernel layout
# ---------------------------------------------------------------------------
def init_params(key):
    ks = jax.random.split(key, 10)

    def normal(k, shape, fan_in):
        return jax.random.normal(k, shape, jnp.float32) / jnp.sqrt(fan_in)

    return {
        "conv1_w": normal(ks[0], (96, 3, 7, 7), 3 * 7 * 7),
        "conv1_b": normal(ks[1], (96,), 3 * 7 * 7),
        "conv2_w": normal(ks[2], (256, 96, 5, 5), 96 * 5 * 5),
        "conv2_b": normal(ks[3], (256,), 96 * 5 * 5),
        "fc1_w": normal(ks[4], (120, 256 * 4 * 4), 256 * 4 * 4),
        "fc1_b": normal(ks[5], (120,), 256 * 4 * 4),
        "fc2_w": normal(ks[6], (84, 120), 120),
        "fc2_b": normal(ks[7], (84,), 120),
        "fc3_w": normal(ks[8], (10, 84), 84),
        "fc3_b": normal(ks[9], (10,), 84),
    }


def prepare_params(p):
    """One-time conversion of PyTorch-layout weights to kernel (matmul) layout."""
    # conv1: (96,3,7,7) -> (7*7*3, 96), pad out-channels to 128, bf16.
    w1 = jnp.transpose(p["conv1_w"], (2, 3, 1, 0)).reshape(7 * 7 * 3, 96)
    w1 = jnp.pad(w1, ((0, 0), (0, C1_PAD - 96))).astype(jnp.bfloat16)
    b1 = jnp.pad(p["conv1_b"], (0, C1_PAD - 96)).reshape(1, C1_PAD).astype(jnp.float32)

    # conv2: (256,96,5,5) -> (5,5,96,256), pad in-channels to 128 -> (5*5*128, 256).
    w2 = jnp.transpose(p["conv2_w"], (2, 3, 1, 0))
    w2 = jnp.pad(w2, ((0, 0), (0, 0), (0, C1_PAD - 96), (0, 0)))
    w2 = w2.reshape(5 * 5 * C1_PAD, 256).astype(jnp.bfloat16)
    b2 = p["conv2_b"].reshape(1, 256).astype(jnp.float32)

    # fc1: columns reordered from torch's (c,h,w) flatten to NHWC (h,w,c) flatten,
    # so the runtime activation transpose disappears.
    f1 = p["fc1_w"].reshape(120, 256, 4, 4)
    f1 = jnp.transpose(f1, (2, 3, 1, 0)).reshape(4 * 4 * 256, 120).astype(jnp.float32)

    return {
        "conv1_w": w1, "conv1_b": b1,
        "conv2_w": w2, "conv2_b": b2,
        "fc1_w": f1, "fc1_b": p["fc1_b"].reshape(1, 120).astype(jnp.float32),
        "fc2_w": p["fc2_w"].T.astype(jnp.float32),
        "fc2_b": p["fc2_b"].reshape(1, 84).astype(jnp.float32),
        "fc3_w": p["fc3_w"].T.astype(jnp.float32),
        "fc3_b": p["fc3_b"].reshape(1, 10).astype(jnp.float32),
    }


# ---------------------------------------------------------------------------
# Forward pass (3 pallas_calls total)
# ---------------------------------------------------------------------------
def net_forward(x_nchw, kp):
    N = x_nchw.shape[0]
    x = jnp.transpose(x_nchw, (0, 2, 3, 1)).astype(jnp.bfloat16)  # NCHW -> NHWC

    # conv1(7x7) + relu + pool -> (N*12*12, 128) bf16, rows ordered (n, hp, wp)
    y = conv_bias_relu_pool(x, kp["conv1_w"], kp["conv1_b"], 7, 7,
                            out_dtype=jnp.bfloat16)
    Hp1 = (x.shape[1] - 7 + 1) // 2
    Wp1 = (x.shape[2] - 7 + 1) // 2
    y = y.reshape(N, Hp1, Wp1, C1_PAD)

    # conv2(5x5) + relu + pool -> (N*4*4, 256) f32
    z = conv_bias_relu_pool(y, kp["conv2_w"], kp["conv2_b"], 5, 5,
                            out_dtype=jnp.float32)
    Hp2 = (Hp1 - 5 + 1) // 2
    Wp2 = (Wp1 - 5 + 1) // 2

    # NHWC flatten (fc1 weights were permuted at init to match), fused FC tail.
    flat = z.reshape(N, Hp2 * Wp2 * 256)
    return fc_tail(flat, kp["fc1_w"], kp["fc1_b"], kp["fc2_w"], kp["fc2_b"],
                   kp["fc3_w"], kp["fc3_b"])


# ---------------------------------------------------------------------------
# Pure-JAX reference (PyTorch semantics, f32) for sanity checking
# ---------------------------------------------------------------------------
def _pool2x2_nchw(y):
    n, c, h, w = y.shape
    return jnp.max(y.reshape(n, c, h // 2, 2, w // 2, 2), axis=(3, 5))


def net_forward_reference(x_nchw, p):
    dn = ("NCHW", "OIHW", "NCHW")
    y = jax.lax.conv_general_dilated(x_nchw, p["conv1_w"], (1, 1), "VALID",
                                     dimension_numbers=dn,
                                     precision=jax.lax.Precision.HIGHEST)
    y = _pool2x2_nchw(jnp.maximum(y + p["conv1_b"][None, :, None, None], 0.0))
    y = jax.lax.conv_general_dilated(y, p["conv2_w"], (1, 1), "VALID",
                                     dimension_numbers=dn,
                                     precision=jax.lax.Precision.HIGHEST)
    y = _pool2x2_nchw(jnp.maximum(y + p["conv2_b"][None, :, None, None], 0.0))
    flat = y.reshape(y.shape[0], -1)  # PyTorch flattens in (C, H, W) order
    h = jnp.maximum(flat @ p["fc1_w"].T + p["fc1_b"], 0.0)
    h = jnp.maximum(h @ p["fc2_w"].T + p["fc2_b"], 0.0)
    return h @ p["fc3_w"].T + p["fc3_b"]


if __name__ == "__main__":
    key = jax.random.PRNGKey(0)
    kx, kp_key = jax.random.split(key)

    # Input spatial size 30 is implied by fc1 = Linear(256*4*4, 120):
    # 30 -conv7-> 24 -pool-> 12 -conv5-> 8 -pool-> 4.
    x = jax.random.normal(kx, (2, 3, 30, 30), jnp.float32)
    params = init_params(kp_key)
    kparams = prepare_params(params)

    fwd = jax.jit(net_forward)
    out = jax.block_until_ready(fwd(x, kparams))
    assert out.shape == (2, 10) and out.dtype == jnp.float32

    ref = net_forward_reference(x, params)
    # bf16 conv inputs (f32 accumulation) vs. an all-f32 reference.
    assert jnp.allclose(out, ref, rtol=5e-2, atol=5e-2), float(
        jnp.max(jnp.abs(out - ref)))

    print("KERNEL_OK")
</pallas_src>

<mosaic_0001>
module attributes {stable_mosaic.version = 11 : i64} {
  func.func @_conv_bias_relu_pool_kernel(%arg0: i32, %arg1: memref<4x288x147xbf16, #tpu.memory_space<vmem>>, %arg2: memref<147x128xbf16, #tpu.memory_space<vmem>>, %arg3: memref<1x128xf32, #tpu.memory_space<vmem>>, %arg4: memref<288x128xbf16, #tpu.memory_space<vmem>>) attributes {dimension_semantics = [#tpu.dimension_semantics<parallel>], iteration_bounds = array<i64: 1>, scalar_prefetch = 0 : i64, scratch_operands = 0 : i64, tpu.core_type = #tpu.core_type<tc>, window_params = [{transform_indices = @transform_0, window_bounds = array<i64: 4, 288, 147>}, {pipeline_mode = #tpu.pipeline_mode<synchronous>, transform_indices = @transform_1, window_bounds = array<i64: 147, 128>}, {pipeline_mode = #tpu.pipeline_mode<synchronous>, transform_indices = @transform_2, window_bounds = array<i64: 1, 128>}, {transform_indices = @transform_3, window_bounds = array<i64: 288, 128>}]} {
    %c0 = arith.constant 0 : index
    %c0_0 = arith.constant 0 : index
    %c0_1 = arith.constant 0 : index
    %0 = vector.load %arg1[%c0, %c0_0, %c0_1] : memref<4x288x147xbf16, #tpu.memory_space<vmem>>, vector<4x288x147xbf16>
    %1 = vector.shape_cast %0 : vector<4x288x147xbf16> to vector<1152x147xbf16>
    %c0_2 = arith.constant 0 : index
    %c0_3 = arith.constant 0 : index
    %2 = vector.load %arg2[%c0_2, %c0_3] : memref<147x128xbf16, #tpu.memory_space<vmem>>, vector<147x128xbf16>
    %cst = arith.constant dense<0.000000e+00> : vector<1152x128xf32>
    %3 = tpu.matmul %1, %2, %cst {dimension_numbers = #tpu.dot_dimension_numbers<[1], [0], [0], [1], [0, 0, 1, 1], [], []>} : vector<1152x147xbf16>, vector<147x128xbf16>, vector<1152x128xf32> -> vector<1152x128xf32>
    %4 = vector.shape_cast %3 : vector<1152x128xf32> to vector<4x288x128xf32>
    %cst_4 = arith.constant dense<0xFF800000> : vector<288x128xf32>
    %5 = vector.multi_reduction <maximumf>, %4, %cst_4 [0] : vector<4x288x128xf32> to vector<288x128xf32>
    %c0_5 = arith.constant 0 : index
    %c0_6 = arith.constant 0 : index
    %6 = vector.load %arg3[%c0_5, %c0_6] : memref<1x128xf32, #tpu.memory_space<vmem>>, vector<1x128xf32>
    %7 = vector.broadcast %6 : vector<1x128xf32> to vector<288x128xf32>
    %8 = arith.addf %5, %7 : vector<288x128xf32>
    %cst_7 = arith.constant 0.000000e+00 : f32
    %9 = vector.broadcast %cst_7 : f32 to vector<288x128xf32>
    %10 = arith.maximumf %8, %9 : vector<288x128xf32>
    %11 = arith.truncf %10 : vector<288x128xf32> to vector<288x128xbf16>
    %c0_8 = arith.constant 0 : index
    %c0_9 = arith.constant 0 : index
    %12 = vector.load %arg4[%c0_8, %c0_9] : memref<288x128xbf16, #tpu.memory_space<vmem>>, vector<288x128xbf16>
    tpu.vector_store %arg4[%c0_8, %c0_9], %11 {strides = array<i32>} : memref<288x128xbf16, #tpu.memory_space<vmem>>, vector<288x128xbf16>,
    return
  }
  func.func @transform_0(%arg0: i32) -> (i32, i32, i32) {
    %c0_i32 = arith.constant 0 : i32
    %c0_i32_0 = arith.constant 0 : i32
    %c0_i32_1 = arith.constant 0 : i32
    return %c0_i32, %arg0, %c0_i32_0 : i32, i32, i32
  }
  func.func @transform_1(%arg0: i32) -> (i32, i32) {
    %c0_i32 = arith.constant 0 : i32
    %c0_i32_0 = arith.constant 0 : i32
    %c0_i32_1 = arith.constant 0 : i32
    return %c0_i32, %c0_i32_0 : i32, i32
  }
  func.func @transform_2(%arg0: i32) -> (i32, i32) {
    %c0_i32 = arith.constant 0 : i32
    %c0_i32_0 = arith.constant 0 : i32
    %c0_i32_1 = arith.constant 0 : i32
    return %c0_i32, %c0_i32_0 : i32, i32
  }
  func.func @transform_3(%arg0: i32) -> (i32, i32) {
    %c0_i32 = arith.constant 0 : i32
    %c0_i32_0 = arith.constant 0 : i32
    return %arg0, %c0_i32 : i32, i32
  }
}

module attributes {stable_mosaic.version = 11 : i64} {
  func.func @_conv_bias_relu_pool_kernel(%arg0: i32, %arg1: memref<4x32x3200xbf16, #tpu.memory_space<vmem>>, %arg2: memref<3200x256xbf16, #tpu.memory_space<vmem>>, %arg3: memref<1x256xf32, #tpu.memory_space<vmem>>, %arg4: memref<32x256xf32, #tpu.memory_space<vmem>>) attributes {dimension_semantics = [#tpu.dimension_semantics<parallel>], iteration_bounds = array<i64: 1>, scalar_prefetch = 0 : i64, scratch_operands = 0 : i64, tpu.core_type = #tpu.core_type<tc>, window_params = [{transform_indices = @transform_0, window_bounds = array<i64: 4, 32, 3200>}, {pipeline_mode = #tpu.pipeline_mode<synchronous>, transform_indices = @transform_1, window_bounds = array<i64: 3200, 256>}, {pipeline_mode = #tpu.pipeline_mode<synchronous>, transform_indices = @transform_2, window_bounds = array<i64: 1, 256>}, {transform_indices = @transform_3, window_bounds = array<i64: 32, 256>}]} {
    %c0 = arith.constant 0 : index
    %c0_0 = arith.constant 0 : index
    %c0_1 = arith.constant 0 : index
    %0 = vector.load %arg1[%c0, %c0_0, %c0_1] : memref<4x32x3200xbf16, #tpu.memory_space<vmem>>, vector<4x32x3200xbf16>
    %1 = vector.shape_cast %0 : vector<4x32x3200xbf16> to vector<128x3200xbf16>
    %c0_2 = arith.constant 0 : index
    %c0_3 = arith.constant 0 : index
    %2 = vector.load %arg2[%c0_2, %c0_3] : memref<3200x256xbf16, #tpu.memory_space<vmem>>, vector<3200x256xbf16>
    %cst = arith.constant dense<0.000000e+00> : vector<128x256xf32>
    %3 = tpu.matmul %1, %2, %cst {dimension_numbers = #tpu.dot_dimension_numbers<[1], [0], [0], [1], [0, 0, 1, 1], [], []>} : vector<128x3200xbf16>, vector<3200x256xbf16>, vector<128x256xf32> -> vector<128x256xf32>
    %4 = vector.shape_cast %3 : vector<128x256xf32> to vector<4x32x256xf32>
    %cst_4 = arith.constant dense<0xFF800000> : vector<32x256xf32>
    %5 = vector.multi_reduction <maximumf>, %4, %cst_4 [0] : vector<4x32x256xf32> to vector<32x256xf32>
    %c0_5 = arith.constant 0 : index
    %c0_6 = arith.constant 0 : index
    %6 = vector.load %arg3[%c0_5, %c0_6] : memref<1x256xf32, #tpu.memory_space<vmem>>, vector<1x256xf32>
    %7 = vector.broadcast %6 : vector<1x256xf32> to vector<32x256xf32>
    %8 = arith.addf %5, %7 : vector<32x256xf32>
    %cst_7 = arith.constant 0.000000e+00 : f32
    %9 = vector.broadcast %cst_7 : f32 to vector<32x256xf32>
    %10 = arith.maximumf %8, %9 : vector<32x256xf32>
    %c0_8 = arith.constant 0 : index
    %c0_9 = arith.constant 0 : index
    %11 = vector.load %arg4[%c0_8, %c0_9] : memref<32x256xf32, #tpu.memory_space<vmem>>, vector<32x256xf32>
    tpu.vector_store %arg4[%c0_8, %c0_9], %10 {strides = array<i32>} : memref<32x256xf32, #tpu.memory_space<vmem>>, vector<32x256xf32>,
    return
  }
  func.func @transform_0(%arg0: i32) -> (i32, i32, i32) {
    %c0_i32 = arith.constant 0 : i32
    %c0_i32_0 = arith.constant 0 : i32
    %c0_i32_1 = arith.constant 0 : i32
    return %c0_i32, %arg0, %c0_i32_0 : i32, i32, i32
  }
  func.func @transform_1(%arg0: i32) -> (i32, i32) {
    %c0_i32 = arith.constant 0 : i32
    %c0_i32_0 = arith.constant 0 : i32
    %c0_i32_1 = arith.constant 0 : i32
    return %c0_i32, %c0_i32_0 : i32, i32
  }
  func.func @transform_2(%arg0: i32) -> (i32, i32) {
    %c0_i32 = arith.constant 0 : i32
    %c0_i32_0 = arith.constant 0 : i32
    %c0_i32_1 = arith.constant 0 : i32
    return %c0_i32, %c0_i32_0 : i32, i32
  }
  func.func @transform_3(%arg0: i32) -> (i32, i32) {
    %c0_i32 = arith.constant 0 : i32
    %c0_i32_0 = arith.constant 0 : i32
    return %arg0, %c0_i32 : i32, i32
  }
}

module attributes {stable_mosaic.version = 11 : i64} {
  func.func @_fc_tail_kernel(%arg0: i32, %arg1: memref<2x4096xf32, #tpu.memory_space<vmem>>, %arg2: memref<4096x120xf32, #tpu.memory_space<vmem>>, %arg3: memref<1x120xf32, #tpu.memory_space<vmem>>, %arg4: memref<120x84xf32, #tpu.memory_space<vmem>>, %arg5: memref<1x84xf32, #tpu.memory_space<vmem>>, %arg6: memref<84x10xf32, #tpu.memory_space<vmem>>, %arg7: memref<1x10xf32, #tpu.memory_space<vmem>>, %arg8: memref<2x10xf32, #tpu.memory_space<vmem>>) attributes {dimension_semantics = [#tpu.dimension_semantics<parallel>], iteration_bounds = array<i64: 1>, scalar_prefetch = 0 : i64, scratch_operands = 0 : i64, tpu.core_type = #tpu.core_type<tc>, window_params = [{transform_indices = @transform_0, window_bounds = array<i64: 2, 4096>}, {pipeline_mode = #tpu.pipeline_mode<synchronous>, transform_indices = @transform_1, window_bounds = array<i64: 4096, 120>}, {pipeline_mode = #tpu.pipeline_mode<synchronous>, transform_indices = @transform_2, window_bounds = array<i64: 1, 120>}, {pipeline_mode = #tpu.pipeline_mode<synchronous>, transform_indices = @transform_3, window_bounds = array<i64: 120, 84>}, {pipeline_mode = #tpu.pipeline_mode<synchronous>, transform_indices = @transform_4, window_bounds = array<i64: 1, 84>}, {pipeline_mode = #tpu.pipeline_mode<synchronous>, transform_indices = @transform_5, window_bounds = array<i64: 84, 10>}, {pipeline_mode = #tpu.pipeline_mode<synchronous>, transform_indices = @transform_6, window_bounds = array<i64: 1, 10>}, {transform_indices = @transform_7, window_bounds = array<i64: 2, 10>}]} {
    %c0 = arith.constant 0 : index
    %c0_0 = arith.constant 0 : index
    %0 = vector.load %arg1[%c0, %c0_0] : memref<2x4096xf32, #tpu.memory_space<vmem>>, vector<2x4096xf32>
    %c0_1 = arith.constant 0 : index
    %c0_2 = arith.constant 0 : index
    %1 = vector.load %arg2[%c0_1, %c0_2] : memref<4096x120xf32, #tpu.memory_space<vmem>>, vector<4096x120xf32>
    %cst = arith.constant dense<0.000000e+00> : vector<2x120xf32>
    %2 = tpu.matmul %0, %1, %cst {dimension_numbers = #tpu.dot_dimension_numbers<[1], [0], [0], [1], [0, 0, 1, 1], [], []>} : vector<2x4096xf32>, vector<4096x120xf32>, vector<2x120xf32> -> vector<2x120xf32>
    %c0_3 = arith.constant 0 : index
    %c0_4 = arith.constant 0 : index
    %3 = vector.load %arg3[%c0_3, %c0_4] : memref<1x120xf32, #tpu.memory_space<vmem>>, vector<1x120xf32>
    %4 = vector.broadcast %3 : vector<1x120xf32> to vector<2x120xf32>
    %5 = arith.addf %2, %4 : vector<2x120xf32>
    %cst_5 = arith.constant 0.000000e+00 : f32
    %6 = vector.broadcast %cst_5 : f32 to vector<2x120xf32>
    %7 = arith.maximumf %5, %6 : vector<2x120xf32>
    %c0_6 = arith.constant 0 : index
    %c0_7 = arith.constant 0 : index
    %8 = vector.load %arg4[%c0_6, %c0_7] : memref<120x84xf32, #tpu.memory_space<vmem>>, vector<120x84xf32>
    %cst_8 = arith.constant dense<0.000000e+00> : vector<2x84xf32>
    %9 = tpu.matmul %7, %8, %cst_8 {dimension_numbers = #tpu.dot_dimension_numbers<[1], [0], [0], [1], [0, 0, 1, 1], [], []>} : vector<2x120xf32>, vector<120x84xf32>, vector<2x84xf32> -> vector<2x84xf32>
    %c0_9 = arith.constant 0 : index
    %c0_10 = arith.constant 0 : index
    %10 = vector.load %arg5[%c0_9, %c0_10] : memref<1x84xf32, #tpu.memory_space<vmem>>, vector<1x84xf32>
    %11 = vector.broadcast %10 : vector<1x84xf32> to vector<2x84xf32>
    %12 = arith.addf %9, %11 : vector<2x84xf32>
    %cst_11 = arith.constant 0.000000e+00 : f32
    %13 = vector.broadcast %cst_11 : f32 to vector<2x84xf32>
    %14 = arith.maximumf %12, %13 : vector<2x84xf32>
    %c0_12 = arith.constant 0 : index
    %c0_13 = arith.constant 0 : index
    %15 = vector.load %arg6[%c0_12, %c0_13] : memref<84x10xf32, #tpu.memory_space<vmem>>, vector<84x10xf32>
    %cst_14 = arith.constant dense<0.000000e+00> : vector<2x10xf32>
    %16 = tpu.matmul %14, %15, %cst_14 {dimension_numbers = #tpu.dot_dimension_numbers<[1], [0], [0], [1], [0, 0, 1, 1], [], []>} : vector<2x84xf32>, vector<84x10xf32>, vector<2x10xf32> -> vector<2x10xf32>
    %c0_15 = arith.constant 0 : index
    %c0_16 = arith.constant 0 : index
    %17 = vector.load %arg7[%c0_15, %c0_16] : memref<1x10xf32, #tpu.memory_space<vmem>>, vector<1x10xf32>
    %18 = vector.broadcast %17 : vector<1x10xf32> to vector<2x10xf32>
    %19 = arith.addf %16, %18 : vector<2x10xf32>
    %c0_17 = arith.constant 0 : index
    %c0_18 = arith.constant 0 : index
    %20 = vector.load %arg8[%c0_17, %c0_18] : memref<2x10xf32, #tpu.memory_space<vmem>>, vector<2x10xf32>
    tpu.vector_store %arg8[%c0_17, %c0_18], %19 {strides = array<i32>} : memref<2x10xf32, #tpu.memory_space<vmem>>, vector<2x10xf32>,
    return
  }
  func.func @transform_0(%arg0: i32) -> (i32, i32) {
    %c0_i32 = arith.constant 0 : i32
    %c0_i32_0 = arith.constant 0 : i32
    return %arg0, %c0_i32 : i32, i32
  }
  func.func @transform_1(%arg0: i32) -> (i32, i32) {
    %c0_i32 = arith.constant 0 : i32
    %c0_i32_0 = arith.constant 0 : i32
    %c0_i32_1 = arith.constant 0 : i32
    return %c0_i32, %c0_i32_0 : i32, i32
  }
  func.func @transform_2(%arg0: i32) -> (i32, i32) {
    %c0_i32 = arith.constant 0 : i32
    %c0_i32_0 = arith.constant 0 : i32
    %c0_i32_1 = arith.constant 0 : i32
    return %c0_i32, %c0_i32_0 : i32, i32
  }
  func.func @transform_3(%arg0: i32) -> (i32, i32) {
    %c0_i32 = arith.constant 0 : i32
    %c0_i32_0 = arith.constant 0 : i32
    %c0_i32_1 = arith.constant 0 : i32
    return %c0_i32, %c0_i32_0 : i32, i32
  }
  func.func @transform_4(%arg0: i32) -> (i32, i32) {
    %c0_i32 = arith.constant 0 : i32
    %c0_i32_0 = arith.constant 0 : i32
    %c0_i32_1 = arith.constant 0 : i32
    return %c0_i32, %c0_i32_0 : i32, i32
  }
  func.func @transform_5(%arg0: i32) -> (i32, i32) {
    %c0_i32 = arith.constant 0 : i32
    %c0_i32_0 = arith.constant 0 : i32
    %c0_i32_1 = arith.constant 0 : i32
    return %c0_i32, %c0_i32_0 : i32, i32
  }
  func.func @transform_6(%arg0: i32) -> (i32, i32) {
    %c0_i32 = arith.constant 0 : i32
    %c0_i32_0 = arith.constant 0 : i32
    %c0_i32_1 = arith.constant 0 : i32
    return %c0_i32, %c0_i32_0 : i32, i32
  }
  func.func @transform_7(%arg0: i32) -> (i32, i32) {
    %c0_i32 = arith.constant 0 : i32
    %c0_i32_0 = arith.constant 0 : i32
    return %arg0, %c0_i32 : i32, i32
  }
}

</mosaic_0001>

<bundles_post_ra>
// kernel: net_forward.3
= control target key start
LH: loop header
LB: loop body
LE: loop exit
PB: predicated region body
PF: predicated region fallthrough
CT: control target
= control target key end

     0   :  { %v2741_v0 = vmov 0   ;;  %vm883_vm0 = vcmask 154624   ;;  %vm1100_vm1 = vcmask 1040384   ;;  %vm1101_vm2 = vcmask 1041408   ;;  %s3608_s1 = inlined_call_operand.vmem [shape: bf16[147,128], index: 1, kind: input, shape index: {}]   ;;  %s3609_s0 = inlined_call_operand.vmem [shape: bf16[4,288,147], index: 0, kind: input, shape index: {}]   ;;  %s3610_s2 = inlined_call_operand.vmem [shape: f32[1,128], index: 2, kind: input, shape index: {}]   ;;  %s3611_s3 = inlined_call_operand.vmem [shape: bf16[288,128], index: 3, kind: output, shape index: {}]  }
   0x1   :  { %1107 = vmatprep.subr.bf16.mxu0 %v2741_v0  ;;  %2493 = vmatprep.subr.bf16.mxu1 %v2741_v0  ;;  %v2515_v1 = vld [vmem:[%s3608_s1] sm:$0xff]   ;;  %v2516_v2 = vld [vmem:[%s3608_s1 + $0x8] sm:$0xff]   ;;  %v2517_v3 = vld [vmem:[%s3608_s1 + $0x10] sm:$0xff]   ;;  %v2742_v11 = vmov 65535  }
   0x2   :  { %1108 = vmatpush1.bf16.msra.mxu0 %v2515_v1  ;;  %2503 = vmatpush1.bf16.msra.mxu1 %v2515_v1  ;;  %v2518_v4 = vld [vmem:[%s3608_s1 + $0x18] sm:$0xff]   ;;  %v2527_v5 = vld [vmem:[%s3609_s0 + $0x4] ss:$8 sps:$4 sm:$0xff]   ;;  %v2521_v9 = vld [vmem:[%s3608_s1 + $0x30] sm:$0xff]   ;;  %v1102_v12 = vsel %vm1100_vm1, 4294967295, %v2742_v11 }
   0x3   :  { %1109 = vmatprep.subr.bf16.mxu0 %v2741_v0  ;;  %2494 = vmatprep.subr.bf16.mxu1 %v2741_v0  ;;  %v2530_v6 = vld [vmem:[%s3609_s0 + $0x244] ss:$8 sps:$4 sm:$0xff]   ;;  %v2522_v10 = vld [vmem:[%s3608_s1 + $0x38] sm:$0xff]   ;;  %v2524_v14 = vld [vmem:[%s3608_s1 + $0x48] ss:$0 sps:$4 sm:$0x33]  }
   0x4   :  { %2241 = vmatprep.mubr.msk.bf16.mxu0 %vm883_vm0, %v2527_v5  ;;  %v2519_v7 = vld [vmem:[%s3608_s1 + $0x20] sm:$0xff]   ;;  %2277 = vmatprep.mubr.msk.bf16.mxu1 %vm883_vm0, %v2530_v6  ;;  %v2520_v8 = vld [vmem:[%s3608_s1 + $0x28] sm:$0xff]   ;;  %v1103_v15 = vsel %vm1101_vm2, %v1102_v12, 0  ;;  %v2531_v19 = vld [vmem:[%s3609_s0 + $0x14] ss:$8 sps:$4 sm:$0xff]  }
   0x5   :  { %v2523_v13 = vld [vmem:[%s3608_s1 + $0x40] sm:$0xff]   ;;  %v1105_v16 = vand.u32 %v2524_v14, %v1103_v15  ;;  %v2534_v20 = vld [vmem:[%s3609_s0 + $0x254] ss:$8 sps:$4 sm:$0xff]   ;;  %v2533_v21 = vld [vmem:[%s3609_s0 + $0x10] ss:$8 sps:$4 sm:$0xff]  }
   0x6   :  { %1110 = vmatpush1.bf16.msra.mxu0 %v2516_v2  ;;  %2504 = vmatpush1.bf16.msra.mxu1 %v2516_v2  ;;  %v2525_v17 = vld [vmem:[%s3609_s0] ss:$8 sps:$4 sm:$0xff]   ;;  %v2536_v22 = vld [vmem:[%s3609_s0 + $0x250] ss:$8 sps:$4 sm:$0xff]   ;;  %v2537_v23 = vld [vmem:[%s3609_s0 + $0x24] ss:$8 sps:$4 sm:$0xff]  }
   0x7   :  { %1111 = vmatprep.subr.bf16.mxu0 %v2741_v0  ;;  %2495 = vmatprep.subr.bf16.mxu1 %v2741_v0  ;;  %v2528_v18 = vld [vmem:[%s3609_s0 + $0x240] ss:$8 sps:$4 sm:$0xff]   ;;  %v2540_v24 = vld [vmem:[%s3609_s0 + $0x264] ss:$8 sps:$4 sm:$0xff]   ;;  %v2543_v27 = vld [vmem:[%s3609_s0 + $0x34] ss:$8 sps:$4 sm:$0xff]  }
   0x8   :  { %v2539_v25 = vld [vmem:[%s3609_s0 + $0x20] ss:$8 sps:$4 sm:$0xff]   ;;  %v2546_v28 = vld [vmem:[%s3609_s0 + $0x274] ss:$8 sps:$4 sm:$0xff]   ;;  %v2545_v29 = vld [vmem:[%s3609_s0 + $0x30] ss:$8 sps:$4 sm:$0xff]  }
   0x9   :  { %v2542_v26 = vld [vmem:[%s3609_s0 + $0x260] ss:$8 sps:$4 sm:$0xff]   ;;  %v2548_v30 = vld [vmem:[%s3609_s0 + $0x270] ss:$8 sps:$4 sm:$0xff]   ;;  %v2549_v31 = vld [vmem:[%s3609_s0 + $0x44] ss:$8 sps:$4 sm:$0xff]  }
   0xa   :  { %1112 = vmatpush1.bf16.msra.mxu0 %v2517_v3  ;;  %2505 = vmatpush1.bf16.msra.mxu1 %v2517_v3  ;;  %v2552_v32 = vld [vmem:[%s3609_s0 + $0x284] ss:$8 sps:$4 sm:$0xff]   ;;  %v2551_v33 = vld [vmem:[%s3609_s0 + $0x40] ss:$8 sps:$4 sm:$0xff]   ;;  %v2555_v35 = vld [vmem:[%s3609_s0 + $0x54] ss:$8 sps:$4 sm:$0xff]  }
   0xb   :  { %1113 = vmatprep.subr.bf16.mxu0 %v2741_v0  ;;  %2496 = vmatprep.subr.bf16.mxu1 %v2741_v0  ;;  %v2554_v34 = vld [vmem:[%s3609_s0 + $0x280] ss:$8 sps:$4 sm:$0xff]   ;;  %v2558_v36 = vld [vmem:[%s3609_s0 + $0x294] ss:$8 sps:$4 sm:$0xff]   ;;  %v2557_v37 = vld [vmem:[%s3609_s0 + $0x50] ss:$8 sps:$4 sm:$0xff]  }
   0xc   :  { %v2560_v38 = vld [vmem:[%s3609_s0 + $0x290] ss:$8 sps:$4 sm:$0xff]   ;;  %v2561_v39 = vld [vmem:[%s3609_s0 + $0x64] ss:$8 sps:$4 sm:$0xff]   ;;  %v2563_v41 = vld [vmem:[%s3609_s0 + $0x60] ss:$8 sps:$4 sm:$0xff]  }
   0xd   :  { %v2564_v40 = vld [vmem:[%s3609_s0 + $0x2a4] ss:$8 sps:$4 sm:$0xff]   ;;  %v2566_v42 = vld [vmem:[%s3609_s0 + $0x2a0] ss:$8 sps:$4 sm:$0xff]   ;;  %v2567_v43 = vld [vmem:[%s3609_s0 + $0x74] ss:$8 sps:$4 sm:$0xff]  }
   0xe   :  { %1114 = vmatpush1.bf16.msra.mxu0 %v2518_v4  ;;  %2506 = vmatpush1.bf16.msra.mxu1 %v2518_v4  ;;  %v2570_v44 = vld [vmem:[%s3609_s0 + $0x2b4] ss:$8 sps:$4 sm:$0xff]   ;;  %v2569_v45 = vld [vmem:[%s3609_s0 + $0x70] ss:$8 sps:$4 sm:$0xff]   ;;  %v2573_v47 = vld [vmem:[%s3609_s0 + $0x84] ss:$8 sps:$4 sm:$0xff]  }
   0xf   :  { %1115 = vmatprep.subr.bf16.mxu0 %v2741_v0  ;;  %2497 = vmatprep.subr.bf16.mxu1 %v2741_v0  ;;  %v2572_v46 = vld [vmem:[%s3609_s0 + $0x2b0] ss:$8 sps:$4 sm:$0xff]   ;;  %v2576_v48 = vld [vmem:[%s3609_s0 + $0x2c4] ss:$8 sps:$4 sm:$0xff]   ;;  %v2575_v49 = vld [vmem:[%s3609_s0 + $0x80] ss:$8 sps:$4 sm:$0xff]  }
  0x10   :  { %v2578_v50 = vld [vmem:[%s3609_s0 + $0x2c0] ss:$8 sps:$4 sm:$0xff]   ;;  %v2579_v51 = vld [vmem:[%s3609_s0 + $0x94] ss:$8 sps:$4 sm:$0xff]   ;;  %v2581_v53 = vld [vmem:[%s3609_s0 + $0x90] ss:$8 sps:$4 sm:$0xff]  }
  0x11   :  { %v2582_v52 = vld [vmem:[%s3609_s0 + $0x2d4] ss:$8 sps:$4 sm:$0xff]   ;;  %v2584_v54 = vld [vmem:[%s3609_s0 + $0x2d0] ss:$8 sps:$4 sm:$0xff]   ;;  %v2585_v55 = vld [vmem:[%s3609_s0 + $0xa4] ss:$8 sps:$4 sm:$0xff]  }
  0x12   :  { %1116 = vmatpush1.bf16.msra.mxu0 %v2519_v7  ;;  %2507 = vmatpush1.bf16.msra.mxu1 %v2519_v7  ;;  %v2588_v56 = vld [vmem:[%s3609_s0 + $0x2e4] ss:$8 sps:$4 sm:$0xff]   ;;  %v2587_v57 = vld [vmem:[%s3609_s0 + $0xa0] ss:$8 sps:$4 sm:$0xff]   ;;  %v2591_v59 = vld [vmem:[%s3609_s0 + $0xb4] ss:$8 sps:$4 sm:$0xff]  }
  0x13   :  { %1117 = vmatprep.subr.bf16.mxu0 %v2741_v0  ;;  %2498 = vmatprep.subr.bf16.mxu1 %v2741_v0  ;;  %v2590_v58 = vld [vmem:[%s3609_s0 + $0x2e0] ss:$8 sps:$4 sm:$0xff]   ;;  %v2594_v60 = vld [vmem:[%s3609_s0 + $0x2f4] ss:$8 sps:$4 sm:$0xff]   ;;  %v2593_v61 = vld [vmem:[%s3609_s0 + $0xb0] ss:$8 sps:$4 sm:$0xff]  }
  0x14   :  { %v2596_v62 = vld [vmem:[%s3609_s0 + $0x2f0] ss:$8 sps:$4 sm:$0xff]   ;;  %v2597_v63 = vld [vmem:[%s3609_s0 + $0xc4] ss:$8 sps:$4 sm:$0xff]   ;;  %v2599_v1 = vld [vmem:[%s3609_s0 + $0xc0] ss:$8 sps:$4 sm:$0xff]  }
  0x15   :  { %v2602_v2 = vld [vmem:[%s3609_s0 + $0x300] ss:$8 sps:$4 sm:$0xff]   ;;  %v2603_v3 = vld [vmem:[%s3609_s0 + $0xd4] ss:$8 sps:$4 sm:$0xff]   ;;  %v2605_v5 = vld [vmem:[%s3609_s0 + $0xd0] ss:$8 sps:$4 sm:$0xff]  }
  0x16   :  { %1118 = vmatpush1.bf16.msra.mxu0 %v2520_v8  ;;  %2508 = vmatpush1.bf16.msra.mxu1 %v2520_v8  ;;  %v2606_v4 = vld [vmem:[%s3609_s0 + $0x314] ss:$8 sps:$4 sm:$0xff]   ;;  %v2608_v6 = vld [vmem:[%s3609_s0 + $0x310] ss:$8 sps:$4 sm:$0xff]   ;;  %v2609_v7 = vld [vmem:[%s3609_s0 + $0xe4] ss:$8 sps:$4 sm:$0xff]  }
  0x17   :  { %1119 = vmatprep.subr.bf16.mxu0 %v2741_v0  ;;  %2499 = vmatprep.subr.bf16.mxu1 %v2741_v0  ;;  %v2612_v8 = vld [vmem:[%s3609_s0 + $0x324] ss:$8 sps:$4 sm:$0xff]   ;;  %v2615_v11 = vld [vmem:[%s3609_s0 + $0xf4] ss:$8 sps:$4 sm:$0xff]   ;;  %v2620_v14 = vld [vmem:[%s3609_s0 + $0x330] ss:$8 sps:$4 sm:$0xff]  }
  0x18   :  { %v2618_v12 = vld [vmem:[%s3609_s0 + $0x334] ss:$8 sps:$4 sm:$0xff]   ;;  %v2621_v15 = vld [vmem:[%s3609_s0 + $0x104] ss:$8 sps:$4 sm:$0xff]  }
  0x1a   :  { %1120 = vmatpush1.bf16.msra.mxu0 %v2521_v9  ;;  %2509 = vmatpush1.bf16.msra.mxu1 %v2521_v9  ;;  %v2611_v9 = vld [vmem:[%s3609_s0 + $0xe0] ss:$8 sps:$4 sm:$0xff]  }
  0x1b   :  { %1121 = vmatprep.subr.bf16.mxu0 %v2741_v0  ;;  %2500 = vmatprep.subr.bf16.mxu1 %v2741_v0 }
  0x1e   :  { %1122 = vmatpush1.bf16.msra.mxu0 %v2522_v10  ;;  %2510 = vmatpush1.bf16.msra.mxu1 %v2522_v10  ;;  %v2614_v10 = vld [vmem:[%s3609_s0 + $0x320] ss:$8 sps:$4 sm:$0xff]  }
  0x1f   :  { %1123 = vmatprep.subr.bf16.mxu0 %v2741_v0  ;;  %2501 = vmatprep.subr.bf16.mxu1 %v2741_v0 }
  0x22   :  { %1124 = vmatpush1.bf16.msra.mxu0 %v2523_v13  ;;  %2511 = vmatpush1.bf16.msra.mxu1 %v2523_v13  ;;  %v2617_v13 = vld [vmem:[%s3609_s0 + $0xf0] ss:$8 sps:$4 sm:$0xff]  }
  0x23   :  { %1125 = vmatprep.subr.bf16.mxu0 %v2741_v0  ;;  %2502 = vmatprep.subr.bf16.mxu1 %v2741_v0  ;;  %v2600_v0 = vld [vmem:[%s3609_s0 + $0x304] ss:$8 sps:$4 sm:$0xff]  }
  0x26   :  { %1126 = vmatpush1.bf16.msra.mxu0 %v1105_v16  ;;  %2512 = vmatpush1.bf16.msra.mxu1 %v1105_v16  ;;  %v2624_v16 = vld [vmem:[%s3609_s0 + $0x344] ss:$8 sps:$4 sm:$0xff]  }
  0x29   :  { %1140 = vmatmul.mubr.bf16.vlgmr.msra.gmra.mrb[0].mxu0 %v2525_v17  ;;  %1428 = vmatmul.mubr.bf16.vlgmr.msra.gmra.mrb[0].mxu1 %v2528_v18  ;;  %v2623_v17 = vld [vmem:[%s3609_s0 + $0x100] ss:$8 sps:$4 sm:$0xff]  }
  0x2a   :  { %2242 = vmatprep.mubr.msk.bf16.mxu0 %vm883_vm0, %v2531_v19  ;;  %2278 = vmatprep.mubr.msk.bf16.mxu1 %vm883_vm0, %v2534_v20  ;;  %v2626_v18 = vld [vmem:[%s3609_s0 + $0x340] ss:$8 sps:$4 sm:$0xff]   ;;  %v2627_v19 = vld [vmem:[%s3609_s0 + $0x114] ss:$8 sps:$4 sm:$0xff]  }
  0x2b   :  { %v2630_v20 = vld [vmem:[%s3609_s0 + $0x354] ss:$8 sps:$4 sm:$0xff]  }
  0x31   :  { %1148 = vmatmul.mubr.bf16.gmra.mrb[4].mxu0 %v2533_v21  ;;  %1436 = vmatmul.mubr.bf16.gmra.mrb[4].mxu1 %v2536_v22  ;;  %v2629_v21 = vld [vmem:[%s3609_s0 + $0x110] ss:$8 sps:$4 sm:$0xff]  }
  0x32   :  { %2243 = vmatprep.mubr.msk.bf16.mxu0 %vm883_vm0, %v2537_v23  ;;  %2279 = vmatprep.mubr.msk.bf16.mxu1 %vm883_vm0, %v2540_v24  ;;  %v2632_v22 = vld [vmem:[%s3609_s0 + $0x350] ss:$8 sps:$4 sm:$0xff]   ;;  %v2633_v23 = vld [vmem:[%s3609_s0 + $0x124] ss:$8 sps:$4 sm:$0xff]  }
  0x33   :  { %v2636_v24 = vld [vmem:[%s3609_s0 + $0x364] ss:$8 sps:$4 sm:$0xff]  }
  0x39   :  { %1156 = vmatmul.mubr.bf16.gmra.mrb[8].mxu0 %v2539_v25  ;;  %1444 = vmatmul.mubr.bf16.gmra.mrb[8].mxu1 %v2542_v26  ;;  %v2635_v25 = vld [vmem:[%s3609_s0 + $0x120] ss:$8 sps:$4 sm:$0xff]  }
  0x3a   :  { %2244 = vmatprep.mubr.msk.bf16.mxu0 %vm883_vm0, %v2543_v27  ;;  %2280 = vmatprep.mubr.msk.bf16.mxu1 %vm883_vm0, %v2546_v28  ;;  %v2638_v26 = vld [vmem:[%s3609_s0 + $0x360] ss:$8 sps:$4 sm:$0xff]   ;;  %v2639_v27 = vld [vmem:[%s3609_s0 + $0x134] ss:$8 sps:$4 sm:$0xff]  }
  0x3b   :  { %v2642_v28 = vld [vmem:[%s3609_s0 + $0x374] ss:$8 sps:$4 sm:$0xff]  }
  0x41   :  { %1164 = vmatmul.mubr.bf16.gmra.mrb[12].mxu0 %v2545_v29  ;;  %1452 = vmatmul.mubr.bf16.gmra.mrb[12].mxu1 %v2548_v30  ;;  %v2641_v29 = vld [vmem:[%s3609_s0 + $0x130] ss:$8 sps:$4 sm:$0xff]  }
  0x42   :  { %2245 = vmatprep.mubr.msk.bf16.mxu0 %vm883_vm0, %v2549_v31  ;;  %2281 = vmatprep.mubr.msk.bf16.mxu1 %vm883_vm0, %v2552_v32  ;;  %v2644_v30 = vld [vmem:[%s3609_s0 + $0x370] ss:$8 sps:$4 sm:$0xff]   ;;  %v2645_v31 = vld [vmem:[%s3609_s0 + $0x144] ss:$8 sps:$4 sm:$0xff]  }
  0x43   :  { %v2648_v32 = vld [vmem:[%s3609_s0 + $0x384] ss:$8 sps:$4 sm:$0xff]  }
  0x49   :  { %1172 = vmatmul.mubr.bf16.gmra.mrb[16].mxu0 %v2551_v33  ;;  %1460 = vmatmul.mubr.bf16.gmra.mrb[16].mxu1 %v2554_v34  ;;  %v2647_v33 = vld [vmem:[%s3609_s0 + $0x140] ss:$8 sps:$4 sm:$0xff]  }
  0x4a   :  { %2246 = vmatprep.mubr.msk.bf16.mxu0 %vm883_vm0, %v2555_v35  ;;  %2282 = vmatprep.mubr.msk.bf16.mxu1 %vm883_vm0, %v2558_v36  ;;  %v2650_v34 = vld [vmem:[%s3609_s0 + $0x380] ss:$8 sps:$4 sm:$0xff]   ;;  %v2651_v35 = vld [vmem:[%s3609_s0 + $0x154] ss:$8 sps:$4 sm:$0xff]  }
  0x4b   :  { %v2654_v36 = vld [vmem:[%s3609_s0 + $0x394] ss:$8 sps:$4 sm:$0xff]  }
  0x51   :  { %1180 = vmatmul.mubr.bf16.gmra.mrb[20].mxu0 %v2557_v37  ;;  %1468 = vmatmul.mubr.bf16.gmra.mrb[20].mxu1 %v2560_v38  ;;  %v2653_v37 = vld [vmem:[%s3609_s0 + $0x150] ss:$8 sps:$4 sm:$0xff]  }
  0x52   :  { %2247 = vmatprep.mubr.msk.bf16.mxu0 %vm883_vm0, %v2561_v39  ;;  %2283 = vmatprep.mubr.msk.bf16.mxu1 %vm883_vm0, %v2564_v40  ;;  %v2656_v38 = vld [vmem:[%s3609_s0 + $0x390] ss:$8 sps:$4 sm:$0xff]   ;;  %v2657_v39 = vld [vmem:[%s3609_s0 + $0x164] ss:$8 sps:$4 sm:$0xff]  }
  0x53   :  { %v2660_v40 = vld [vmem:[%s3609_s0 + $0x3a4] ss:$8 sps:$4 sm:$0xff]  }
  0x59   :  { %1188 = vmatmul.mubr.bf16.gmra.mrb[24].mxu0 %v2563_v41  ;;  %1476 = vmatmul.mubr.bf16.gmra.mrb[24].mxu1 %v2566_v42  ;;  %v2659_v41 = vld [vmem:[%s3609_s0 + $0x160] ss:$8 sps:$4 sm:$0xff]  }
  0x5a   :  { %2248 = vmatprep.mubr.msk.bf16.mxu0 %vm883_vm0, %v2567_v43  ;;  %2284 = vmatprep.mubr.msk.bf16.mxu1 %vm883_vm0, %v2570_v44  ;;  %v2662_v42 = vld [vmem:[%s3609_s0 + $0x3a0] ss:$8 sps:$4 sm:$0xff]   ;;  %v2663_v43 = vld [vmem:[%s3609_s0 + $0x174] ss:$8 sps:$4 sm:$0xff]  }
  0x5b   :  { %v2666_v44 = vld [vmem:[%s3609_s0 + $0x3b4] ss:$8 sps:$4 sm:$0xff]  }
  0x61   :  { %1196 = vmatmul.mubr.bf16.gmra.mrb[28].mxu0 %v2569_v45  ;;  %1484 = vmatmul.mubr.bf16.gmra.mrb[28].mxu1 %v2572_v46  ;;  %v2665_v45 = vld [vmem:[%s3609_s0 + $0x170] ss:$8 sps:$4 sm:$0xff]  }
  0x62   :  { %2249 = vmatprep.mubr.msk.bf16.mxu0 %vm883_vm0, %v2573_v47  ;;  %2285 = vmatprep.mubr.msk.bf16.mxu1 %vm883_vm0, %v2576_v48  ;;  %v2668_v46 = vld [vmem:[%s3609_s0 + $0x3b0] ss:$8 sps:$4 sm:$0xff]   ;;  %v2669_v47 = vld [vmem:[%s3609_s0 + $0x184] ss:$8 sps:$4 sm:$0xff]  }
  0x63   :  { %v2672_v48 = vld [vmem:[%s3609_s0 + $0x3c4] ss:$8 sps:$4 sm:$0xff]  }
  0x69   :  { %1204 = vmatmul.mubr.bf16.gmra.mrb[32].mxu0 %v2575_v49  ;;  %1492 = vmatmul.mubr.bf16.gmra.mrb[32].mxu1 %v2578_v50  ;;  %v2671_v49 = vld [vmem:[%s3609_s0 + $0x180] ss:$8 sps:$4 sm:$0xff]  }
  0x6a   :  { %2250 = vmatprep.mubr.msk.bf16.mxu0 %vm883_vm0, %v2579_v51  ;;  %2286 = vmatprep.mubr.msk.bf16.mxu1 %vm883_vm0, %v2582_v52  ;;  %v2674_v50 = vld [vmem:[%s3609_s0 + $0x3c0] ss:$8 sps:$4 sm:$0xff]   ;;  %v2675_v51 = vld [vmem:[%s3609_s0 + $0x194] ss:$8 sps:$4 sm:$0xff]  }
  0x6b   :  { %v2678_v52 = vld [vmem:[%s3609_s0 + $0x3d4] ss:$8 sps:$4 sm:$0xff]  }
  0x71   :  { %1212 = vmatmul.mubr.bf16.gmra.mrb[36].mxu0 %v2581_v53  ;;  %1500 = vmatmul.mubr.bf16.gmra.mrb[36].mxu1 %v2584_v54  ;;  %v2677_v53 = vld [vmem:[%s3609_s0 + $0x190] ss:$8 sps:$4 sm:$0xff]  }
  0x72   :  { %2251 = vmatprep.mubr.msk.bf16.mxu0 %vm883_vm0, %v2585_v55  ;;  %2287 = vmatprep.mubr.msk.bf16.mxu1 %vm883_vm0, %v2588_v56  ;;  %v2680_v54 = vld [vmem:[%s3609_s0 + $0x3d0] ss:$8 sps:$4 sm:$0xff]   ;;  %v2681_v55 = vld [vmem:[%s3609_s0 + $0x1a4] ss:$8 sps:$4 sm:$0xff]  }
  0x73   :  { %v2684_v56 = vld [vmem:[%s3609_s0 + $0x3e4] ss:$8 sps:$4 sm:$0xff]  }
  0x79   :  { %1220 = vmatmul.mubr.bf16.gmra.mrb[40].mxu0 %v2587_v57  ;;  %1508 = vmatmul.mubr.bf16.gmra.mrb[40].mxu1 %v2590_v58  ;;  %v2683_v57 = vld [vmem:[%s3609_s0 + $0x1a0] ss:$8 sps:$4 sm:$0xff]  }
  0x7a   :  { %2252 = vmatprep.mubr.msk.bf16.mxu0 %vm883_vm0, %v2591_v59  ;;  %2288 = vmatprep.mubr.msk.bf16.mxu1 %vm883_vm0, %v2594_v60  ;;  %v2686_v58 = vld [vmem:[%s3609_s0 + $0x3e0] ss:$8 sps:$4 sm:$0xff]   ;;  %v2687_v59 = vld [vmem:[%s3609_s0 + $0x1b4] ss:$8 sps:$4 sm:$0xff]  }
  0x7b   :  { %v2690_v60 = vld [vmem:[%s3609_s0 + $0x3f4] ss:$8 sps:$4 sm:$0xff]  }
  0x81   :  { %1228 = vmatmul.mubr.bf16.gmra.mrb[44].mxu0 %v2593_v61  ;;  %1516 = vmatmul.mubr.bf16.gmra.mrb[44].mxu1 %v2596_v62 }
  0x82   :  { %2253 = vmatprep.mubr.msk.bf16.mxu0 %vm883_vm0, %v2597_v63  ;;  %2289 = vmatprep.mubr.msk.bf16.mxu1 %vm883_vm0, %v2600_v0 }
  0x89   :  { %1236 = vmatmul.mubr.bf16.gmra.mrb[48].mxu0 %v2599_v1  ;;  %1524 = vmatmul.mubr.bf16.gmra.mrb[48].mxu1 %v2602_v2  ;;  %v2689_v1 = vld [vmem:[%s3609_s0 + $0x1b0] ss:$8 sps:$4 sm:$0xff]  }
  0x8a   :  { %2254 = vmatprep.mubr.msk.bf16.mxu0 %vm883_vm0, %v2603_v3  ;;  %2290 = vmatprep.mubr.msk.bf16.mxu1 %vm883_vm0, %v2606_v4  ;;  %v2692_v2 = vld [vmem:[%s3609_s0 + $0x3f0] ss:$8 sps:$4 sm:$0xff]  }
  0x91   :  { %1244 = vmatmul.mubr.bf16.gmra.mrb[52].mxu0 %v2605_v5  ;;  %1532 = vmatmul.mubr.bf16.gmra.mrb[52].mxu1 %v2608_v6  ;;  %v2693_v5 = vld [vmem:[%s3609_s0 + $0x1c4] ss:$8 sps:$4 sm:$0xff]  }
  0x92   :  { %2255 = vmatprep.mubr.msk.bf16.mxu0 %vm883_vm0, %v2609_v7  ;;  %2291 = vmatprep.mubr.msk.bf16.mxu1 %vm883_vm0, %v2612_v8  ;;  %v2696_v6 = vld [vmem:[%s3609_s0 + $0x404] ss:$8 sps:$4 sm:$0xff]  }
  0x99   :  { %1252 = vmatmul.mubr.bf16.gmra.mrb[56].mxu0 %v2611_v9  ;;  %1540 = vmatmul.mubr.bf16.gmra.mrb[56].mxu1 %v2614_v10 }
  0x9a   :  { %2256 = vmatprep.mubr.msk.bf16.mxu0 %vm883_vm0, %v2615_v11  ;;  %2292 = vmatprep.mubr.msk.bf16.mxu1 %vm883_vm0, %v2618_v12 }
  0xa1   :  { %1260 = vmatmul.mubr.bf16.gmra.mrb[60].mxu0 %v2617_v13  ;;  %1548 = vmatmul.mubr.bf16.gmra.mrb[60].mxu1 %v2620_v14  ;;  %v2695_v13 = vld [vmem:[%s3609_s0 + $0x1c0] ss:$8 sps:$4 sm:$0xff]  }
  0xa2   :  { %2257 = vmatprep.mubr.msk.bf16.mxu0 %vm883_vm0, %v2621_v15  ;;  %2293 = vmatprep.mubr.msk.bf16.mxu1 %vm883_vm0, %v2624_v16  ;;  %v2698_v14 = vld [vmem:[%s3609_s0 + $0x400] ss:$8 sps:$4 sm:$0xff]  }
  0xa9   :  { %1268 = vmatmul.mubr.bf16.gmra.mrb[64].mxu0 %v2623_v17  ;;  %1556 = vmatmul.mubr.bf16.gmra.mrb[64].mxu1 %v2626_v18  ;;  %v2699_v17 = vld [vmem:[%s3609_s0 + $0x1d4] ss:$8 sps:$4 sm:$0xff]  }
  0xaa   :  { %2258 = vmatprep.mubr.msk.bf16.mxu0 %vm883_vm0, %v2627_v19  ;;  %2294 = vmatprep.mubr.msk.bf16.mxu1 %vm883_vm0, %v2630_v20  ;;  %v2702_v18 = vld [vmem:[%s3609_s0 + $0x414] ss:$8 sps:$4 sm:$0xff]  }
  0xb1   :  { %1276 = vmatmul.mubr.bf16.gmra.mrb[68].mxu0 %v2629_v21  ;;  %1564 = vmatmul.mubr.bf16.gmra.mrb[68].mxu1 %v2632_v22 }
  0xb2   :  { %2259 = vmatprep.mubr.msk.bf16.mxu0 %vm883_vm0, %v2633_v23  ;;  %2295 = vmatprep.mubr.msk.bf16.mxu1 %vm883_vm0, %v2636_v24 }
  0xb9   :  { %1284 = vmatmul.mubr.bf16.gmra.mrb[72].mxu0 %v2635_v25  ;;  %1572 = vmatmul.mubr.bf16.gmra.mrb[72].mxu1 %v2638_v26  ;;  %v2701_v25 = vld [vmem:[%s3609_s0 + $0x1d0] ss:$8 sps:$4 sm:$0xff]  }
  0xba   :  { %2260 = vmatprep.mubr.msk.bf16.mxu0 %vm883_vm0, %v2639_v27  ;;  %2296 = vmatprep.mubr.msk.bf16.mxu1 %vm883_vm0, %v2642_v28  ;;  %v2704_v26 = vld [vmem:[%s3609_s0 + $0x410] ss:$8 sps:$4 sm:$0xff]  }
  0xc1   :  { %1292 = vmatmul.mubr.bf16.gmra.mrb[76].mxu0 %v2641_v29  ;;  %1580 = vmatmul.mubr.bf16.gmra.mrb[76].mxu1 %v2644_v30  ;;  %v2705_v29 = vld [vmem:[%s3609_s0 + $0x1e4] ss:$8 sps:$4 sm:$0xff]  }
  0xc2   :  { %2261 = vmatprep.mubr.msk.bf16.mxu0 %vm883_vm0, %v2645_v31  ;;  %2297 = vmatprep.mubr.msk.bf16.mxu1 %vm883_vm0, %v2648_v32  ;;  %v2708_v30 = vld [vmem:[%s3609_s0 + $0x424] ss:$8 sps:$4 sm:$0xff]  }
  0xc9   :  { %1300 = vmatmul.mubr.bf16.gmra.mrb[80].mxu0 %v2647_v33  ;;  %1588 = vmatmul.mubr.bf16.gmra.mrb[80].mxu1 %v2650_v34 }
  0xca   :  { %2262 = vmatprep.mubr.msk.bf16.mxu0 %vm883_vm0, %v2651_v35  ;;  %2298 = vmatprep.mubr.msk.bf16.mxu1 %vm883_vm0, %v2654_v36 }
  0xd1   :  { %1308 = vmatmul.mubr.bf16.gmra.mrb[84].mxu0 %v2653_v37  ;;  %1596 = vmatmul.mubr.bf16.gmra.mrb[84].mxu1 %v2656_v38  ;;  %v2707_v37 = vld [vmem:[%s3609_s0 + $0x1e0] ss:$8 sps:$4 sm:$0xff]  }
  0xd2   :  { %2263 = vmatprep.mubr.msk.bf16.mxu0 %vm883_vm0, %v2657_v39  ;;  %2299 = vmatprep.mubr.msk.bf16.mxu1 %vm883_vm0, %v2660_v40  ;;  %v2710_v38 = vld [vmem:[%s3609_s0 + $0x420] ss:$8 sps:$4 sm:$0xff]  }
  0xd9   :  { %1316 = vmatmul.mubr.bf16.gmra.mrb[88].mxu0 %v2659_v41  ;;  %1604 = vmatmul.mubr.bf16.gmra.mrb[88].mxu1 %v2662_v42  ;;  %v2711_v41 = vld [vmem:[%s3609_s0 + $0x1f4] ss:$8 sps:$4 sm:$0xff]  }
  0xda   :  { %2264 = vmatprep.mubr.msk.bf16.mxu0 %vm883_vm0, %v2663_v43  ;;  %2300 = vmatprep.mubr.msk.bf16.mxu1 %vm883_vm0, %v2666_v44  ;;  %v2714_v42 = vld [vmem:[%s3609_s0 + $0x434] ss:$8 sps:$4 sm:$0xff]  }
  0xe1   :  { %1324 = vmatmul.mubr.bf16.gmra.mrb[92].mxu0 %v2665_v45  ;;  %1612 = vmatmul.mubr.bf16.gmra.mrb[92].mxu1 %v2668_v46 }
  0xe2   :  { %2265 = vmatprep.mubr.msk.bf16.mxu0 %vm883_vm0, %v2669_v47  ;;  %2301 = vmatprep.mubr.msk.bf16.mxu1 %vm883_vm0, %v2672_v48 }
  0xe9   :  { %1332 = vmatmul.mubr.bf16.gmra.mrb[96].mxu0 %v2671_v49  ;;  %1620 = vmatmul.mubr.bf16.gmra.mrb[96].mxu1 %v2674_v50  ;;  %v2713_v49 = vld [vmem:[%s3609_s0 + $0x1f0] ss:$8 sps:$4 sm:$0xff]  }
  0xea   :  { %2266 = vmatprep.mubr.msk.bf16.mxu0 %vm883_vm0, %v2675_v51  ;;  %2302 = vmatprep.mubr.msk.bf16.mxu1 %vm883_vm0, %v2678_v52  ;;  %v2716_v50 = vld [vmem:[%s3609_s0 + $0x430] ss:$8 sps:$4 sm:$0xff]  }
  0xf1   :  { %1340 = vmatmul.mubr.bf16.gmra.mrb[100].mxu0 %v2677_v53  ;;  %1628 = vmatmul.mubr.bf16.gmra.mrb[100].mxu1 %v2680_v54  ;;  %v2717_v53 = vld [vmem:[%s3609_s0 + $0x204] ss:$8 sps:$4 sm:$0xff]  }
  0xf2   :  { %2267 = vmatprep.mubr.msk.bf16.mxu0 %vm883_vm0, %v2681_v55  ;;  %2303 = vmatprep.mubr.msk.bf16.mxu1 %vm883_vm0, %v2684_v56  ;;  %v2720_v54 = vld [vmem:[%s3609_s0 + $0x444] ss:$8 sps:$4 sm:$0xff]  }
  0xf9   :  { %1348 = vmatmul.mubr.bf16.gmra.mrb[104].mxu0 %v2683_v57  ;;  %1636 = vmatmul.mubr.bf16.gmra.mrb[104].mxu1 %v2686_v58 }
  0xfa   :  { %2268 = vmatprep.mubr.msk.bf16.mxu0 %vm883_vm0, %v2687_v59  ;;  %2304 = vmatprep.mubr.msk.bf16.mxu1 %vm883_vm0, %v2690_v60 }
  0xfc   :  { %v3179_v61 = vpop.f32.mrb[0].mxu0  ;;  %v3181_v62 = vpop.f32.mrb[0].mxu1 }
  0xfd   :  { %v1143_v63 = vpop.f32.mrb[1].mxu0  ;;  %v1431_v0 = vpop.f32.mrb[1].mxu1 }
  0xfe   :  { %v3189_v3 = vpop.f32.mrb[2].mxu0  ;;  %v3191_v4 = vpop.f32.mrb[2].mxu1  ;;  %v2719_v63 = vld [vmem:[%s3609_s0 + $0x200] ss:$8 sps:$4 sm:$0xff]  }
  0xff   :  { %v1146_v7 = vpop.f32.mrb[3].mxu0  ;;  %v1434_v8 = vpop.f32.mrb[3].mxu1  ;;  %v2722_v0 = vld [vmem:[%s3609_s0 + $0x440] ss:$8 sps:$4 sm:$0xff]  }
 0x101   :  { %1356 = vmatmul.mubr.bf16.gmra.mrb[108].mxu0 %v2689_v1  ;;  %1644 = vmatmul.mubr.bf16.gmra.mrb[108].mxu1 %v2692_v2 }
 0x102   :  { %2269 = vmatprep.mubr.msk.bf16.mxu0 %vm883_vm0, %v2693_v5  ;;  %2305 = vmatprep.mubr.msk.bf16.mxu1 %vm883_vm0, %v2696_v6  ;;  %v2723_v5 = vld [vmem:[%s3609_s0 + $0x214] ss:$8 sps:$4 sm:$0xff]  }
 0x103   :  { %v2726_v6 = vld [vmem:[%s3609_s0 + $0x454] ss:$8 sps:$4 sm:$0xff]  }
 0x104   :  { %v3201_v9 = vpop.f32.mrb[4].mxu0  ;;  %v3203_v10 = vpop.f32.mrb[4].mxu1 }
 0x105   :  { %v1151_v11 = vpop.f32.mrb[5].mxu0  ;;  %v1439_v12 = vpop.f32.mrb[5].mxu1 }
 0x106   :  { %v3211_v15 = vpop.f32.mrb[6].mxu0  ;;  %v3213_v16 = vpop.f32.mrb[6].mxu1 }
 0x107   :  { %v1154_v19 = vpop.f32.mrb[7].mxu0  ;;  %v1442_v20 = vpop.f32.mrb[7].mxu1 }
 0x109   :  { %1364 = vmatmul.mubr.bf16.gmra.mrb[112].mxu0 %v2695_v13  ;;  %1652 = vmatmul.mubr.bf16.gmra.mrb[112].mxu1 %v2698_v14 }
 0x10a   :  { %2270 = vmatprep.mubr.msk.bf16.mxu0 %vm883_vm0, %v2699_v17  ;;  %2306 = vmatprep.mubr.msk.bf16.mxu1 %vm883_vm0, %v2702_v18  ;;  %v2725_v17 = vld [vmem:[%s3609_s0 + $0x210] ss:$8 sps:$4 sm:$0xff]  }
 0x10b   :  { %v2728_v18 = vld [vmem:[%s3609_s0 + $0x450] ss:$8 sps:$4 sm:$0xff]  }
 0x10c   :  { %v3223_v21 = vpop.f32.mrb[8].mxu0  ;;  %v3225_v22 = vpop.f32.mrb[8].mxu1 }
 0x10d   :  { %v1159_v23 = vpop.f32.mrb[9].mxu0  ;;  %v1447_v24 = vpop.f32.mrb[9].mxu1 }
 0x10e   :  { %v3233_v27 = vpop.f32.mrb[10].mxu0  ;;  %v3235_v28 = vpop.f32.mrb[10].mxu1  ;;  %v2729_v23 = vld [vmem:[%s3609_s0 + $0x224] ss:$8 sps:$4 sm:$0xff]  }
 0x10f   :  { %v1162_v31 = vpop.f32.mrb[11].mxu0  ;;  %v1450_v32 = vpop.f32.mrb[11].mxu1  ;;  %v2732_v24 = vld [vmem:[%s3609_s0 + $0x464] ss:$8 sps:$4 sm:$0xff]  }
 0x111   :  { %1372 = vmatmul.mubr.bf16.gmra.mrb[116].mxu0 %v2701_v25  ;;  %1660 = vmatmul.mubr.bf16.gmra.mrb[116].mxu1 %v2704_v26 }
 0x112   :  { %2271 = vmatprep.mubr.msk.bf16.mxu0 %vm883_vm0, %v2705_v29  ;;  %2307 = vmatprep.mubr.msk.bf16.mxu1 %vm883_vm0, %v2708_v30 }
 0x114   :  { %v3245_v33 = vpop.f32.mrb[12].mxu0  ;;  %v3247_v34 = vpop.f32.mrb[12].mxu1 }
 0x115   :  { %v1167_v35 = vpop.f32.mrb[13].mxu0  ;;  %v1455_v36 = vpop.f32.mrb[13].mxu1 }
 0x116   :  { %v3255_v39 = vpop.f32.mrb[14].mxu0  ;;  %v3257_v40 = vpop.f32.mrb[14].mxu1  ;;  %v2731_v35 = vld [vmem:[%s3609_s0 + $0x220] ss:$8 sps:$4 sm:$0xff]  }
 0x117   :  { %v1170_v43 = vpop.f32.mrb[15].mxu0  ;;  %v1458_v44 = vpop.f32.mrb[15].mxu1  ;;  %v2734_v36 = vld [vmem:[%s3609_s0 + $0x460] ss:$8 sps:$4 sm:$0xff]  }
 0x119   :  { %1380 = vmatmul.mubr.bf16.gmra.mrb[120].mxu0 %v2707_v37  ;;  %1668 = vmatmul.mubr.bf16.gmra.mrb[120].mxu1 %v2710_v38 }
 0x11a   :  { %2272 = vmatprep.mubr.msk.bf16.mxu0 %vm883_vm0, %v2711_v41  ;;  %2308 = vmatprep.mubr.msk.bf16.mxu1 %vm883_vm0, %v2714_v42  ;;  %v2735_v41 = vld [vmem:[%s3609_s0 + $0x234] ss:$8 sps:$4 sm:$0xff]  }
 0x11b   :  { %v2738_v42 = vld [vmem:[%s3609_s0 + $0x474] ss:$8 sps:$4 sm:$0xff]  }
 0x11c   :  { %v3267_v45 = vpop.f32.mrb[16].mxu0  ;;  %v3269_v46 = vpop.f32.mrb[16].mxu1 }
 0x11d   :  { %v1175_v47 = vpop.f32.mrb[17].mxu0  ;;  %v1463_v48 = vpop.f32.mrb[17].mxu1 }
 0x11e   :  { %v3277_v51 = vpop.f32.mrb[18].mxu0  ;;  %v3279_v52 = vpop.f32.mrb[18].mxu1 }
 0x11f   :  { %v1178_v55 = vpop.f32.mrb[19].mxu0  ;;  %v1466_v56 = vpop.f32.mrb[19].mxu1 }
 0x121   :  { %1388 = vmatmul.mubr.bf16.gmra.mrb[124].mxu0 %v2713_v49  ;;  %1676 = vmatmul.mubr.bf16.gmra.mrb[124].mxu1 %v2716_v50 }
 0x122   :  { %2273 = vmatprep.mubr.msk.bf16.mxu0 %vm883_vm0, %v2717_v53  ;;  %2309 = vmatprep.mubr.msk.bf16.mxu1 %vm883_vm0, %v2720_v54  ;;  %v2737_v53 = vld [vmem:[%s3609_s0 + $0x230] ss:$8 sps:$4 sm:$0xff]  }
 0x123   :  { %v2740_v54 = vld [vmem:[%s3609_s0 + $0x470] ss:$8 sps:$4 sm:$0xff]  }
 0x124   :  { %v3289_v57 = vpop.f32.mrb[20].mxu0  ;;  %v3291_v58 = vpop.f32.mrb[20].mxu1 }
 0x125   :  { %v1183_v59 = vpop.f32.mrb[21].mxu0  ;;  %v1471_v60 = vpop.f32.mrb[21].mxu1 }
 0x126   :  { %v3299_v1 = vpop.f32.mrb[22].mxu0  ;;  %v3301_v2 = vpop.f32.mrb[22].mxu1 }
 0x127   :  { %v1186_v7 = vpop.f32.mrb[23].mxu0  ;;  %v1474_v8 = vpop.f32.mrb[23].mxu1 }
 0x129   :  { %1396 = vmatmul.mubr.bf16.gmra.mrb[128].mxu0 %v2719_v63  ;;  %1684 = vmatmul.mubr.bf16.gmra.mrb[128].mxu1 %v2722_v0 }
 0x12a   :  { %2274 = vmatprep.mubr.msk.bf16.mxu0 %vm883_vm0, %v2723_v5  ;;  %2310 = vmatprep.mubr.msk.bf16.mxu1 %vm883_vm0, %v2726_v6 }
 0x12c   :  { %v3311_v11 = vpop.f32.mrb[24].mxu0  ;;  %v3313_v12 = vpop.f32.mrb[24].mxu1 }
 0x12d   :  { %v1191_v13 = vpop.f32.mrb[25].mxu0  ;;  %v1479_v14 = vpop.f32.mrb[25].mxu1 }
 0x12e   :  { %v3321_v19 = vpop.f32.mrb[26].mxu0  ;;  %v3323_v20 = vpop.f32.mrb[26].mxu1 }
 0x12f   :  { %v1194_v25 = vpop.f32.mrb[27].mxu0  ;;  %v1482_v26 = vpop.f32.mrb[27].mxu1 }
 0x131   :  { %1404 = vmatmul.mubr.bf16.gmra.mrb[132].mxu0 %v2725_v17  ;;  %1692 = vmatmul.mubr.bf16.gmra.mrb[132].mxu1 %v2728_v18 }
 0x132   :  { %2275 = vmatprep.mubr.msk.bf16.mxu0 %vm883_vm0, %v2729_v23  ;;  %2311 = vmatprep.mubr.msk.bf16.mxu1 %vm883_vm0, %v2732_v24 }
 0x134   :  { %v3333_v29 = vpop.f32.mrb[28].mxu0  ;;  %v3335_v30 = vpop.f32.mrb[28].mxu1 }
 0x135   :  { %v1199_v31 = vpop.f32.mrb[29].mxu0  ;;  %v1487_v32 = vpop.f32.mrb[29].mxu1 }
 0x136   :  { %v3343_v37 = vpop.f32.mrb[30].mxu0  ;;  %v3345_v38 = vpop.f32.mrb[30].mxu1 }
 0x137   :  { %v1202_v43 = vpop.f32.mrb[31].mxu0  ;;  %v1490_v44 = vpop.f32.mrb[31].mxu1 }
 0x139   :  { %1412 = vmatmul.mubr.bf16.gmra.mrb[136].mxu0 %v2731_v35  ;;  %1700 = vmatmul.mubr.bf16.gmra.mrb[136].mxu1 %v2734_v36 }
 0x13a   :  { %2276 = vmatprep.mubr.msk.bf16.mxu0 %vm883_vm0, %v2735_v41  ;;  %2312 = vmatprep.mubr.msk.bf16.mxu1 %vm883_vm0, %v2738_v42 }
 0x13c   :  { %v3355_v47 = vpop.f32.mrb[32].mxu0  ;;  %v3357_v48 = vpop.f32.mrb[32].mxu1 }
 0x13d   :  { %v1207_v49 = vpop.f32.mrb[33].mxu0  ;;  %v1495_v50 = vpop.f32.mrb[33].mxu1 }
 0x13e   :  { %v3365_v55 = vpop.f32.mrb[34].mxu0  ;;  %v3367_v56 = vpop.f32.mrb[34].mxu1 }
 0x13f   :  { %v1210_v59 = vpop.f32.mrb[35].mxu0  ;;  %v1498_v60 = vpop.f32.mrb[35].mxu1 }
 0x141   :  { %1420 = vmatmul.mubr.bf16.gmra.mrb[140].mxu0 %v2737_v53  ;;  %1708 = vmatmul.mubr.bf16.gmra.mrb[140].mxu1 %v2740_v54 }
 0x144   :  { %v3369_v63 = vpop.f32.mrb[36].mxu0  ;;  %v3371_v0 = vpop.f32.mrb[36].mxu1 }
 0x145   :  { %v1215_v5 = vpop.f32.mrb[37].mxu0  ;;  %v1503_v6 = vpop.f32.mrb[37].mxu1 }
 0x146   :  { %v3373_v7 = vpop.f32.mrb[38].mxu0  ;;  %v3375_v8 = vpop.f32.mrb[38].mxu1 }
 0x147   :  { %v1218_v13 = vpop.f32.mrb[39].mxu0  ;;  %v1506_v14 = vpop.f32.mrb[39].mxu1 }
 0x14c   :  { %v3377_v17 = vpop.f32.mrb[40].mxu0  ;;  %v3379_v18 = vpop.f32.mrb[40].mxu1 }
 0x14d   :  { %v1223_v23 = vpop.f32.mrb[41].mxu0  ;;  %v1511_v24 = vpop.f32.mrb[41].mxu1 }
 0x14e   :  { %v3381_v25 = vpop.f32.mrb[42].mxu0  ;;  %v3383_v26 = vpop.f32.mrb[42].mxu1 }
 0x14f   :  { %v1226_v31 = vpop.f32.mrb[43].mxu0  ;;  %v1514_v32 = vpop.f32.mrb[43].mxu1 }
 0x154   :  { %v3385_v35 = vpop.f32.mrb[44].mxu0  ;;  %v3387_v36 = vpop.f32.mrb[44].mxu1 }
 0x155   :  { %v1231_v41 = vpop.f32.mrb[45].mxu0  ;;  %v1519_v42 = vpop.f32.mrb[45].mxu1 }
 0x156   :  { %v3389_v43 = vpop.f32.mrb[46].mxu0  ;;  %v3391_v44 = vpop.f32.mrb[46].mxu1 }
 0x157   :  { %3612 = vst [vmem:[#allocation2_spill] sm:$0xff] %v3391_v44  ;;  %v1234_v49 = vpop.f32.mrb[47].mxu0  ;;  %v1522_v50 = vpop.f32.mrb[47].mxu1 }
 0x15c   :  { %v3393_v53 = vpop.f32.mrb[48].mxu0  ;;  %v3395_v54 = vpop.f32.mrb[48].mxu1 }
 0x15d   :  { %3613 = vst [vmem:[#allocation3_spill] sm:$0xff] %v3393_v53  ;;  %3614 = vst [vmem:[#allocation4_spill] sm:$0xff] %v3395_v54  ;;  %v1239_v59 = vpop.f32.mrb[49].mxu0  ;;  %v1527_v60 = vpop.f32.mrb[49].mxu1 }
 0x15e   :  { %v3397_v5 = vpop.f32.mrb[50].mxu0  ;;  %v3399_v6 = vpop.f32.mrb[50].mxu1 }
 0x15f   :  { %3615 = vst [vmem:[#allocation5_spill] sm:$0xff] %v3397_v5  ;;  %3616 = vst [vmem:[#allocation6_spill] sm:$0xff] %v3399_v6  ;;  %v1242_v13 = vpop.f32.mrb[51].mxu0  ;;  %v1530_v14 = vpop.f32.mrb[51].mxu1 }
 0x164   :  { %v3401_v23 = vpop.f32.mrb[52].mxu0  ;;  %v3403_v24 = vpop.f32.mrb[52].mxu1 }
 0x165   :  { %3617 = vst [vmem:[#allocation7_spill] sm:$0xff] %v3401_v23  ;;  %3618 = vst [vmem:[#allocation8_spill] sm:$0xff] %v3403_v24  ;;  %v1247_v31 = vpop.f32.mrb[53].mxu0  ;;  %v1535_v32 = vpop.f32.mrb[53].mxu1 }
 0x166   :  { %v3405_v41 = vpop.f32.mrb[54].mxu0  ;;  %v3407_v42 = vpop.f32.mrb[54].mxu1 }
 0x167   :  { %3619 = vst [vmem:[#allocation9_spill] sm:$0xff] %v3405_v41  ;;  %3620 = vst [vmem:[#allocation10_spill] sm:$0xff] %v3407_v42  ;;  %v1250_v49 = vpop.f32.mrb[55].mxu0  ;;  %v1538_v50 = vpop.f32.mrb[55].mxu1 }
 0x16c   :  { %v3409_v59 = vpop.f32.mrb[56].mxu0  ;;  %v3411_v60 = vpop.f32.mrb[56].mxu1 }
 0x16d   :  { %3621 = vst [vmem:[#allocation11_spill] sm:$0xff] %v3409_v59  ;;  %3622 = vst [vmem:[#allocation12_spill] sm:$0xff] %v3411_v60  ;;  %v1255_v5 = vpop.f32.mrb[57].mxu0  ;;  %v1543_v6 = vpop.f32.mrb[57].mxu1 }
 0x16e   :  { %v3413_v13 = vpop.f32.mrb[58].mxu0  ;;  %v3415_v14 = vpop.f32.mrb[58].mxu1 }
 0x16f   :  { %3623 = vst [vmem:[#allocation13_spill] sm:$0xff] %v3413_v13  ;;  %3624 = vst [vmem:[#allocation14_spill] sm:$0xff] %v3415_v14  ;;  %v1258_v23 = vpop.f32.mrb[59].mxu0  ;;  %v1546_v24 = vpop.f32.mrb[59].mxu1 }
 0x174   :  { %v3417_v31 = vpop.f32.mrb[60].mxu0  ;;  %v3419_v32 = vpop.f32.mrb[60].mxu1 }
 0x175   :  { %3625 = vst [vmem:[#allocation15_spill] sm:$0xff] %v3417_v31  ;;  %3626 = vst [vmem:[#allocation16_spill] sm:$0xff] %v3419_v32  ;;  %v1263_v41 = vpop.f32.mrb[61].mxu0  ;;  %v1551_v42 = vpop.f32.mrb[61].mxu1 }
 0x176   :  { %v3421_v49 = vpop.f32.mrb[62].mxu0  ;;  %v3423_v50 = vpop.f32.mrb[62].mxu1 }
 0x177   :  { %3627 = vst [vmem:[#allocation17_spill] sm:$0xff] %v3421_v49  ;;  %3628 = vst [vmem:[#allocation18_spill] sm:$0xff] %v3423_v50  ;;  %v1266_v59 = vpop.f32.mrb[63].mxu0  ;;  %v1554_v60 = vpop.f32.mrb[63].mxu1 }
 0x17c   :  { %v3425_v5 = vpop.f32.mrb[64].mxu0  ;;  %v3427_v6 = vpop.f32.mrb[64].mxu1 }
 0x17d   :  { %3629 = vst [vmem:[#allocation19_spill] sm:$0xff] %v3425_v5  ;;  %3630 = vst [vmem:[#allocation20_spill] sm:$0xff] %v3427_v6  ;;  %v1271_v13 = vpop.f32.mrb[65].mxu0  ;;  %v1559_v14 = vpop.f32.mrb[65].mxu1 }
 0x17e   :  { %v3429_v23 = vpop.f32.mrb[66].mxu0  ;;  %v3431_v24 = vpop.f32.mrb[66].mxu1 }
 0x17f   :  { %3631 = vst [vmem:[#allocation21_spill] sm:$0xff] %v3429_v23  ;;  %3632 = vst [vmem:[#allocation22_spill] sm:$0xff] %v3431_v24  ;;  %v1274_v31 = vpop.f32.mrb[67].mxu0  ;;  %v1562_v32 = vpop.f32.mrb[67].mxu1 }
 0x184   :  { %v3433_v41 = vpop.f32.mrb[68].mxu0  ;;  %v3435_v42 = vpop.f32.mrb[68].mxu1 }
 0x185   :  { %3633 = vst [vmem:[#allocation23_spill] sm:$0xff] %v3433_v41  ;;  %3634 = vst [vmem:[#allocation24_spill] sm:$0xff] %v3435_v42  ;;  %v1279_v49 = vpop.f32.mrb[69].mxu0  ;;  %v1567_v50 = vpop.f32.mrb[69].mxu1 }
 0x186   :  { %v3437_v59 = vpop.f32.mrb[70].mxu0  ;;  %v3439_v60 = vpop.f32.mrb[70].mxu1 }
 0x187   :  { %3635 = vst [vmem:[#allocation25_spill] sm:$0xff] %v3437_v59  ;;  %3636 = vst [vmem:[#allocation26_spill] sm:$0xff] %v3439_v60  ;;  %v1282_v5 = vpop.f32.mrb[71].mxu0  ;;  %v1570_v6 = vpop.f32.mrb[71].mxu1  ;;  %v3447_v60 = vld [vmem:[%s3610_s2] ss:$0 sm:$0xff] }
 0x18c   :  { %v1285_v13 = vpop.f32.mrb[72].mxu0  ;;  %v1573_v14 = vpop.f32.mrb[72].mxu1 }
 0x18d   :  { %v1716_v23 = vmax.f32 %v3179_v61, %v1285_v13  ;;  %v1287_v54 = vpop.f32.mrb[73].mxu0  ;;  %v1575_v24 = vpop.f32.mrb[73].mxu1 }
 0x18e   :  { %v1288_v31 = vpop.f32.mrb[74].mxu0  ;;  %v1576_v32 = vpop.f32.mrb[74].mxu1 }
 0x18f   :  { %v1717_v41 = vmax.f32 %v1716_v23, %v3181_v62  ;;  %v1719_v42 = vmax.f32 %v3189_v3, %v1288_v31  ;;  %v1290_v49 = vpop.f32.mrb[75].mxu0  ;;  %v1578_v50 = vpop.f32.mrb[75].mxu1 }
 0x191   :  { %v1718_v5 = vmax.f32 %v1717_v41, %v1573_v14  ;;  %v1720_v6 = vmax.f32 %v1719_v42, %v3191_v4 }
 0x193   :  { %v1831_v61 = vadd.f32 %v3447_v60, %v1718_v5  ;;  %v1721_v54 = vmax.f32 %v1720_v6, %v1576_v32 }
 0x194   :  { %v1293_v24 = vpop.f32.mrb[76].mxu0  ;;  %v1581_v13 = vpop.f32.mrb[76].mxu1 }
 0x195   :  { %v1832_v59 = vadd.f32 %v3447_v60, %v1721_v54  ;;  %v1722_v62 = vmax.f32 %v3201_v9, %v1293_v24  ;;  %v1295_v3 = vpop.f32.mrb[77].mxu0  ;;  %v1583_v23 = vpop.f32.mrb[77].mxu1  ;;  %v1867_v50 = vmax.f32 %v1831_v61, 0.0 }
 0x196   :  { %v1296_v31 = vpop.f32.mrb[78].mxu0  ;;  %v1584_v49 = vpop.f32.mrb[78].mxu1 }
 0x197   :  { %v1868_v53 = vmax.f32 %v1832_v59, 0.0  ;;  %v1723_v44 = vmax.f32 %v1722_v62, %v3203_v10  ;;  %v1725_v41 = vmax.f32 %v3211_v15, %v1296_v31  ;;  %v1298_v4 = vpop.f32.mrb[79].mxu0  ;;  %v1586_v42 = vpop.f32.mrb[79].mxu1 }
 0x199   :  { %v2389_v14 = vpack.c.bf16 %v1868_v53, %v1867_v50  ;;  %v1724_v32 = vmax.f32 %v1723_v44, %v1581_v13  ;;  %v1726_v5 = vmax.f32 %v1725_v41, %v3213_v16 }
 0x19b   :  { %2390 = vst [vmem:[%s3611_s3] sm:$0xff] %v2389_v14   ;;  %v1833_v9 = vadd.f32 %v3447_v60, %v1724_v32  ;;  %v1727_v6 = vmax.f32 %v1726_v5, %v1584_v49 }
 0x19c   :  { %v1301_v54 = vpop.f32.mrb[80].mxu0  ;;  %v1589_v61 = vpop.f32.mrb[80].mxu1 }
 0x19d   :  { %v1834_v59 = vadd.f32 %v3447_v60, %v1727_v6  ;;  %v1728_v10 = vmax.f32 %v3223_v21, %v1301_v54  ;;  %v1303_v15 = vpop.f32.mrb[81].mxu0  ;;  %v1591_v24 = vpop.f32.mrb[81].mxu1  ;;  %v1869_v44 = vmax.f32 %v1833_v9, 0.0 }
 0x19e   :  { %v1304_v62 = vpop.f32.mrb[82].mxu0  ;;  %v1592_v53 = vpop.f32.mrb[82].mxu1 }
 0x19f   :  { %v1870_v13 = vmax.f32 %v1834_v59, 0.0  ;;  %v1729_v16 = vmax.f32 %v1728_v10, %v3225_v22  ;;  %v1731_v3 = vmax.f32 %v3233_v27, %v1304_v62  ;;  %v1306_v23 = vpop.f32.mrb[83].mxu0  ;;  %v1594_v31 = vpop.f32.mrb[83].mxu1 }
 0x1a1   :  { %v2394_v50 = vpack.c.bf16 %v1870_v13, %v1869_v44  ;;  %v1730_v49 = vmax.f32 %v1729_v16, %v1589_v61  ;;  %v1732_v41 = vmax.f32 %v1731_v3, %v3235_v28 }
 0x1a3   :  { %2476 = vst [vmem:[%s3611_s3 + $0x8] sm:$0xff] %v2394_v50   ;;  %v1835_v21 = vadd.f32 %v3447_v60, %v1730_v49  ;;  %v1733_v4 = vmax.f32 %v1732_v41, %v1592_v53 }
 0x1a4   :  { %v1309_v42 = vpop.f32.mrb[84].mxu0  ;;  %v1597_v14 = vpop.f32.mrb[84].mxu1 }
 0x1a5   :  { %v1836_v32 = vadd.f32 %v3447_v60, %v1733_v4  ;;  %v1734_v22 = vmax.f32 %v3245_v33, %v1309_v42  ;;  %v1311_v27 = vpop.f32.mrb[85].mxu0  ;;  %v1599_v5 = vpop.f32.mrb[85].mxu1  ;;  %v1871_v54 = vmax.f32 %v1835_v21, 0.0 }
 0x1a6   :  { %v1312_v9 = vpop.f32.mrb[86].mxu0  ;;  %v1600_v6 = vpop.f32.mrb[86].mxu1 }
 0x1a7   :  { %v1872_v61 = vmax.f32 %v1836_v32, 0.0  ;;  %v1735_v28 = vmax.f32 %v1734_v22, %v3247_v34  ;;  %v1737_v59 = vmax.f32 %v3255_v39, %v1312_v9  ;;  %v1314_v10 = vpop.f32.mrb[87].mxu0  ;;  %v1602_v15 = vpop.f32.mrb[87].mxu1 }
 0x1a9   :  { %v2399_v24 = vpack.c.bf16 %v1872_v61, %v1871_v54  ;;  %v1736_v62 = vmax.f32 %v1735_v28, %v1597_v14  ;;  %v1738_v53 = vmax.f32 %v1737_v59, %v3257_v40 }
 0x1ab   :  { %2477 = vst [vmem:[%s3611_s3 + $0x10] sm:$0xff] %v2399_v24   ;;  %v1837_v33 = vadd.f32 %v3447_v60, %v1736_v62  ;;  %v1739_v44 = vmax.f32 %v1738_v53, %v1600_v6 }
 0x1ac   :  { %v1317_v13 = vpop.f32.mrb[88].mxu0  ;;  %v1605_v16 = vpop.f32.mrb[88].mxu1 }
 0x1ad   :  { %v1838_v3 = vadd.f32 %v3447_v60, %v1739_v44  ;;  %v1740_v34 = vmax.f32 %v3267_v45, %v1317_v13  ;;  %v1319_v39 = vpop.f32.mrb[89].mxu0  ;;  %v1607_v23 = vpop.f32.mrb[89].mxu1  ;;  %v1873_v49 = vmax.f32 %v1837_v33, 0.0 }
 0x1ae   :  { %v1320_v31 = vpop.f32.mrb[90].mxu0  ;;  %v1608_v50 = vpop.f32.mrb[90].mxu1 }
 0x1af   :  { %v1874_v41 = vmax.f32 %v1838_v3, 0.0  ;;  %v1741_v40 = vmax.f32 %v1740_v34, %v3269_v46  ;;  %v1743_v21 = vmax.f32 %v3277_v51, %v1320_v31  ;;  %v1322_v4 = vpop.f32.mrb[91].mxu0  ;;  %v1610_v42 = vpop.f32.mrb[91].mxu1 }
 0x1b1   :  { %v2404_v14 = vpack.c.bf16 %v1874_v41, %v1873_v49  ;;  %v1742_v32 = vmax.f32 %v1741_v40, %v1605_v16  ;;  %v1744_v22 = vmax.f32 %v1743_v21, %v3279_v52 }
 0x1b3   :  { %2478 = vst [vmem:[%s3611_s3 + $0x18] sm:$0xff] %v2404_v14   ;;  %v1839_v45 = vadd.f32 %v3447_v60, %v1742_v32  ;;  %v1745_v27 = vmax.f32 %v1744_v22, %v1608_v50 }
 0x1b4   :  { %v1325_v5 = vpop.f32.mrb[92].mxu0  ;;  %v1613_v9 = vpop.f32.mrb[92].mxu1 }
 0x1b5   :  { %v1840_v6 = vadd.f32 %v3447_v60, %v1745_v27  ;;  %v1746_v46 = vmax.f32 %v3289_v57, %v1325_v5  ;;  %v1327_v51 = vpop.f32.mrb[93].mxu0  ;;  %v1615_v54 = vpop.f32.mrb[93].mxu1  ;;  %v1875_v59 = vmax.f32 %v1839_v45, 0.0 }
 0x1b6   :  { %v1328_v61 = vpop.f32.mrb[94].mxu0  ;;  %v1616_v28 = vpop.f32.mrb[94].mxu1 }
 0x1b7   :  { %v1876_v10 = vmax.f32 %v1840_v6, 0.0  ;;  %v1747_v52 = vmax.f32 %v1746_v46, %v3291_v58  ;;  %v1749_v15 = vmax.f32 %v3299_v1, %v1328_v61  ;;  %v1330_v24 = vpop.f32.mrb[95].mxu0  ;;  %v1618_v62 = vpop.f32.mrb[95].mxu1 }
 0x1b9   :  { %v2409_v53 = vpack.c.bf16 %v1876_v10, %v1875_v59  ;;  %v1748_v33 = vmax.f32 %v1747_v52, %v1613_v9  ;;  %v1750_v44 = vmax.f32 %v1749_v15, %v3301_v2 }
 0x1bb   :  { %2479 = vst [vmem:[%s3611_s3 + $0x20] sm:$0xff] %v2409_v53   ;;  %v1841_v57 = vadd.f32 %v3447_v60, %v1748_v33  ;;  %v1751_v13 = vmax.f32 %v1750_v44, %v1616_v28 }
 0x1bc   :  { %v1333_v16 = vpop.f32.mrb[96].mxu0  ;;  %v1621_v3 = vpop.f32.mrb[96].mxu1 }
 0x1bd   :  { %v1842_v34 = vadd.f32 %v3447_v60, %v1751_v13  ;;  %v1752_v58 = vmax.f32 %v3311_v11, %v1333_v16  ;;  %v1335_v1 = vpop.f32.mrb[97].mxu0  ;;  %v1623_v39 = vpop.f32.mrb[97].mxu1  ;;  %v1877_v50 = vmax.f32 %v1841_v57, 0.0 }
 0x1be   :  { %v1336_v23 = vpop.f32.mrb[98].mxu0  ;;  %v1624_v31 = vpop.f32.mrb[98].mxu1 }
 0x1bf   :  { %v1878_v49 = vmax.f32 %v1842_v34, 0.0  ;;  %v1753_v2 = vmax.f32 %v1752_v58, %v3313_v12  ;;  %v1755_v41 = vmax.f32 %v3321_v19, %v1336_v23  ;;  %v1338_v40 = vpop.f32.mrb[99].mxu0  ;;  %v1626_v21 = vpop.f32.mrb[99].mxu1 }
 0x1c1   :  { %v2414_v4 = vpack.c.bf16 %v1878_v49, %v1877_v50  ;;  %v1754_v42 = vmax.f32 %v1753_v2, %v1621_v3  ;;  %v1756_v14 = vmax.f32 %v1755_v41, %v3323_v20 }
 0x1c3   :  { %2480 = vst [vmem:[%s3611_s3 + $0x28] sm:$0xff] %v2414_v4   ;;  %v1843_v11 = vadd.f32 %v3447_v60, %v1754_v42  ;;  %v1757_v32 = vmax.f32 %v1756_v14, %v1624_v31 }
 0x1c4   :  { %v1341_v22 = vpop.f32.mrb[100].mxu0  ;;  %v1629_v45 = vpop.f32.mrb[100].mxu1 }
 0x1c5   :  { %v1844_v27 = vadd.f32 %v3447_v60, %v1757_v32  ;;  %v1758_v12 = vmax.f32 %v3333_v29, %v1341_v22  ;;  %v1343_v19 = vpop.f32.mrb[101].mxu0  ;;  %v1631_v5 = vpop.f32.mrb[101].mxu1  ;;  %v1879_v46 = vmax.f32 %v1843_v11, 0.0 }
 0x1c6   :  { %v1344_v9 = vpop.f32.mrb[102].mxu0  ;;  %v1632_v6 = vpop.f32.mrb[102].mxu1 }
 0x1c7   :  { %v1880_v51 = vmax.f32 %v1844_v27, 0.0  ;;  %v1759_v20 = vmax.f32 %v1758_v12, %v3335_v30  ;;  %v1761_v54 = vmax.f32 %v3343_v37, %v1344_v9  ;;  %v1346_v61 = vpop.f32.mrb[103].mxu0  ;;  %v1634_v28 = vpop.f32.mrb[103].mxu1 }
 0x1c9   :  { %v2419_v59 = vpack.c.bf16 %v1880_v51, %v1879_v46  ;;  %v1760_v10 = vmax.f32 %v1759_v20, %v1629_v45  ;;  %v1762_v52 = vmax.f32 %v1761_v54, %v3345_v38 }
 0x1cb   :  { %2481 = vst [vmem:[%s3611_s3 + $0x30] sm:$0xff] %v2419_v59   ;;  %v1845_v29 = vadd.f32 %v3447_v60, %v1760_v10  ;;  %v1763_v15 = vmax.f32 %v1762_v52, %v1632_v6 }
 0x1cc   :  { %v1349_v24 = vpop.f32.mrb[104].mxu0  ;;  %v1637_v62 = vpop.f32.mrb[104].mxu1 }
 0x1cd   :  { %v1846_v53 = vadd.f32 %v3447_v60, %v1763_v15  ;;  %v1764_v30 = vmax.f32 %v3355_v47, %v1349_v24  ;;  %v1351_v37 = vpop.f32.mrb[105].mxu0  ;;  %v1639_v33 = vpop.f32.mrb[105].mxu1  ;;  %v1881_v13 = vmax.f32 %v1845_v29, 0.0 }
 0x1ce   :  { %v1352_v44 = vpop.f32.mrb[106].mxu0  ;;  %v1640_v57 = vpop.f32.mrb[106].mxu1 }
 0x1cf   :  { %v1882_v16 = vmax.f32 %v1846_v53, 0.0  ;;  %v1765_v38 = vmax.f32 %v1764_v30, %v3357_v48  ;;  %v1767_v3 = vmax.f32 %v3365_v55, %v1352_v44  ;;  %v1354_v34 = vpop.f32.mrb[107].mxu0  ;;  %v1642_v58 = vpop.f32.mrb[107].mxu1 }
 0x1d0   :  { %v3637_v58 = vld [vmem:[#allocation2_spill] sm:$0xff] }
 0x1d1   :  { %v2424_v1 = vpack.c.bf16 %v1882_v16, %v1881_v13  ;;  %v1766_v39 = vmax.f32 %v1765_v38, %v1637_v62  ;;  %v1768_v23 = vmax.f32 %v1767_v3, %v3367_v56 }
 0x1d3   :  { %2482 = vst [vmem:[%s3611_s3 + $0x38] sm:$0xff] %v2424_v1   ;;  %v1847_v47 = vadd.f32 %v3447_v60, %v1766_v39  ;;  %v1769_v31 = vmax.f32 %v1768_v23, %v1640_v57 }
 0x1d4   :  { %v1357_v50 = vpop.f32.mrb[108].mxu0  ;;  %v1645_v49 = vpop.f32.mrb[108].mxu1 }
 0x1d5   :  { %v1848_v2 = vadd.f32 %v3447_v60, %v1769_v31  ;;  %v1770_v48 = vmax.f32 %v3369_v63, %v1357_v50  ;;  %v1359_v55 = vpop.f32.mrb[109].mxu0  ;;  %v1647_v41 = vpop.f32.mrb[109].mxu1  ;;  %v1883_v4 = vmax.f32 %v1847_v47, 0.0 }
 0x1d6   :  { %v1360_v40 = vpop.f32.mrb[110].mxu0  ;;  %v1648_v21 = vpop.f32.mrb[110].mxu1 }
 0x1d7   :  { %v1884_v42 = vmax.f32 %v1848_v2, 0.0  ;;  %v1771_v56 = vmax.f32 %v1770_v48, %v3371_v0  ;;  %v1773_v14 = vmax.f32 %v3373_v7, %v1360_v40  ;;  %v1362_v11 = vpop.f32.mrb[111].mxu0  ;;  %v1650_v32 = vpop.f32.mrb[111].mxu1  ;;  %v3639_v40 = vld [vmem:[#allocation4_spill] sm:$0xff] }
 0x1d9   :  { %v2429_v22 = vpack.c.bf16 %v1884_v42, %v1883_v4  ;;  %v1772_v45 = vmax.f32 %v1771_v56, %v1645_v49  ;;  %v1774_v27 = vmax.f32 %v1773_v14, %v3375_v8  ;;  %v3640_v4 = vld [vmem:[#allocation5_spill] sm:$0xff] }
 0x1db   :  { %2483 = vst [vmem:[%s3611_s3 + $0x40] sm:$0xff] %v2429_v22   ;;  %v1849_v63 = vadd.f32 %v3447_v60, %v1772_v45  ;;  %v1775_v12 = vmax.f32 %v1774_v27, %v1648_v21  ;;  %v3641_v22 = vld [vmem:[#allocation6_spill] sm:$0xff] }
 0x1dc   :  { %v1365_v19 = vpop.f32.mrb[112].mxu0  ;;  %v1653_v5 = vpop.f32.mrb[112].mxu1 }
 0x1dd   :  { %v1850_v9 = vadd.f32 %v3447_v60, %v1775_v12  ;;  %v1776_v0 = vmax.f32 %v3377_v17, %v1365_v19  ;;  %v1367_v7 = vpop.f32.mrb[113].mxu0  ;;  %v1655_v6 = vpop.f32.mrb[113].mxu1  ;;  %v1885_v20 = vmax.f32 %v1849_v63, 0.0 }
 0x1de   :  { %v1368_v46 = vpop.f32.mrb[114].mxu0  ;;  %v1656_v51 = vpop.f32.mrb[114].mxu1 }
 0x1df   :  { %v1886_v54 = vmax.f32 %v1850_v9, 0.0  ;;  %v1777_v8 = vmax.f32 %v1776_v0, %v3379_v18  ;;  %v1779_v61 = vmax.f32 %v3381_v25, %v1368_v46  ;;  %v1370_v28 = vpop.f32.mrb[115].mxu0  ;;  %v1658_v59 = vpop.f32.mrb[115].mxu1  ;;  %v3642_v9 = vld [vmem:[#allocation7_spill] sm:$0xff] }
 0x1e0   :  { %v3644_v28 = vld [vmem:[#allocation9_spill] sm:$0xff] }
 0x1e1   :  { %v2434_v10 = vpack.c.bf16 %v1886_v54, %v1885_v20  ;;  %v1778_v52 = vmax.f32 %v1777_v8, %v1653_v5  ;;  %v1780_v29 = vmax.f32 %v1779_v61, %v3383_v26  ;;  %v3643_v8 = vld [vmem:[#allocation8_spill] sm:$0xff] }
 0x1e3   :  { %2484 = vst [vmem:[%s3611_s3 + $0x48] sm:$0xff] %v2434_v10   ;;  %v1851_v17 = vadd.f32 %v3447_v60, %v1778_v52  ;;  %v1781_v15 = vmax.f32 %v1780_v29, %v1656_v51 }
 0x1e4   :  { %v1373_v24 = vpop.f32.mrb[116].mxu0  ;;  %v1661_v62 = vpop.f32.mrb[116].mxu1 }
 0x1e5   :  { %v1852_v53 = vadd.f32 %v3447_v60, %v1781_v15  ;;  %v1782_v18 = vmax.f32 %v3385_v35, %v1373_v24  ;;  %v1375_v25 = vpop.f32.mrb[117].mxu0  ;;  %v1663_v30 = vpop.f32.mrb[117].mxu1  ;;  %v1887_v44 = vmax.f32 %v1851_v17, 0.0  ;;  %v3645_v15 = vld [vmem:[#allocation10_spill] sm:$0xff] }
 0x1e6   :  { %v1376_v37 = vpop.f32.mrb[118].mxu0  ;;  %v1664_v33 = vpop.f32.mrb[118].mxu1 }
 0x1e7   :  { %v1888_v57 = vmax.f32 %v1852_v53, 0.0  ;;  %v1783_v26 = vmax.f32 %v1782_v18, %v3387_v36  ;;  %v1785_v13 = vmax.f32 %v3389_v43, %v1376_v37  ;;  %v1378_v16 = vpop.f32.mrb[119].mxu0  ;;  %v1666_v38 = vpop.f32.mrb[119].mxu1  ;;  %v3638_v36 = vld [vmem:[#allocation3_spill] sm:$0xff] }
 0x1e8   :  { %v3646_v37 = vld [vmem:[#allocation11_spill] sm:$0xff] }
 0x1e9   :  { %v2439_v3 = vpack.c.bf16 %v1888_v57, %v1887_v44  ;;  %v1784_v34 = vmax.f32 %v1783_v26, %v1661_v62  ;;  %v1786_v1 = vmax.f32 %v1785_v13, %v3637_v58  ;;  %v3648_v58 = vld [vmem:[#allocation13_spill] sm:$0xff] }
 0x1eb   :  { %2485 = vst [vmem:[%s3611_s3 + $0x50] sm:$0xff] %v2439_v3   ;;  %v1853_v35 = vadd.f32 %v3447_v60, %v1784_v34  ;;  %v1787_v39 = vmax.f32 %v1786_v1, %v1664_v33  ;;  %v3647_v3 = vld [vmem:[#allocation12_spill] sm:$0xff] }
 0x1ec   :  { %v1381_v23 = vpop.f32.mrb[120].mxu0  ;;  %v1669_v47 = vpop.f32.mrb[120].mxu1 }
 0x1ed   :  { %v1854_v31 = vadd.f32 %v3447_v60, %v1787_v39  ;;  %v1788_v50 = vmax.f32 %v3638_v36, %v1381_v23  ;;  %v1383_v43 = vpop.f32.mrb[121].mxu0  ;;  %v1671_v49 = vpop.f32.mrb[121].mxu1  ;;  %v1889_v55 = vmax.f32 %v1853_v35, 0.0 }
 0x1ee   :  { %v1384_v2 = vpop.f32.mrb[122].mxu0  ;;  %v1672_v48 = vpop.f32.mrb[122].mxu1 }
 0x1ef   :  { %v1890_v41 = vmax.f32 %v1854_v31, 0.0  ;;  %v1789_v21 = vmax.f32 %v1788_v50, %v3639_v40  ;;  %v1791_v42 = vmax.f32 %v3640_v4, %v1384_v2  ;;  %v1386_v56 = vpop.f32.mrb[123].mxu0  ;;  %v1674_v14 = vpop.f32.mrb[123].mxu1  ;;  %v3649_v31 = vld [vmem:[#allocation14_spill] sm:$0xff] }
 0x1f1   :  { %v2444_v11 = vpack.c.bf16 %v1890_v41, %v1889_v55  ;;  %v1790_v32 = vmax.f32 %v1789_v21, %v1669_v47  ;;  %v1792_v45 = vmax.f32 %v1791_v42, %v3641_v22  ;;  %v3650_v55 = vld [vmem:[#allocation15_spill] sm:$0xff]  ;;  %v3652_v22 = vld [vmem:[#allocation17_spill] sm:$0xff] }
 0x1f3   :  { %2486 = vst [vmem:[%s3611_s3 + $0x58] sm:$0xff] %v2444_v11   ;;  %v1855_v27 = vadd.f32 %v3447_v60, %v1790_v32  ;;  %v1793_v63 = vmax.f32 %v1792_v45, %v1672_v48  ;;  %v3651_v11 = vld [vmem:[#allocation16_spill] sm:$0xff] }
 0x1f4   :  { %v1389_v12 = vpop.f32.mrb[124].mxu0  ;;  %v1677_v19 = vpop.f32.mrb[124].mxu1 }
 0x1f5   :  { %v1856_v5 = vadd.f32 %v3447_v60, %v1793_v63  ;;  %v1794_v0 = vmax.f32 %v3642_v9, %v1389_v12  ;;  %v1391_v7 = vpop.f32.mrb[125].mxu0  ;;  %v1679_v6 = vpop.f32.mrb[125].mxu1  ;;  %v1891_v20 = vmax.f32 %v1855_v27, 0.0 }
 0x1f6   :  { %v1392_v46 = vpop.f32.mrb[126].mxu0  ;;  %v1680_v51 = vpop.f32.mrb[126].mxu1 }
 0x1f7   :  { %v1892_v54 = vmax.f32 %v1856_v5, 0.0  ;;  %v1795_v61 = vmax.f32 %v1794_v0, %v3643_v8  ;;  %v1797_v59 = vmax.f32 %v3644_v28, %v1392_v46  ;;  %v1394_v10 = vpop.f32.mrb[127].mxu0  ;;  %v1682_v52 = vpop.f32.mrb[127].mxu1  ;;  %v3653_v5 = vld [vmem:[#allocation18_spill] sm:$0xff] }
 0x1f9   :  { %v2449_v29 = vpack.c.bf16 %v1892_v54, %v1891_v20  ;;  %v1796_v17 = vmax.f32 %v1795_v61, %v1677_v19  ;;  %v1798_v24 = vmax.f32 %v1797_v59, %v3645_v15  ;;  %v3654_v20 = vld [vmem:[#allocation19_spill] sm:$0xff]  ;;  %v3656_v15 = vld [vmem:[#allocation21_spill] sm:$0xff] }
 0x1fb   :  { %2487 = vst [vmem:[%s3611_s3 + $0x60] sm:$0xff] %v2449_v29   ;;  %v1857_v62 = vadd.f32 %v3447_v60, %v1796_v17  ;;  %v1799_v53 = vmax.f32 %v1798_v24, %v1680_v51  ;;  %v3655_v29 = vld [vmem:[#allocation20_spill] sm:$0xff] }
 0x1fc   :  { %v1397_v18 = vpop.f32.mrb[128].mxu0  ;;  %v1685_v25 = vpop.f32.mrb[128].mxu1 }
 0x1fd   :  { %v1858_v30 = vadd.f32 %v3447_v60, %v1799_v53  ;;  %v1800_v33 = vmax.f32 %v3646_v37, %v1397_v18  ;;  %v1399_v44 = vpop.f32.mrb[129].mxu0  ;;  %v1687_v57 = vpop.f32.mrb[129].mxu1  ;;  %v1893_v16 = vmax.f32 %v1857_v62, 0.0 }
 0x1fe   :  { %v1400_v26 = vpop.f32.mrb[130].mxu0  ;;  %v1688_v13 = vpop.f32.mrb[130].mxu1 }
 0x1ff   :  { %v1894_v38 = vmax.f32 %v1858_v30, 0.0  ;;  %v1801_v34 = vmax.f32 %v1800_v33, %v3647_v3  ;;  %v1803_v1 = vmax.f32 %v3648_v58, %v1400_v26  ;;  %v1402_v35 = vpop.f32.mrb[131].mxu0  ;;  %v1690_v39 = vpop.f32.mrb[131].mxu1  ;;  %v3657_v30 = vld [vmem:[#allocation22_spill] sm:$0xff] }
 0x201   :  { %v2454_v23 = vpack.c.bf16 %v1894_v38, %v1893_v16  ;;  %v1802_v47 = vmax.f32 %v1801_v34, %v1685_v25  ;;  %v1804_v36 = vmax.f32 %v1803_v1, %v3649_v31  ;;  %v3658_v16 = vld [vmem:[#allocation23_spill] sm:$0xff]  ;;  %v3660_v31 = vld [vmem:[#allocation25_spill] sm:$0xff] }
 0x203   :  { %2488 = vst [vmem:[%s3611_s3 + $0x68] sm:$0xff] %v2454_v23   ;;  %v1859_v50 = vadd.f32 %v3447_v60, %v1802_v47  ;;  %v1805_v43 = vmax.f32 %v1804_v36, %v1688_v13  ;;  %v3659_v23 = vld [vmem:[#allocation24_spill] sm:$0xff] }
 0x204   :  { %v1405_v49 = vpop.f32.mrb[132].mxu0  ;;  %v1693_v2 = vpop.f32.mrb[132].mxu1 }
 0x205   :  { %v1860_v48 = vadd.f32 %v3447_v60, %v1805_v43  ;;  %v1806_v41 = vmax.f32 %v3650_v55, %v1405_v49  ;;  %v1407_v40 = vpop.f32.mrb[133].mxu0  ;;  %v1695_v21 = vpop.f32.mrb[133].mxu1  ;;  %v1895_v56 = vmax.f32 %v1859_v50, 0.0 }
 0x206   :  { %v1408_v4 = vpop.f32.mrb[134].mxu0  ;;  %v1696_v42 = vpop.f32.mrb[134].mxu1 }
 0x207   :  { %v1896_v14 = vmax.f32 %v1860_v48, 0.0  ;;  %v1807_v32 = vmax.f32 %v1806_v41, %v3651_v11  ;;  %v1809_v45 = vmax.f32 %v3652_v22, %v1408_v4  ;;  %v1410_v27 = vpop.f32.mrb[135].mxu0  ;;  %v1698_v63 = vpop.f32.mrb[135].mxu1  ;;  %v3661_v48 = vld [vmem:[#allocation26_spill] sm:$0xff] }
 0x209   :  { %v2459_v12 = vpack.c.bf16 %v1896_v14, %v1895_v56  ;;  %v1808_v19 = vmax.f32 %v1807_v32, %v1693_v2  ;;  %v1810_v9 = vmax.f32 %v1809_v45, %v3653_v5 }
 0x20b   :  { %2489 = vst [vmem:[%s3611_s3 + $0x70] sm:$0xff] %v2459_v12   ;;  %v1861_v0 = vadd.f32 %v3447_v60, %v1808_v19  ;;  %v1811_v7 = vmax.f32 %v1810_v9, %v1696_v42 }
 0x20c   :  { %v1413_v6 = vpop.f32.mrb[136].mxu0  ;;  %v1701_v46 = vpop.f32.mrb[136].mxu1 }
 0x20d   :  { %v1862_v51 = vadd.f32 %v3447_v60, %v1811_v7  ;;  %v1812_v54 = vmax.f32 %v3654_v20, %v1413_v6  ;;  %v1415_v8 = vpop.f32.mrb[137].mxu0  ;;  %v1703_v61 = vpop.f32.mrb[137].mxu1  ;;  %v1897_v10 = vmax.f32 %v1861_v0, 0.0 }
 0x20e   :  { %v1416_v28 = vpop.f32.mrb[138].mxu0  ;;  %v1704_v59 = vpop.f32.mrb[138].mxu1 }
 0x20f   :  { %v1898_v52 = vmax.f32 %v1862_v51, 0.0  ;;  %v1813_v17 = vmax.f32 %v1812_v54, %v3655_v29  ;;  %v1815_v24 = vmax.f32 %v3656_v15, %v1416_v28  ;;  %v1418_v62 = vpop.f32.mrb[139].mxu0  ;;  %v1706_v53 = vpop.f32.mrb[139].mxu1 }
 0x211   :  { %v2464_v18 = vpack.c.bf16 %v1898_v52, %v1897_v10  ;;  %v1814_v25 = vmax.f32 %v1813_v17, %v1701_v46  ;;  %v1816_v37 = vmax.f32 %v1815_v24, %v3657_v30 }
 0x213   :  { %2490 = vst [vmem:[%s3611_s3 + $0x78] sm:$0xff] %v2464_v18   ;;  %v1863_v33 = vadd.f32 %v3447_v60, %v1814_v25  ;;  %v1817_v44 = vmax.f32 %v1816_v37, %v1704_v59 }
 0x214   :  { %v1421_v57 = vpop.f32.mrb[140].mxu0  ;;  %v1709_v26 = vpop.f32.mrb[140].mxu1 }
 0x215   :  { %v1864_v13 = vadd.f32 %v3447_v60, %v1817_v44  ;;  %v1818_v38 = vmax.f32 %v3658_v16, %v1421_v57  ;;  %v1423_v3 = vpop.f32.mrb[141].mxu0  ;;  %v1711_v34 = vpop.f32.mrb[141].mxu1  ;;  %v1899_v35 = vmax.f32 %v1863_v33, 0.0 }
 0x216   :  { %v1424_v58 = vpop.f32.mrb[142].mxu0  ;;  %v1712_v1 = vpop.f32.mrb[142].mxu1 }
 0x217   :  { %v1900_v39 = vmax.f32 %v1864_v13, 0.0  ;;  %v1819_v47 = vmax.f32 %v1818_v38, %v3659_v23  ;;  %v1821_v36 = vmax.f32 %v3660_v31, %v1424_v58  ;;  %v1426_v50 = vpop.f32.mrb[143].mxu0  ;;  %v1714_v43 = vpop.f32.mrb[143].mxu1 }
 0x219   :  { %v2469_v49 = vpack.c.bf16 %v1900_v39, %v1899_v35  ;;  %v1820_v2 = vmax.f32 %v1819_v47, %v1709_v26  ;;  %v1822_v55 = vmax.f32 %v1821_v36, %v3661_v48 }
 0x21b   :  { %2491 = vst [vmem:[%s3611_s3 + $0x80] sm:$0xff] %v2469_v49   ;;  %v1865_v41 = vadd.f32 %v3447_v60, %v1820_v2  ;;  %v1823_v40 = vmax.f32 %v1822_v55, %v1712_v1 }
 0x21d   :  { %v1866_v21 = vadd.f32 %v3447_v60, %v1823_v40  ;;  %v1901_v4 = vmax.f32 %v1865_v41, 0.0 }
 0x21f   :  { %v1902_v42 = vmax.f32 %v1866_v21, 0.0 }
 0x221   :  { %v2474_v56 = vpack.c.bf16 %v1902_v42, %v1901_v4 }
 0x223   :  { %2492 = vst [vmem:[%s3611_s3 + $0x88] sm:$0xff] %v2474_v56  }

// kernel: net_forward.4
= control target key start
LH: loop header
LB: loop body
LE: loop exit
PB: predicated region body
PF: predicated region fallthrough
CT: control target
= control target key end

     0   :  { %s9169_s1 = inlined_call_operand.vmem [shape: bf16[3200,256], index: 1, kind: input, shape index: {}]   ;;  %s9170_s0 = inlined_call_operand.vmem [shape: bf16[4,32,3200], index: 0, kind: input, shape index: {}]   ;;  %s9171_s2 = inlined_call_operand.vmem [shape: f32[1,256], index: 2, kind: input, shape index: {}]   ;;  %s9172_s3 = inlined_call_operand.vmem [shape: f32[32,256], index: 3, kind: output, shape index: {}]  }
   0x1   :  { %v6181_v0 = vld [vmem:[%s9169_s1 + $0x4] ss:$8 sps:$4 sm:$0xff]   ;;  %v6185_v2 = vld [vmem:[%s9169_s1] ss:$8 sps:$4 sm:$0xff]   ;;  %v6187_v4 = vld [vmem:[%s9169_s1 + $0x14] ss:$8 sps:$4 sm:$0xff]  }
   0x2   :  { %v6183_v1 = vld [vmem:[%s9169_s1 + $0x604] ss:$8 sps:$4 sm:$0xff]   ;;  %3631 = vmatprep.subr.bf16.mxu1 %v6181_v0  ;;  %v6186_v3 = vld [vmem:[%s9169_s1 + $0x600] ss:$8 sps:$4 sm:$0xff]   ;;  %v6189_v5 = vld [vmem:[%s9169_s1 + $0x614] ss:$8 sps:$4 sm:$0xff]  }
   0x3   :  { %4309 = vmatprep.subr.bf16.mxu0 %v6183_v1  ;;  %3632 = vmatpush1.bf16.msra.mxu1 %v6185_v2  ;;  %v6191_v6 = vld [vmem:[%s9169_s1 + $0x10] ss:$8 sps:$4 sm:$0xff]   ;;  %v6193_v8 = vld [vmem:[%s9169_s1 + $0x24] ss:$8 sps:$4 sm:$0xff]   ;;  %v6197_v10 = vld [vmem:[%s9169_s1 + $0x20] ss:$8 sps:$4 sm:$0xff]  }
   0x4   :  { %4310 = vmatpush1.bf16.msra.mxu0 %v6186_v3  ;;  %3633 = vmatprep.subr.bf16.mxu1 %v6187_v4  ;;  %v6192_v7 = vld [vmem:[%s9169_s1 + $0x610] ss:$8 sps:$4 sm:$0xff]   ;;  %v6195_v9 = vld [vmem:[%s9169_s1 + $0x624] ss:$8 sps:$4 sm:$0xff]   ;;  %v6198_v11 = vld [vmem:[%s9169_s1 + $0x620] ss:$8 sps:$4 sm:$0xff]  }
   0x5   :  { %4311 = vmatprep.subr.bf16.mxu0 %v6189_v5  ;;  %v6199_v12 = vld [vmem:[%s9169_s1 + $0x34] ss:$8 sps:$4 sm:$0xff]   ;;  %v6203_v14 = vld [vmem:[%s9169_s1 + $0x30] ss:$8 sps:$4 sm:$0xff]   ;;  %v6205_v16 = vld [vmem:[%s9169_s1 + $0x44] ss:$8 sps:$4 sm:$0xff]  }
   0x6   :  { %v6201_v13 = vld [vmem:[%s9169_s1 + $0x634] ss:$8 sps:$4 sm:$0xff]   ;;  %v6204_v15 = vld [vmem:[%s9169_s1 + $0x630] ss:$8 sps:$4 sm:$0xff]   ;;  %v6207_v17 = vld [vmem:[%s9169_s1 + $0x644] ss:$8 sps:$4 sm:$0xff]  }
   0x7   :  { %3634 = vmatpush1.bf16.msra.mxu1 %v6191_v6  ;;  %v6209_v18 = vld [vmem:[%s9169_s1 + $0x40] ss:$8 sps:$4 sm:$0xff]   ;;  %v6211_v20 = vld [vmem:[%s9169_s1 + $0x54] ss:$8 sps:$4 sm:$0xff]   ;;  %v6215_v22 = vld [vmem:[%s9169_s1 + $0x50] ss:$8 sps:$4 sm:$0xff]  }
   0x8   :  { %4312 = vmatpush1.bf16.msra.mxu0 %v6192_v7  ;;  %3635 = vmatprep.subr.bf16.mxu1 %v6193_v8  ;;  %v6210_v19 = vld [vmem:[%s9169_s1 + $0x640] ss:$8 sps:$4 sm:$0xff]   ;;  %v6213_v21 = vld [vmem:[%s9169_s1 + $0x654] ss:$8 sps:$4 sm:$0xff]   ;;  %v6216_v23 = vld [vmem:[%s9169_s1 + $0x650] ss:$8 sps:$4 sm:$0xff]  }
   0x9   :  { %4313 = vmatprep.subr.bf16.mxu0 %v6195_v9  ;;  %v6217_v24 = vld [vmem:[%s9169_s1 + $0x64] ss:$8 sps:$4 sm:$0xff]   ;;  %v6221_v26 = vld [vmem:[%s9169_s1 + $0x60] ss:$8 sps:$4 sm:$0xff]   ;;  %v6223_v28 = vld [vmem:[%s9169_s1 + $0x74] ss:$8 sps:$4 sm:$0xff]  }
   0xa   :  { %v6219_v25 = vld [vmem:[%s9169_s1 + $0x664] ss:$8 sps:$4 sm:$0xff]   ;;  %v6222_v27 = vld [vmem:[%s9169_s1 + $0x660] ss:$8 sps:$4 sm:$0xff]   ;;  %v6225_v29 = vld [vmem:[%s9169_s1 + $0x674] ss:$8 sps:$4 sm:$0xff]  }
   0xb   :  { %3636 = vmatpush1.bf16.msra.mxu1 %v6197_v10  ;;  %v6227_v30 = vld [vmem:[%s9169_s1 + $0x70] ss:$8 sps:$4 sm:$0xff]   ;;  %v6229_v32 = vld [vmem:[%s9169_s1 + $0x84] ss:$8 sps:$4 sm:$0xff]   ;;  %v6233_v34 = vld [vmem:[%s9169_s1 + $0x80] ss:$8 sps:$4 sm:$0xff]  }
   0xc   :  { %4314 = vmatpush1.bf16.msra.mxu0 %v6198_v11  ;;  %3637 = vmatprep.subr.bf16.mxu1 %v6199_v12  ;;  %v6228_v31 = vld [vmem:[%s9169_s1 + $0x670] ss:$8 sps:$4 sm:$0xff]   ;;  %v6231_v33 = vld [vmem:[%s9169_s1 + $0x684] ss:$8 sps:$4 sm:$0xff]   ;;  %v6234_v35 = vld [vmem:[%s9169_s1 + $0x680] ss:$8 sps:$4 sm:$0xff]  }
   0xd   :  { %4315 = vmatprep.subr.bf16.mxu0 %v6201_v13  ;;  %v6235_v36 = vld [vmem:[%s9169_s1 + $0x94] ss:$8 sps:$4 sm:$0xff]   ;;  %v6239_v38 = vld [vmem:[%s9169_s1 + $0x90] ss:$8 sps:$4 sm:$0xff]   ;;  %v6241_v40 = vld [vmem:[%s9169_s1 + $0xa4] ss:$8 sps:$4 sm:$0xff]  }
   0xe   :  { %v6237_v37 = vld [vmem:[%s9169_s1 + $0x694] ss:$8 sps:$4 sm:$0xff]   ;;  %v6240_v39 = vld [vmem:[%s9169_s1 + $0x690] ss:$8 sps:$4 sm:$0xff]   ;;  %v6243_v41 = vld [vmem:[%s9169_s1 + $0x6a4] ss:$8 sps:$4 sm:$0xff]  }
   0xf   :  { %3638 = vmatpush1.bf16.msra.mxu1 %v6203_v14  ;;  %v6245_v42 = vld [vmem:[%s9169_s1 + $0xa0] ss:$8 sps:$4 sm:$0xff]   ;;  %v6247_v44 = vld [vmem:[%s9169_s1 + $0xb4] ss:$8 sps:$4 sm:$0xff]   ;;  %v6251_v46 = vld [vmem:[%s9169_s1 + $0xb0] ss:$8 sps:$4 sm:$0xff]  }
  0x10   :  { %4316 = vmatpush1.bf16.msra.mxu0 %v6204_v15  ;;  %3639 = vmatprep.subr.bf16.mxu1 %v6205_v16  ;;  %v6246_v43 = vld [vmem:[%s9169_s1 + $0x6a0] ss:$8 sps:$4 sm:$0xff]   ;;  %v6249_v45 = vld [vmem:[%s9169_s1 + $0x6b4] ss:$8 sps:$4 sm:$0xff]   ;;  %v6252_v47 = vld [vmem:[%s9169_s1 + $0x6b0] ss:$8 sps:$4 sm:$0xff]  }
  0x11   :  { %4317 = vmatprep.subr.bf16.mxu0 %v6207_v17  ;;  %v6253_v48 = vld [vmem:[%s9169_s1 + $0xc4] ss:$8 sps:$4 sm:$0xff]   ;;  %v6282_v51 = vld [vmem:[%s9170_s0 + $0x34] ss:$100 sps:$4 sm:$0xff]   ;;  %v6257_v52 = vld [vmem:[%s9169_s1 + $0xc0] ss:$8 sps:$4 sm:$0xff]  }
  0x12   :  { %v6279_v49 = vld [vmem:[%s9170_s0 + $0x4] ss:$100 sps:$4 sm:$0xff]   ;;  %4341 = vmatprep.mubr.bf16.mxu0 %v6282_v51  ;;  %v6259_v54 = vld [vmem:[%s9169_s1 + $0xd4] ss:$8 sps:$4 sm:$0xff]   ;;  %v6263_v56 = vld [vmem:[%s9169_s1 + $0xd0] ss:$8 sps:$4 sm:$0xff]  }
  0x13   :  { %3640 = vmatpush1.bf16.msra.mxu1 %v6209_v18  ;;  %v6255_v50 = vld [vmem:[%s9169_s1 + $0x6c4] ss:$8 sps:$4 sm:$0xff]   ;;  %3663 = vmatprep.mubr.bf16.mxu1 %v6279_v49  ;;  %v6258_v53 = vld [vmem:[%s9169_s1 + $0x6c0] ss:$8 sps:$4 sm:$0xff]   ;;  %v6261_v55 = vld [vmem:[%s9169_s1 + $0x6d4] ss:$8 sps:$4 sm:$0xff]  }
  0x14   :  { %4318 = vmatpush1.bf16.msra.mxu0 %v6210_v19  ;;  %3641 = vmatprep.subr.bf16.mxu1 %v6211_v20  ;;  %v6264_v57 = vld [vmem:[%s9169_s1 + $0x6d0] ss:$8 sps:$4 sm:$0xff]   ;;  %v6265_v58 = vld [vmem:[%s9169_s1 + $0xe4] ss:$8 sps:$4 sm:$0xff]   ;;  %v6269_v60 = vld [vmem:[%s9169_s1 + $0xe0] ss:$8 sps:$4 sm:$0xff]  }
  0x15   :  { %4319 = vmatprep.subr.bf16.mxu0 %v6213_v21  ;;  %v6267_v59 = vld [vmem:[%s9169_s1 + $0x6e4] ss:$8 sps:$4 sm:$0xff]   ;;  %v6270_v61 = vld [vmem:[%s9169_s1 + $0x6e0] ss:$8 sps:$4 sm:$0xff]   ;;  %v6271_v62 = vld [vmem:[%s9169_s1 + $0xf4] ss:$8 sps:$4 sm:$0xff]  }
  0x16   :  { %v6273_v63 = vld [vmem:[%s9169_s1 + $0x6f4] ss:$8 sps:$4 sm:$0xff]   ;;  %v6275_v0 = vld [vmem:[%s9169_s1 + $0xf0] ss:$8 sps:$4 sm:$0xff]   ;;  %v6285_v2 = vld [vmem:[%s9169_s1 + $0x104] ss:$8 sps:$4 sm:$0xff]  }
  0x17   :  { %3642 = vmatpush1.bf16.msra.mxu1 %v6215_v22  ;;  %v6276_v1 = vld [vmem:[%s9169_s1 + $0x6f0] ss:$8 sps:$4 sm:$0xff]   ;;  %v6288_v3 = vld [vmem:[%s9169_s1 + $0x704] ss:$8 sps:$4 sm:$0xff]   ;;  %v6283_v6 = vld [vmem:[%s9169_s1 + $0x100] ss:$8 sps:$4 sm:$0xff]  }
  0x18   :  { %4320 = vmatpush1.bf16.msra.mxu0 %v6216_v23  ;;  %3643 = vmatprep.subr.bf16.mxu1 %v6217_v24  ;;  %v6277_v4 = vld [vmem:[%s9170_s0] ss:$100 sps:$4 sm:$0xff]   ;;  %v6280_v5 = vld [vmem:[%s9170_s0 + $0x30] ss:$100 sps:$4 sm:$0xff]   ;;  %v6299_v16 = vld [vmem:[%s9170_s0 + $0xc8] ss:$100 sps:$4 sm:$0xff]  }
  0x19   :  { %4321 = vmatprep.subr.bf16.mxu0 %v6219_v25  ;;  %v6286_v7 = vld [vmem:[%s9169_s1 + $0x700] ss:$8 sps:$4 sm:$0xff]   ;;  %v6291_v8 = vld [vmem:[%s9169_s1 + $0x114] ss:$8 sps:$4 sm:$0xff]   ;;  %v6295_v10 = vld [vmem:[%s9170_s0 + $0xcc] ss:$100 sps:$4 sm:$0xff]  }
  0x1a   :  { %v6294_v9 = vld [vmem:[%s9169_s1 + $0x714] ss:$8 sps:$4 sm:$0xff]   ;;  %v6289_v12 = vld [vmem:[%s9169_s1 + $0x110] ss:$8 sps:$4 sm:$0xff]   ;;  %v6302_v14 = vld [vmem:[%s9169_s1 + $0x124] ss:$8 sps:$4 sm:$0xff]  }
  0x1b   :  { %3644 = vmatpush1.bf16.msra.mxu1 %v6221_v26  ;;  %v6297_v11 = vld [vmem:[%s9170_s0 + $0xfc] ss:$100 sps:$4 sm:$0xff]   ;;  %v6292_v13 = vld [vmem:[%s9169_s1 + $0x710] ss:$8 sps:$4 sm:$0xff]   ;;  %v6306_v15 = vld [vmem:[%s9169_s1 + $0x724] ss:$8 sps:$4 sm:$0xff]  }
  0x1c   :  { %4322 = vmatpush1.bf16.msra.mxu0 %v6222_v27  ;;  %3645 = vmatprep.subr.bf16.mxu1 %v6223_v28  ;;  %v6300_v17 = vld [vmem:[%s9169_s1 + $0x120] ss:$8 sps:$4 sm:$0xff]   ;;  %v6303_v18 = vld [vmem:[%s9170_s0 + $0xf8] ss:$100 sps:$4 sm:$0xff]   ;;  %v6320_v26 = vld [vmem:[%s9169_s1 + $0x144] ss:$8 sps:$4 sm:$0xff]  }
  0x1d   :  { %4323 = vmatprep.subr.bf16.mxu0 %v6225_v29  ;;  %v6304_v19 = vld [vmem:[%s9169_s1 + $0x720] ss:$8 sps:$4 sm:$0xff]   ;;  %v6309_v20 = vld [vmem:[%s9169_s1 + $0x134] ss:$8 sps:$4 sm:$0xff]   ;;  %v6307_v24 = vld [vmem:[%s9169_s1 + $0x130] ss:$8 sps:$4 sm:$0xff]  }
  0x1e   :  { %v6312_v21 = vld [vmem:[%s9169_s1 + $0x734] ss:$8 sps:$4 sm:$0xff]   ;;  %v6315_v23 = vld [vmem:[%s9170_s0 + $0x1c4] ss:$100 sps:$4 sm:$0xff]   ;;  %v6310_v25 = vld [vmem:[%s9169_s1 + $0x730] ss:$8 sps:$4 sm:$0xff]  }
  0x1f   :  { %3646 = vmatpush1.bf16.msra.mxu1 %v6227_v30  ;;  %v6313_v22 = vld [vmem:[%s9170_s0 + $0x194] ss:$100 sps:$4 sm:$0xff]   ;;  %v6324_v27 = vld [vmem:[%s9169_s1 + $0x744] ss:$8 sps:$4 sm:$0xff]   ;;  %v6318_v29 = vld [vmem:[%s9169_s1 + $0x140] ss:$8 sps:$4 sm:$0xff]  }
  0x20   :  { %4324 = vmatpush1.bf16.msra.mxu0 %v6228_v31  ;;  %3647 = vmatprep.subr.bf16.mxu1 %v6229_v32  ;;  %v6317_v28 = vld [vmem:[%s9170_s0 + $0x190] ss:$100 sps:$4 sm:$0xff]   ;;  %v6321_v30 = vld [vmem:[%s9170_s0 + $0x1c0] ss:$100 sps:$4 sm:$0xff]  }
  0x21   :  { %4325 = vmatprep.subr.bf16.mxu0 %v6231_v33  ;;  %v6322_v31 = vld [vmem:[%s9169_s1 + $0x740] ss:$8 sps:$4 sm:$0xff]   ;;  %v6327_v32 = vld [vmem:[%s9169_s1 + $0x154] ss:$8 sps:$4 sm:$0xff]   ;;  %v6346_v49 = vld [vmem:[%s9169_s1 + $0x770] ss:$8 sps:$4 sm:$0xff]  }
  0x22   :  { %v6330_v33 = vld [vmem:[%s9169_s1 + $0x754] ss:$8 sps:$4 sm:$0xff]   ;;  %v6360_v51 = vld [vmem:[%s9169_s1 + $0x784] ss:$8 sps:$4 sm:$0xff]  }
  0x23   :  { %3648 = vmatpush1.bf16.msra.mxu1 %v6233_v34  ;;  %v6331_v34 = vld [vmem:[%s9170_s0 + $0x25c] ss:$100 sps:$4 sm:$0xff]  }
  0x24   :  { %4326 = vmatpush1.bf16.msra.mxu0 %v6234_v35  ;;  %3649 = vmatprep.subr.bf16.mxu1 %v6235_v36  ;;  %v6333_v35 = vld [vmem:[%s9170_s0 + $0x28c] ss:$100 sps:$4 sm:$0xff]  }
  0x25   :  { %4327 = vmatprep.subr.bf16.mxu0 %v6237_v37  ;;  %v6325_v36 = vld [vmem:[%s9169_s1 + $0x150] ss:$8 sps:$4 sm:$0xff]  }
  0x26   :  { %v6328_v37 = vld [vmem:[%s9169_s1 + $0x750] ss:$8 sps:$4 sm:$0xff]  }
  0x27   :  { %3650 = vmatpush1.bf16.msra.mxu1 %v6239_v38  ;;  %v6338_v38 = vld [vmem:[%s9169_s1 + $0x164] ss:$8 sps:$4 sm:$0xff]  }
  0x28   :  { %4328 = vmatpush1.bf16.msra.mxu0 %v6240_v39  ;;  %3651 = vmatprep.subr.bf16.mxu1 %v6241_v40  ;;  %v6342_v39 = vld [vmem:[%s9169_s1 + $0x764] ss:$8 sps:$4 sm:$0xff]   ;;  %v6335_v40 = vld [vmem:[%s9170_s0 + $0x258] ss:$100 sps:$4 sm:$0xff]  }
  0x29   :  { %4329 = vmatprep.subr.bf16.mxu0 %v6243_v41  ;;  %v6336_v41 = vld [vmem:[%s9169_s1 + $0x160] ss:$8 sps:$4 sm:$0xff]  }
  0x2b   :  { %3652 = vmatpush1.bf16.msra.mxu1 %v6245_v42  ;;  %v6339_v42 = vld [vmem:[%s9170_s0 + $0x288] ss:$100 sps:$4 sm:$0xff]  }
  0x2c   :  { %4330 = vmatpush1.bf16.msra.mxu0 %v6246_v43  ;;  %3653 = vmatprep.subr.bf16.mxu1 %v6247_v44  ;;  %v6340_v43 = vld [vmem:[%s9169_s1 + $0x760] ss:$8 sps:$4 sm:$0xff]   ;;  %v6345_v44 = vld [vmem:[%s9169_s1 + $0x174] ss:$8 sps:$4 sm:$0xff]  }
  0x2d   :  { %4331 = vmatprep.subr.bf16.mxu0 %v6249_v45  ;;  %v6348_v45 = vld [vmem:[%s9169_s1 + $0x774] ss:$8 sps:$4 sm:$0xff]  }
  0x2f   :  { %3654 = vmatpush1.bf16.msra.mxu1 %v6251_v46  ;;  %v6349_v46 = vld [vmem:[%s9170_s0 + $0x324] ss:$100 sps:$4 sm:$0xff]  }
  0x30   :  { %4332 = vmatpush1.bf16.msra.mxu0 %v6252_v47  ;;  %3655 = vmatprep.subr.bf16.mxu1 %v6253_v48  ;;  %v6351_v47 = vld [vmem:[%s9170_s0 + $0x354] ss:$100 sps:$4 sm:$0xff]  }
  0x31   :  { %4333 = vmatprep.subr.bf16.mxu0 %v6255_v50  ;;  %v6343_v48 = vld [vmem:[%s9169_s1 + $0x170] ss:$8 sps:$4 sm:$0xff]   ;;  %v6356_v50 = vld [vmem:[%s9169_s1 + $0x184] ss:$8 sps:$4 sm:$0xff]  }
  0x33   :  { %3656 = vmatpush1.bf16.msra.mxu1 %v6257_v52  ;;  %v6353_v52 = vld [vmem:[%s9170_s0 + $0x320] ss:$100 sps:$4 sm:$0xff]  }
  0x34   :  { %4334 = vmatpush1.bf16.msra.mxu0 %v6258_v53  ;;  %3657 = vmatprep.subr.bf16.mxu1 %v6259_v54  ;;  %v6354_v53 = vld [vmem:[%s9169_s1 + $0x180] ss:$8 sps:$4 sm:$0xff]   ;;  %v6357_v54 = vld [vmem:[%s9170_s0 + $0x350] ss:$100 sps:$4 sm:$0xff]  }
  0x35   :  { %4335 = vmatprep.subr.bf16.mxu0 %v6261_v55  ;;  %v6358_v55 = vld [vmem:[%s9169_s1 + $0x780] ss:$8 sps:$4 sm:$0xff]  }
  0x37   :  { %3658 = vmatpush1.bf16.msra.mxu1 %v6263_v56  ;;  %v6363_v56 = vld [vmem:[%s9169_s1 + $0x194] ss:$8 sps:$4 sm:$0xff]  }
  0x38   :  { %4336 = vmatpush1.bf16.msra.mxu0 %v6264_v57  ;;  %3659 = vmatprep.subr.bf16.mxu1 %v6265_v58  ;;  %v6366_v57 = vld [vmem:[%s9169_s1 + $0x794] ss:$8 sps:$4 sm:$0xff]   ;;  %v6367_v58 = vld [vmem:[%s9170_s0 + $0x3ec] ss:$100 sps:$4 sm:$0xff]  }
  0x39   :  { %4337 = vmatprep.subr.bf16.mxu0 %v6267_v59  ;;  %v6369_v59 = vld [vmem:[%s9170_s0 + $0x41c] ss:$100 sps:$4 sm:$0xff]  }
  0x3b   :  { %3660 = vmatpush1.bf16.msra.mxu1 %v6269_v60  ;;  %v6361_v60 = vld [vmem:[%s9169_s1 + $0x190] ss:$8 sps:$4 sm:$0xff]  }
  0x3c   :  { %4338 = vmatpush1.bf16.msra.mxu0 %v6270_v61  ;;  %3661 = vmatprep.subr.bf16.mxu1 %v6271_v62  ;;  %v6364_v61 = vld [vmem:[%s9169_s1 + $0x790] ss:$8 sps:$4 sm:$0xff]   ;;  %v6374_v62 = vld [vmem:[%s9169_s1 + $0x1a4] ss:$8 sps:$4 sm:$0xff]  }
  0x3d   :  { %4339 = vmatprep.subr.bf16.mxu0 %v6273_v63  ;;  %v6378_v63 = vld [vmem:[%s9169_s1 + $0x7a4] ss:$8 sps:$4 sm:$0xff]  }
  0x3f   :  { %3662 = vmatpush1.bf16.msra.mxu1 %v6275_v0  ;;  %v6371_v0 = vld [vmem:[%s9170_s0 + $0x3e8] ss:$100 sps:$4 sm:$0xff]  }
  0x40   :  { %4340 = vmatpush1.bf16.msra.mxu0 %v6276_v1  ;;  %3744 = vmatprep.subr.bf16.mxu1 %v6285_v2  ;;  %v6372_v1 = vld [vmem:[%s9169_s1 + $0x1a0] ss:$8 sps:$4 sm:$0xff]   ;;  %v6375_v2 = vld [vmem:[%s9170_s0 + $0x418] ss:$100 sps:$4 sm:$0xff]  }
  0x41   :  { %4422 = vmatprep.subr.bf16.mxu0 %v6288_v3  ;;  %v6376_v3 = vld [vmem:[%s9169_s1 + $0x7a0] ss:$8 sps:$4 sm:$0xff]  }
  0x42   :  { %3664 = vmatmul.mubr.bf16.vlgmr.msra.gmra.mrb[0].mxu1 %v6277_v4  ;;  %v6381_v4 = vld [vmem:[%s9169_s1 + $0x1b4] ss:$8 sps:$4 sm:$0xff]  }
  0x43   :  { %4342 = vmatmul.mubr.bf16.vlgmr.msra.gmra.mrb[0].mxu0 %v6280_v5  ;;  %3745 = vmatpush1.bf16.msra.mxu1 %v6283_v6  ;;  %v6384_v5 = vld [vmem:[%s9169_s1 + $0x7b4] ss:$8 sps:$4 sm:$0xff]  }
  0x44   :  { %4423 = vmatpush1.bf16.msra.mxu0 %v6286_v7  ;;  %3746 = vmatprep.subr.bf16.mxu1 %v6291_v8  ;;  %v6385_v6 = vld [vmem:[%s9170_s0 + $0x4b4] ss:$100 sps:$4 sm:$0xff]   ;;  %v6387_v7 = vld [vmem:[%s9170_s0 + $0x4e4] ss:$100 sps:$4 sm:$0xff]  }
  0x45   :  { %4424 = vmatprep.subr.bf16.mxu0 %v6294_v9  ;;  %3673 = vmatprep.mubr.bf16.mxu1 %v6295_v10  ;;  %v6379_v8 = vld [vmem:[%s9169_s1 + $0x1b0] ss:$8 sps:$4 sm:$0xff]   ;;  %v6392_v10 = vld [vmem:[%s9169_s1 + $0x1c4] ss:$8 sps:$4 sm:$0xff]  }
  0x46   :  { %4351 = vmatprep.mubr.bf16.mxu0 %v6297_v11  ;;  %v6382_v9 = vld [vmem:[%s9169_s1 + $0x7b0] ss:$8 sps:$4 sm:$0xff]   ;;  %v6396_v11 = vld [vmem:[%s9169_s1 + $0x7c4] ss:$8 sps:$4 sm:$0xff]  }
  0x47   :  { %3747 = vmatpush1.bf16.msra.mxu1 %v6289_v12  ;;  %v6389_v12 = vld [vmem:[%s9170_s0 + $0x4b0] ss:$100 sps:$4 sm:$0xff]  }
  0x48   :  { %4425 = vmatpush1.bf16.msra.mxu0 %v6292_v13  ;;  %3748 = vmatprep.subr.bf16.mxu1 %v6302_v14  ;;  %v6390_v13 = vld [vmem:[%s9169_s1 + $0x1c0] ss:$8 sps:$4 sm:$0xff]  }
  0x49   :  { %4426 = vmatprep.subr.bf16.mxu0 %v6306_v15  ;;  %v6393_v14 = vld [vmem:[%s9170_s0 + $0x4e0] ss:$100 sps:$4 sm:$0xff]  }
  0x4a   :  { %3674 = vmatmul.mubr.bf16.gmra.mrb[4].mxu1 %v6299_v16  ;;  %v6394_v15 = vld [vmem:[%s9169_s1 + $0x7c0] ss:$8 sps:$4 sm:$0xff]   ;;  %v6399_v16 = vld [vmem:[%s9169_s1 + $0x1d4] ss:$8 sps:$4 sm:$0xff]  }
  0x4b   :  { %4352 = vmatmul.mubr.bf16.gmra.mrb[4].mxu0 %v6303_v18  ;;  %3749 = vmatpush1.bf16.msra.mxu1 %v6300_v17  ;;  %v6402_v17 = vld [vmem:[%s9169_s1 + $0x7d4] ss:$8 sps:$4 sm:$0xff]  }
  0x4c   :  { %4427 = vmatpush1.bf16.msra.mxu0 %v6304_v19  ;;  %3750 = vmatprep.subr.bf16.mxu1 %v6309_v20  ;;  %v6403_v18 = vld [vmem:[%s9170_s0 + $0x57c] ss:$100 sps:$4 sm:$0xff]   ;;  %v6405_v19 = vld [vmem:[%s9170_s0 + $0x5ac] ss:$100 sps:$4 sm:$0xff]  }
  0x4d   :  { %4428 = vmatprep.subr.bf16.mxu0 %v6312_v21  ;;  %3683 = vmatprep.mubr.bf16.mxu1 %v6313_v22  ;;  %v6397_v20 = vld [vmem:[%s9169_s1 + $0x1d0] ss:$8 sps:$4 sm:$0xff]   ;;  %v6410_v22 = vld [vmem:[%s9169_s1 + $0x1e4] ss:$8 sps:$4 sm:$0xff]  }
  0x4e   :  { %4361 = vmatprep.mubr.bf16.mxu0 %v6315_v23  ;;  %v6400_v21 = vld [vmem:[%s9169_s1 + $0x7d0] ss:$8 sps:$4 sm:$0xff]   ;;  %v6414_v23 = vld [vmem:[%s9169_s1 + $0x7e4] ss:$8 sps:$4 sm:$0xff]  }
  0x4f   :  { %3751 = vmatpush1.bf16.msra.mxu1 %v6307_v24  ;;  %v6407_v24 = vld [vmem:[%s9170_s0 + $0x578] ss:$100 sps:$4 sm:$0xff]  }
  0x50   :  { %4429 = vmatpush1.bf16.msra.mxu0 %v6310_v25  ;;  %3752 = vmatprep.subr.bf16.mxu1 %v6320_v26  ;;  %v6408_v25 = vld [vmem:[%s9169_s1 + $0x1e0] ss:$8 sps:$4 sm:$0xff]  }
  0x51   :  { %4430 = vmatprep.subr.bf16.mxu0 %v6324_v27  ;;  %v6411_v26 = vld [vmem:[%s9170_s0 + $0x5a8] ss:$100 sps:$4 sm:$0xff]  }
  0x52   :  { %3684 = vmatmul.mubr.bf16.gmra.mrb[8].mxu1 %v6317_v28  ;;  %v6412_v27 = vld [vmem:[%s9169_s1 + $0x7e0] ss:$8 sps:$4 sm:$0xff]   ;;  %v6417_v28 = vld [vmem:[%s9169_s1 + $0x1f4] ss:$8 sps:$4 sm:$0xff]  }
  0x53   :  { %4362 = vmatmul.mubr.bf16.gmra.mrb[8].mxu0 %v6321_v30  ;;  %3753 = vmatpush1.bf16.msra.mxu1 %v6318_v29  ;;  %v6420_v29 = vld [vmem:[%s9169_s1 + $0x7f4] ss:$8 sps:$4 sm:$0xff]   ;;  %v6423_v30 = vld [vmem:[%s9170_s0 + $0xc] ss:$100 sps:$4 sm:$0xff]  }
  0x54   :  { %4431 = vmatpush1.bf16.msra.mxu0 %v6322_v31  ;;  %3754 = vmatprep.subr.bf16.mxu1 %v6327_v32  ;;  %v6426_v31 = vld [vmem:[%s9170_s0 + $0x3c] ss:$100 sps:$4 sm:$0xff]   ;;  %v6415_v32 = vld [vmem:[%s9169_s1 + $0x1f0] ss:$8 sps:$4 sm:$0xff]  }
  0x55   :  { %4432 = vmatprep.subr.bf16.mxu0 %v6330_v33  ;;  %3693 = vmatprep.mubr.bf16.mxu1 %v6331_v34  ;;  %v6418_v33 = vld [vmem:[%s9169_s1 + $0x7f0] ss:$8 sps:$4 sm:$0xff]   ;;  %v6429_v34 = vld [vmem:[%s9169_s1 + $0x204] ss:$8 sps:$4 sm:$0xff]  }
  0x56   :  { %4371 = vmatprep.mubr.bf16.mxu0 %v6333_v35  ;;  %v6432_v35 = vld [vmem:[%s9169_s1 + $0x804] ss:$8 sps:$4 sm:$0xff]  }
  0x57   :  { %3755 = vmatpush1.bf16.msra.mxu1 %v6325_v36  ;;  %v6421_v36 = vld [vmem:[%s9170_s0 + $0x8] ss:$100 sps:$4 sm:$0xff]  }
  0x58   :  { %4433 = vmatpush1.bf16.msra.mxu0 %v6328_v37  ;;  %3756 = vmatprep.subr.bf16.mxu1 %v6338_v38  ;;  %v6424_v37 = vld [vmem:[%s9170_s0 + $0x38] ss:$100 sps:$4 sm:$0xff]   ;;  %v6427_v38 = vld [vmem:[%s9169_s1 + $0x200] ss:$8 sps:$4 sm:$0xff]  }
  0x59   :  { %4434 = vmatprep.subr.bf16.mxu0 %v6342_v39  ;;  %v6430_v39 = vld [vmem:[%s9169_s1 + $0x800] ss:$8 sps:$4 sm:$0xff]  }
  0x5a   :  { %3694 = vmatmul.mubr.bf16.gmra.mrb[12].mxu1 %v6335_v40  ;;  %v6435_v40 = vld [vmem:[%s9169_s1 + $0x214] ss:$8 sps:$4 sm:$0xff]  }
  0x5b   :  { %4372 = vmatmul.mubr.bf16.gmra.mrb[12].mxu0 %v6339_v42  ;;  %3757 = vmatpush1.bf16.msra.mxu1 %v6336_v41  ;;  %v6438_v41 = vld [vmem:[%s9169_s1 + $0x814] ss:$8 sps:$4 sm:$0xff]  }
  0x5c   :  { %4435 = vmatpush1.bf16.msra.mxu0 %v6340_v43  ;;  %3758 = vmatprep.subr.bf16.mxu1 %v6345_v44  ;;  %v6439_v42 = vld [vmem:[%s9170_s0 + $0xd4] ss:$100 sps:$4 sm:$0xff]   ;;  %v6441_v43 = vld [vmem:[%s9170_s0 + $0x104] ss:$100 sps:$4 sm:$0xff]  }
  0x5d   :  { %4436 = vmatprep.subr.bf16.mxu0 %v6348_v45  ;;  %3703 = vmatprep.mubr.bf16.mxu1 %v6349_v46  ;;  %v6433_v44 = vld [vmem:[%s9169_s1 + $0x210] ss:$8 sps:$4 sm:$0xff]   ;;  %v6446_v46 = vld [vmem:[%s9169_s1 + $0x224] ss:$8 sps:$4 sm:$0xff]  }
  0x5e   :  { %4381 = vmatprep.mubr.bf16.mxu0 %v6351_v47  ;;  %v6436_v45 = vld [vmem:[%s9169_s1 + $0x810] ss:$8 sps:$4 sm:$0xff]   ;;  %v6450_v47 = vld [vmem:[%s9169_s1 + $0x824] ss:$8 sps:$4 sm:$0xff]  }
  0x5f   :  { %3759 = vmatpush1.bf16.msra.mxu1 %v6343_v48  ;;  %v6443_v48 = vld [vmem:[%s9170_s0 + $0xd0] ss:$100 sps:$4 sm:$0xff]  }
  0x60   :  { %4437 = vmatpush1.bf16.msra.mxu0 %v6346_v49  ;;  %3760 = vmatprep.subr.bf16.mxu1 %v6356_v50  ;;  %v6444_v49 = vld [vmem:[%s9169_s1 + $0x220] ss:$8 sps:$4 sm:$0xff]  }
  0x61   :  { %4438 = vmatprep.subr.bf16.mxu0 %v6360_v51  ;;  %v6447_v50 = vld [vmem:[%s9170_s0 + $0x100] ss:$100 sps:$4 sm:$0xff]  }
  0x62   :  { %3704 = vmatmul.mubr.bf16.gmra.mrb[16].mxu1 %v6353_v52  ;;  %v6448_v51 = vld [vmem:[%s9169_s1 + $0x820] ss:$8 sps:$4 sm:$0xff]   ;;  %v6453_v52 = vld [vmem:[%s9169_s1 + $0x234] ss:$8 sps:$4 sm:$0xff]  }
  0x63   :  { %4382 = vmatmul.mubr.bf16.gmra.mrb[16].mxu0 %v6357_v54  ;;  %3761 = vmatpush1.bf16.msra.mxu1 %v6354_v53  ;;  %v6456_v53 = vld [vmem:[%s9169_s1 + $0x834] ss:$8 sps:$4 sm:$0xff]  }
  0x64   :  { %4439 = vmatpush1.bf16.msra.mxu0 %v6358_v55  ;;  %3762 = vmatprep.subr.bf16.mxu1 %v6363_v56  ;;  %v6457_v54 = vld [vmem:[%s9170_s0 + $0x19c] ss:$100 sps:$4 sm:$0xff]   ;;  %v6459_v55 = vld [vmem:[%s9170_s0 + $0x1cc] ss:$100 sps:$4 sm:$0xff]  }
  0x65   :  { %4440 = vmatprep.subr.bf16.mxu0 %v6366_v57  ;;  %3713 = vmatprep.mubr.bf16.mxu1 %v6367_v58  ;;  %v6451_v56 = vld [vmem:[%s9169_s1 + $0x230] ss:$8 sps:$4 sm:$0xff]   ;;  %v6464_v58 = vld [vmem:[%s9169_s1 + $0x244] ss:$8 sps:$4 sm:$0xff]  }
  0x66   :  { %4391 = vmatprep.mubr.bf16.mxu0 %v6369_v59  ;;  %v6454_v57 = vld [vmem:[%s9169_s1 + $0x830] ss:$8 sps:$4 sm:$0xff]   ;;  %v6468_v59 = vld [vmem:[%s9169_s1 + $0x844] ss:$8 sps:$4 sm:$0xff]  }
  0x67   :  { %3763 = vmatpush1.bf16.msra.mxu1 %v6361_v60  ;;  %v6461_v60 = vld [vmem:[%s9170_s0 + $0x198] ss:$100 sps:$4 sm:$0xff]  }
  0x68   :  { %4441 = vmatpush1.bf16.msra.mxu0 %v6364_v61  ;;  %3764 = vmatprep.subr.bf16.mxu1 %v6374_v62  ;;  %v6462_v61 = vld [vmem:[%s9169_s1 + $0x240] ss:$8 sps:$4 sm:$0xff]  }
  0x69   :  { %4442 = vmatprep.subr.bf16.mxu0 %v6378_v63  ;;  %v6465_v62 = vld [vmem:[%s9170_s0 + $0x1c8] ss:$100 sps:$4 sm:$0xff]  }
  0x6a   :  { %3714 = vmatmul.mubr.bf16.gmra.mrb[20].mxu1 %v6371_v0  ;;  %v6466_v63 = vld [vmem:[%s9169_s1 + $0x840] ss:$8 sps:$4 sm:$0xff]   ;;  %v6471_v0 = vld [vmem:[%s9169_s1 + $0x254] ss:$8 sps:$4 sm:$0xff]  }
  0x6b   :  { %4392 = vmatmul.mubr.bf16.gmra.mrb[20].mxu0 %v6375_v2  ;;  %3765 = vmatpush1.bf16.msra.mxu1 %v6372_v1  ;;  %v6474_v1 = vld [vmem:[%s9169_s1 + $0x854] ss:$8 sps:$4 sm:$0xff]   ;;  %v6475_v2 = vld [vmem:[%s9170_s0 + $0x264] ss:$100 sps:$4 sm:$0xff]  }
  0x6c   :  { %4443 = vmatpush1.bf16.msra.mxu0 %v6376_v3  ;;  %3766 = vmatprep.subr.bf16.mxu1 %v6381_v4  ;;  %v6477_v3 = vld [vmem:[%s9170_s0 + $0x294] ss:$100 sps:$4 sm:$0xff]  }
  0x6d   :  { %4444 = vmatprep.subr.bf16.mxu0 %v6384_v5  ;;  %3723 = vmatprep.mubr.bf16.mxu1 %v6385_v6  ;;  %v6469_v4 = vld [vmem:[%s9169_s1 + $0x250] ss:$8 sps:$4 sm:$0xff]   ;;  %v6482_v6 = vld [vmem:[%s9169_s1 + $0x264] ss:$8 sps:$4 sm:$0xff]  }
  0x6e   :  { %4401 = vmatprep.mubr.bf16.mxu0 %v6387_v7  ;;  %v6472_v5 = vld [vmem:[%s9169_s1 + $0x850] ss:$8 sps:$4 sm:$0xff]   ;;  %v6486_v7 = vld [vmem:[%s9169_s1 + $0x864] ss:$8 sps:$4 sm:$0xff]  }
  0x6f   :  { %3767 = vmatpush1.bf16.msra.mxu1 %v6379_v8  ;;  %v6479_v8 = vld [vmem:[%s9170_s0 + $0x260] ss:$100 sps:$4 sm:$0xff]  }
  0x70   :  { %4445 = vmatpush1.bf16.msra.mxu0 %v6382_v9  ;;  %3768 = vmatprep.subr.bf16.mxu1 %v6392_v10  ;;  %v6480_v9 = vld [vmem:[%s9169_s1 + $0x260] ss:$8 sps:$4 sm:$0xff]   ;;  %v6483_v10 = vld [vmem:[%s9170_s0 + $0x290] ss:$100 sps:$4 sm:$0xff]  }
  0x71   :  { %4446 = vmatprep.subr.bf16.mxu0 %v6396_v11  ;;  %v6484_v11 = vld [vmem:[%s9169_s1 + $0x860] ss:$8 sps:$4 sm:$0xff]  }
  0x72   :  { %3724 = vmatmul.mubr.bf16.gmra.mrb[24].mxu1 %v6389_v12  ;;  %v6489_v12 = vld [vmem:[%s9169_s1 + $0x274] ss:$8 sps:$4 sm:$0xff]  }
  0x73   :  { %4402 = vmatmul.mubr.bf16.gmra.mrb[24].mxu0 %v6393_v14  ;;  %3769 = vmatpush1.bf16.msra.mxu1 %v6390_v13  ;;  %v6492_v13 = vld [vmem:[%s9169_s1 + $0x874] ss:$8 sps:$4 sm:$0xff]   ;;  %v6493_v14 = vld [vmem:[%s9170_s0 + $0x32c] ss:$100 sps:$4 sm:$0xff]  }
  0x74   :  { %4447 = vmatpush1.bf16.msra.mxu0 %v6394_v15  ;;  %3770 = vmatprep.subr.bf16.mxu1 %v6399_v16  ;;  %v6495_v15 = vld [vmem:[%s9170_s0 + $0x35c] ss:$100 sps:$4 sm:$0xff]   ;;  %v6487_v16 = vld [vmem:[%s9169_s1 + $0x270] ss:$8 sps:$4 sm:$0xff]  }
  0x75   :  { %4448 = vmatprep.subr.bf16.mxu0 %v6402_v17  ;;  %3733 = vmatprep.mubr.bf16.mxu1 %v6403_v18  ;;  %v6490_v17 = vld [vmem:[%s9169_s1 + $0x870] ss:$8 sps:$4 sm:$0xff]   ;;  %v6500_v18 = vld [vmem:[%s9169_s1 + $0x284] ss:$8 sps:$4 sm:$0xff]  }
  0x76   :  { %4411 = vmatprep.mubr.bf16.mxu0 %v6405_v19  ;;  %v6504_v19 = vld [vmem:[%s9169_s1 + $0x884] ss:$8 sps:$4 sm:$0xff]  }
  0x77   :  { %3771 = vmatpush1.bf16.msra.mxu1 %v6397_v20  ;;  %v6497_v20 = vld [vmem:[%s9170_s0 + $0x328] ss:$100 sps:$4 sm:$0xff]  }
  0x78   :  { %4449 = vmatpush1.bf16.msra.mxu0 %v6400_v21  ;;  %3772 = vmatprep.subr.bf16.mxu1 %v6410_v22  ;;  %v6498_v21 = vld [vmem:[%s9169_s1 + $0x280] ss:$8 sps:$4 sm:$0xff]   ;;  %v6501_v22 = vld [vmem:[%s9170_s0 + $0x358] ss:$100 sps:$4 sm:$0xff]  }
  0x79   :  { %4450 = vmatprep.subr.bf16.mxu0 %v6414_v23  ;;  %v6502_v23 = vld [vmem:[%s9169_s1 + $0x880] ss:$8 sps:$4 sm:$0xff]  }
  0x7a   :  { %3734 = vmatmul.mubr.bf16.gmra.mrb[28].mxu1 %v6407_v24  ;;  %v6507_v24 = vld [vmem:[%s9169_s1 + $0x294] ss:$8 sps:$4 sm:$0xff]  }
  0x7b   :  { %4412 = vmatmul.mubr.bf16.gmra.mrb[28].mxu0 %v6411_v26  ;;  %3773 = vmatpush1.bf16.msra.mxu1 %v6408_v25  ;;  %v6510_v25 = vld [vmem:[%s9169_s1 + $0x894] ss:$8 sps:$4 sm:$0xff]  }
  0x7c   :  { %4451 = vmatpush1.bf16.msra.mxu0 %v6412_v27  ;;  %3774 = vmatprep.subr.bf16.mxu1 %v6417_v28  ;;  %v6511_v26 = vld [vmem:[%s9170_s0 + $0x3f4] ss:$100 sps:$4 sm:$0xff]   ;;  %v6513_v27 = vld [vmem:[%s9170_s0 + $0x424] ss:$100 sps:$4 sm:$0xff]  }
  0x7d   :  { %4452 = vmatprep.subr.bf16.mxu0 %v6420_v29  ;;  %3776 = vmatprep.mubr.bf16.mxu1 %v6423_v30  ;;  %v6505_v28 = vld [vmem:[%s9169_s1 + $0x290] ss:$8 sps:$4 sm:$0xff]   ;;  %v6518_v30 = vld [vmem:[%s9169_s1 + $0x2a4] ss:$8 sps:$4 sm:$0xff]  }
  0x7e   :  { %4454 = vmatprep.mubr.bf16.mxu0 %v6426_v31  ;;  %v6508_v29 = vld [vmem:[%s9169_s1 + $0x890] ss:$8 sps:$4 sm:$0xff]   ;;  %v6522_v31 = vld [vmem:[%s9169_s1 + $0x8a4] ss:$8 sps:$4 sm:$0xff]  }
  0x7f   :  { %3775 = vmatpush1.bf16.msra.mxu1 %v6415_v32  ;;  %v6515_v32 = vld [vmem:[%s9170_s0 + $0x3f0] ss:$100 sps:$4 sm:$0xff]  }
  0x80   :  { %4453 = vmatpush1.bf16.msra.mxu0 %v6418_v33  ;;  %3857 = vmatprep.subr.bf16.mxu1 %v6429_v34  ;;  %v6516_v33 = vld [vmem:[%s9169_s1 + $0x2a0] ss:$8 sps:$4 sm:$0xff]  }
  0x81   :  { %4535 = vmatprep.subr.bf16.mxu0 %v6432_v35  ;;  %v6519_v34 = vld [vmem:[%s9170_s0 + $0x420] ss:$100 sps:$4 sm:$0xff]  }
  0x82   :  { %3777 = vmatmul.mubr.bf16.vlgmr.msra.gmra.mrb[0].mxu1 %v6421_v36  ;;  %v6520_v35 = vld [vmem:[%s9169_s1 + $0x8a0] ss:$8 sps:$4 sm:$0xff]   ;;  %v6525_v36 = vld [vmem:[%s9169_s1 + $0x2b4] ss:$8 sps:$4 sm:$0xff]  }
  0x83   :  { %4455 = vmatmul.mubr.bf16.vlgmr.msra.gmra.mrb[0].mxu0 %v6424_v37  ;;  %3858 = vmatpush1.bf16.msra.mxu1 %v6427_v38  ;;  %v6528_v37 = vld [vmem:[%s9169_s1 + $0x8b4] ss:$8 sps:$4 sm:$0xff]  }
  0x84   :  { %4536 = vmatpush1.bf16.msra.mxu0 %v6430_v39  ;;  %3859 = vmatprep.subr.bf16.mxu1 %v6435_v40  ;;  %v6529_v38 = vld [vmem:[%s9170_s0 + $0x4bc] ss:$100 sps:$4 sm:$0xff]   ;;  %v6531_v39 = vld [vmem:[%s9170_s0 + $0x4ec] ss:$100 sps:$4 sm:$0xff]  }
  0x85   :  { %4537 = vmatprep.subr.bf16.mxu0 %v6438_v41  ;;  %3786 = vmatprep.mubr.bf16.mxu1 %v6439_v42  ;;  %v6523_v40 = vld [vmem:[%s9169_s1 + $0x2b0] ss:$8 sps:$4 sm:$0xff]   ;;  %v6536_v42 = vld [vmem:[%s9169_s1 + $0x2c4] ss:$8 sps:$4 sm:$0xff]  }
  0x86   :  { %4464 = vmatprep.mubr.bf16.mxu0 %v6441_v43  ;;  %v6526_v41 = vld [vmem:[%s9169_s1 + $0x8b0] ss:$8 sps:$4 sm:$0xff]   ;;  %v6540_v43 = vld [vmem:[%s9169_s1 + $0x8c4] ss:$8 sps:$4 sm:$0xff]  }
  0x87   :  { %3860 = vmatpush1.bf16.msra.mxu1 %v6433_v44  ;;  %v6533_v44 = vld [vmem:[%s9170_s0 + $0x4b8] ss:$100 sps:$4 sm:$0xff]  }
  0x88   :  { %4538 = vmatpush1.bf16.msra.mxu0 %v6436_v45  ;;  %3861 = vmatprep.subr.bf16.mxu1 %v6446_v46  ;;  %v6534_v45 = vld [vmem:[%s9169_s1 + $0x2c0] ss:$8 sps:$4 sm:$0xff]  }
  0x89   :  { %4539 = vmatprep.subr.bf16.mxu0 %v6450_v47  ;;  %v6537_v46 = vld [vmem:[%s9170_s0 + $0x4e8] ss:$100 sps:$4 sm:$0xff]  }
  0x8a   :  { %3787 = vmatmul.mubr.bf16.gmra.mrb[4].mxu1 %v6443_v48  ;;  %v6538_v47 = vld [vmem:[%s9169_s1 + $0x8c0] ss:$8 sps:$4 sm:$0xff]   ;;  %v6543_v48 = vld [vmem:[%s9169_s1 + $0x2d4] ss:$8 sps:$4 sm:$0xff]  }
  0x8b   :  { %4465 = vmatmul.mubr.bf16.gmra.mrb[4].mxu0 %v6447_v50  ;;  %3862 = vmatpush1.bf16.msra.mxu1 %v6444_v49  ;;  %v6546_v49 = vld [vmem:[%s9169_s1 + $0x8d4] ss:$8 sps:$4 sm:$0xff]   ;;  %v6547_v50 = vld [vmem:[%s9170_s0 + $0x584] ss:$100 sps:$4 sm:$0xff]  }
  0x8c   :  { %4540 = vmatpush1.bf16.msra.mxu0 %v6448_v51  ;;  %3863 = vmatprep.subr.bf16.mxu1 %v6453_v52  ;;  %v6549_v51 = vld [vmem:[%s9170_s0 + $0x5b4] ss:$100 sps:$4 sm:$0xff]  }
  0x8d   :  { %4541 = vmatprep.subr.bf16.mxu0 %v6456_v53  ;;  %3796 = vmatprep.mubr.bf16.mxu1 %v6457_v54  ;;  %v6541_v52 = vld [vmem:[%s9169_s1 + $0x2d0] ss:$8 sps:$4 sm:$0xff]   ;;  %v6554_v54 = vld [vmem:[%s9169_s1 + $0x2e4] ss:$8 sps:$4 sm:$0xff]  }
  0x8e   :  { %4474 = vmatprep.mubr.bf16.mxu0 %v6459_v55  ;;  %v6544_v53 = vld [vmem:[%s9169_s1 + $0x8d0] ss:$8 sps:$4 sm:$0xff]   ;;  %v6558_v55 = vld [vmem:[%s9169_s1 + $0x8e4] ss:$8 sps:$4 sm:$0xff]  }
  0x8f   :  { %3864 = vmatpush1.bf16.msra.mxu1 %v6451_v56  ;;  %v6551_v56 = vld [vmem:[%s9170_s0 + $0x580] ss:$100 sps:$4 sm:$0xff]  }
  0x90   :  { %4542 = vmatpush1.bf16.msra.mxu0 %v6454_v57  ;;  %3865 = vmatprep.subr.bf16.mxu1 %v6464_v58  ;;  %v6552_v57 = vld [vmem:[%s9169_s1 + $0x2e0] ss:$8 sps:$4 sm:$0xff]   ;;  %v6555_v58 = vld [vmem:[%s9170_s0 + $0x5b0] ss:$100 sps:$4 sm:$0xff]  }
  0x91   :  { %4543 = vmatprep.subr.bf16.mxu0 %v6468_v59  ;;  %v6556_v59 = vld [vmem:[%s9169_s1 + $0x8e0] ss:$8 sps:$4 sm:$0xff]  }
  0x92   :  { %3797 = vmatmul.mubr.bf16.gmra.mrb[8].mxu1 %v6461_v60  ;;  %v6561_v60 = vld [vmem:[%s9169_s1 + $0x2f4] ss:$8 sps:$4 sm:$0xff]  }
  0x93   :  { %4475 = vmatmul.mubr.bf16.gmra.mrb[8].mxu0 %v6465_v62  ;;  %3866 = vmatpush1.bf16.msra.mxu1 %v6462_v61  ;;  %v6564_v61 = vld [vmem:[%s9169_s1 + $0x8f4] ss:$8 sps:$4 sm:$0xff]  }
  0x94   :  { %4544 = vmatpush1.bf16.msra.mxu0 %v6466_v63  ;;  %3867 = vmatprep.subr.bf16.mxu1 %v6471_v0  ;;  %v6567_v62 = vld [vmem:[%s9170_s0 + $0x14] ss:$100 sps:$4 sm:$0xff]   ;;  %v6570_v63 = vld [vmem:[%s9170_s0 + $0x44] ss:$100 sps:$4 sm:$0xff]  }
  0x95   :  { %4545 = vmatprep.subr.bf16.mxu0 %v6474_v1  ;;  %3806 = vmatprep.mubr.bf16.mxu1 %v6475_v2  ;;  %v6559_v0 = vld [vmem:[%s9169_s1 + $0x2f0] ss:$8 sps:$4 sm:$0xff]   ;;  %v6573_v2 = vld [vmem:[%s9169_s1 + $0x304] ss:$8 sps:$4 sm:$0xff]  }
  0x96   :  { %4484 = vmatprep.mubr.bf16.mxu0 %v6477_v3  ;;  %v6562_v1 = vld [vmem:[%s9169_s1 + $0x8f0] ss:$8 sps:$4 sm:$0xff]   ;;  %v6576_v3 = vld [vmem:[%s9169_s1 + $0x904] ss:$8 sps:$4 sm:$0xff]  }
  0x97   :  { %3868 = vmatpush1.bf16.msra.mxu1 %v6469_v4  ;;  %v6565_v4 = vld [vmem:[%s9170_s0 + $0x10] ss:$100 sps:$4 sm:$0xff]  }
  0x98   :  { %4546 = vmatpush1.bf16.msra.mxu0 %v6472_v5  ;;  %3869 = vmatprep.subr.bf16.mxu1 %v6482_v6  ;;  %v6568_v5 = vld [vmem:[%s9170_s0 + $0x40] ss:$100 sps:$4 sm:$0xff]  }
  0x99   :  { %4547 = vmatprep.subr.bf16.mxu0 %v6486_v7  ;;  %v6571_v6 = vld [vmem:[%s9169_s1 + $0x300] ss:$8 sps:$4 sm:$0xff]  }
  0x9a   :  { %3807 = vmatmul.mubr.bf16.gmra.mrb[12].mxu1 %v6479_v8  ;;  %v6574_v7 = vld [vmem:[%s9169_s1 + $0x900] ss:$8 sps:$4 sm:$0xff]   ;;  %v6579_v8 = vld [vmem:[%s9169_s1 + $0x314] ss:$8 sps:$4 sm:$0xff]  }
  0x9b   :  { %4485 = vmatmul.mubr.bf16.gmra.mrb[12].mxu0 %v6483_v10  ;;  %3870 = vmatpush1.bf16.msra.mxu1 %v6480_v9  ;;  %v6582_v9 = vld [vmem:[%s9169_s1 + $0x914] ss:$8 sps:$4 sm:$0xff]  }
  0x9c   :  { %4548 = vmatpush1.bf16.msra.mxu0 %v6484_v11  ;;  %3871 = vmatprep.subr.bf16.mxu1 %v6489_v12  ;;  %v6583_v10 = vld [vmem:[%s9170_s0 + $0xdc] ss:$100 sps:$4 sm:$0xff]   ;;  %v6585_v11 = vld [vmem:[%s9170_s0 + $0x10c] ss:$100 sps:$4 sm:$0xff]  }
  0x9d   :  { %4549 = vmatprep.subr.bf16.mxu0 %v6492_v13  ;;  %3816 = vmatprep.mubr.bf16.mxu1 %v6493_v14  ;;  %v6577_v12 = vld [vmem:[%s9169_s1 + $0x310] ss:$8 sps:$4 sm:$0xff]   ;;  %v6590_v14 = vld [vmem:[%s9169_s1 + $0x324] ss:$8 sps:$4 sm:$0xff]  }
  0x9e   :  { %4494 = vmatprep.mubr.bf16.mxu0 %v6495_v15  ;;  %v6580_v13 = vld [vmem:[%s9169_s1 + $0x910] ss:$8 sps:$4 sm:$0xff]   ;;  %v6594_v15 = vld [vmem:[%s9169_s1 + $0x924] ss:$8 sps:$4 sm:$0xff]  }
  0x9f   :  { %3872 = vmatpush1.bf16.msra.mxu1 %v6487_v16  ;;  %v6587_v16 = vld [vmem:[%s9170_s0 + $0xd8] ss:$100 sps:$4 sm:$0xff]  }
  0xa0   :  { %4550 = vmatpush1.bf16.msra.mxu0 %v6490_v17  ;;  %3873 = vmatprep.subr.bf16.mxu1 %v6500_v18  ;;  %v6588_v17 = vld [vmem:[%s9169_s1 + $0x320] ss:$8 sps:$4 sm:$0xff]  }
  0xa1   :  { %4551 = vmatprep.subr.bf16.mxu0 %v6504_v19  ;;  %v6591_v18 = vld [vmem:[%s9170_s0 + $0x108] ss:$100 sps:$4 sm:$0xff]  }
  0xa2   :  { %3817 = vmatmul.mubr.bf16.gmra.mrb[16].mxu1 %v6497_v20  ;;  %v6592_v19 = vld [vmem:[%s9169_s1 + $0x920] ss:$8 sps:$4 sm:$0xff]   ;;  %v6597_v20 = vld [vmem:[%s9169_s1 + $0x334] ss:$8 sps:$4 sm:$0xff]  }
  0xa3   :  { %4495 = vmatmul.mubr.bf16.gmra.mrb[16].mxu0 %v6501_v22  ;;  %3874 = vmatpush1.bf16.msra.mxu1 %v6498_v21  ;;  %v6600_v21 = vld [vmem:[%s9169_s1 + $0x934] ss:$8 sps:$4 sm:$0xff]   ;;  %v6601_v22 = vld [vmem:[%s9170_s0 + $0x1a4] ss:$100 sps:$4 sm:$0xff]  }
  0xa4   :  { %4552 = vmatpush1.bf16.msra.mxu0 %v6502_v23  ;;  %3875 = vmatprep.subr.bf16.mxu1 %v6507_v24  ;;  %v6603_v23 = vld [vmem:[%s9170_s0 + $0x1d4] ss:$100 sps:$4 sm:$0xff]  }
  0xa5   :  { %4553 = vmatprep.subr.bf16.mxu0 %v6510_v25  ;;  %3826 = vmatprep.mubr.bf16.mxu1 %v6511_v26  ;;  %v6595_v24 = vld [vmem:[%s9169_s1 + $0x330] ss:$8 sps:$4 sm:$0xff]   ;;  %v6608_v26 = vld [vmem:[%s9169_s1 + $0x344] ss:$8 sps:$4 sm:$0xff]  }
  0xa6   :  { %4504 = vmatprep.mubr.bf16.mxu0 %v6513_v27  ;;  %v6598_v25 = vld [vmem:[%s9169_s1 + $0x930] ss:$8 sps:$4 sm:$0xff]   ;;  %v6612_v27 = vld [vmem:[%s9169_s1 + $0x944] ss:$8 sps:$4 sm:$0xff]  }
  0xa7   :  { %3876 = vmatpush1.bf16.msra.mxu1 %v6505_v28  ;;  %v6605_v28 = vld [vmem:[%s9170_s0 + $0x1a0] ss:$100 sps:$4 sm:$0xff]  }
  0xa8   :  { %4554 = vmatpush1.bf16.msra.mxu0 %v6508_v29  ;;  %3877 = vmatprep.subr.bf16.mxu1 %v6518_v30  ;;  %v6606_v29 = vld [vmem:[%s9169_s1 + $0x340] ss:$8 sps:$4 sm:$0xff]   ;;  %v6609_v30 = vld [vmem:[%s9170_s0 + $0x1d0] ss:$100 sps:$4 sm:$0xff]  }
  0xa9   :  { %4555 = vmatprep.subr.bf16.mxu0 %v6522_v31  ;;  %v6610_v31 = vld [vmem:[%s9169_s1 + $0x940] ss:$8 sps:$4 sm:$0xff]  }
  0xaa   :  { %3827 = vmatmul.mubr.bf16.gmra.mrb[20].mxu1 %v6515_v32  ;;  %v6615_v32 = vld [vmem:[%s9169_s1 + $0x354] ss:$8 sps:$4 sm:$0xff]  }
  0xab   :  { %4505 = vmatmul.mubr.bf16.gmra.mrb[20].mxu0 %v6519_v34  ;;  %3878 = vmatpush1.bf16.msra.mxu1 %v6516_v33  ;;  %v6618_v33 = vld [vmem:[%s9169_s1 + $0x954] ss:$8 sps:$4 sm:$0xff]   ;;  %v6619_v34 = vld [vmem:[%s9170_s0 + $0x26c] ss:$100 sps:$4 sm:$0xff]  }
  0xac   :  { %4556 = vmatpush1.bf16.msra.mxu0 %v6520_v35  ;;  %3879 = vmatprep.subr.bf16.mxu1 %v6525_v36  ;;  %v6621_v35 = vld [vmem:[%s9170_s0 + $0x29c] ss:$100 sps:$4 sm:$0xff]   ;;  %v6613_v36 = vld [vmem:[%s9169_s1 + $0x350] ss:$8 sps:$4 sm:$0xff]  }
  0xad   :  { %4557 = vmatprep.subr.bf16.mxu0 %v6528_v37  ;;  %3836 = vmatprep.mubr.bf16.mxu1 %v6529_v38  ;;  %v6616_v37 = vld [vmem:[%s9169_s1 + $0x950] ss:$8 sps:$4 sm:$0xff]   ;;  %v6626_v38 = vld [vmem:[%s9169_s1 + $0x364] ss:$8 sps:$4 sm:$0xff]  }
  0xae   :  { %4514 = vmatprep.mubr.bf16.mxu0 %v6531_v39  ;;  %v6630_v39 = vld [vmem:[%s9169_s1 + $0x964] ss:$8 sps:$4 sm:$0xff]  }
  0xaf   :  { %3880 = vmatpush1.bf16.msra.mxu1 %v6523_v40  ;;  %v6623_v40 = vld [vmem:[%s9170_s0 + $0x268] ss:$100 sps:$4 sm:$0xff]  }
  0xb0   :  { %4558 = vmatpush1.bf16.msra.mxu0 %v6526_v41  ;;  %3881 = vmatprep.subr.bf16.mxu1 %v6536_v42  ;;  %v6624_v41 = vld [vmem:[%s9169_s1 + $0x360] ss:$8 sps:$4 sm:$0xff]   ;;  %v6627_v42 = vld [vmem:[%s9170_s0 + $0x298] ss:$100 sps:$4 sm:$0xff]  }
  0xb1   :  { %4559 = vmatprep.subr.bf16.mxu0 %v6540_v43  ;;  %v6628_v43 = vld [vmem:[%s9169_s1 + $0x960] ss:$8 sps:$4 sm:$0xff]  }
  0xb2   :  { %3837 = vmatmul.mubr.bf16.gmra.mrb[24].mxu1 %v6533_v44  ;;  %v6633_v44 = vld [vmem:[%s9169_s1 + $0x374] ss:$8 sps:$4 sm:$0xff]  }
  0xb3   :  { %4515 = vmatmul.mubr.bf16.gmra.mrb[24].mxu0 %v6537_v46  ;;  %3882 = vmatpush1.bf16.msra.mxu1 %v6534_v45  ;;  %v6636_v45 = vld [vmem:[%s9169_s1 + $0x974] ss:$8 sps:$4 sm:$0xff]  }
  0xb4   :  { %4560 = vmatpush1.bf16.msra.mxu0 %v6538_v47  ;;  %3883 = vmatprep.subr.bf16.mxu1 %v6543_v48  ;;  %v6637_v46 = vld [vmem:[%s9170_s0 + $0x334] ss:$100 sps:$4 sm:$0xff]   ;;  %v6639_v47 = vld [vmem:[%s9170_s0 + $0x364] ss:$100 sps:$4 sm:$0xff]  }
  0xb5   :  { %4561 = vmatprep.subr.bf16.mxu0 %v6546_v49  ;;  %3846 = vmatprep.mubr.bf16.mxu1 %v6547_v50  ;;  %v6631_v48 = vld [vmem:[%s9169_s1 + $0x370] ss:$8 sps:$4 sm:$0xff]   ;;  %v6644_v50 = vld [vmem:[%s9169_s1 + $0x384] ss:$8 sps:$4 sm:$0xff]  }
  0xb6   :  { %4524 = vmatprep.mubr.bf16.mxu0 %v6549_v51  ;;  %v6634_v49 = vld [vmem:[%s9169_s1 + $0x970] ss:$8 sps:$4 sm:$0xff]   ;;  %v6648_v51 = vld [vmem:[%s9169_s1 + $0x984] ss:$8 sps:$4 sm:$0xff]  }
  0xb7   :  { %3884 = vmatpush1.bf16.msra.mxu1 %v6541_v52  ;;  %v6641_v52 = vld [vmem:[%s9170_s0 + $0x330] ss:$100 sps:$4 sm:$0xff]  }
  0xb8   :  { %4562 = vmatpush1.bf16.msra.mxu0 %v6544_v53  ;;  %3885 = vmatprep.subr.bf16.mxu1 %v6554_v54  ;;  %v6642_v53 = vld [vmem:[%s9169_s1 + $0x380] ss:$8 sps:$4 sm:$0xff]  }
  0xb9   :  { %4563 = vmatprep.subr.bf16.mxu0 %v6558_v55  ;;  %v6645_v54 = vld [vmem:[%s9170_s0 + $0x360] ss:$100 sps:$4 sm:$0xff]  }
  0xba   :  { %3847 = vmatmul.mubr.bf16.gmra.mrb[28].mxu1 %v6551_v56  ;;  %v6646_v55 = vld [vmem:[%s9169_s1 + $0x980] ss:$8 sps:$4 sm:$0xff]   ;;  %v6651_v56 = vld [vmem:[%s9169_s1 + $0x394] ss:$8 sps:$4 sm:$0xff]  }
  0xbb   :  { %4525 = vmatmul.mubr.bf16.gmra.mrb[28].mxu0 %v6555_v58  ;;  %3886 = vmatpush1.bf16.msra.mxu1 %v6552_v57  ;;  %v6654_v57 = vld [vmem:[%s9169_s1 + $0x994] ss:$8 sps:$4 sm:$0xff]  }
  0xbc   :  { %4564 = vmatpush1.bf16.msra.mxu0 %v6556_v59  ;;  %3887 = vmatprep.subr.bf16.mxu1 %v6561_v60  ;;  %v6655_v58 = vld [vmem:[%s9170_s0 + $0x3fc] ss:$100 sps:$4 sm:$0xff]   ;;  %v6657_v59 = vld [vmem:[%s9170_s0 + $0x42c] ss:$100 sps:$4 sm:$0xff]  }
  0xbd   :  { %4565 = vmatprep.subr.bf16.mxu0 %v6564_v61  ;;  %3889 = vmatprep.mubr.bf16.mxu1 %v6567_v62  ;;  %v6649_v60 = vld [vmem:[%s9169_s1 + $0x390] ss:$8 sps:$4 sm:$0xff]   ;;  %v6662_v62 = vld [vmem:[%s9169_s1 + $0x3a4] ss:$8 sps:$4 sm:$0xff]  }
  0xbe   :  { %4567 = vmatprep.mubr.bf16.mxu0 %v6570_v63  ;;  %v6652_v61 = vld [vmem:[%s9169_s1 + $0x990] ss:$8 sps:$4 sm:$0xff]   ;;  %v6666_v63 = vld [vmem:[%s9169_s1 + $0x9a4] ss:$8 sps:$4 sm:$0xff]  }
  0xbf   :  { %3888 = vmatpush1.bf16.msra.mxu1 %v6559_v0  ;;  %v6659_v0 = vld [vmem:[%s9170_s0 + $0x3f8] ss:$100 sps:$4 sm:$0xff]  }
  0xc0   :  { %4566 = vmatpush1.bf16.msra.mxu0 %v6562_v1  ;;  %3970 = vmatprep.subr.bf16.mxu1 %v6573_v2  ;;  %v6660_v1 = vld [vmem:[%s9169_s1 + $0x3a0] ss:$8 sps:$4 sm:$0xff]  }
  0xc1   :  { %4648 = vmatprep.subr.bf16.mxu0 %v6576_v3  ;;  %v6663_v2 = vld [vmem:[%s9170_s0 + $0x428] ss:$100 sps:$4 sm:$0xff]  }
  0xc2   :  { %3890 = vmatmul.mubr.bf16.vlgmr.msra.gmra.mrb[0].mxu1 %v6565_v4  ;;  %v6664_v3 = vld [vmem:[%s9169_s1 + $0x9a0] ss:$8 sps:$4 sm:$0xff]   ;;  %v6669_v4 = vld [vmem:[%s9169_s1 + $0x3b4] ss:$8 sps:$4 sm:$0xff]  }
  0xc3   :  { %4568 = vmatmul.mubr.bf16.vlgmr.msra.gmra.mrb[0].mxu0 %v6568_v5  ;;  %3971 = vmatpush1.bf16.msra.mxu1 %v6571_v6  ;;  %v6672_v5 = vld [vmem:[%s9169_s1 + $0x9b4] ss:$8 sps:$4 sm:$0xff]   ;;  %v6673_v6 = vld [vmem:[%s9170_s0 + $0x4c4] ss:$100 sps:$4 sm:$0xff]  }
  0xc4   :  { %4649 = vmatpush1.bf16.msra.mxu0 %v6574_v7  ;;  %3972 = vmatprep.subr.bf16.mxu1 %v6579_v8  ;;  %v6675_v7 = vld [vmem:[%s9170_s0 + $0x4f4] ss:$100 sps:$4 sm:$0xff]  }
  0xc5   :  { %4650 = vmatprep.subr.bf16.mxu0 %v6582_v9  ;;  %3899 = vmatprep.mubr.bf16.mxu1 %v6583_v10  ;;  %v6667_v8 = vld [vmem:[%s9169_s1 + $0x3b0] ss:$8 sps:$4 sm:$0xff]   ;;  %v6680_v10 = vld [vmem:[%s9169_s1 + $0x3c4] ss:$8 sps:$4 sm:$0xff]  }
  0xc6   :  { %4577 = vmatprep.mubr.bf16.mxu0 %v6585_v11  ;;  %v6670_v9 = vld [vmem:[%s9169_s1 + $0x9b0] ss:$8 sps:$4 sm:$0xff]   ;;  %v6684_v11 = vld [vmem:[%s9169_s1 + $0x9c4] ss:$8 sps:$4 sm:$0xff]  }
  0xc7   :  { %3973 = vmatpush1.bf16.msra.mxu1 %v6577_v12  ;;  %v6677_v12 = vld [vmem:[%s9170_s0 + $0x4c0] ss:$100 sps:$4 sm:$0xff]  }
  0xc8   :  { %4651 = vmatpush1.bf16.msra.mxu0 %v6580_v13  ;;  %3974 = vmatprep.subr.bf16.mxu1 %v6590_v14  ;;  %v6678_v13 = vld [vmem:[%s9169_s1 + $0x3c0] ss:$8 sps:$4 sm:$0xff]   ;;  %v6681_v14 = vld [vmem:[%s9170_s0 + $0x4f0] ss:$100 sps:$4 sm:$0xff]  }
  0xc9   :  { %4652 = vmatprep.subr.bf16.mxu0 %v6594_v15  ;;  %v6682_v15 = vld [vmem:[%s9169_s1 + $0x9c0] ss:$8 sps:$4 sm:$0xff]  }
  0xca   :  { %3900 = vmatmul.mubr.bf16.gmra.mrb[4].mxu1 %v6587_v16  ;;  %v6687_v16 = vld [vmem:[%s9169_s1 + $0x3d4] ss:$8 sps:$4 sm:$0xff]  }
  0xcb   :  { %4578 = vmatmul.mubr.bf16.gmra.mrb[4].mxu0 %v6591_v18  ;;  %3975 = vmatpush1.bf16.msra.mxu1 %v6588_v17  ;;  %v6690_v17 = vld [vmem:[%s9169_s1 + $0x9d4] ss:$8 sps:$4 sm:$0xff]   ;;  %v6691_v18 = vld [vmem:[%s9170_s0 + $0x58c] ss:$100 sps:$4 sm:$0xff]  }
  0xcc   :  { %4653 = vmatpush1.bf16.msra.mxu0 %v6592_v19  ;;  %3976 = vmatprep.subr.bf16.mxu1 %v6597_v20  ;;  %v6693_v19 = vld [vmem:[%s9170_s0 + $0x5bc] ss:$100 sps:$4 sm:$0xff]   ;;  %v6685_v20 = vld [vmem:[%s9169_s1 + $0x3d0] ss:$8 sps:$4 sm:$0xff]  }
  0xcd   :  { %4654 = vmatprep.subr.bf16.mxu0 %v6600_v21  ;;  %3909 = vmatprep.mubr.bf16.mxu1 %v6601_v22  ;;  %v6688_v21 = vld [vmem:[%s9169_s1 + $0x9d0] ss:$8 sps:$4 sm:$0xff]   ;;  %v6698_v22 = vld [vmem:[%s9169_s1 + $0x3e4] ss:$8 sps:$4 sm:$0xff]  }
  0xce   :  { %4587 = vmatprep.mubr.bf16.mxu0 %v6603_v23  ;;  %v6702_v23 = vld [vmem:[%s9169_s1 + $0x9e4] ss:$8 sps:$4 sm:$0xff]  }
  0xcf   :  { %3977 = vmatpush1.bf16.msra.mxu1 %v6595_v24  ;;  %v6695_v24 = vld [vmem:[%s9170_s0 + $0x588] ss:$100 sps:$4 sm:$0xff]  }
  0xd0   :  { %4655 = vmatpush1.bf16.msra.mxu0 %v6598_v25  ;;  %3978 = vmatprep.subr.bf16.mxu1 %v6608_v26  ;;  %v6696_v25 = vld [vmem:[%s9169_s1 + $0x3e0] ss:$8 sps:$4 sm:$0xff]   ;;  %v6699_v26 = vld [vmem:[%s9170_s0 + $0x5b8] ss:$100 sps:$4 sm:$0xff]  }
  0xd1   :  { %4656 = vmatprep.subr.bf16.mxu0 %v6612_v27  ;;  %v6700_v27 = vld [vmem:[%s9169_s1 + $0x9e0] ss:$8 sps:$4 sm:$0xff]  }
  0xd2   :  { %3910 = vmatmul.mubr.bf16.gmra.mrb[8].mxu1 %v6605_v28  ;;  %v6705_v28 = vld [vmem:[%s9169_s1 + $0x3f4] ss:$8 sps:$4 sm:$0xff]  }
  0xd3   :  { %4588 = vmatmul.mubr.bf16.gmra.mrb[8].mxu0 %v6609_v30  ;;  %3979 = vmatpush1.bf16.msra.mxu1 %v6606_v29  ;;  %v6708_v29 = vld [vmem:[%s9169_s1 + $0x9f4] ss:$8 sps:$4 sm:$0xff]  }
  0xd4   :  { %4657 = vmatpush1.bf16.msra.mxu0 %v6610_v31  ;;  %3980 = vmatprep.subr.bf16.mxu1 %v6615_v32  ;;  %v6711_v30 = vld [vmem:[%s9170_s0 + $0x1c] ss:$100 sps:$4 sm:$0xff]   ;;  %v6714_v31 = vld [vmem:[%s9170_s0 + $0x4c] ss:$100 sps:$4 sm:$0xff]  }
  0xd5   :  { %4658 = vmatprep.subr.bf16.mxu0 %v6618_v33  ;;  %3919 = vmatprep.mubr.bf16.mxu1 %v6619_v34  ;;  %v6703_v32 = vld [vmem:[%s9169_s1 + $0x3f0] ss:$8 sps:$4 sm:$0xff]   ;;  %v6717_v34 = vld [vmem:[%s9169_s1 + $0x404] ss:$8 sps:$4 sm:$0xff]  }
  0xd6   :  { %4597 = vmatprep.mubr.bf16.mxu0 %v6621_v35  ;;  %v6706_v33 = vld [vmem:[%s9169_s1 + $0x9f0] ss:$8 sps:$4 sm:$0xff]   ;;  %v6720_v35 = vld [vmem:[%s9169_s1 + $0xa04] ss:$8 sps:$4 sm:$0xff]  }
  0xd7   :  { %3981 = vmatpush1.bf16.msra.mxu1 %v6613_v36  ;;  %v6709_v36 = vld [vmem:[%s9170_s0 + $0x18] ss:$100 sps:$4 sm:$0xff]  }
  0xd8   :  { %4659 = vmatpush1.bf16.msra.mxu0 %v6616_v37  ;;  %3982 = vmatprep.subr.bf16.mxu1 %v6626_v38  ;;  %v6712_v37 = vld [vmem:[%s9170_s0 + $0x48] ss:$100 sps:$4 sm:$0xff]  }
  0xd9   :  { %4660 = vmatprep.subr.bf16.mxu0 %v6630_v39  ;;  %v6715_v38 = vld [vmem:[%s9169_s1 + $0x400] ss:$8 sps:$4 sm:$0xff]  }
  0xda   :  { %3920 = vmatmul.mubr.bf16.gmra.mrb[12].mxu1 %v6623_v40  ;;  %v6718_v39 = vld [vmem:[%s9169_s1 + $0xa00] ss:$8 sps:$4 sm:$0xff]   ;;  %v6723_v40 = vld [vmem:[%s9169_s1 + $0x414] ss:$8 sps:$4 sm:$0xff]  }
  0xdb   :  { %4598 = vmatmul.mubr.bf16.gmra.mrb[12].mxu0 %v6627_v42  ;;  %3983 = vmatpush1.bf16.msra.mxu1 %v6624_v41  ;;  %v6726_v41 = vld [vmem:[%s9169_s1 + $0xa14] ss:$8 sps:$4 sm:$0xff]   ;;  %v6727_v42 = vld [vmem:[%s9170_s0 + $0xe4] ss:$100 sps:$4 sm:$0xff]  }
  0xdc   :  { %4661 = vmatpush1.bf16.msra.mxu0 %v6628_v43  ;;  %3984 = vmatprep.subr.bf16.mxu1 %v6633_v44  ;;  %v6729_v43 = vld [vmem:[%s9170_s0 + $0x114] ss:$100 sps:$4 sm:$0xff]  }
  0xdd   :  { %4662 = vmatprep.subr.bf16.mxu0 %v6636_v45  ;;  %3929 = vmatprep.mubr.bf16.mxu1 %v6637_v46  ;;  %v6721_v44 = vld [vmem:[%s9169_s1 + $0x410] ss:$8 sps:$4 sm:$0xff]   ;;  %v6734_v46 = vld [vmem:[%s9169_s1 + $0x424] ss:$8 sps:$4 sm:$0xff]  }
  0xde   :  { %4607 = vmatprep.mubr.bf16.mxu0 %v6639_v47  ;;  %v6724_v45 = vld [vmem:[%s9169_s1 + $0xa10] ss:$8 sps:$4 sm:$0xff]   ;;  %v6738_v47 = vld [vmem:[%s9169_s1 + $0xa24] ss:$8 sps:$4 sm:$0xff]  }
  0xdf   :  { %3985 = vmatpush1.bf16.msra.mxu1 %v6631_v48  ;;  %v6731_v48 = vld [vmem:[%s9170_s0 + $0xe0] ss:$100 sps:$4 sm:$0xff]  }
  0xe0   :  { %4663 = vmatpush1.bf16.msra.mxu0 %v6634_v49  ;;  %3986 = vmatprep.subr.bf16.mxu1 %v6644_v50  ;;  %v6732_v49 = vld [vmem:[%s9169_s1 + $0x420] ss:$8 sps:$4 sm:$0xff]   ;;  %v6735_v50 = vld [vmem:[%s9170_s0 + $0x110] ss:$100 sps:$4 sm:$0xff]  }
  0xe1   :  { %4664 = vmatprep.subr.bf16.mxu0 %v6648_v51  ;;  %v6736_v51 = vld [vmem:[%s9169_s1 + $0xa20] ss:$8 sps:$4 sm:$0xff]  }
  0xe2   :  { %3930 = vmatmul.mubr.bf16.gmra.mrb[16].mxu1 %v6641_v52  ;;  %v6741_v52 = vld [vmem:[%s9169_s1 + $0x434] ss:$8 sps:$4 sm:$0xff]  }
  0xe3   :  { %4608 = vmatmul.mubr.bf16.gmra.mrb[16].mxu0 %v6645_v54  ;;  %3987 = vmatpush1.bf16.msra.mxu1 %v6642_v53  ;;  %v6744_v53 = vld [vmem:[%s9169_s1 + $0xa34] ss:$8 sps:$4 sm:$0xff]   ;;  %v6745_v54 = vld [vmem:[%s9170_s0 + $0x1ac] ss:$100 sps:$4 sm:$0xff]  }
  0xe4   :  { %4665 = vmatpush1.bf16.msra.mxu0 %v6646_v55  ;;  %3988 = vmatprep.subr.bf16.mxu1 %v6651_v56  ;;  %v6747_v55 = vld [vmem:[%s9170_s0 + $0x1dc] ss:$100 sps:$4 sm:$0xff]   ;;  %v6739_v56 = vld [vmem:[%s9169_s1 + $0x430] ss:$8 sps:$4 sm:$0xff]  }
  0xe5   :  { %4666 = vmatprep.subr.bf16.mxu0 %v6654_v57  ;;  %3939 = vmatprep.mubr.bf16.mxu1 %v6655_v58  ;;  %v6742_v57 = vld [vmem:[%s9169_s1 + $0xa30] ss:$8 sps:$4 sm:$0xff]   ;;  %v6752_v58 = vld [vmem:[%s9169_s1 + $0x444] ss:$8 sps:$4 sm:$0xff]  }
  0xe6   :  { %4617 = vmatprep.mubr.bf16.mxu0 %v6657_v59  ;;  %v6756_v59 = vld [vmem:[%s9169_s1 + $0xa44] ss:$8 sps:$4 sm:$0xff]  }
  0xe7   :  { %3989 = vmatpush1.bf16.msra.mxu1 %v6649_v60  ;;  %v6749_v60 = vld [vmem:[%s9170_s0 + $0x1a8] ss:$100 sps:$4 sm:$0xff]  }
  0xe8   :  { %4667 = vmatpush1.bf16.msra.mxu0 %v6652_v61  ;;  %3990 = vmatprep.subr.bf16.mxu1 %v6662_v62  ;;  %v6750_v61 = vld [vmem:[%s9169_s1 + $0x440] ss:$8 sps:$4 sm:$0xff]   ;;  %v6753_v62 = vld [vmem:[%s9170_s0 + $0x1d8] ss:$100 sps:$4 sm:$0xff]  }
  0xe9   :  { %4668 = vmatprep.subr.bf16.mxu0 %v6666_v63  ;;  %v6754_v63 = vld [vmem:[%s9169_s1 + $0xa40] ss:$8 sps:$4 sm:$0xff]  }
  0xea   :  { %3940 = vmatmul.mubr.bf16.gmra.mrb[20].mxu1 %v6659_v0  ;;  %v6759_v0 = vld [vmem:[%s9169_s1 + $0x454] ss:$8 sps:$4 sm:$0xff]  }
  0xeb   :  { %4618 = vmatmul.mubr.bf16.gmra.mrb[20].mxu0 %v6663_v2  ;;  %3991 = vmatpush1.bf16.msra.mxu1 %v6660_v1  ;;  %v6762_v1 = vld [vmem:[%s9169_s1 + $0xa54] ss:$8 sps:$4 sm:$0xff]  }
  0xec   :  { %4669 = vmatpush1.bf16.msra.mxu0 %v6664_v3  ;;  %3992 = vmatprep.subr.bf16.mxu1 %v6669_v4  ;;  %v6763_v2 = vld [vmem:[%s9170_s0 + $0x274] ss:$100 sps:$4 sm:$0xff]   ;;  %v6765_v3 = vld [vmem:[%s9170_s0 + $0x2a4] ss:$100 sps:$4 sm:$0xff]  }
  0xed   :  { %4670 = vmatprep.subr.bf16.mxu0 %v6672_v5  ;;  %3949 = vmatprep.mubr.bf16.mxu1 %v6673_v6  ;;  %v6757_v4 = vld [vmem:[%s9169_s1 + $0x450] ss:$8 sps:$4 sm:$0xff]   ;;  %v6770_v6 = vld [vmem:[%s9169_s1 + $0x464] ss:$8 sps:$4 sm:$0xff]  }
  0xee   :  { %4627 = vmatprep.mubr.bf16.mxu0 %v6675_v7  ;;  %v6760_v5 = vld [vmem:[%s9169_s1 + $0xa50] ss:$8 sps:$4 sm:$0xff]   ;;  %v6774_v7 = vld [vmem:[%s9169_s1 + $0xa64] ss:$8 sps:$4 sm:$0xff]  }
  0xef   :  { %3993 = vmatpush1.bf16.msra.mxu1 %v6667_v8  ;;  %v6767_v8 = vld [vmem:[%s9170_s0 + $0x270] ss:$100 sps:$4 sm:$0xff]  }
  0xf0   :  { %4671 = vmatpush1.bf16.msra.mxu0 %v6670_v9  ;;  %3994 = vmatprep.subr.bf16.mxu1 %v6680_v10  ;;  %v6768_v9 = vld [vmem:[%s9169_s1 + $0x460] ss:$8 sps:$4 sm:$0xff]  }
  0xf1   :  { %4672 = vmatprep.subr.bf16.mxu0 %v6684_v11  ;;  %v6771_v10 = vld [vmem:[%s9170_s0 + $0x2a0] ss:$100 sps:$4 sm:$0xff]  }
  0xf2   :  { %3950 = vmatmul.mubr.bf16.gmra.mrb[24].mxu1 %v6677_v12  ;;  %v6772_v11 = vld [vmem:[%s9169_s1 + $0xa60] ss:$8 sps:$4 sm:$0xff]   ;;  %v6777_v12 = vld [vmem:[%s9169_s1 + $0x474] ss:$8 sps:$4 sm:$0xff]  }
  0xf3   :  { %4628 = vmatmul.mubr.bf16.gmra.mrb[24].mxu0 %v6681_v14  ;;  %3995 = vmatpush1.bf16.msra.mxu1 %v6678_v13  ;;  %v6780_v13 = vld [vmem:[%s9169_s1 + $0xa74] ss:$8 sps:$4 sm:$0xff]  }
  0xf4   :  { %4673 = vmatpush1.bf16.msra.mxu0 %v6682_v15  ;;  %3996 = vmatprep.subr.bf16.mxu1 %v6687_v16  ;;  %v6781_v14 = vld [vmem:[%s9170_s0 + $0x33c] ss:$100 sps:$4 sm:$0xff]   ;;  %v6783_v15 = vld [vmem:[%s9170_s0 + $0x36c] ss:$100 sps:$4 sm:$0xff]  }
  0xf5   :  { %4674 = vmatprep.subr.bf16.mxu0 %v6690_v17  ;;  %3959 = vmatprep.mubr.bf16.mxu1 %v6691_v18  ;;  %v6775_v16 = vld [vmem:[%s9169_s1 + $0x470] ss:$8 sps:$4 sm:$0xff]   ;;  %v6788_v18 = vld [vmem:[%s9169_s1 + $0x484] ss:$8 sps:$4 sm:$0xff]  }
  0xf6   :  { %4637 = vmatprep.mubr.bf16.mxu0 %v6693_v19  ;;  %v6778_v17 = vld [vmem:[%s9169_s1 + $0xa70] ss:$8 sps:$4 sm:$0xff]   ;;  %v6792_v19 = vld [vmem:[%s9169_s1 + $0xa84] ss:$8 sps:$4 sm:$0xff]  }
  0xf7   :  { %3997 = vmatpush1.bf16.msra.mxu1 %v6685_v20  ;;  %v6785_v20 = vld [vmem:[%s9170_s0 + $0x338] ss:$100 sps:$4 sm:$0xff]  }
  0xf8   :  { %4675 = vmatpush1.bf16.msra.mxu0 %v6688_v21  ;;  %3998 = vmatprep.subr.bf16.mxu1 %v6698_v22  ;;  %v6786_v21 = vld [vmem:[%s9169_s1 + $0x480] ss:$8 sps:$4 sm:$0xff]  }
  0xf9   :  { %4676 = vmatprep.subr.bf16.mxu0 %v6702_v23  ;;  %v6789_v22 = vld [vmem:[%s9170_s0 + $0x368] ss:$100 sps:$4 sm:$0xff]  }
  0xfa   :  { %3960 = vmatmul.mubr.bf16.gmra.mrb[28].mxu1 %v6695_v24  ;;  %v6790_v23 = vld [vmem:[%s9169_s1 + $0xa80] ss:$8 sps:$4 sm:$0xff]   ;;  %v6795_v24 = vld [vmem:[%s9169_s1 + $0x494] ss:$8 sps:$4 sm:$0xff]  }
  0xfb   :  { %4638 = vmatmul.mubr.bf16.gmra.mrb[28].mxu0 %v6699_v26  ;;  %3999 = vmatpush1.bf16.msra.mxu1 %v6696_v25  ;;  %v6798_v25 = vld [vmem:[%s9169_s1 + $0xa94] ss:$8 sps:$4 sm:$0xff]   ;;  %v6799_v26 = vld [vmem:[%s9170_s0 + $0x404] ss:$100 sps:$4 sm:$0xff]  }
  0xfc   :  { %4677 = vmatpush1.bf16.msra.mxu0 %v6700_v27  ;;  %4000 = vmatprep.subr.bf16.mxu1 %v6705_v28  ;;  %v6801_v27 = vld [vmem:[%s9170_s0 + $0x434] ss:$100 sps:$4 sm:$0xff]  }
  0xfd   :  { %4678 = vmatprep.subr.bf16.mxu0 %v6708_v29  ;;  %4002 = vmatprep.mubr.bf16.mxu1 %v6711_v30  ;;  %v6793_v28 = vld [vmem:[%s9169_s1 + $0x490] ss:$8 sps:$4 sm:$0xff]   ;;  %v6806_v30 = vld [vmem:[%s9169_s1 + $0x4a4] ss:$8 sps:$4 sm:$0xff]  }
  0xfe   :  { %4680 = vmatprep.mubr.bf16.mxu0 %v6714_v31  ;;  %v6796_v29 = vld [vmem:[%s9169_s1 + $0xa90] ss:$8 sps:$4 sm:$0xff]   ;;  %v6810_v31 = vld [vmem:[%s9169_s1 + $0xaa4] ss:$8 sps:$4 sm:$0xff]  }
  0xff   :  { %4001 = vmatpush1.bf16.msra.mxu1 %v6703_v32  ;;  %v6803_v32 = vld [vmem:[%s9170_s0 + $0x400] ss:$100 sps:$4 sm:$0xff]  }
 0x100   :  { %4679 = vmatpush1.bf16.msra.mxu0 %v6706_v33  ;;  %4083 = vmatprep.subr.bf16.mxu1 %v6717_v34  ;;  %v6804_v33 = vld [vmem:[%s9169_s1 + $0x4a0] ss:$8 sps:$4 sm:$0xff]   ;;  %v6807_v34 = vld [vmem:[%s9170_s0 + $0x430] ss:$100 sps:$4 sm:$0xff]  }
 0x101   :  { %4761 = vmatprep.subr.bf16.mxu0 %v6720_v35  ;;  %v6808_v35 = vld [vmem:[%s9169_s1 + $0xaa0] ss:$8 sps:$4 sm:$0xff]  }
 0x102   :  { %4003 = vmatmul.mubr.bf16.vlgmr.msra.gmra.mrb[0].mxu1 %v6709_v36  ;;  %v6813_v36 = vld [vmem:[%s9169_s1 + $0x4b4] ss:$8 sps:$4 sm:$0xff]  }
 0x103   :  { %4681 = vmatmul.mubr.bf16.vlgmr.msra.gmra.mrb[0].mxu0 %v6712_v37  ;;  %4084 = vmatpush1.bf16.msra.mxu1 %v6715_v38  ;;  %v6816_v37 = vld [vmem:[%s9169_s1 + $0xab4] ss:$8 sps:$4 sm:$0xff]   ;;  %v6817_v38 = vld [vmem:[%s9170_s0 + $0x4cc] ss:$100 sps:$4 sm:$0xff]  }
 0x104   :  { %4762 = vmatpush1.bf16.msra.mxu0 %v6718_v39  ;;  %4085 = vmatprep.subr.bf16.mxu1 %v6723_v40  ;;  %v6819_v39 = vld [vmem:[%s9170_s0 + $0x4fc] ss:$100 sps:$4 sm:$0xff]   ;;  %v6811_v40 = vld [vmem:[%s9169_s1 + $0x4b0] ss:$8 sps:$4 sm:$0xff]  }
 0x105   :  { %4763 = vmatprep.subr.bf16.mxu0 %v6726_v41  ;;  %4012 = vmatprep.mubr.bf16.mxu1 %v6727_v42  ;;  %v6814_v41 = vld [vmem:[%s9169_s1 + $0xab0] ss:$8 sps:$4 sm:$0xff]   ;;  %v6824_v42 = vld [vmem:[%s9169_s1 + $0x4c4] ss:$8 sps:$4 sm:$0xff]  }
 0x106   :  { %4690 = vmatprep.mubr.bf16.mxu0 %v6729_v43  ;;  %v6828_v43 = vld [vmem:[%s9169_s1 + $0xac4] ss:$8 sps:$4 sm:$0xff]  }
 0x107   :  { %4086 = vmatpush1.bf16.msra.mxu1 %v6721_v44  ;;  %v6821_v44 = vld [vmem:[%s9170_s0 + $0x4c8] ss:$100 sps:$4 sm:$0xff]  }
 0x108   :  { %4764 = vmatpush1.bf16.msra.mxu0 %v6724_v45  ;;  %4087 = vmatprep.subr.bf16.mxu1 %v6734_v46  ;;  %v6822_v45 = vld [vmem:[%s9169_s1 + $0x4c0] ss:$8 sps:$4 sm:$0xff]   ;;  %v6825_v46 = vld [vmem:[%s9170_s0 + $0x4f8] ss:$100 sps:$4 sm:$0xff]  }
 0x109   :  { %4765 = vmatprep.subr.bf16.mxu0 %v6738_v47  ;;  %v6826_v47 = vld [vmem:[%s9169_s1 + $0xac0] ss:$8 sps:$4 sm:$0xff]  }
 0x10a   :  { %4013 = vmatmul.mubr.bf16.gmra.mrb[4].mxu1 %v6731_v48  ;;  %v6831_v48 = vld [vmem:[%s9169_s1 + $0x4d4] ss:$8 sps:$4 sm:$0xff]  }
 0x10b   :  { %4691 = vmatmul.mubr.bf16.gmra.mrb[4].mxu0 %v6735_v50  ;;  %4088 = vmatpush1.bf16.msra.mxu1 %v6732_v49  ;;  %v6834_v49 = vld [vmem:[%s9169_s1 + $0xad4] ss:$8 sps:$4 sm:$0xff]  }
 0x10c   :  { %4766 = vmatpush1.bf16.msra.mxu0 %v6736_v51  ;;  %4089 = vmatprep.subr.bf16.mxu1 %v6741_v52  ;;  %v6835_v50 = vld [vmem:[%s9170_s0 + $0x594] ss:$100 sps:$4 sm:$0xff]   ;;  %v6837_v51 = vld [vmem:[%s9170_s0 + $0x5c4] ss:$100 sps:$4 sm:$0xff]  }
 0x10d   :  { %4767 = vmatprep.subr.bf16.mxu0 %v6744_v53  ;;  %4022 = vmatprep.mubr.bf16.mxu1 %v6745_v54  ;;  %v6829_v52 = vld [vmem:[%s9169_s1 + $0x4d0] ss:$8 sps:$4 sm:$0xff]   ;;  %v6842_v54 = vld [vmem:[%s9169_s1 + $0x4e4] ss:$8 sps:$4 sm:$0xff]  }
 0x10e   :  { %4700 = vmatprep.mubr.bf16.mxu0 %v6747_v55  ;;  %v6832_v53 = vld [vmem:[%s9169_s1 + $0xad0] ss:$8 sps:$4 sm:$0xff]   ;;  %v6846_v55 = vld [vmem:[%s9169_s1 + $0xae4] ss:$8 sps:$4 sm:$0xff]  }
 0x10f   :  { %4090 = vmatpush1.bf16.msra.mxu1 %v6739_v56  ;;  %v6839_v56 = vld [vmem:[%s9170_s0 + $0x590] ss:$100 sps:$4 sm:$0xff]  }
 0x110   :  { %4768 = vmatpush1.bf16.msra.mxu0 %v6742_v57  ;;  %4091 = vmatprep.subr.bf16.mxu1 %v6752_v58  ;;  %v6840_v57 = vld [vmem:[%s9169_s1 + $0x4e0] ss:$8 sps:$4 sm:$0xff]  }
 0x111   :  { %4769 = vmatprep.subr.bf16.mxu0 %v6756_v59  ;;  %v6843_v58 = vld [vmem:[%s9170_s0 + $0x5c0] ss:$100 sps:$4 sm:$0xff]  }
 0x112   :  { %4023 = vmatmul.mubr.bf16.gmra.mrb[8].mxu1 %v6749_v60  ;;  %v6844_v59 = vld [vmem:[%s9169_s1 + $0xae0] ss:$8 sps:$4 sm:$0xff]   ;;  %v6849_v60 = vld [vmem:[%s9169_s1 + $0x4f4] ss:$8 sps:$4 sm:$0xff]  }
 0x113   :  { %4701 = vmatmul.mubr.bf16.gmra.mrb[8].mxu0 %v6753_v62  ;;  %4092 = vmatpush1.bf16.msra.mxu1 %v6750_v61  ;;  %v6852_v61 = vld [vmem:[%s9169_s1 + $0xaf4] ss:$8 sps:$4 sm:$0xff]   ;;  %v6855_v62 = vld [vmem:[%s9170_s0 + $0x24] ss:$100 sps:$4 sm:$0xff]  }
 0x114   :  { %4770 = vmatpush1.bf16.msra.mxu0 %v6754_v63  ;;  %4093 = vmatprep.subr.bf16.mxu1 %v6759_v0  ;;  %v6858_v63 = vld [vmem:[%s9170_s0 + $0x54] ss:$100 sps:$4 sm:$0xff]  }
 0x115   :  { %4771 = vmatprep.subr.bf16.mxu0 %v6762_v1  ;;  %4032 = vmatprep.mubr.bf16.mxu1 %v6763_v2  ;;  %v6847_v0 = vld [vmem:[%s9169_s1 + $0x4f0] ss:$8 sps:$4 sm:$0xff]   ;;  %v6861_v2 = vld [vmem:[%s9169_s1 + $0x504] ss:$8 sps:$4 sm:$0xff]  }
 0x116   :  { %4710 = vmatprep.mubr.bf16.mxu0 %v6765_v3  ;;  %v6850_v1 = vld [vmem:[%s9169_s1 + $0xaf0] ss:$8 sps:$4 sm:$0xff]   ;;  %v8454_v3 = vld [vmem:[%s9169_s1 + $0xb04] ss:$8 sps:$4 sm:$0xff]  }
 0x117   :  { %4094 = vmatpush1.bf16.msra.mxu1 %v6757_v4  ;;  %v6853_v4 = vld [vmem:[%s9170_s0 + $0x20] ss:$100 sps:$4 sm:$0xff]  }
 0x118   :  { %4772 = vmatpush1.bf16.msra.mxu0 %v6760_v5  ;;  %4095 = vmatprep.subr.bf16.mxu1 %v6770_v6  ;;  %v6856_v5 = vld [vmem:[%s9170_s0 + $0x50] ss:$100 sps:$4 sm:$0xff]   ;;  %v6859_v6 = vld [vmem:[%s9169_s1 + $0x500] ss:$8 sps:$4 sm:$0xff]  }
 0x119   :  { %4773 = vmatprep.subr.bf16.mxu0 %v6774_v7  ;;  %v8468_v7 = vld [vmem:[%s9169_s1 + $0xb00] ss:$8 sps:$4 sm:$0xff]  }
 0x11a   :  { %4033 = vmatmul.mubr.bf16.gmra.mrb[12].mxu1 %v6767_v8  ;;  %v6867_v8 = vld [vmem:[%s9169_s1 + $0x514] ss:$8 sps:$4 sm:$0xff]  }
 0x11b   :  { %4711 = vmatmul.mubr.bf16.gmra.mrb[12].mxu0 %v6771_v10  ;;  %4096 = vmatpush1.bf16.msra.mxu1 %v6768_v9  ;;  %v8477_v9 = vld [vmem:[%s9169_s1 + $0xb14] ss:$8 sps:$4 sm:$0xff]   ;;  %v6871_v10 = vld [vmem:[%s9170_s0 + $0xec] ss:$100 sps:$4 sm:$0xff]  }
 0x11c   :  { %4774 = vmatpush1.bf16.msra.mxu0 %v6772_v11  ;;  %4097 = vmatprep.subr.bf16.mxu1 %v6777_v12  ;;  %v6873_v11 = vld [vmem:[%s9170_s0 + $0x11c] ss:$100 sps:$4 sm:$0xff]   ;;  %v6865_v12 = vld [vmem:[%s9169_s1 + $0x510] ss:$8 sps:$4 sm:$0xff]  }
 0x11d   :  { %4775 = vmatprep.subr.bf16.mxu0 %v6780_v13  ;;  %4042 = vmatprep.mubr.bf16.mxu1 %v6781_v14  ;;  %v8492_v13 = vld [vmem:[%s9169_s1 + $0xb10] ss:$8 sps:$4 sm:$0xff]   ;;  %v6878_v14 = vld [vmem:[%s9169_s1 + $0x524] ss:$8 sps:$4 sm:$0xff]  }
 0x11e   :  { %4720 = vmatprep.mubr.bf16.mxu0 %v6783_v15  ;;  %v8501_v15 = vld [vmem:[%s9169_s1 + $0xb24] ss:$8 sps:$4 sm:$0xff]  }
 0x11f   :  { %4098 = vmatpush1.bf16.msra.mxu1 %v6775_v16  ;;  %v6875_v16 = vld [vmem:[%s9170_s0 + $0xe8] ss:$100 sps:$4 sm:$0xff]  }
 0x120   :  { %4776 = vmatpush1.bf16.msra.mxu0 %v6778_v17  ;;  %4099 = vmatprep.subr.bf16.mxu1 %v6788_v18  ;;  %v6876_v17 = vld [vmem:[%s9169_s1 + $0x520] ss:$8 sps:$4 sm:$0xff]   ;;  %v6879_v18 = vld [vmem:[%s9170_s0 + $0x118] ss:$100 sps:$4 sm:$0xff]  }
 0x121   :  { %4777 = vmatprep.subr.bf16.mxu0 %v6792_v19  ;;  %v8515_v19 = vld [vmem:[%s9169_s1 + $0xb20] ss:$8 sps:$4 sm:$0xff]  }
 0x122   :  { %4043 = vmatmul.mubr.bf16.gmra.mrb[16].mxu1 %v6785_v20  ;;  %v6885_v20 = vld [vmem:[%s9169_s1 + $0x534] ss:$8 sps:$4 sm:$0xff]  }
 0x123   :  { %4721 = vmatmul.mubr.bf16.gmra.mrb[16].mxu0 %v6789_v22  ;;  %4100 = vmatpush1.bf16.msra.mxu1 %v6786_v21  ;;  %v8525_v21 = vld [vmem:[%s9169_s1 + $0xb34] ss:$8 sps:$4 sm:$0xff]  }
 0x124   :  { %4778 = vmatpush1.bf16.msra.mxu0 %v6790_v23  ;;  %4101 = vmatprep.subr.bf16.mxu1 %v6795_v24  ;;  %v6889_v22 = vld [vmem:[%s9170_s0 + $0x1b4] ss:$100 sps:$4 sm:$0xff]   ;;  %v6891_v23 = vld [vmem:[%s9170_s0 + $0x1e4] ss:$100 sps:$4 sm:$0xff]  }
 0x125   :  { %4779 = vmatprep.subr.bf16.mxu0 %v6798_v25  ;;  %4052 = vmatprep.mubr.bf16.mxu1 %v6799_v26  ;;  %v6883_v24 = vld [vmem:[%s9169_s1 + $0x530] ss:$8 sps:$4 sm:$0xff]   ;;  %v6896_v26 = vld [vmem:[%s9169_s1 + $0x544] ss:$8 sps:$4 sm:$0xff]  }
 0x126   :  { %4730 = vmatprep.mubr.bf16.mxu0 %v6801_v27  ;;  %v8540_v25 = vld [vmem:[%s9169_s1 + $0xb30] ss:$8 sps:$4 sm:$0xff]   ;;  %v8549_v27 = vld [vmem:[%s9169_s1 + $0xb44] ss:$8 sps:$4 sm:$0xff]  }
 0x127   :  { %4102 = vmatpush1.bf16.msra.mxu1 %v6793_v28  ;;  %v6893_v28 = vld [vmem:[%s9170_s0 + $0x1b0] ss:$100 sps:$4 sm:$0xff]  }
 0x128   :  { %4780 = vmatpush1.bf16.msra.mxu0 %v6796_v29  ;;  %4103 = vmatprep.subr.bf16.mxu1 %v6806_v30  ;;  %v6894_v29 = vld [vmem:[%s9169_s1 + $0x540] ss:$8 sps:$4 sm:$0xff]  }
 0x129   :  { %4781 = vmatprep.subr.bf16.mxu0 %v6810_v31  ;;  %v6897_v30 = vld [vmem:[%s9170_s0 + $0x1e0] ss:$100 sps:$4 sm:$0xff]  }
 0x12a   :  { %4053 = vmatmul.mubr.bf16.gmra.mrb[20].mxu1 %v6803_v32  ;;  %v8563_v31 = vld [vmem:[%s9169_s1 + $0xb40] ss:$8 sps:$4 sm:$0xff]   ;;  %v6903_v32 = vld [vmem:[%s9169_s1 + $0x554] ss:$8 sps:$4 sm:$0xff]  }
 0x12b   :  { %4731 = vmatmul.mubr.bf16.gmra.mrb[20].mxu0 %v6807_v34  ;;  %4104 = vmatpush1.bf16.msra.mxu1 %v6804_v33  ;;  %v8573_v33 = vld [vmem:[%s9169_s1 + $0xb54] ss:$8 sps:$4 sm:$0xff]  }
 0x12c   :  { %4782 = vmatpush1.bf16.msra.mxu0 %v6808_v35  ;;  %4105 = vmatprep.subr.bf16.mxu1 %v6813_v36  ;;  %v6907_v34 = vld [vmem:[%s9170_s0 + $0x27c] ss:$100 sps:$4 sm:$0xff]   ;;  %v6909_v35 = vld [vmem:[%s9170_s0 + $0x2ac] ss:$100 sps:$4 sm:$0xff]  }
 0x12d   :  { %4783 = vmatprep.subr.bf16.mxu0 %v6816_v37  ;;  %4062 = vmatprep.mubr.bf16.mxu1 %v6817_v38  ;;  %v6901_v36 = vld [vmem:[%s9169_s1 + $0x550] ss:$8 sps:$4 sm:$0xff]   ;;  %v6914_v38 = vld [vmem:[%s9169_s1 + $0x564] ss:$8 sps:$4 sm:$0xff]  }
 0x12e   :  { %4740 = vmatprep.mubr.bf16.mxu0 %v6819_v39  ;;  %v8588_v37 = vld [vmem:[%s9169_s1 + $0xb50] ss:$8 sps:$4 sm:$0xff]   ;;  %v8597_v39 = vld [vmem:[%s9169_s1 + $0xb64] ss:$8 sps:$4 sm:$0xff]  }
 0x12f   :  { %4106 = vmatpush1.bf16.msra.mxu1 %v6811_v40  ;;  %v6911_v40 = vld [vmem:[%s9170_s0 + $0x278] ss:$100 sps:$4 sm:$0xff]  }
 0x130   :  { %4784 = vmatpush1.bf16.msra.mxu0 %v6814_v41  ;;  %4107 = vmatprep.subr.bf16.mxu1 %v6824_v42  ;;  %v6912_v41 = vld [vmem:[%s9169_s1 + $0x560] ss:$8 sps:$4 sm:$0xff]  }
 0x131   :  { %4785 = vmatprep.subr.bf16.mxu0 %v6828_v43  ;;  %v6915_v42 = vld [vmem:[%s9170_s0 + $0x2a8] ss:$100 sps:$4 sm:$0xff]  }
 0x132   :  { %4063 = vmatmul.mubr.bf16.gmra.mrb[24].mxu1 %v6821_v44  ;;  %v8611_v43 = vld [vmem:[%s9169_s1 + $0xb60] ss:$8 sps:$4 sm:$0xff]   ;;  %v6921_v44 = vld [vmem:[%s9169_s1 + $0x574] ss:$8 sps:$4 sm:$0xff]  }
 0x133   :  { %4741 = vmatmul.mubr.bf16.gmra.mrb[24].mxu0 %v6825_v46  ;;  %4108 = vmatpush1.bf16.msra.mxu1 %v6822_v45  ;;  %v8621_v45 = vld [vmem:[%s9169_s1 + $0xb74] ss:$8 sps:$4 sm:$0xff]   ;;  %v6925_v46 = vld [vmem:[%s9170_s0 + $0x344] ss:$100 sps:$4 sm:$0xff]  }
 0x134   :  { %4786 = vmatpush1.bf16.msra.mxu0 %v6826_v47  ;;  %4109 = vmatprep.subr.bf16.mxu1 %v6831_v48  ;;  %v6927_v47 = vld [vmem:[%s9170_s0 + $0x374] ss:$100 sps:$4 sm:$0xff]  }
 0x135   :  { %4787 = vmatprep.subr.bf16.mxu0 %v6834_v49  ;;  %4072 = vmatprep.mubr.bf16.mxu1 %v6835_v50  ;;  %v6919_v48 = vld [vmem:[%s9169_s1 + $0x570] ss:$8 sps:$4 sm:$0xff]   ;;  %v6932_v50 = vld [vmem:[%s9169_s1 + $0x584] ss:$8 sps:$4 sm:$0xff]  }
 0x136   :  { %4750 = vmatprep.mubr.bf16.mxu0 %v6837_v51  ;;  %v8636_v49 = vld [vmem:[%s9169_s1 + $0xb70] ss:$8 sps:$4 sm:$0xff]   ;;  %v8645_v51 = vld [vmem:[%s9169_s1 + $0xb84] ss:$8 sps:$4 sm:$0xff]  }
 0x137   :  { %4110 = vmatpush1.bf16.msra.mxu1 %v6829_v52  ;;  %v6929_v52 = vld [vmem:[%s9170_s0 + $0x340] ss:$100 sps:$4 sm:$0xff]  }
 0x138   :  { %4788 = vmatpush1.bf16.msra.mxu0 %v6832_v53  ;;  %4111 = vmatprep.subr.bf16.mxu1 %v6842_v54  ;;  %v6930_v53 = vld [vmem:[%s9169_s1 + $0x580] ss:$8 sps:$4 sm:$0xff]   ;;  %v6933_v54 = vld [vmem:[%s9170_s0 + $0x370] ss:$100 sps:$4 sm:$0xff]  }
 0x139   :  { %4789 = vmatprep.subr.bf16.mxu0 %v6846_v55  ;;  %v8659_v55 = vld [vmem:[%s9169_s1 + $0xb80] ss:$8 sps:$4 sm:$0xff]  }
 0x13a   :  { %4073 = vmatmul.mubr.bf16.gmra.mrb[28].mxu1 %v6839_v56  ;;  %v6939_v56 = vld [vmem:[%s9169_s1 + $0x594] ss:$8 sps:$4 sm:$0xff]  }
 0x13b   :  { %4751 = vmatmul.mubr.bf16.gmra.mrb[28].mxu0 %v6843_v58  ;;  %4112 = vmatpush1.bf16.msra.mxu1 %v6840_v57  ;;  %v8669_v57 = vld [vmem:[%s9169_s1 + $0xb94] ss:$8 sps:$4 sm:$0xff]   ;;  %v6943_v58 = vld [vmem:[%s9170_s0 + $0x40c] ss:$100 sps:$4 sm:$0xff]  }
 0x13c   :  { %4790 = vmatpush1.bf16.msra.mxu0 %v6844_v59  ;;  %4113 = vmatprep.subr.bf16.mxu1 %v6849_v60  ;;  %v6945_v59 = vld [vmem:[%s9170_s0 + $0x43c] ss:$100 sps:$4 sm:$0xff]   ;;  %v6937_v60 = vld [vmem:[%s9169_s1 + $0x590] ss:$8 sps:$4 sm:$0xff]  }
 0x13d   :  { %4791 = vmatprep.subr.bf16.mxu0 %v6852_v61  ;;  %4115 = vmatprep.mubr.bf16.mxu1 %v6855_v62  ;;  %v8684_v61 = vld [vmem:[%s9169_s1 + $0xb90] ss:$8 sps:$4 sm:$0xff]   ;;  %v6950_v62 = vld [vmem:[%s9169_s1 + $0x5a4] ss:$8 sps:$4 sm:$0xff]  }
 0x13e   :  { %4793 = vmatprep.mubr.bf16.mxu0 %v6858_v63  ;;  %v8693_v63 = vld [vmem:[%s9169_s1 + $0xba4] ss:$8 sps:$4 sm:$0xff]  }
 0x13f   :  { %4114 = vmatpush1.bf16.msra.mxu1 %v6847_v0  ;;  %v6947_v0 = vld [vmem:[%s9170_s0 + $0x408] ss:$100 sps:$4 sm:$0xff]  }
 0x140   :  { %4792 = vmatpush1.bf16.msra.mxu0 %v6850_v1  ;;  %4196 = vmatprep.subr.bf16.mxu1 %v6861_v2  ;;  %v6948_v1 = vld [vmem:[%s9169_s1 + $0x5a0] ss:$8 sps:$4 sm:$0xff]   ;;  %v6951_v2 = vld [vmem:[%s9170_s0 + $0x438] ss:$100 sps:$4 sm:$0xff]  }
 0x141   :  { %4874 = vmatprep.subr.bf16.mxu0 %v8454_v3 }
 0x142   :  { %4116 = vmatmul.mubr.bf16.vlgmr.msra.gmra.mrb[0].mxu1 %v6853_v4  ;;  %v8707_v4 = vld [vmem:[%s9169_s1 + $0xba0] ss:$8 sps:$4 sm:$0xff]  }
 0x143   :  { %4794 = vmatmul.mubr.bf16.vlgmr.msra.gmra.mrb[0].mxu0 %v6856_v5  ;;  %4197 = vmatpush1.bf16.msra.mxu1 %v6859_v6  ;;  %v6957_v5 = vld [vmem:[%s9169_s1 + $0x5b4] ss:$8 sps:$4 sm:$0xff]  }
 0x144   :  { %4875 = vmatpush1.bf16.msra.mxu0 %v8468_v7  ;;  %4198 = vmatprep.subr.bf16.mxu1 %v6867_v8  ;;  %v8717_v6 = vld [vmem:[%s9169_s1 + $0xbb4] ss:$8 sps:$4 sm:$0xff]  }
 0x145   :  { %4876 = vmatprep.subr.bf16.mxu0 %v8477_v9  ;;  %4125 = vmatprep.mubr.bf16.mxu1 %v6871_v10  ;;  %v6961_v8 = vld [vmem:[%s9170_s0 + $0x4d4] ss:$100 sps:$4 sm:$0xff]   ;;  %v6963_v10 = vld [vmem:[%s9170_s0 + $0x504] ss:$100 sps:$4 sm:$0xff]  }
 0x146   :  { %4803 = vmatprep.mubr.bf16.mxu0 %v6873_v11  ;;  %v6955_v11 = vld [vmem:[%s9169_s1 + $0x5b0] ss:$8 sps:$4 sm:$0xff]  }
 0x147   :  { %4199 = vmatpush1.bf16.msra.mxu1 %v6865_v12  ;;  %v8731_v12 = vld [vmem:[%s9169_s1 + $0xbb0] ss:$8 sps:$4 sm:$0xff]  }
 0x148   :  { %4877 = vmatpush1.bf16.msra.mxu0 %v8492_v13  ;;  %4200 = vmatprep.subr.bf16.mxu1 %v6878_v14  ;;  %v6968_v14 = vld [vmem:[%s9169_s1 + $0x5c4] ss:$8 sps:$4 sm:$0xff]  }
 0x149   :  { %4878 = vmatprep.subr.bf16.mxu0 %v8501_v15 }
 0x14a   :  { %4126 = vmatmul.mubr.bf16.gmra.mrb[4].mxu1 %v6875_v16  ;;  %v8741_v16 = vld [vmem:[%s9169_s1 + $0xbc4] ss:$8 sps:$4 sm:$0xff]  }
 0x14b   :  { %4804 = vmatmul.mubr.bf16.gmra.mrb[4].mxu0 %v6879_v18  ;;  %4201 = vmatpush1.bf16.msra.mxu1 %v6876_v17  ;;  %v6965_v17 = vld [vmem:[%s9170_s0 + $0x4d0] ss:$100 sps:$4 sm:$0xff]   ;;  %v6966_v18 = vld [vmem:[%s9169_s1 + $0x5c0] ss:$8 sps:$4 sm:$0xff]  }
 0x14c   :  { %4879 = vmatpush1.bf16.msra.mxu0 %v8515_v19  ;;  %4202 = vmatprep.subr.bf16.mxu1 %v6885_v20  ;;  %v6969_v20 = vld [vmem:[%s9170_s0 + $0x500] ss:$100 sps:$4 sm:$0xff]  }
 0x14d   :  { %4880 = vmatprep.subr.bf16.mxu0 %v8525_v21  ;;  %4135 = vmatprep.mubr.bf16.mxu1 %v6889_v22  ;;  %v8755_v22 = vld [vmem:[%s9169_s1 + $0xbc0] ss:$8 sps:$4 sm:$0xff]  }
 0x14e   :  { %4813 = vmatprep.mubr.bf16.mxu0 %v6891_v23  ;;  %v6975_v23 = vld [vmem:[%s9169_s1 + $0x5d4] ss:$8 sps:$4 sm:$0xff]  }
 0x14f   :  { %4203 = vmatpush1.bf16.msra.mxu1 %v6883_v24  ;;  %v8765_v24 = vld [vmem:[%s9169_s1 + $0xbd4] ss:$8 sps:$4 sm:$0xff]  }
 0x150   :  { %4881 = vmatpush1.bf16.msra.mxu0 %v8540_v25  ;;  %4204 = vmatprep.subr.bf16.mxu1 %v6896_v26  ;;  %v6979_v26 = vld [vmem:[%s9170_s0 + $0x59c] ss:$100 sps:$4 sm:$0xff]  }
 0x151   :  { %4882 = vmatprep.subr.bf16.mxu0 %v8549_v27 }
 0x152   :  { %4136 = vmatmul.mubr.bf16.gmra.mrb[8].mxu1 %v6893_v28  ;;  %v6981_v28 = vld [vmem:[%s9170_s0 + $0x5cc] ss:$100 sps:$4 sm:$0xff]  }
 0x153   :  { %4814 = vmatmul.mubr.bf16.gmra.mrb[8].mxu0 %v6897_v30  ;;  %4205 = vmatpush1.bf16.msra.mxu1 %v6894_v29  ;;  %v6973_v29 = vld [vmem:[%s9169_s1 + $0x5d0] ss:$8 sps:$4 sm:$0xff]  }
 0x154   :  { %4883 = vmatpush1.bf16.msra.mxu0 %v8563_v31  ;;  %4206 = vmatprep.subr.bf16.mxu1 %v6903_v32  ;;  %v8779_v30 = vld [vmem:[%s9169_s1 + $0xbd0] ss:$8 sps:$4 sm:$0xff]   ;;  %v6986_v32 = vld [vmem:[%s9169_s1 + $0x5e4] ss:$8 sps:$4 sm:$0xff]  }
 0x155   :  { %4884 = vmatprep.subr.bf16.mxu0 %v8573_v33  ;;  %4145 = vmatprep.mubr.bf16.mxu1 %v6907_v34  ;;  %v8789_v34 = vld [vmem:[%s9169_s1 + $0xbe4] ss:$8 sps:$4 sm:$0xff]  }
 0x156   :  { %4823 = vmatprep.mubr.bf16.mxu0 %v6909_v35  ;;  %v6983_v35 = vld [vmem:[%s9170_s0 + $0x598] ss:$100 sps:$4 sm:$0xff]  }
 0x157   :  { %4207 = vmatpush1.bf16.msra.mxu1 %v6901_v36  ;;  %v6984_v36 = vld [vmem:[%s9169_s1 + $0x5e0] ss:$8 sps:$4 sm:$0xff]  }
 0x158   :  { %4885 = vmatpush1.bf16.msra.mxu0 %v8588_v37  ;;  %4208 = vmatprep.subr.bf16.mxu1 %v6914_v38  ;;  %v6987_v38 = vld [vmem:[%s9170_s0 + $0x5c8] ss:$100 sps:$4 sm:$0xff]  }
 0x159   :  { %4886 = vmatprep.subr.bf16.mxu0 %v8597_v39 }
 0x15a   :  { %4146 = vmatmul.mubr.bf16.gmra.mrb[12].mxu1 %v6911_v40  ;;  %v8803_v40 = vld [vmem:[%s9169_s1 + $0xbe0] ss:$8 sps:$4 sm:$0xff]  }
 0x15b   :  { %4824 = vmatmul.mubr.bf16.gmra.mrb[12].mxu0 %v6915_v42  ;;  %4209 = vmatpush1.bf16.msra.mxu1 %v6912_v41  ;;  %v6993_v41 = vld [vmem:[%s9169_s1 + $0x5f4] ss:$8 sps:$4 sm:$0xff]  }
 0x15c   :  { %4887 = vmatpush1.bf16.msra.mxu0 %v8611_v43  ;;  %4210 = vmatprep.subr.bf16.mxu1 %v6921_v44  ;;  %v8813_v42 = vld [vmem:[%s9169_s1 + $0xbf4] ss:$8 sps:$4 sm:$0xff]   ;;  %v6999_v44 = vld [vmem:[%s9170_s0 + $0x2c] ss:$100 sps:$4 sm:$0xff]  }
 0x15d   :  { %4888 = vmatprep.subr.bf16.mxu0 %v8621_v45  ;;  %4155 = vmatprep.mubr.bf16.mxu1 %v6925_v46  ;;  %v7002_v46 = vld [vmem:[%s9170_s0 + $0x5c] ss:$100 sps:$4 sm:$0xff]  }
 0x15e   :  { %4833 = vmatprep.mubr.bf16.mxu0 %v6927_v47  ;;  %v6991_v47 = vld [vmem:[%s9169_s1 + $0x5f0] ss:$8 sps:$4 sm:$0xff]  }
 0x15f   :  { %4211 = vmatpush1.bf16.msra.mxu1 %v6919_v48  ;;  %v8828_v48 = vld [vmem:[%s9169_s1 + $0xbf0] ss:$8 sps:$4 sm:$0xff]  }
 0x160   :  { %4889 = vmatpush1.bf16.msra.mxu0 %v8636_v49  ;;  %4212 = vmatprep.subr.bf16.mxu1 %v6932_v50  ;;  %v7005_v50 = vld [vmem:[%s9169_s1 + $0xc04] ss:$8 sps:$4 sm:$0xff]  }
 0x161   :  { %4890 = vmatprep.subr.bf16.mxu0 %v8645_v51 }
 0x162   :  { %4156 = vmatmul.mubr.bf16.gmra.mrb[16].mxu1 %v6929_v52  ;;  %v6997_v52 = vld [vmem:[%s9170_s0 + $0x28] ss:$100 sps:$4 sm:$0xff]  }
 0x163   :  { %4834 = vmatmul.mubr.bf16.gmra.mrb[16].mxu0 %v6933_v54  ;;  %4213 = vmatpush1.bf16.msra.mxu1 %v6930_v53  ;;  %v7000_v53 = vld [vmem:[%s9170_s0 + $0x58] ss:$100 sps:$4 sm:$0xff]   ;;  %v7003_v54 = vld [vmem:[%s9169_s1 + $0xc00] ss:$8 sps:$4 sm:$0xff]  }
 0x164   :  { %4891 = vmatpush1.bf16.msra.mxu0 %v8659_v55  ;;  %4214 = vmatprep.subr.bf16.mxu1 %v6939_v56  ;;  %v7008_v56 = vld [vmem:[%s9169_s1 + $0xc14] ss:$8 sps:$4 sm:$0xff]  }
 0x165   :  { %4892 = vmatprep.subr.bf16.mxu0 %v8669_v57  ;;  %4165 = vmatprep.mubr.bf16.mxu1 %v6943_v58  ;;  %v7009_v58 = vld [vmem:[%s9170_s0 + $0xf4] ss:$100 sps:$4 sm:$0xff]  }
 0x166   :  { %4843 = vmatprep.mubr.bf16.mxu0 %v6945_v59  ;;  %v7011_v59 = vld [vmem:[%s9170_s0 + $0x124] ss:$100 sps:$4 sm:$0xff]  }
 0x167   :  { %4215 = vmatpush1.bf16.msra.mxu1 %v6937_v60  ;;  %v7006_v60 = vld [vmem:[%s9169_s1 + $0xc10] ss:$8 sps:$4 sm:$0xff]  }
 0x168   :  { %4893 = vmatpush1.bf16.msra.mxu0 %v8684_v61  ;;  %4216 = vmatprep.subr.bf16.mxu1 %v6950_v62  ;;  %v7013_v62 = vld [vmem:[%s9170_s0 + $0xf0] ss:$100 sps:$4 sm:$0xff]  }
 0x169   :  { %4894 = vmatprep.subr.bf16.mxu0 %v8693_v63 }
 0x16a   :  { %4166 = vmatmul.mubr.bf16.gmra.mrb[20].mxu1 %v6947_v0  ;;  %v7020_v0 = vld [vmem:[%s9169_s1 + $0xc34] ss:$8 sps:$4 sm:$0xff]  }
 0x16b   :  { %4844 = vmatmul.mubr.bf16.gmra.mrb[20].mxu0 %v6951_v2  ;;  %4217 = vmatpush1.bf16.msra.mxu1 %v6948_v1  ;;  %v7021_v1 = vld [vmem:[%s9170_s0 + $0x1bc] ss:$100 sps:$4 sm:$0xff]   ;;  %v7029_v2 = vld [vmem:[%s9169_s1 + $0xc44] ss:$8 sps:$4 sm:$0xff]  }
 0x16c   :  { %4895 = vmatpush1.bf16.msra.mxu0 %v8707_v4  ;;  %4218 = vmatprep.subr.bf16.mxu1 %v6957_v5  ;;  %v7025_v5 = vld [vmem:[%s9170_s0 + $0x1b8] ss:$100 sps:$4 sm:$0xff]  }
 0x16d   :  { %4896 = vmatprep.subr.bf16.mxu0 %v8717_v6  ;;  %4175 = vmatprep.mubr.bf16.mxu1 %v6961_v8  ;;  %v7032_v8 = vld [vmem:[%s9169_s1 + $0xc54] ss:$8 sps:$4 sm:$0xff]  }
 0x16e   :  { %4853 = vmatprep.mubr.bf16.mxu0 %v6963_v10  ;;  %v7033_v10 = vld [vmem:[%s9170_s0 + $0x284] ss:$100 sps:$4 sm:$0xff]  }
 0x16f   :  { %4219 = vmatpush1.bf16.msra.mxu1 %v6955_v11  ;;  %v7041_v11 = vld [vmem:[%s9169_s1 + $0xc64] ss:$8 sps:$4 sm:$0xff]  }
 0x170   :  { %4897 = vmatpush1.bf16.msra.mxu0 %v8731_v12  ;;  %4220 = vmatprep.subr.bf16.mxu1 %v6968_v14  ;;  %v7037_v14 = vld [vmem:[%s9170_s0 + $0x280] ss:$100 sps:$4 sm:$0xff]  }
 0x171   :  { %4898 = vmatprep.subr.bf16.mxu0 %v8741_v16 }
 0x172   :  { %4176 = vmatmul.mubr.bf16.gmra.mrb[24].mxu1 %v6965_v17  ;;  %v7044_v17 = vld [vmem:[%s9169_s1 + $0xc74] ss:$8 sps:$4 sm:$0xff]  }
 0x173   :  { %4854 = vmatmul.mubr.bf16.gmra.mrb[24].mxu0 %v6969_v20  ;;  %4221 = vmatpush1.bf16.msra.mxu1 %v6966_v18  ;;  %v7045_v18 = vld [vmem:[%s9170_s0 + $0x34c] ss:$100 sps:$4 sm:$0xff]  }
 0x174   :  { %4899 = vmatpush1.bf16.msra.mxu0 %v8755_v22  ;;  %4222 = vmatprep.subr.bf16.mxu1 %v6975_v23  ;;  %v7047_v20 = vld [vmem:[%s9170_s0 + $0x348] ss:$100 sps:$4 sm:$0xff]  }
 0x175   :  { %4900 = vmatprep.subr.bf16.mxu0 %v8765_v24  ;;  %4185 = vmatprep.mubr.bf16.mxu1 %v6979_v26  ;;  %v7052_v23 = vld [vmem:[%s9170_s0 + $0x128] ss:$100 sps:$4 sm:$0xff]  }
 0x176   :  { %4863 = vmatprep.mubr.bf16.mxu0 %v6981_v28  ;;  %v7068_v26 = vld [vmem:[%s9170_s0 + $0x448] ss:$100 sps:$4 sm:$0xff]  }
 0x177   :  { %4223 = vmatpush1.bf16.msra.mxu1 %v6973_v29  ;;  %v7069_v28 = vld [vmem:[%s9170_s0 + $0x50c] ss:$100 sps:$4 sm:$0xff]  }
 0x178   :  { %4901 = vmatpush1.bf16.msra.mxu0 %v8779_v30  ;;  %4224 = vmatprep.subr.bf16.mxu1 %v6986_v32  ;;  %v7071_v29 = vld [vmem:[%s9170_s0 + $0x508] ss:$100 sps:$4 sm:$0xff]   ;;  %v7073_v32 = vld [vmem:[%s9170_s0 + $0x5d4] ss:$100 sps:$4 sm:$0xff]  }
 0x179   :  { %4902 = vmatprep.subr.bf16.mxu0 %v8789_v34 }
 0x17a   :  { %4186 = vmatmul.mubr.bf16.gmra.mrb[28].mxu1 %v6983_v35  ;;  %v7076_v35 = vld [vmem:[%s9170_s0 + $0x5d8] ss:$100 sps:$4 sm:$0xff]  }
 0x17b   :  { %4864 = vmatmul.mubr.bf16.gmra.mrb[28].mxu0 %v6987_v38  ;;  %4225 = vmatpush1.bf16.msra.mxu1 %v6984_v36 }
 0x17c   :  { %4903 = vmatpush1.bf16.msra.mxu0 %v8803_v40  ;;  %4226 = vmatprep.subr.bf16.mxu1 %v6993_v41 }
 0x17d   :  { %4904 = vmatprep.subr.bf16.mxu0 %v8813_v42  ;;  %4228 = vmatprep.mubr.bf16.mxu1 %v6999_v44 }
 0x17e   :  { %4906 = vmatprep.mubr.bf16.mxu0 %v7002_v46 }
 0x17f   :  { %4227 = vmatpush1.bf16.msra.mxu1 %v6991_v47 }
 0x180   :  { %4905 = vmatpush1.bf16.msra.mxu0 %v8828_v48  ;;  %5764 = vmatprep.subr.bf16.mxu1 %v8454_v3  ;;  %v7017_v3 = vld [vmem:[%s9169_s1 + $0xc24] ss:$8 sps:$4 sm:$0xff]  }
 0x181   :  { %4987 = vmatprep.subr.bf16.mxu0 %v7005_v50 }
 0x182   :  { %4229 = vmatmul.mubr.bf16.vlgmr.msra.gmra.mrb[0].mxu1 %v6997_v52 }
 0x183   :  { %4907 = vmatmul.mubr.bf16.vlgmr.msra.gmra.mrb[0].mxu0 %v7000_v53  ;;  %5780 = vmatpush1.bf16.msra.mxu1 %v8468_v7  ;;  %v7014_v7 = vld [vmem:[%s9170_s0 + $0x120] ss:$100 sps:$4 sm:$0xff]  }
 0x184   :  { %4988 = vmatpush1.bf16.msra.mxu0 %v7003_v54  ;;  %5765 = vmatprep.subr.bf16.mxu1 %v8477_v9  ;;  %v7015_v9 = vld [vmem:[%s9169_s1 + $0xc20] ss:$8 sps:$4 sm:$0xff]  }
 0x185   :  { %4989 = vmatprep.subr.bf16.mxu0 %v7008_v56  ;;  %4238 = vmatprep.mubr.bf16.mxu1 %v7009_v58 }
 0x186   :  { %4916 = vmatprep.mubr.bf16.mxu0 %v7011_v59 }
 0x187   :  { %5781 = vmatpush1.bf16.msra.mxu1 %v8492_v13  ;;  %v7023_v13 = vld [vmem:[%s9170_s0 + $0x1ec] ss:$100 sps:$4 sm:$0xff]  }
 0x188   :  { %4990 = vmatpush1.bf16.msra.mxu0 %v7006_v60  ;;  %5766 = vmatprep.subr.bf16.mxu1 %v8501_v15  ;;  %v7018_v15 = vld [vmem:[%s9169_s1 + $0xc30] ss:$8 sps:$4 sm:$0xff]  }
 0x189   :  { %4991 = vmatprep.subr.bf16.mxu0 %v7017_v3 }
 0x18a   :  { %4239 = vmatmul.mubr.bf16.gmra.mrb[4].mxu1 %v7013_v62 }
 0x18b   :  { %4917 = vmatmul.mubr.bf16.gmra.mrb[4].mxu0 %v7014_v7  ;;  %5782 = vmatpush1.bf16.msra.mxu1 %v8515_v19  ;;  %v7026_v19 = vld [vmem:[%s9170_s0 + $0x1e8] ss:$100 sps:$4 sm:$0xff]  }
 0x18c   :  { %4992 = vmatpush1.bf16.msra.mxu0 %v7015_v9  ;;  %5767 = vmatprep.subr.bf16.mxu1 %v8525_v21  ;;  %v7027_v21 = vld [vmem:[%s9169_s1 + $0xc40] ss:$8 sps:$4 sm:$0xff]  }
 0x18d   :  { %4993 = vmatprep.subr.bf16.mxu0 %v7020_v0  ;;  %4248 = vmatprep.mubr.bf16.mxu1 %v7021_v1 }
 0x18e   :  { %4926 = vmatprep.mubr.bf16.mxu0 %v7023_v13 }
 0x18f   :  { %5783 = vmatpush1.bf16.msra.mxu1 %v8540_v25  ;;  %v7035_v25 = vld [vmem:[%s9170_s0 + $0x2b4] ss:$100 sps:$4 sm:$0xff]  }
 0x190   :  { %4994 = vmatpush1.bf16.msra.mxu0 %v7018_v15  ;;  %5768 = vmatprep.subr.bf16.mxu1 %v8549_v27  ;;  %v7030_v27 = vld [vmem:[%s9169_s1 + $0xc50] ss:$8 sps:$4 sm:$0xff]  }
 0x191   :  { %4995 = vmatprep.subr.bf16.mxu0 %v7029_v2 }
 0x192   :  { %4249 = vmatmul.mubr.bf16.gmra.mrb[8].mxu1 %v7025_v5 }
 0x193   :  { %4927 = vmatmul.mubr.bf16.gmra.mrb[8].mxu0 %v7026_v19  ;;  %5784 = vmatpush1.bf16.msra.mxu1 %v8563_v31  ;;  %v7038_v31 = vld [vmem:[%s9170_s0 + $0x2b0] ss:$100 sps:$4 sm:$0xff]  }
 0x194   :  { %4996 = vmatpush1.bf16.msra.mxu0 %v7027_v21  ;;  %5769 = vmatprep.subr.bf16.mxu1 %v8573_v33  ;;  %v7039_v33 = vld [vmem:[%s9169_s1 + $0xc60] ss:$8 sps:$4 sm:$0xff]  }
 0x195   :  { %4997 = vmatprep.subr.bf16.mxu0 %v7032_v8  ;;  %4258 = vmatprep.mubr.bf16.mxu1 %v7033_v10 }
 0x196   :  { %4936 = vmatprep.mubr.bf16.mxu0 %v7035_v25 }
 0x197   :  { %5785 = vmatpush1.bf16.msra.mxu1 %v8588_v37  ;;  %v7042_v37 = vld [vmem:[%s9169_s1 + $0xc70] ss:$8 sps:$4 sm:$0xff]  }
 0x198   :  { %4998 = vmatpush1.bf16.msra.mxu0 %v7030_v27  ;;  %5770 = vmatprep.subr.bf16.mxu1 %v8597_v39  ;;  %v7077_v39 = vmov 0  }
 0x199   :  { %4999 = vmatprep.subr.bf16.mxu0 %v7041_v11 }
 0x19a   :  { %4259 = vmatmul.mubr.bf16.gmra.mrb[12].mxu1 %v7037_v14 }
 0x19b   :  { %4937 = vmatmul.mubr.bf16.gmra.mrb[12].mxu0 %v7038_v31  ;;  %5786 = vmatpush1.bf16.msra.mxu1 %v8611_v43  ;;  %v7048_v43 = vld [vmem:[%s9170_s0 + $0x60] ss:$100 sps:$4 sm:$0xff]  }
 0x19c   :  { %5000 = vmatpush1.bf16.msra.mxu0 %v7039_v33  ;;  %5771 = vmatprep.subr.bf16.mxu1 %v8621_v45  ;;  %v7049_v45 = vld [vmem:[%s9170_s0 + $0x414] ss:$100 sps:$4 sm:$0xff]  }
 0x19d   :  { %5001 = vmatprep.subr.bf16.mxu0 %v7044_v17  ;;  %4268 = vmatprep.mubr.bf16.mxu1 %v7045_v18 }
 0x19e   :  { %5019 = vmatprep.mubr.bf16.mxu0 %v7077_v39 }
 0x19f   :  { %5787 = vmatpush1.bf16.msra.mxu1 %v8636_v49  ;;  %v7051_v49 = vld [vmem:[%s9170_s0 + $0x410] ss:$100 sps:$4 sm:$0xff]  }
 0x1a0   :  { %5002 = vmatpush1.bf16.msra.mxu0 %v7042_v37  ;;  %5772 = vmatprep.subr.bf16.mxu1 %v8645_v51  ;;  %v7053_v51 = vld [vmem:[%s9170_s0 + $0x4dc] ss:$100 sps:$4 sm:$0xff]  }
 0x1a2   :  { %4269 = vmatmul.mubr.bf16.gmra.mrb[16].mxu1 %v7047_v20 }
 0x1a3   :  { %5020 = vmatmul.mubr.bf16.vlgmr.msra.gmra.mrb[0].mxu0 %v7048_v43  ;;  %5788 = vmatpush1.bf16.msra.mxu1 %v8659_v55  ;;  %v7055_v55 = vld [vmem:[%s9170_s0 + $0x4d8] ss:$100 sps:$4 sm:$0xff]  }
 0x1a4   :  { %4278 = vmatprep.mubr.bf16.mxu1 %v7049_v45  ;;  %5773 = vmatprep.subr.bf16.mxu1 %v8669_v57  ;;  %v7056_v57 = vld [vmem:[%s9170_s0 + $0x1f0] ss:$100 sps:$4 sm:$0xff]  }
 0x1a5   :  { %5029 = vmatprep.mubr.bf16.mxu0 %v7077_v39 }
 0x1a7   :  { %5789 = vmatpush1.bf16.msra.mxu1 %v8684_v61  ;;  %v7057_v61 = vld [vmem:[%s9170_s0 + $0x5a4] ss:$100 sps:$4 sm:$0xff]  }
 0x1a8   :  { %5774 = vmatprep.subr.bf16.mxu1 %v8693_v63  ;;  %v7059_v63 = vld [vmem:[%s9170_s0 + $0x5a0] ss:$100 sps:$4 sm:$0xff]  }
 0x1aa   :  { %4279 = vmatmul.mubr.bf16.gmra.mrb[20].mxu1 %v7051_v49 }
 0x1ab   :  { %5030 = vmatmul.mubr.bf16.gmra.mrb[4].mxu0 %v7052_v23  ;;  %5790 = vmatpush1.bf16.msra.mxu1 %v8707_v4  ;;  %v7060_v4 = vld [vmem:[%s9170_s0 + $0x2b8] ss:$100 sps:$4 sm:$0xff]  }
 0x1ac   :  { %4288 = vmatprep.mubr.bf16.mxu1 %v7053_v51  ;;  %5775 = vmatprep.subr.bf16.mxu1 %v8717_v6  ;;  %v7063_v6 = vld [vmem:[%s9170_s0 + $0x37c] ss:$100 sps:$4 sm:$0xff]  }
 0x1ad   :  { %5039 = vmatprep.mubr.bf16.mxu0 %v7077_v39 }
 0x1af   :  { %5791 = vmatpush1.bf16.msra.mxu1 %v8731_v12  ;;  %v7061_v12 = vld [vmem:[%s9170_s0 + $0x378] ss:$100 sps:$4 sm:$0xff]  }
 0x1b0   :  { %5776 = vmatprep.subr.bf16.mxu1 %v8741_v16  ;;  %v7064_v16 = vld [vmem:[%s9170_s0 + $0x380] ss:$100 sps:$4 sm:$0xff]  }
 0x1b2   :  { %4289 = vmatmul.mubr.bf16.gmra.mrb[24].mxu1 %v7055_v55 }
 0x1b3   :  { %5040 = vmatmul.mubr.bf16.gmra.mrb[8].mxu0 %v7056_v57  ;;  %5792 = vmatpush1.bf16.msra.mxu1 %v8755_v22  ;;  %v7065_v22 = vld [vmem:[%s9170_s0 + $0x444] ss:$100 sps:$4 sm:$0xff]  }
 0x1b4   :  { %4298 = vmatprep.mubr.bf16.mxu1 %v7057_v61  ;;  %5777 = vmatprep.subr.bf16.mxu1 %v8765_v24  ;;  %v7067_v24 = vld [vmem:[%s9170_s0 + $0x440] ss:$100 sps:$4 sm:$0xff]  }
 0x1b5   :  { %5049 = vmatprep.mubr.bf16.mxu0 %v7077_v39 }
 0x1b7   :  { %5793 = vmatpush1.bf16.msra.mxu1 %v8779_v30  ;;  %v7072_v30 = vld [vmem:[%s9170_s0 + $0x510] ss:$100 sps:$4 sm:$0xff]  }
 0x1b8   :  { %5778 = vmatprep.subr.bf16.mxu1 %v8789_v34  ;;  %v7075_v34 = vld [vmem:[%s9170_s0 + $0x5d0] ss:$100 sps:$4 sm:$0xff]  }
 0x1ba   :  { %4299 = vmatmul.mubr.bf16.gmra.mrb[28].mxu1 %v7059_v63 }
 0x1bb   :  { %5050 = vmatmul.mubr.bf16.gmra.mrb[12].mxu0 %v7060_v4  ;;  %5794 = vmatpush1.bf16.msra.mxu1 %v8803_v40 }
 0x1bc   :  { %4946 = vmatprep.mubr.bf16.mxu1 %v7063_v6  ;;  %5779 = vmatprep.subr.bf16.mxu1 %v8813_v42 }
 0x1bd   :  { %5059 = vmatprep.mubr.bf16.mxu0 %v7077_v39 }
 0x1bf   :  { %5795 = vmatpush1.bf16.msra.mxu1 %v8828_v48 }
 0x1c2   :  { %4947 = vmatmul.mubr.bf16.vlgmr.msra.gmra.mrb[32].mxu1 %v7061_v12 }
 0x1c3   :  { %5060 = vmatmul.mubr.bf16.gmra.mrb[32].mxu0 %v7064_v16  ;;  %4956 = vmatprep.mubr.bf16.mxu1 %v7065_v22 }
 0x1c4   :  { %5069 = vmatprep.mubr.bf16.mxu0 %v7077_v39 }
 0x1ca   :  { %4957 = vmatmul.mubr.bf16.gmra.mrb[36].mxu1 %v7067_v24 }
 0x1cb   :  { %5070 = vmatmul.mubr.bf16.gmra.mrb[36].mxu0 %v7068_v26  ;;  %4966 = vmatprep.mubr.bf16.mxu1 %v7069_v28 }
 0x1cc   :  { %5079 = vmatprep.mubr.bf16.mxu0 %v7077_v39 }
 0x1d2   :  { %4967 = vmatmul.mubr.bf16.gmra.mrb[40].mxu1 %v7071_v29 }
 0x1d3   :  { %5080 = vmatmul.mubr.bf16.gmra.mrb[40].mxu0 %v7072_v30  ;;  %4976 = vmatprep.mubr.bf16.mxu1 %v7073_v32 }
 0x1d4   :  { %5089 = vmatprep.mubr.bf16.mxu0 %v7077_v39 }
 0x1da   :  { %4977 = vmatmul.mubr.bf16.gmra.mrb[44].mxu1 %v7075_v34 }
 0x1db   :  { %5090 = vmatmul.mubr.bf16.gmra.mrb[44].mxu0 %v7076_v35 }
 0x236   :  { %v4835_v36 = vpop.f32.mrb[16].mxu0 }
 0x237   :  { %v4837_v38 = vpop.f32.mrb[17].mxu0 }
 0x238   :  { %v4839_v40 = vpop.f32.mrb[18].mxu0 }
 0x239   :  { %v4841_v41 = vpop.f32.mrb[19].mxu0 }
 0x23e   :  { %v4845_v42 = vpop.f32.mrb[20].mxu0 }
 0x23f   :  { %v4847_v44 = vpop.f32.mrb[21].mxu0 }
 0x240   :  { %v4849_v46 = vpop.f32.mrb[22].mxu0 }
 0x241   :  { %v4851_v47 = vpop.f32.mrb[23].mxu0 }
 0x246   :  { %v4855_v48 = vpop.f32.mrb[24].mxu0 }
 0x247   :  { %v4857_v50 = vpop.f32.mrb[25].mxu0 }
 0x248   :  { %v9034_v52 = vpop.f32.mrb[26].mxu0 }
 0x249   :  { %v9036_v53 = vpop.f32.mrb[27].mxu0 }
 0x24e   :  { %v9038_v54 = vpop.f32.mrb[28].mxu0 }
 0x24f   :  { %v9040_v56 = vpop.f32.mrb[29].mxu0 }
 0x250   :  { %v9042_v58 = vpop.f32.mrb[30].mxu0 }
 0x251   :  { %v9044_v59 = vpop.f32.mrb[31].mxu0 }
 0x255   :  { %v4230_v60 = vpop.f32.mrb[0].mxu1 }
 0x256   :  { %v4232_v3 = vpop.f32.mrb[1].mxu1 }
 0x257   :  { %v4234_v62 = vpop.f32.mrb[2].mxu1 }
 0x258   :  { %v4236_v7 = vpop.f32.mrb[3].mxu1 }
 0x25d   :  { %v4240_v9 = vpop.f32.mrb[4].mxu1 }
 0x25e   :  { %v4242_v0 = vpop.f32.mrb[5].mxu1 }
 0x25f   :  { %v4244_v1 = vpop.f32.mrb[6].mxu1 }
 0x260   :  { %v4246_v13 = vpop.f32.mrb[7].mxu1 }
 0x265   :  { %v4250_v15 = vpop.f32.mrb[8].mxu1 }
 0x266   :  { %v4252_v2 = vpop.f32.mrb[9].mxu1 }
 0x267   :  { %v4254_v5 = vpop.f32.mrb[10].mxu1 }
 0x268   :  { %v4256_v19 = vpop.f32.mrb[11].mxu1 }
 0x26d   :  { %v4260_v21 = vpop.f32.mrb[12].mxu1 }
 0x26e   :  { %v4262_v8 = vpop.f32.mrb[13].mxu1 }
 0x26f   :  { %v9046_v10 = vpop.f32.mrb[14].mxu1 }
 0x270   :  { %v9048_v25 = vpop.f32.mrb[15].mxu1 }
 0x275   :  { %v4270_v27 = vpop.f32.mrb[16].mxu1 }
 0x276   :  { %v5021_v11 = vpop.f32.mrb[0].mxu0  ;;  %v9050_v14 = vadd.f32 %v4835_v36, %v4270_v27  ;;  %v4272_v33 = vpop.f32.mrb[17].mxu1 }
 0x277   :  { %v9052_v31 = vadd.f32 %v5021_v11, %v4230_v60  ;;  %v5023_v17 = vpop.f32.mrb[1].mxu0  ;;  %v9054_v18 = vadd.f32 %v4837_v38, %v4272_v33  ;;  %v4274_v39 = vpop.f32.mrb[18].mxu1 }
 0x278   :  { %v9056_v37 = vadd.f32 %v5023_v17, %v4232_v3  ;;  %v5025_v20 = vpop.f32.mrb[2].mxu0  ;;  %v9058_v43 = vadd.f32 %v4839_v40, %v4274_v39  ;;  %v4276_v49 = vpop.f32.mrb[19].mxu1 }
 0x279   :  { %v9060_v45 = vadd.f32 %v5025_v20, %v4234_v62  ;;  %v5027_v23 = vpop.f32.mrb[3].mxu0  ;;  %v9062_v51 = vadd.f32 %v4841_v41, %v4276_v49 }
 0x27a   :  { %v9064_v55 = vadd.f32 %v5027_v23, %v4236_v7 }
 0x27d   :  { %v4280_v57 = vpop.f32.mrb[20].mxu1 }
 0x27e   :  { %v5031_v61 = vpop.f32.mrb[4].mxu0  ;;  %v9066_v63 = vadd.f32 %v4845_v42, %v4280_v57  ;;  %v4282_v6 = vpop.f32.mrb[21].mxu1 }
 0x27f   :  { %v9068_v4 = vadd.f32 %v5031_v61, %v4240_v9  ;;  %v5033_v12 = vpop.f32.mrb[5].mxu0  ;;  %v9070_v16 = vadd.f32 %v4847_v44, %v4282_v6  ;;  %v4284_v24 = vpop.f32.mrb[22].mxu1 }
 0x280   :  { %v9072_v22 = vadd.f32 %v5033_v12, %v4242_v0  ;;  %v5035_v26 = vpop.f32.mrb[6].mxu0  ;;  %v9074_v28 = vadd.f32 %v4849_v46, %v4284_v24  ;;  %v4286_v30 = vpop.f32.mrb[23].mxu1 }
 0x281   :  { %v9076_v29 = vadd.f32 %v5035_v26, %v4244_v1  ;;  %v5037_v32 = vpop.f32.mrb[7].mxu0  ;;  %v9078_v34 = vadd.f32 %v4851_v47, %v4286_v30 }
 0x282   :  { %v9080_v35 = vadd.f32 %v5037_v32, %v4246_v13 }
 0x285   :  { %v4290_v36 = vpop.f32.mrb[24].mxu1 }
 0x286   :  { %v5041_v38 = vpop.f32.mrb[8].mxu0  ;;  %v9082_v40 = vadd.f32 %v4855_v48, %v4290_v36  ;;  %v4292_v42 = vpop.f32.mrb[25].mxu1 }
 0x287   :  { %v5804_v41 = vadd.f32 %v5041_v38, %v4250_v15  ;;  %v5043_v44 = vpop.f32.mrb[9].mxu0  ;;  %v9084_v60 = vadd.f32 %v4857_v50, %v4292_v42  ;;  %v4294_v46 = vpop.f32.mrb[26].mxu1 }
 0x288   :  { %v5805_v3 = vadd.f32 %v5043_v44, %v4252_v2  ;;  %v5045_v62 = vpop.f32.mrb[10].mxu0  ;;  %v9088_v9 = vadd.f32 %v9034_v52, %v4294_v46  ;;  %v4296_v0 = vpop.f32.mrb[27].mxu1 }
 0x289   :  { %v5100_v7 = vmax.f32 %v9052_v31, %v5804_v41  ;;  %v5806_v47 = vadd.f32 %v5045_v62, %v4254_v5  ;;  %v5047_v1 = vpop.f32.mrb[11].mxu0  ;;  %v9092_v48 = vadd.f32 %v9036_v53, %v4296_v0 }
 0x28a   :  { %v5103_v13 = vmax.f32 %v9056_v37, %v5805_v3  ;;  %v5807_v15 = vadd.f32 %v5047_v1, %v4256_v19 }
 0x28b   :  { %v5106_v50 = vmax.f32 %v9060_v45, %v5806_v47 }
 0x28c   :  { %v5109_v2 = vmax.f32 %v9064_v55, %v5807_v15 }
 0x28d   :  { %v4300_v27 = vpop.f32.mrb[28].mxu1 }
 0x28e   :  { %v5051_v11 = vpop.f32.mrb[12].mxu0  ;;  %v9097_v31 = vadd.f32 %v9038_v54, %v4300_v27  ;;  %v4302_v33 = vpop.f32.mrb[29].mxu1 }
 0x28f   :  { %v5808_v52 = vadd.f32 %v5051_v11, %v4260_v21  ;;  %v5053_v5 = vpop.f32.mrb[13].mxu0  ;;  %v9100_v17 = vadd.f32 %v9040_v56, %v4302_v33  ;;  %v4304_v39 = vpop.f32.mrb[30].mxu1 }
 0x290   :  { %v5809_v37 = vadd.f32 %v5053_v5, %v4262_v8  ;;  %v5055_v53 = vpop.f32.mrb[14].mxu0  ;;  %v9104_v20 = vadd.f32 %v9042_v58, %v4304_v39  ;;  %v4306_v49 = vpop.f32.mrb[31].mxu1 }
 0x291   :  { %v5112_v19 = vmax.f32 %v9068_v4, %v5808_v52  ;;  %v5810_v45 = vadd.f32 %v5055_v53, %v9046_v10  ;;  %v5057_v23 = vpop.f32.mrb[15].mxu0  ;;  %v9109_v21 = vadd.f32 %v9044_v59, %v4306_v49 }
 0x292   :  { %v5115_v54 = vmax.f32 %v9072_v22, %v5809_v37  ;;  %v5811_v56 = vadd.f32 %v5057_v23, %v9048_v25 }
 0x293   :  { %v5118_v8 = vmax.f32 %v9076_v29, %v5810_v45 }
 0x294   :  { %v5121_v55 = vmax.f32 %v9080_v35, %v5811_v56 }
 0x295   :  { %v4948_v57 = vpop.f32.mrb[32].mxu1 }
 0x296   :  { %v5061_v61 = vpop.f32.mrb[32].mxu0  ;;  %v5813_v58 = vadd.f32 %v9050_v14, %v4948_v57  ;;  %v4950_v4 = vpop.f32.mrb[33].mxu1  ;;  %v5126_v14 = vlaneseq }
 0x297   :  { %v5063_v6 = vpop.f32.mrb[33].mxu0  ;;  %v5816_v10 = vadd.f32 %v9054_v18, %v4950_v4  ;;  %v4952_v12 = vpop.f32.mrb[34].mxu1 }
 0x298   :  { %v5065_v24 = vpop.f32.mrb[34].mxu0  ;;  %v5814_v22 = vadd.f32 %v5813_v58, %v5061_v61  ;;  %v5819_v59 = vadd.f32 %v9058_v43, %v4952_v12  ;;  %v4954_v26 = vpop.f32.mrb[35].mxu1 }
 0x299   :  { %v5067_v30 = vpop.f32.mrb[35].mxu0  ;;  %v5817_v25 = vadd.f32 %v5816_v10, %v5063_v6  ;;  %v5822_v29 = vadd.f32 %v9062_v51, %v4954_v26 }
 0x29a   :  { %v5101_v32 = vmax.f32 %v5100_v7, %v5814_v22  ;;  %v5820_v35 = vadd.f32 %v5819_v59, %v5065_v24 }
 0x29b   :  { %v5104_v36 = vmax.f32 %v5103_v13, %v5817_v25  ;;  %v5823_v38 = vadd.f32 %v5822_v29, %v5067_v30  ;;  %v5127_v13 = vshrl.u32 %v5126_v14, 7 }
 0x29c   :  { %v5107_v41 = vmax.f32 %v5106_v50, %v5820_v35 }
 0x29d   :  { %v5110_v42 = vmax.f32 %v5109_v2, %v5823_v38  ;;  %v4958_v44 = vpop.f32.mrb[36].mxu1  ;;  %v5132_v53 = vsub.s32 1, %v5127_v13 }
 0x29e   :  { %v5071_v3 = vpop.f32.mrb[36].mxu0  ;;  %v5825_v18 = vadd.f32 %v9066_v63, %v4958_v44  ;;  %v4960_v46 = vpop.f32.mrb[37].mxu1 }
 0x29f   :  { %v5073_v62 = vpop.f32.mrb[37].mxu0  ;;  %v5828_v43 = vadd.f32 %v9070_v16, %v4960_v46  ;;  %v4962_v47 = vpop.f32.mrb[38].mxu1  ;;  %v5128_v16 = vsub.s32 0, %v5127_v13 }
 0x2a0   :  { %v5075_v0 = vpop.f32.mrb[38].mxu0  ;;  %v5826_v1 = vadd.f32 %v5825_v18, %v5071_v3  ;;  %v5831_v51 = vadd.f32 %v9074_v28, %v4962_v47  ;;  %v4964_v7 = vpop.f32.mrb[39].mxu1  ;;  %v5124_v28 = vld [vmem:[%s9171_s2] sm:$0x3] }
 0x2a1   :  { %v5077_v15 = vpop.f32.mrb[39].mxu0  ;;  %v5829_v27 = vadd.f32 %v5828_v43, %v5073_v62  ;;  %v5834_v50 = vadd.f32 %v9078_v34, %v4964_v7  ;;  %v5133_v4 = vrot.slane %v5124_v28, %v5132_v53 }
 0x2a2   :  { %v9122_v2 = vmax.f32 %v5112_v19, %v5826_v1  ;;  %v5832_v11 = vadd.f32 %v5831_v51, %v5075_v0 }
 0x2a3   :  { %v9124_v52 = vmax.f32 %v5115_v54, %v5829_v27  ;;  %v5835_v63 = vadd.f32 %v5834_v50, %v5077_v15 }
 0x2a4   :  { %v9126_v33 = vmax.f32 %v5118_v8, %v5832_v11  ;;  %v5129_v8 = vrot.slane %v5124_v28, %v5128_v16 }
 0x2a5   :  { %v9128_v5 = vmax.f32 %v5121_v55, %v5835_v63  ;;  %v4968_v37 = vpop.f32.mrb[40].mxu1 }
 0x2a6   :  { %v5081_v39 = vpop.f32.mrb[40].mxu0  ;;  %v5837_v34 = vadd.f32 %v9082_v40, %v4968_v37  ;;  %v4970_v19 = vpop.f32.mrb[41].mxu1 }
 0x2a7   :  { %v5083_v45 = vpop.f32.mrb[41].mxu0  ;;  %v5840_v49 = vadd.f32 %v9084_v60, %v4970_v19  ;;  %v4972_v23 = vpop.f32.mrb[42].mxu1 }
 0x2a8   :  { %v5085_v54 = vpop.f32.mrb[42].mxu0  ;;  %v5838_v56 = vadd.f32 %v5837_v34, %v5081_v39  ;;  %v5843_v55 = vadd.f32 %v9088_v9, %v4972_v23  ;;  %v4974_v57 = vpop.f32.mrb[43].mxu1 }
 0x2a9   :  { %v5087_v61 = vpop.f32.mrb[43].mxu0  ;;  %v5841_v58 = vadd.f32 %v5840_v49, %v5083_v45  ;;  %v5846_v6 = vadd.f32 %v9092_v48, %v4974_v57 }
 0x2aa   :  { %v5102_v10 = vmax.f32 %v5101_v32, %v5838_v56  ;;  %v5844_v12 = vadd.f32 %v5843_v55, %v5085_v54 }
 0x2ab   :  { %v5105_v24 = vmax.f32 %v5104_v36, %v5841_v58  ;;  %v5847_v40 = vadd.f32 %v5846_v6, %v5087_v61 }
 0x2ac   :  { %v5136_v22 = vadd.f32 %v5129_v8, %v5102_v10  ;;  %v5108_v59 = vmax.f32 %v5107_v41, %v5844_v12 }
 0x2ad   :  { %v5137_v26 = vadd.f32 %v5133_v4, %v5105_v24  ;;  %v5111_v60 = vmax.f32 %v5110_v42, %v5847_v40  ;;  %v4978_v30 = vpop.f32.mrb[44].mxu1 }
 0x2ae   :  { %v5091_v25 = vpop.f32.mrb[44].mxu0  ;;  %v5144_v29 = vmax.f32 %v5136_v22, 0.0  ;;  %v5138_v35 = vadd.f32 %v5129_v8, %v5108_v59  ;;  %v5849_v9 = vadd.f32 %v9097_v31, %v4978_v30  ;;  %v4980_v38 = vpop.f32.mrb[45].mxu1 }
 0x2af   :  { %v5093_v14 = vpop.f32.mrb[45].mxu0  ;;  %v5145_v44 = vmax.f32 %v5137_v26, 0.0  ;;  %v5139_v3 = vadd.f32 %v5133_v4, %v5111_v60  ;;  %v5852_v48 = vadd.f32 %v9100_v17, %v4980_v38  ;;  %v4982_v32 = vpop.f32.mrb[46].mxu1 }
 0x2b0   :  { %v5095_v18 = vpop.f32.mrb[46].mxu0  ;;  %5152 = vst [vmem:[%s9172_s3] sm:$0xff] %v5144_v29  ;;  %v5146_v36 = vmax.f32 %v5138_v35, 0.0  ;;  %v5850_v41 = vadd.f32 %v5849_v9, %v5091_v25  ;;  %v5855_v42 = vadd.f32 %v9104_v20, %v4982_v32  ;;  %v4984_v46 = vpop.f32.mrb[47].mxu1 }
 0x2b1   :  { %v5097_v62 = vpop.f32.mrb[47].mxu0  ;;  %5153 = vst [vmem:[%s9172_s3 + $0x8] sm:$0xff] %v5145_v44  ;;  %v5147_v31 = vmax.f32 %v5139_v3, 0.0  ;;  %v5853_v43 = vadd.f32 %v5852_v48, %v5093_v14  ;;  %v5858_v17 = vadd.f32 %v9109_v21, %v4984_v46 }
 0x2b2   :  { %5154 = vst [vmem:[%s9172_s3 + $0x10] sm:$0xff] %v5146_v36  ;;  %v5114_v47 = vmax.f32 %v9122_v2, %v5850_v41  ;;  %v5856_v0 = vadd.f32 %v5855_v42, %v5095_v18 }
 0x2b3   :  { %5155 = vst [vmem:[%s9172_s3 + $0x18] sm:$0xff] %v5147_v31  ;;  %v5117_v20 = vmax.f32 %v9124_v52, %v5853_v43  ;;  %v5859_v1 = vadd.f32 %v5858_v17, %v5097_v62 }
 0x2b4   :  { %v5140_v51 = vadd.f32 %v5129_v8, %v5114_v47  ;;  %v5120_v7 = vmax.f32 %v9126_v33, %v5856_v0 }
 0x2b5   :  { %v5141_v15 = vadd.f32 %v5133_v4, %v5117_v20  ;;  %v5123_v21 = vmax.f32 %v9128_v5, %v5859_v1 }
 0x2b6   :  { %v5148_v13 = vmax.f32 %v5140_v51, 0.0  ;;  %v5142_v27 = vadd.f32 %v5129_v8, %v5120_v7 }
 0x2b7   :  { %v5149_v50 = vmax.f32 %v5141_v15, 0.0  ;;  %v5143_v11 = vadd.f32 %v5133_v4, %v5123_v21 }
 0x2b8   :  { %5156 = vst [vmem:[%s9172_s3 + $0x20] sm:$0xff] %v5148_v13  ;;  %v5150_v2 = vmax.f32 %v5142_v27, 0.0 }
 0x2b9   :  { %5157 = vst [vmem:[%s9172_s3 + $0x28] sm:$0xff] %v5149_v50  ;;  %v5151_v52 = vmax.f32 %v5143_v11, 0.0 }
 0x2ba   :  { %5158 = vst [vmem:[%s9172_s3 + $0x30] sm:$0xff] %v5150_v2 }
 0x2bb   :  { %5159 = vst [vmem:[%s9172_s3 + $0x38] sm:$0xff] %v5151_v52 }

// kernel: net_forward.5
= control target key start
LH: loop header
LB: loop body
LE: loop exit
PB: predicated region body
PF: predicated region fallthrough
CT: control target
= control target key end

     0   :  { %v3297_v47 = vmov 1983009808   ;;  %v566_v49 = vlaneseq  ;;  %s5105_s0 = inlined_call_operand.vmem [shape: f32[2,4096], index: 0, kind: input, shape index: {}]   ;;  %s5106_s1 = inlined_call_operand.vmem [shape: f32[4096,120], index: 1, kind: input, shape index: {}]   ;;  %s5107_s2 = inlined_call_operand.vmem [shape: f32[1,120], index: 2, kind: input, shape index: {}]   ;;  %s5108_s3 = inlined_call_operand.vmem [shape: f32[120,84], index: 3, kind: input, shape index: {}]   ;;  %s5109_s4 = inlined_call_operand.vmem [shape: f32[1,84], index: 4, kind: input, shape index: {}]   ;;  %s5110_s5 = inlined_call_operand.vmem [shape: f32[84,10], index: 5, kind: input, shape index: {}]   ;;  %s5111_s6 = inlined_call_operand.vmem [shape: f32[1,10], index: 6, kind: input, shape index: {}]   ;;  %s5112_s7 = inlined_call_operand.hbm [shape: f32[2,10], index: 7, kind: output, shape index: {}]  }
   0x1   :  { %v51_v0 = vld [vmem:[%s5106_s1 + $0x80] sm:$0xff]  ;;  %v52_v1 = vld [vmem:[%s5106_s1 + $0x88] sm:$0xff]  ;;  %v53_v11 = vld [vmem:[%s5106_s1 + $0x90] sm:$0xff]  ;;  %v564_v48 = vunpack.c.l.s4 %v3297_v47 }
   0x2   :  { %v35_v2 = vld [vmem:[%s5106_s1] sm:$0xff]  ;;  %v2712_v3 = vpack.c.bf16 %v52_v1, %v51_v0  ;;  %v36_v4 = vld [vmem:[%s5106_s1 + $0x8] sm:$0xff]  ;;  %v54_v13 = vld [vmem:[%s5106_s1 + $0x98] sm:$0xff]  ;;  %v567_v0 = vshrl.u32 %v566_v49, 7 }
   0x3   :  { %v83_v5 = vld [vmem:[%s5106_s1 + $0x180] sm:$0xff]  ;;  %v84_v6 = vld [vmem:[%s5106_s1 + $0x188] sm:$0xff]  ;;  %v2714_v7 = vpack.c.bf16 %v36_v4, %v35_v2  ;;  %v37_v14 = vld [vmem:[%s5106_s1 + $0x10] sm:$0xff]  ;;  %v2716_v16 = vpack.c.bf16 %v54_v13, %v53_v11  ;;  %v565_v63 = vunpack.c.0.s8 %v564_v48 }
   0x4   :  { %v2744_v8 = vpack.c.bf16 %v84_v6, %v83_v5  ;;  %v67_v9 = vld [vmem:[%s5106_s1 + $0x100] sm:$0xff]  ;;  %v68_v10 = vld [vmem:[%s5106_s1 + $0x108] sm:$0xff]  ;;  %2713 = vmatprep.subr.bf16.mxu0 %v2712_v3  ;;  %v38_v15 = vld [vmem:[%s5106_s1 + $0x18] sm:$0xff] }
   0x5   :  { %v2746_v12 = vpack.c.bf16 %v68_v10, %v67_v9  ;;  %2715 = vmatpush3.bf16.msra.mxu0 %v2714_v7  ;;  %v2718_v17 = vpack.c.bf16 %v38_v15, %v37_v14  ;;  %v85_v18 = vld [vmem:[%s5106_s1 + $0x190] sm:$0xff]  ;;  %v86_v19 = vld [vmem:[%s5106_s1 + $0x198] sm:$0xff]  ;;  %v55_v23 = vld [vmem:[%s5106_s1 + $0xa0] sm:$0xff]  ;;  %v3492_v13 = vsub.s32 %v565_v63, %v567_v0 }
   0x6   :  { %2745 = vmatprep.subr.bf16.mxu1 %v2744_v8  ;;  %v69_v20 = vld [vmem:[%s5106_s1 + $0x110] sm:$0xff]  ;;  %v2748_v21 = vpack.c.bf16 %v86_v19, %v85_v18  ;;  %v70_v22 = vld [vmem:[%s5106_s1 + $0x118] sm:$0xff]  ;;  %v56_v24 = vld [vmem:[%s5106_s1 + $0xa8] sm:$0xff]  ;;  %2717 = vmatprep.subr.bf16.mxu0 %v2716_v16 }
   0x7   :  { %2747 = vmatpush3.bf16.msra.mxu1 %v2746_v12  ;;  %v2750_v25 = vpack.c.bf16 %v70_v22, %v69_v20  ;;  %v2720_v26 = vpack.c.bf16 %v56_v24, %v55_v23  ;;  %v39_v27 = vld [vmem:[%s5106_s1 + $0x20] sm:$0xff]  ;;  %v40_v28 = vld [vmem:[%s5106_s1 + $0x28] sm:$0xff]  ;;  %v57_v35 = vld [vmem:[%s5106_s1 + $0xb0] sm:$0xff] }
   0x8   :  { %v87_v29 = vld [vmem:[%s5106_s1 + $0x1a0] sm:$0xff]  ;;  %2749 = vmatprep.subr.bf16.mxu1 %v2748_v21  ;;  %v88_v30 = vld [vmem:[%s5106_s1 + $0x1a8] sm:$0xff]  ;;  %v2722_v33 = vpack.c.bf16 %v40_v28, %v39_v27  ;;  %v58_v36 = vld [vmem:[%s5106_s1 + $0xb8] sm:$0xff] }
   0x9   :  { %v71_v31 = vld [vmem:[%s5106_s1 + $0x120] sm:$0xff]  ;;  %v72_v32 = vld [vmem:[%s5106_s1 + $0x128] sm:$0xff]  ;;  %2719 = vmatpush3.bf16.msra.mxu0 %v2718_v17  ;;  %v2752_v34 = vpack.c.bf16 %v88_v30, %v87_v29  ;;  %v41_v37 = vld [vmem:[%s5106_s1 + $0x30] sm:$0xff]  ;;  %v2724_v39 = vpack.c.bf16 %v58_v36, %v57_v35 }
   0xa   :  { %2721 = vmatprep.subr.bf16.mxu0 %v2720_v26  ;;  %v2754_v38 = vpack.c.bf16 %v72_v32, %v71_v31  ;;  %v42_v40 = vld [vmem:[%s5106_s1 + $0x38] sm:$0xff]  ;;  %v89_v41 = vld [vmem:[%s5106_s1 + $0x1b0] sm:$0xff]  ;;  %v59_v46 = vld [vmem:[%s5106_s1 + $0xc0] sm:$0xff] }
   0xb   :  { %2751 = vmatpush3.bf16.msra.mxu1 %v2750_v25  ;;  %v90_v42 = vld [vmem:[%s5106_s1 + $0x1b8] sm:$0xff]  ;;  %v73_v44 = vld [vmem:[%s5106_s1 + $0x130] sm:$0xff]  ;;  %v60_v50 = vld [vmem:[%s5106_s1 + $0xc8] sm:$0xff]  ;;  %v2726_v51 = vpack.c.bf16 %v42_v40, %v41_v37 }
   0xc   :  { %2753 = vmatprep.subr.bf16.mxu1 %v2752_v34  ;;  %v2756_v43 = vpack.c.bf16 %v90_v42, %v89_v41  ;;  %v74_v45 = vld [vmem:[%s5106_s1 + $0x138] sm:$0xff]  ;;  %v91_v52 = vld [vmem:[%s5106_s1 + $0x1c0] sm:$0xff]  ;;  %v92_v53 = vld [vmem:[%s5106_s1 + $0x1c8] sm:$0xff]  ;;  %v2728_v55 = vpack.c.bf16 %v60_v50, %v59_v46 }
   0xd   :  { %2723 = vmatpush3.bf16.msra.mxu0 %v2722_v33  ;;  %v2758_v54 = vpack.c.bf16 %v74_v45, %v73_v44  ;;  %v43_v56 = vld [vmem:[%s5106_s1 + $0x40] sm:$0xff]  ;;  %v44_v57 = vld [vmem:[%s5106_s1 + $0x48] sm:$0xff]  ;;  %v2760_v59 = vpack.c.bf16 %v92_v53, %v91_v52  ;;  %v61_v61 = vld [vmem:[%s5106_s1 + $0xd0] sm:$0xff] }
   0xe   :  { %2725 = vmatprep.subr.bf16.mxu0 %v2724_v39  ;;  %v75_v58 = vld [vmem:[%s5106_s1 + $0x140] sm:$0xff]  ;;  %v76_v60 = vld [vmem:[%s5106_s1 + $0x148] sm:$0xff]  ;;  %v62_v62 = vld [vmem:[%s5106_s1 + $0xd8] sm:$0xff]  ;;  %v2730_v3 = vpack.c.bf16 %v44_v57, %v43_v56 }
   0xf   :  { %2755 = vmatpush3.bf16.msra.mxu1 %v2754_v38  ;;  %v93_v1 = vld [vmem:[%s5106_s1 + $0x1d0] sm:$0xff]  ;;  %v94_v2 = vld [vmem:[%s5106_s1 + $0x1d8] sm:$0xff]  ;;  %v2762_v4 = vpack.c.bf16 %v76_v60, %v75_v58  ;;  %v2732_v5 = vpack.c.bf16 %v62_v62, %v61_v61  ;;  %v63_v11 = vld [vmem:[%s5106_s1 + $0xe0] sm:$0xff] }
  0x10   :  { %2757 = vmatprep.subr.bf16.mxu1 %v2756_v43  ;;  %v45_v6 = vld [vmem:[%s5106_s1 + $0x50] sm:$0xff]  ;;  %v46_v7 = vld [vmem:[%s5106_s1 + $0x58] sm:$0xff]  ;;  %v2764_v9 = vpack.c.bf16 %v94_v2, %v93_v1  ;;  %v64_v12 = vld [vmem:[%s5106_s1 + $0xe8] sm:$0xff] }
  0x11   :  { %2727 = vmatpush3.bf16.msra.mxu0 %v2726_v51  ;;  %v77_v8 = vld [vmem:[%s5106_s1 + $0x150] sm:$0xff]  ;;  %v78_v10 = vld [vmem:[%s5106_s1 + $0x158] sm:$0xff]  ;;  %v95_v14 = vld [vmem:[%s5106_s1 + $0x1e0] sm:$0xff]  ;;  %v2734_v16 = vpack.c.bf16 %v46_v7, %v45_v6  ;;  %v2736_v19 = vpack.c.bf16 %v64_v12, %v63_v11 }
  0x12   :  { %2729 = vmatprep.subr.bf16.mxu0 %v2728_v55  ;;  %v96_v15 = vld [vmem:[%s5106_s1 + $0x1e8] sm:$0xff]  ;;  %v47_v17 = vld [vmem:[%s5106_s1 + $0x60] sm:$0xff]  ;;  %v2766_v18 = vpack.c.bf16 %v78_v10, %v77_v8  ;;  %v65_v25 = vld [vmem:[%s5106_s1 + $0xf0] sm:$0xff] }
  0x13   :  { %2759 = vmatpush3.bf16.msra.mxu1 %v2758_v54  ;;  %v48_v20 = vld [vmem:[%s5106_s1 + $0x68] sm:$0xff]  ;;  %v79_v21 = vld [vmem:[%s5106_s1 + $0x160] sm:$0xff]  ;;  %v2768_v23 = vpack.c.bf16 %v96_v15, %v95_v14  ;;  %v66_v26 = vld [vmem:[%s5106_s1 + $0xf8] sm:$0xff] }
  0x14   :  { %2761 = vmatprep.subr.bf16.mxu1 %v2760_v59  ;;  %v27_v22 = vld [vmem:[%s5105_s0] sm:$0xff]  ;;  %v80_v24 = vld [vmem:[%s5106_s1 + $0x168] sm:$0xff]  ;;  %v97_v29 = vld [vmem:[%s5106_s1 + $0x1f0] sm:$0xff]  ;;  %v2738_v31 = vpack.c.bf16 %v48_v20, %v47_v17  ;;  %v2740_v35 = vpack.c.bf16 %v66_v26, %v65_v25 }
  0x15   :  { %2731 = vmatpush3.bf16.msra.mxu0 %v2730_v3  ;;  %v569_v27 = vrot.slane %v27_v22, %v3492_v13  ;;  %v562_v28 = vcombine.high %v27_v22, %v27_v22  ;;  %v98_v30 = vld [vmem:[%s5106_s1 + $0x1f8] sm:$0xff]  ;;  %v2770_v34 = vpack.c.bf16 %v80_v24, %v79_v21  ;;  %v49_v36 = vld [vmem:[%s5106_s1 + $0x70] sm:$0xff]  ;;  %v115_v41 = vld [vmem:[%s5106_s1 + $0x280] sm:$0xff] }
  0x16   :  { %2733 = vmatprep.subr.bf16.mxu0 %v2732_v5  ;;  %v50_v37 = vld [vmem:[%s5106_s1 + $0x78] sm:$0xff]  ;;  %v81_v38 = vld [vmem:[%s5106_s1 + $0x170] sm:$0xff]  ;;  %v2772_v39 = vpack.c.bf16 %v98_v30, %v97_v29  ;;  %v116_v42 = vld [vmem:[%s5106_s1 + $0x288] sm:$0xff] }
  0x17   :  { %2763 = vmatpush3.bf16.msra.mxu1 %v2762_v4  ;;  %v577_v32 = vcombine.high %v569_v27, %v569_v27  ;;  %v576_v33 = vrot.slane %v562_v28, %v3492_v13  ;;  %v82_v40 = vld [vmem:[%s5106_s1 + $0x178] sm:$0xff]  ;;  %v147_v44 = vld [vmem:[%s5106_s1 + $0x380] sm:$0xff]  ;;  %v148_v45 = vld [vmem:[%s5106_s1 + $0x388] sm:$0xff]  ;;  %v2742_v46 = vpack.c.bf16 %v50_v37, %v49_v36  ;;  %v2776_v48 = vpack.c.bf16 %v116_v42, %v115_v41 }
  0x18   :  { %2765 = vmatprep.subr.bf16.mxu1 %v2764_v9  ;;  %v2774_v47 = vpack.c.bf16 %v82_v40, %v81_v38  ;;  %v99_v49 = vld [vmem:[%s5106_s1 + $0x200] sm:$0xff]  ;;  %v100_v50 = vld [vmem:[%s5106_s1 + $0x208] sm:$0xff]  ;;  %v2808_v52 = vpack.c.bf16 %v148_v45, %v147_v44  ;;  %v117_v54 = vld [vmem:[%s5106_s1 + $0x290] sm:$0xff] }
  0x19   :  { %2735 = vmatpush3.bf16.msra.mxu0 %v2734_v16  ;;  %794 = vmatprep.mubr.f32.mxu0 %v577_v32  ;;  %v578_v43 = vcombine.high %v576_v33, %v576_v33  ;;  %v131_v51 = vld [vmem:[%s5106_s1 + $0x300] sm:$0xff]  ;;  %v132_v53 = vld [vmem:[%s5106_s1 + $0x308] sm:$0xff]  ;;  %v118_v55 = vld [vmem:[%s5106_s1 + $0x298] sm:$0xff]  ;;  %v2778_v58 = vpack.c.bf16 %v100_v50, %v99_v49 }
  0x1a   :  { %2737 = vmatprep.subr.bf16.mxu0 %v2736_v19  ;;  %v149_v56 = vld [vmem:[%s5106_s1 + $0x390] sm:$0xff]  ;;  %v150_v57 = vld [vmem:[%s5106_s1 + $0x398] sm:$0xff]  ;;  %v2810_v59 = vpack.c.bf16 %v132_v53, %v131_v51  ;;  %v2780_v60 = vpack.c.bf16 %v118_v55, %v117_v54  ;;  %v119_v2 = vld [vmem:[%s5106_s1 + $0x2a0] sm:$0xff] }
  0x1b   :  { %2767 = vmatpush3.bf16.msra.mxu1 %v2766_v18  ;;  %864 = vmatprep.mubr.f32.mxu1 %v578_v43  ;;  %v101_v61 = vld [vmem:[%s5106_s1 + $0x210] sm:$0xff]  ;;  %v102_v62 = vld [vmem:[%s5106_s1 + $0x218] sm:$0xff]  ;;  %v2812_v0 = vpack.c.bf16 %v150_v57, %v149_v56  ;;  %v120_v3 = vld [vmem:[%s5106_s1 + $0x2a8] sm:$0xff] }
  0x1c   :  { %2769 = vmatprep.subr.bf16.mxu1 %v2768_v23  ;;  %v133_v63 = vld [vmem:[%s5106_s1 + $0x310] sm:$0xff]  ;;  %v134_v1 = vld [vmem:[%s5106_s1 + $0x318] sm:$0xff]  ;;  %v151_v4 = vld [vmem:[%s5106_s1 + $0x3a0] sm:$0xff]  ;;  %v2782_v6 = vpack.c.bf16 %v102_v62, %v101_v61  ;;  %v2784_v8 = vpack.c.bf16 %v120_v3, %v119_v2 }
  0x1d   :  { %2739 = vmatpush3.bf16.msra.mxu0 %v2738_v31  ;;  %v152_v5 = vld [vmem:[%s5106_s1 + $0x3a8] sm:$0xff]  ;;  %v2814_v7 = vpack.c.bf16 %v134_v1, %v133_v63  ;;  %v103_v9 = vld [vmem:[%s5106_s1 + $0x220] sm:$0xff]  ;;  %v121_v15 = vld [vmem:[%s5106_s1 + $0x2b0] sm:$0xff] }
  0x1e   :  { %2741 = vmatprep.subr.bf16.mxu0 %v2740_v35  ;;  %v104_v10 = vld [vmem:[%s5106_s1 + $0x228] sm:$0xff]  ;;  %v135_v11 = vld [vmem:[%s5106_s1 + $0x320] sm:$0xff]  ;;  %v2816_v12 = vpack.c.bf16 %v152_v5, %v151_v4  ;;  %v122_v16 = vld [vmem:[%s5106_s1 + $0x2b8] sm:$0xff] }
  0x1f   :  { %2771 = vmatpush3.bf16.msra.mxu1 %v2770_v34  ;;  %v136_v14 = vld [vmem:[%s5106_s1 + $0x328] sm:$0xff]  ;;  %v153_v17 = vld [vmem:[%s5106_s1 + $0x3b0] sm:$0xff]  ;;  %v154_v18 = vld [vmem:[%s5106_s1 + $0x3b8] sm:$0xff]  ;;  %v2786_v19 = vpack.c.bf16 %v104_v10, %v103_v9  ;;  %v2788_v21 = vpack.c.bf16 %v122_v16, %v121_v15 }
  0x20   :  { %2773 = vmatprep.subr.bf16.mxu1 %v2772_v39  ;;  %v2818_v20 = vpack.c.bf16 %v136_v14, %v135_v11  ;;  %v105_v22 = vld [vmem:[%s5106_s1 + $0x230] sm:$0xff]  ;;  %v106_v23 = vld [vmem:[%s5106_s1 + $0x238] sm:$0xff]  ;;  %v2820_v25 = vpack.c.bf16 %v154_v18, %v153_v17  ;;  %v124_v28 = vld [vmem:[%s5106_s1 + $0x2c8] sm:$0xff] }
  0x21   :  { %2743 = vmatpush3.bf16.msra.mxu0 %v2742_v46  ;;  %v137_v24 = vld [vmem:[%s5106_s1 + $0x330] sm:$0xff]  ;;  %v138_v26 = vld [vmem:[%s5106_s1 + $0x338] sm:$0xff]  ;;  %v155_v29 = vld [vmem:[%s5106_s1 + $0x3c0] sm:$0xff]  ;;  %v2790_v32 = vpack.c.bf16 %v106_v23, %v105_v22 }
  0x22   :  { %2777 = vmatprep.subr.bf16.mxu0 %v2776_v48  ;;  %v156_v30 = vld [vmem:[%s5106_s1 + $0x3c8] sm:$0xff]  ;;  %v2822_v35 = vpack.c.bf16 %v138_v26, %v137_v24  ;;  %v107_v37 = vld [vmem:[%s5106_s1 + $0x240] sm:$0xff]  ;;  %v125_v42 = vld [vmem:[%s5106_s1 + $0x2d0] sm:$0xff] }
  0x23   :  { %2775 = vmatpush3.bf16.msra.mxu1 %v2774_v47  ;;  %v28_v31 = vld [vmem:[%s5105_s0 + $0x8] sm:$0xff]  ;;  %v139_v39 = vld [vmem:[%s5106_s1 + $0x340] sm:$0xff]  ;;  %v2824_v40 = vpack.c.bf16 %v156_v30, %v155_v29  ;;  %v126_v43 = vld [vmem:[%s5106_s1 + $0x2d8] sm:$0xff] }
  0x24   :  { %2809 = vmatprep.subr.bf16.mxu1 %v2808_v52  ;;  %795 = vmatmul.mubr.f32.vlgmr.msra.gmra.mrb[0].mxu0 %v569_v27  ;;  %v123_v27 = vld [vmem:[%s5106_s1 + $0x2c0] sm:$0xff]  ;;  %v579_v34 = vcombine.high %v28_v31, %v28_v31  ;;  %v108_v38 = vld [vmem:[%s5106_s1 + $0x248] sm:$0xff]  ;;  %v157_v46 = vld [vmem:[%s5106_s1 + $0x3d0] sm:$0xff]  ;;  %v2796_v51 = vpack.c.bf16 %v126_v43, %v125_v42 }
  0x25   :  { %2779 = vmatpush3.bf16.msra.mxu0 %v2778_v58  ;;  %v2792_v36 = vpack.c.bf16 %v124_v28, %v123_v27  ;;  %v140_v41 = vld [vmem:[%s5106_s1 + $0x348] sm:$0xff]  ;;  %v158_v47 = vld [vmem:[%s5106_s1 + $0x3d8] sm:$0xff]  ;;  %v2794_v48 = vpack.c.bf16 %v108_v38, %v107_v37  ;;  %v109_v52 = vld [vmem:[%s5106_s1 + $0x250] sm:$0xff] }
  0x26   :  { %865 = vmatmul.mubr.f32.vlgmr.msra.gmra.mrb[0].mxu1 %v576_v33  ;;  %2781 = vmatprep.subr.bf16.mxu0 %v2780_v60  ;;  %v3653_v33 = vrot.slane %v28_v31, %v3492_v13  ;;  %v3676_v45 = vrot.slane %v579_v34, %v3492_v13  ;;  %v2826_v50 = vpack.c.bf16 %v140_v41, %v139_v39  ;;  %v110_v53 = vld [vmem:[%s5106_s1 + $0x258] sm:$0xff]  ;;  %v141_v54 = vld [vmem:[%s5106_s1 + $0x350] sm:$0xff]  ;;  %v127_v57 = vld [vmem:[%s5106_s1 + $0x2e0] sm:$0xff] }
  0x27   :  { %2811 = vmatpush3.bf16.msra.mxu1 %v2810_v59  ;;  %v2828_v55 = vpack.c.bf16 %v158_v47, %v157_v46  ;;  %v142_v56 = vld [vmem:[%s5106_s1 + $0x358] sm:$0xff]  ;;  %v128_v58 = vld [vmem:[%s5106_s1 + $0x2e8] sm:$0xff]  ;;  %v159_v59 = vld [vmem:[%s5106_s1 + $0x3e0] sm:$0xff]  ;;  %v2798_v61 = vpack.c.bf16 %v110_v53, %v109_v52 }
  0x28   :  { %2813 = vmatprep.subr.bf16.mxu1 %v2812_v0  ;;  %v594_v44 = vcombine.high %v3653_v33, %v3653_v33  ;;  %v595_v49 = vcombine.high %v3676_v45, %v3676_v45  ;;  %v160_v60 = vld [vmem:[%s5106_s1 + $0x3e8] sm:$0xff]  ;;  %v2830_v62 = vpack.c.bf16 %v142_v56, %v141_v54  ;;  %v2800_v63 = vpack.c.bf16 %v128_v58, %v127_v57  ;;  %v111_v0 = vld [vmem:[%s5106_s1 + $0x260] sm:$0xff]  ;;  %v129_v5 = vld [vmem:[%s5106_s1 + $0x2f0] sm:$0xff] }
  0x29   :  { %2783 = vmatpush3.bf16.msra.mxu0 %v2782_v6  ;;  %v112_v1 = vld [vmem:[%s5106_s1 + $0x268] sm:$0xff]  ;;  %v143_v2 = vld [vmem:[%s5106_s1 + $0x360] sm:$0xff]  ;;  %v2832_v3 = vpack.c.bf16 %v160_v60, %v159_v59  ;;  %v130_v6 = vld [vmem:[%s5106_s1 + $0x2f8] sm:$0xff] }
  0x2a   :  { %2785 = vmatprep.subr.bf16.mxu0 %v2784_v8  ;;  %934 = vmatprep.mubr.f32.mxu0 %v594_v44  ;;  %v144_v4 = vld [vmem:[%s5106_s1 + $0x368] sm:$0xff]  ;;  %v162_v8 = vld [vmem:[%s5106_s1 + $0x3f8] sm:$0xff]  ;;  %v2802_v9 = vpack.c.bf16 %v112_v1, %v111_v0  ;;  %v2804_v11 = vpack.c.bf16 %v130_v6, %v129_v5  ;;  %v145_v15 = vld [vmem:[%s5106_s1 + $0x370] sm:$0xff] }
  0x2b   :  { %2815 = vmatpush3.bf16.msra.mxu1 %v2814_v7  ;;  %1004 = vmatprep.mubr.f32.mxu1 %v595_v49  ;;  %v161_v7 = vld [vmem:[%s5106_s1 + $0x3f0] sm:$0xff]  ;;  %v2834_v10 = vpack.c.bf16 %v144_v4, %v143_v2  ;;  %v114_v14 = vld [vmem:[%s5106_s1 + $0x278] sm:$0xff]  ;;  %v179_v18 = vld [vmem:[%s5106_s1 + $0x480] sm:$0xff] }
  0x2c   :  { %2817 = vmatprep.subr.bf16.mxu1 %v2816_v12  ;;  %v113_v12 = vld [vmem:[%s5106_s1 + $0x270] sm:$0xff]  ;;  %v2836_v16 = vpack.c.bf16 %v162_v8, %v161_v7  ;;  %v146_v17 = vld [vmem:[%s5106_s1 + $0x378] sm:$0xff]  ;;  %v163_v23 = vld [vmem:[%s5106_s1 + $0x400] sm:$0xff] }
  0x2d   :  { %2787 = vmatpush3.bf16.msra.mxu0 %v2786_v19  ;;  %v180_v19 = vld [vmem:[%s5106_s1 + $0x488] sm:$0xff]  ;;  %v2806_v22 = vpack.c.bf16 %v114_v14, %v113_v12  ;;  %v2838_v24 = vpack.c.bf16 %v146_v17, %v145_v15  ;;  %v195_v27 = vld [vmem:[%s5106_s1 + $0x500] sm:$0xff]  ;;  %v181_v30 = vld [vmem:[%s5106_s1 + $0x490] sm:$0xff] }
  0x2e   :  { %2789 = vmatprep.subr.bf16.mxu0 %v2788_v21  ;;  %v212_v21 = vld [vmem:[%s5106_s1 + $0x588] sm:$0xff]  ;;  %v182_v31 = vld [vmem:[%s5106_s1 + $0x498] sm:$0xff]  ;;  %v29_v37 = vld [vmem:[%s5105_s0 + $0x10] sm:$0xff] }
  0x2f   :  { %2819 = vmatpush3.bf16.msra.mxu1 %v2818_v20  ;;  %v211_v20 = vld [vmem:[%s5106_s1 + $0x580] sm:$0xff]  ;;  %v164_v26 = vld [vmem:[%s5106_s1 + $0x408] sm:$0xff]  ;;  %v214_v34 = vld [vmem:[%s5106_s1 + $0x598] sm:$0xff]  ;;  %v2844_v38 = vpack.c.bf16 %v182_v31, %v181_v30  ;;  %v3795_v42 = vrot.slane %v29_v37, %v3492_v13  ;;  %v596_v43 = vcombine.high %v29_v37, %v29_v37 }
  0x30   :  { %2821 = vmatprep.subr.bf16.mxu1 %v2820_v25  ;;  %v2840_v25 = vpack.c.bf16 %v180_v19, %v179_v18  ;;  %v196_v28 = vld [vmem:[%s5106_s1 + $0x508] sm:$0xff]  ;;  %v2872_v29 = vpack.c.bf16 %v212_v21, %v211_v20  ;;  %v165_v39 = vld [vmem:[%s5106_s1 + $0x410] sm:$0xff]  ;;  %v198_v46 = vld [vmem:[%s5106_s1 + $0x518] sm:$0xff] }
  0x31   :  { %2791 = vmatpush3.bf16.msra.mxu0 %v2790_v32  ;;  %v213_v32 = vld [vmem:[%s5106_s1 + $0x590] sm:$0xff]  ;;  %v183_v47 = vld [vmem:[%s5106_s1 + $0x4a0] sm:$0xff]  ;;  %v3816_v52 = vrot.slane %v596_v43, %v3492_v13  ;;  %v168_v56 = vld [vmem:[%s5106_s1 + $0x428] sm:$0xff] }
  0x32   :  { %2793 = vmatprep.subr.bf16.mxu0 %v2792_v36  ;;  %v2874_v36 = vpack.c.bf16 %v196_v28, %v195_v27  ;;  %v197_v41 = vld [vmem:[%s5106_s1 + $0x510] sm:$0xff]  ;;  %v2876_v44 = vpack.c.bf16 %v214_v34, %v213_v32  ;;  %v215_v49 = vld [vmem:[%s5106_s1 + $0x5a0] sm:$0xff]  ;;  %v200_v59 = vld [vmem:[%s5106_s1 + $0x528] sm:$0xff] }
  0x33   :  { %2823 = vmatpush3.bf16.msra.mxu1 %v2822_v35  ;;  %v2842_v35 = vpack.c.bf16 %v164_v26, %v163_v23  ;;  %v199_v57 = vld [vmem:[%s5106_s1 + $0x520] sm:$0xff]  ;;  %v185_v60 = vld [vmem:[%s5106_s1 + $0x4b0] sm:$0xff]  ;;  %v170_v4 = vld [vmem:[%s5106_s1 + $0x438] sm:$0xff] }
  0x34   :  { %2825 = vmatprep.subr.bf16.mxu1 %v2824_v40  ;;  %v166_v40 = vld [vmem:[%s5106_s1 + $0x418] sm:$0xff]  ;;  %v2882_v1 = vpack.c.bf16 %v200_v59, %v199_v57  ;;  %v201_v5 = vld [vmem:[%s5106_s1 + $0x530] sm:$0xff]  ;;  %v187_v8 = vld [vmem:[%s5106_s1 + $0x4c0] sm:$0xff] }
  0x35   :  { %2795 = vmatpush3.bf16.msra.mxu0 %v2794_v48  ;;  %v184_v48 = vld [vmem:[%s5106_s1 + $0x4a8] sm:$0xff]  ;;  %v2846_v53 = vpack.c.bf16 %v166_v40, %v165_v39  ;;  %v202_v7 = vld [vmem:[%s5106_s1 + $0x538] sm:$0xff]  ;;  %v203_v18 = vld [vmem:[%s5106_s1 + $0x540] sm:$0xff] }
  0x36   :  { %2797 = vmatprep.subr.bf16.mxu0 %v2796_v51  ;;  %v611_v51 = vcombine.high %v3795_v42, %v3795_v42  ;;  %v2848_v54 = vpack.c.bf16 %v184_v48, %v183_v47  ;;  %v2886_v14 = vpack.c.bf16 %v202_v7, %v201_v5  ;;  %v172_v17 = vld [vmem:[%s5106_s1 + $0x448] sm:$0xff]  ;;  %v189_v21 = vld [vmem:[%s5106_s1 + $0x4d0] sm:$0xff]  ;;  %v206_v32 = vld [vmem:[%s5106_s1 + $0x558] sm:$0xff] }
  0x37   :  { %2827 = vmatpush3.bf16.msra.mxu1 %v2826_v50  ;;  %v216_v50 = vld [vmem:[%s5106_s1 + $0x5a8] sm:$0xff]  ;;  %v221_v23 = vld [vmem:[%s5106_s1 + $0x5d0] sm:$0xff]  ;;  %v191_v34 = vld [vmem:[%s5106_s1 + $0x4e0] sm:$0xff] }
  0x38   :  { %2829 = vmatprep.subr.bf16.mxu1 %v2828_v55  ;;  %v167_v55 = vld [vmem:[%s5106_s1 + $0x420] sm:$0xff]  ;;  %v2880_v58 = vpack.c.bf16 %v216_v50, %v215_v49  ;;  %v204_v20 = vld [vmem:[%s5106_s1 + $0x548] sm:$0xff]  ;;  %v173_v28 = vld [vmem:[%s5106_s1 + $0x450] sm:$0xff] }
  0x39   :  { %2799 = vmatpush3.bf16.msra.mxu0 %v2798_v61  ;;  %v186_v61 = vld [vmem:[%s5106_s1 + $0x4b8] sm:$0xff]  ;;  %v2850_v0 = vpack.c.bf16 %v168_v56, %v167_v55  ;;  %v2890_v26 = vpack.c.bf16 %v204_v20, %v203_v18  ;;  %v205_v30 = vld [vmem:[%s5106_s1 + $0x550] sm:$0xff]  ;;  %v224_v37 = vld [vmem:[%s5106_s1 + $0x5e8] sm:$0xff] }
  0x3a   :  { %2801 = vmatprep.subr.bf16.mxu0 %v2800_v63  ;;  %v218_v63 = vld [vmem:[%s5106_s1 + $0x5b8] sm:$0xff]  ;;  %v2852_v2 = vpack.c.bf16 %v186_v61, %v185_v60  ;;  %v2894_v39 = vpack.c.bf16 %v206_v32, %v205_v30  ;;  %v176_v43 = vld [vmem:[%s5106_s1 + $0x468] sm:$0xff]  ;;  %v193_v48 = vld [vmem:[%s5106_s1 + $0x4f0] sm:$0xff] }
  0x3b   :  { %2831 = vmatpush3.bf16.msra.mxu1 %v2830_v62  ;;  %v217_v62 = vld [vmem:[%s5106_s1 + $0x5b0] sm:$0xff]  ;;  %v208_v47 = vld [vmem:[%s5106_s1 + $0x568] sm:$0xff]  ;;  %v194_v49 = vld [vmem:[%s5106_s1 + $0x4f8] sm:$0xff] }
  0x3c   :  { %2833 = vmatprep.subr.bf16.mxu1 %v2832_v3  ;;  %v169_v3 = vld [vmem:[%s5106_s1 + $0x430] sm:$0xff]  ;;  %v2884_v6 = vpack.c.bf16 %v218_v63, %v217_v62  ;;  %v2868_v55 = vpack.c.bf16 %v194_v49, %v193_v48  ;;  %v178_v57 = vld [vmem:[%s5106_s1 + $0x478] sm:$0xff]  ;;  %v243_v60 = vld [vmem:[%s5106_s1 + $0x680] sm:$0xff] }
  0x3d   :  { %2803 = vmatpush3.bf16.msra.mxu0 %v2802_v9  ;;  %v188_v9 = vld [vmem:[%s5106_s1 + $0x4c8] sm:$0xff]  ;;  %v2854_v12 = vpack.c.bf16 %v170_v4, %v169_v3  ;;  %v225_v50 = vld [vmem:[%s5106_s1 + $0x5f0] sm:$0xff]  ;;  %v210_v59 = vld [vmem:[%s5106_s1 + $0x578] sm:$0xff] }
  0x3e   :  { %2805 = vmatprep.subr.bf16.mxu0 %v2804_v11  ;;  %v220_v11 = vld [vmem:[%s5106_s1 + $0x5c8] sm:$0xff]  ;;  %v2856_v15 = vpack.c.bf16 %v188_v9, %v187_v8  ;;  %v177_v56 = vld [vmem:[%s5106_s1 + $0x470] sm:$0xff]  ;;  %v275_v62 = vld [vmem:[%s5106_s1 + $0x780] sm:$0xff] }
  0x3f   :  { %2835 = vmatpush3.bf16.msra.mxu1 %v2834_v10  ;;  %v219_v10 = vld [vmem:[%s5106_s1 + $0x5c0] sm:$0xff]  ;;  %v244_v61 = vld [vmem:[%s5106_s1 + $0x688] sm:$0xff]  ;;  %v245_v9 = vld [vmem:[%s5106_s1 + $0x690] sm:$0xff] }
  0x40   :  { %2837 = vmatprep.subr.bf16.mxu1 %v2836_v16  ;;  %v171_v16 = vld [vmem:[%s5106_s1 + $0x440] sm:$0xff]  ;;  %v2888_v19 = vpack.c.bf16 %v220_v11, %v219_v10  ;;  %v276_v63 = vld [vmem:[%s5106_s1 + $0x788] sm:$0xff]  ;;  %v2904_v3 = vpack.c.bf16 %v244_v61, %v243_v60  ;;  %v246_v10 = vld [vmem:[%s5106_s1 + $0x698] sm:$0xff] }
  0x41   :  { %2807 = vmatpush3.bf16.msra.mxu0 %v2806_v22  ;;  %v190_v22 = vld [vmem:[%s5106_s1 + $0x4d8] sm:$0xff]  ;;  %v227_v4 = vld [vmem:[%s5106_s1 + $0x600] sm:$0xff]  ;;  %v228_v5 = vld [vmem:[%s5106_s1 + $0x608] sm:$0xff]  ;;  %v2936_v7 = vpack.c.bf16 %v276_v63, %v275_v62  ;;  %v2908_v18 = vpack.c.bf16 %v246_v10, %v245_v9 }
  0x42   :  { %2841 = vmatprep.subr.bf16.mxu0 %v2840_v25  ;;  %v2858_v25 = vpack.c.bf16 %v172_v17, %v171_v16  ;;  %v2860_v27 = vpack.c.bf16 %v190_v22, %v189_v21  ;;  %v260_v8 = vld [vmem:[%s5106_s1 + $0x708] sm:$0xff]  ;;  %v2906_v16 = vpack.c.bf16 %v228_v5, %v227_v4  ;;  %v230_v20 = vld [vmem:[%s5106_s1 + $0x618] sm:$0xff]  ;;  %v261_v21 = vld [vmem:[%s5106_s1 + $0x710] sm:$0xff] }
  0x43   :  { %2839 = vmatpush3.bf16.msra.mxu1 %v2838_v24  ;;  %v222_v24 = vld [vmem:[%s5106_s1 + $0x5d8] sm:$0xff]  ;;  %v265_v48 = vld [vmem:[%s5106_s1 + $0x730] sm:$0xff]  ;;  %v268_v61 = vld [vmem:[%s5106_s1 + $0x748] sm:$0xff] }
  0x44   :  { %2873 = vmatprep.subr.bf16.mxu1 %v2872_v29  ;;  %935 = vmatmul.mubr.f32.vlgmr.msra.gmra.mrb[2].mxu0 %v3653_v33  ;;  %v2878_v33 = vpack.c.bf16 %v198_v46, %v197_v41  ;;  %v174_v29 = vld [vmem:[%s5106_s1 + $0x458] sm:$0xff]  ;;  %v2892_v31 = vpack.c.bf16 %v222_v24, %v221_v23  ;;  %v175_v41 = vld [vmem:[%s5106_s1 + $0x460] sm:$0xff]  ;;  %v253_v62 = vld [vmem:[%s5106_s1 + $0x6d0] sm:$0xff] }
  0x45   :  { %2843 = vmatpush3.bf16.msra.mxu0 %v2842_v35  ;;  %1074 = vmatprep.mubr.f32.mxu0 %v611_v51  ;;  %v192_v35 = vld [vmem:[%s5106_s1 + $0x4e8] sm:$0xff]  ;;  %v226_v51 = vld [vmem:[%s5106_s1 + $0x5f8] sm:$0xff]  ;;  %v247_v24 = vld [vmem:[%s5106_s1 + $0x6a0] sm:$0xff] }
  0x46   :  { %1005 = vmatmul.mubr.f32.vlgmr.msra.gmra.mrb[2].mxu1 %v3676_v45  ;;  %2845 = vmatprep.subr.bf16.mxu0 %v2844_v38  ;;  %v612_v45 = vcombine.high %v3816_v52, %v3816_v52  ;;  %v2862_v38 = vpack.c.bf16 %v174_v29, %v173_v28  ;;  %v2864_v40 = vpack.c.bf16 %v192_v35, %v191_v34  ;;  %v262_v23 = vld [vmem:[%s5106_s1 + $0x718] sm:$0xff]  ;;  %v280_v28 = vld [vmem:[%s5106_s1 + $0x7a8] sm:$0xff]  ;;  %v263_v35 = vld [vmem:[%s5106_s1 + $0x720] sm:$0xff] }
  0x47   :  { %2875 = vmatpush3.bf16.msra.mxu1 %v2874_v36  ;;  %v223_v36 = vld [vmem:[%s5106_s1 + $0x5e0] sm:$0xff]  ;;  %v232_v34 = vld [vmem:[%s5106_s1 + $0x628] sm:$0xff]  ;;  %v254_v63 = vld [vmem:[%s5106_s1 + $0x6d8] sm:$0xff] }
  0x48   :  { %2877 = vmatprep.subr.bf16.mxu1 %v2876_v44  ;;  %1144 = vmatprep.mubr.f32.mxu1 %v612_v45  ;;  %v207_v44 = vld [vmem:[%s5106_s1 + $0x560] sm:$0xff]  ;;  %v2896_v46 = vpack.c.bf16 %v224_v37, %v223_v36  ;;  %v209_v45 = vld [vmem:[%s5106_s1 + $0x570] sm:$0xff]  ;;  %v2924_v4 = vpack.c.bf16 %v254_v63, %v253_v62  ;;  %v270_v9 = vld [vmem:[%s5106_s1 + $0x758] sm:$0xff] }
  0x49   :  { %2847 = vmatpush3.bf16.msra.mxu0 %v2846_v53  ;;  %v2866_v53 = vpack.c.bf16 %v176_v43, %v175_v41  ;;  %v249_v37 = vld [vmem:[%s5106_s1 + $0x6b0] sm:$0xff]  ;;  %v255_v10 = vld [vmem:[%s5106_s1 + $0x6e0] sm:$0xff] }
  0x4a   :  { %2849 = vmatprep.subr.bf16.mxu0 %v2848_v54  ;;  %v2898_v54 = vpack.c.bf16 %v208_v47, %v207_v44  ;;  %v234_v47 = vld [vmem:[%s5106_s1 + $0x638] sm:$0xff]  ;;  %v237_v5 = vld [vmem:[%s5106_s1 + $0x650] sm:$0xff] }
  0x4b   :  { %2879 = vmatpush3.bf16.msra.mxu1 %v2878_v33  ;;  %v30_v33 = vld [vmem:[%s5105_s0 + $0x18] sm:$0xff]  ;;  %v325_v62 = vld [vmem:[%s5106_s1 + $0x910] sm:$0xff] }
  0x4c   :  { %2881 = vmatprep.subr.bf16.mxu1 %v2880_v58  ;;  %v2900_v58 = vpack.c.bf16 %v226_v51, %v225_v50  ;;  %v3987_v11 = vrot.slane %v30_v33, %v3492_v13  ;;  %v266_v50 = vld [vmem:[%s5106_s1 + $0x738] sm:$0xff]  ;;  %v251_v51 = vld [vmem:[%s5106_s1 + $0x6c0] sm:$0xff] }
  0x4d   :  { %2851 = vmatpush3.bf16.msra.mxu0 %v2850_v0  ;;  %v613_v0 = vcombine.high %v30_v33, %v30_v33  ;;  %v283_v33 = vld [vmem:[%s5106_s1 + $0x7c0] sm:$0xff] }
  0x4e   :  { %2853 = vmatprep.subr.bf16.mxu0 %v2852_v2  ;;  %v2902_v2 = vpack.c.bf16 %v210_v59, %v209_v45  ;;  %v235_v45 = vld [vmem:[%s5106_s1 + $0x640] sm:$0xff] }
  0x4f   :  { %2883 = vmatpush3.bf16.msra.mxu1 %v2882_v1  ;;  %v2870_v1 = vpack.c.bf16 %v178_v57, %v177_v56  ;;  %v2950_v56 = vpack.c.bf16 %v266_v50, %v265_v48  ;;  %v267_v59 = vld [vmem:[%s5106_s1 + $0x740] sm:$0xff]  ;;  %v292_v48 = vld [vmem:[%s5106_s1 + $0x808] sm:$0xff] }
  0x50   :  { %2885 = vmatprep.subr.bf16.mxu1 %v2884_v6  ;;  %v259_v6 = vld [vmem:[%s5106_s1 + $0x700] sm:$0xff] }
  0x51   :  { %2855 = vmatpush3.bf16.msra.mxu0 %v2854_v12  ;;  %v277_v12 = vld [vmem:[%s5106_s1 + $0x790] sm:$0xff]  ;;  %v2938_v17 = vpack.c.bf16 %v260_v8, %v259_v6  ;;  %v238_v6 = vld [vmem:[%s5106_s1 + $0x658] sm:$0xff] }
  0x52   :  { %2857 = vmatprep.subr.bf16.mxu0 %v2856_v15  ;;  %v3996_v15 = vrot.slane %v613_v0, %v3492_v13  ;;  %v285_v0 = vld [vmem:[%s5106_s1 + $0x7d0] sm:$0xff] }
  0x53   :  { %2887 = vmatpush3.bf16.msra.mxu1 %v2886_v14  ;;  %v278_v14 = vld [vmem:[%s5106_s1 + $0x798] sm:$0xff] }
  0x54   :  { %2889 = vmatprep.subr.bf16.mxu1 %v2888_v19  ;;  %v229_v19 = vld [vmem:[%s5106_s1 + $0x610] sm:$0xff]  ;;  %v2940_v22 = vpack.c.bf16 %v278_v14, %v277_v12  ;;  %v629_v29 = vcombine.high %v3996_v15, %v3996_v15  ;;  %v256_v12 = vld [vmem:[%s5106_s1 + $0x6e8] sm:$0xff]  ;;  %v287_v14 = vld [vmem:[%s5106_s1 + $0x7e0] sm:$0xff] }
  0x55   :  { %2859 = vmatpush3.bf16.msra.mxu0 %v2858_v25  ;;  %v248_v25 = vld [vmem:[%s5106_s1 + $0x6a8] sm:$0xff]  ;;  %v2910_v30 = vpack.c.bf16 %v230_v20, %v229_v19  ;;  %v2928_v19 = vpack.c.bf16 %v256_v12, %v255_v10  ;;  %v239_v20 = vld [vmem:[%s5106_s1 + $0x660] sm:$0xff] }
  0x56   :  { %2861 = vmatprep.subr.bf16.mxu0 %v2860_v27  ;;  %v279_v27 = vld [vmem:[%s5106_s1 + $0x7a0] sm:$0xff]  ;;  %v2912_v32 = vpack.c.bf16 %v248_v25, %v247_v24  ;;  %v272_v24 = vld [vmem:[%s5106_s1 + $0x768] sm:$0xff]  ;;  %v257_v25 = vld [vmem:[%s5106_s1 + $0x6f0] sm:$0xff] }
  0x57   :  { %2891 = vmatpush3.bf16.msra.mxu1 %v2890_v26  ;;  %v628_v26 = vcombine.high %v3987_v11, %v3987_v11  ;;  %v2944_v36 = vpack.c.bf16 %v280_v28, %v279_v27  ;;  %v289_v27 = vld [vmem:[%s5106_s1 + $0x7f0] sm:$0xff]  ;;  %v290_v28 = vld [vmem:[%s5106_s1 + $0x7f8] sm:$0xff]  ;;  %v296_v10 = vld [vmem:[%s5106_s1 + $0x828] sm:$0xff] }
  0x58   :  { %2893 = vmatprep.subr.bf16.mxu1 %v2892_v31  ;;  %v2942_v31 = vpack.c.bf16 %v262_v23, %v261_v21  ;;  %v240_v21 = vld [vmem:[%s5106_s1 + $0x668] sm:$0xff]  ;;  %v327_v12 = vld [vmem:[%s5106_s1 + $0x920] sm:$0xff] }
  0x59   :  { %2863 = vmatpush3.bf16.msra.mxu0 %v2862_v38  ;;  %v250_v38 = vld [vmem:[%s5106_s1 + $0x6b8] sm:$0xff] }
  0x5a   :  { %2865 = vmatprep.subr.bf16.mxu0 %v2864_v40  ;;  %v282_v40 = vld [vmem:[%s5106_s1 + $0x7b8] sm:$0xff]  ;;  %v2916_v44 = vpack.c.bf16 %v250_v38, %v249_v37  ;;  %v307_v37 = vld [vmem:[%s5106_s1 + $0x880] sm:$0xff]  ;;  %v308_v38 = vld [vmem:[%s5106_s1 + $0x888] sm:$0xff] }
  0x5b   :  { %2895 = vmatpush3.bf16.msra.mxu1 %v2894_v39  ;;  %v281_v39 = vld [vmem:[%s5106_s1 + $0x7b0] sm:$0xff] }
  0x5c   :  { %2897 = vmatprep.subr.bf16.mxu1 %v2896_v46  ;;  %v233_v46 = vld [vmem:[%s5106_s1 + $0x630] sm:$0xff]  ;;  %v2948_v49 = vpack.c.bf16 %v282_v40, %v281_v39  ;;  %v339_v39 = vld [vmem:[%s5106_s1 + $0x980] sm:$0xff]  ;;  %v340_v40 = vld [vmem:[%s5106_s1 + $0x988] sm:$0xff] }
  0x5d   :  { %2867 = vmatpush3.bf16.msra.mxu0 %v2866_v53  ;;  %v252_v53 = vld [vmem:[%s5106_s1 + $0x6c8] sm:$0xff]  ;;  %v3000_v50 = vpack.c.bf16 %v340_v40, %v339_v39  ;;  %v317_v39 = vld [vmem:[%s5106_s1 + $0x8d0] sm:$0xff]  ;;  %v318_v40 = vld [vmem:[%s5106_s1 + $0x8d8] sm:$0xff] }
  0x5e   :  { %2869 = vmatprep.subr.bf16.mxu0 %v2868_v55  ;;  %v2918_v55 = vpack.c.bf16 %v234_v47, %v233_v46  ;;  %v2920_v57 = vpack.c.bf16 %v252_v53, %v251_v51  ;;  %v2968_v46 = vpack.c.bf16 %v308_v38, %v307_v37  ;;  %v291_v47 = vld [vmem:[%s5106_s1 + $0x800] sm:$0xff]  ;;  %v324_v51 = vld [vmem:[%s5106_s1 + $0x908] sm:$0xff]  ;;  %v309_v53 = vld [vmem:[%s5106_s1 + $0x890] sm:$0xff] }
  0x5f   :  { %2899 = vmatpush3.bf16.msra.mxu1 %v2898_v54  ;;  %v284_v54 = vld [vmem:[%s5106_s1 + $0x7c8] sm:$0xff] }
  0x60   :  { %2901 = vmatprep.subr.bf16.mxu1 %v2900_v58  ;;  %v236_v58 = vld [vmem:[%s5106_s1 + $0x648] sm:$0xff]  ;;  %v2952_v60 = vpack.c.bf16 %v284_v54, %v283_v33  ;;  %v310_v33 = vld [vmem:[%s5106_s1 + $0x898] sm:$0xff] }
  0x61   :  { %2871 = vmatpush3.bf16.msra.mxu0 %v2870_v1  ;;  %v286_v1 = vld [vmem:[%s5106_s1 + $0x7d8] sm:$0xff]  ;;  %v332_v38 = vld [vmem:[%s5106_s1 + $0x948] sm:$0xff] }
  0x62   :  { %2905 = vmatprep.subr.bf16.mxu0 %v2904_v3  ;;  %v2954_v3 = vpack.c.bf16 %v268_v61, %v267_v59  ;;  %v2956_v8 = vpack.c.bf16 %v286_v1, %v285_v0  ;;  %v2972_v59 = vpack.c.bf16 %v310_v33, %v309_v53  ;;  %v294_v61 = vld [vmem:[%s5106_s1 + $0x818] sm:$0xff]  ;;  %v311_v1 = vld [vmem:[%s5106_s1 + $0x8a0] sm:$0xff] }
  0x63   :  { %2903 = vmatpush3.bf16.msra.mxu1 %v2902_v2  ;;  %v2922_v2 = vpack.c.bf16 %v236_v58, %v235_v45  ;;  %v2970_v45 = vpack.c.bf16 %v292_v48, %v291_v47  ;;  %v326_v0 = vld [vmem:[%s5106_s1 + $0x918] sm:$0xff]  ;;  %v2988_v47 = vpack.c.bf16 %v318_v40, %v317_v39  ;;  %v301_v48 = vld [vmem:[%s5106_s1 + $0x850] sm:$0xff]  ;;  %v319_v33 = vld [vmem:[%s5106_s1 + $0x8e0] sm:$0xff] }
  0x64   :  { %2937 = vmatprep.subr.bf16.mxu1 %v2936_v7  ;;  %1075 = vmatmul.mubr.f32.vlgmr.msra.gmra.mrb[4].mxu0 %v3795_v42  ;;  %v231_v42 = vld [vmem:[%s5106_s1 + $0x620] sm:$0xff]  ;;  %v269_v7 = vld [vmem:[%s5106_s1 + $0x750] sm:$0xff]  ;;  %v334_v53 = vld [vmem:[%s5106_s1 + $0x958] sm:$0xff] }
  0x65   :  { %2907 = vmatpush3.bf16.msra.mxu0 %v2906_v16  ;;  %1214 = vmatprep.mubr.f32.mxu0 %v628_v26  ;;  %v2914_v41 = vpack.c.bf16 %v232_v34, %v231_v42  ;;  %v288_v16 = vld [vmem:[%s5106_s1 + $0x7e8] sm:$0xff]  ;;  %v258_v26 = vld [vmem:[%s5106_s1 + $0x6f8] sm:$0xff]  ;;  %v241_v42 = vld [vmem:[%s5106_s1 + $0x670] sm:$0xff] }
  0x66   :  { %1145 = vmatmul.mubr.f32.vlgmr.msra.gmra.mrb[4].mxu1 %v3816_v52  ;;  %2909 = vmatprep.subr.bf16.mxu0 %v2908_v18  ;;  %v264_v52 = vld [vmem:[%s5106_s1 + $0x728] sm:$0xff]  ;;  %v2958_v18 = vpack.c.bf16 %v270_v9, %v269_v7  ;;  %v2960_v23 = vpack.c.bf16 %v288_v16, %v287_v14  ;;  %v242_v34 = vld [vmem:[%s5106_s1 + $0x678] sm:$0xff]  ;;  %v313_v16 = vld [vmem:[%s5106_s1 + $0x8b0] sm:$0xff] }
  0x67   :  { %2939 = vmatpush3.bf16.msra.mxu1 %v2938_v17  ;;  %1284 = vmatprep.mubr.f32.mxu1 %v629_v29  ;;  %v2946_v43 = vpack.c.bf16 %v264_v52, %v263_v35  ;;  %v2926_v17 = vpack.c.bf16 %v238_v6, %v237_v5  ;;  %v2930_v29 = vpack.c.bf16 %v240_v21, %v239_v20  ;;  %v273_v35 = vld [vmem:[%s5106_s1 + $0x770] sm:$0xff]  ;;  %v274_v52 = vld [vmem:[%s5106_s1 + $0x778] sm:$0xff]  ;;  %v344_v5 = vld [vmem:[%s5106_s1 + $0x9a8] sm:$0xff] }
  0x68   :  { %2941 = vmatprep.subr.bf16.mxu1 %v2940_v22  ;;  %v271_v22 = vld [vmem:[%s5106_s1 + $0x760] sm:$0xff]  ;;  %v389_v39 = vld [vmem:[%s5106_s1 + $0xb10] sm:$0xff] }
  0x69   :  { %2911 = vmatpush3.bf16.msra.mxu0 %v2910_v30  ;;  %v31_v30 = vld [vmem:[%s5105_s0 + $0x20] sm:$0xff] }
  0x6a   :  { %2913 = vmatprep.subr.bf16.mxu0 %v2912_v32  ;;  %v2932_v32 = vpack.c.bf16 %v258_v26, %v257_v25  ;;  %v4194_v54 = vrot.slane %v31_v30, %v3492_v13  ;;  %v329_v25 = vld [vmem:[%s5106_s1 + $0x930] sm:$0xff] }
  0x6b   :  { %2943 = vmatpush3.bf16.msra.mxu1 %v2942_v31  ;;  %v2962_v31 = vpack.c.bf16 %v272_v24, %v271_v22  ;;  %v298_v24 = vld [vmem:[%s5106_s1 + $0x838] sm:$0xff] }
  0x6c   :  { %2945 = vmatprep.subr.bf16.mxu1 %v2944_v36  ;;  %v2964_v36 = vpack.c.bf16 %v290_v28, %v289_v27  ;;  %v330_v27 = vld [vmem:[%s5106_s1 + $0x938] sm:$0xff]  ;;  %v315_v28 = vld [vmem:[%s5106_s1 + $0x8c0] sm:$0xff] }
  0x6d   :  { %2915 = vmatpush3.bf16.msra.mxu0 %v2914_v41  ;;  %v630_v41 = vcombine.high %v31_v30, %v31_v30  ;;  %v347_v30 = vld [vmem:[%s5106_s1 + $0x9c0] sm:$0xff] }
  0x6e   :  { %2917 = vmatprep.subr.bf16.mxu0 %v2916_v44  ;;  %v2966_v44 = vpack.c.bf16 %v274_v52, %v273_v35  ;;  %v299_v35 = vld [vmem:[%s5106_s1 + $0x840] sm:$0xff] }
  0x6f   :  { %2947 = vmatpush3.bf16.msra.mxu1 %v2946_v43  ;;  %v2934_v43 = vpack.c.bf16 %v242_v34, %v241_v42  ;;  %v3014_v42 = vpack.c.bf16 %v330_v27, %v329_v25  ;;  %v331_v52 = vld [vmem:[%s5106_s1 + $0x940] sm:$0xff]  ;;  %v356_v25 = vld [vmem:[%s5106_s1 + $0xa08] sm:$0xff] }
  0x70   :  { %2949 = vmatprep.subr.bf16.mxu1 %v2948_v49  ;;  %v323_v49 = vld [vmem:[%s5106_s1 + $0x900] sm:$0xff] }
  0x71   :  { %2919 = vmatpush3.bf16.msra.mxu0 %v2918_v55  ;;  %v341_v55 = vld [vmem:[%s5106_s1 + $0x990] sm:$0xff]  ;;  %v3002_v58 = vpack.c.bf16 %v324_v51, %v323_v49  ;;  %v302_v49 = vld [vmem:[%s5106_s1 + $0x858] sm:$0xff] }
  0x72   :  { %2921 = vmatprep.subr.bf16.mxu0 %v2920_v57  ;;  %v4203_v57 = vrot.slane %v630_v41, %v3492_v13  ;;  %v349_v41 = vld [vmem:[%s5106_s1 + $0x9d0] sm:$0xff] }
  0x73   :  { %2951 = vmatpush3.bf16.msra.mxu1 %v2950_v56  ;;  %v342_v56 = vld [vmem:[%s5106_s1 + $0x998] sm:$0xff] }
  0x74   :  { %2953 = vmatprep.subr.bf16.mxu1 %v2952_v60  ;;  %v293_v60 = vld [vmem:[%s5106_s1 + $0x810] sm:$0xff]  ;;  %v3004_v63 = vpack.c.bf16 %v342_v56, %v341_v55  ;;  %v646_v6 = vcombine.high %v4203_v57, %v4203_v57  ;;  %v320_v55 = vld [vmem:[%s5106_s1 + $0x8e8] sm:$0xff]  ;;  %v351_v56 = vld [vmem:[%s5106_s1 + $0x9e0] sm:$0xff] }
  0x75   :  { %2923 = vmatpush3.bf16.msra.mxu0 %v2922_v2  ;;  %v312_v2 = vld [vmem:[%s5106_s1 + $0x8a8] sm:$0xff]  ;;  %v2974_v7 = vpack.c.bf16 %v294_v61, %v293_v60  ;;  %v2992_v60 = vpack.c.bf16 %v320_v55, %v319_v33  ;;  %v303_v61 = vld [vmem:[%s5106_s1 + $0x860] sm:$0xff] }
  0x76   :  { %2925 = vmatprep.subr.bf16.mxu0 %v2924_v4  ;;  %v343_v4 = vld [vmem:[%s5106_s1 + $0x9a0] sm:$0xff]  ;;  %v2976_v9 = vpack.c.bf16 %v312_v2, %v311_v1  ;;  %v336_v1 = vld [vmem:[%s5106_s1 + $0x968] sm:$0xff]  ;;  %v321_v2 = vld [vmem:[%s5106_s1 + $0x8f0] sm:$0xff] }
  0x77   :  { %2955 = vmatpush3.bf16.msra.mxu1 %v2954_v3  ;;  %v645_v3 = vcombine.high %v4194_v54, %v4194_v54  ;;  %v3008_v14 = vpack.c.bf16 %v344_v5, %v343_v4  ;;  %v353_v4 = vld [vmem:[%s5106_s1 + $0x9f0] sm:$0xff]  ;;  %v354_v5 = vld [vmem:[%s5106_s1 + $0x9f8] sm:$0xff]  ;;  %v360_v33 = vld [vmem:[%s5106_s1 + $0xa28] sm:$0xff] }
  0x78   :  { %2957 = vmatprep.subr.bf16.mxu1 %v2956_v8  ;;  %v3006_v8 = vpack.c.bf16 %v326_v0, %v325_v62  ;;  %v304_v62 = vld [vmem:[%s5106_s1 + $0x868] sm:$0xff]  ;;  %v391_v55 = vld [vmem:[%s5106_s1 + $0xb20] sm:$0xff] }
  0x79   :  { %2927 = vmatpush3.bf16.msra.mxu0 %v2926_v17  ;;  %v314_v17 = vld [vmem:[%s5106_s1 + $0x8b8] sm:$0xff] }
  0x7a   :  { %2929 = vmatprep.subr.bf16.mxu0 %v2928_v19  ;;  %v346_v19 = vld [vmem:[%s5106_s1 + $0x9b8] sm:$0xff]  ;;  %v2980_v22 = vpack.c.bf16 %v314_v17, %v313_v16  ;;  %v371_v16 = vld [vmem:[%s5106_s1 + $0xa80] sm:$0xff]  ;;  %v372_v17 = vld [vmem:[%s5106_s1 + $0xa88] sm:$0xff] }
  0x7b   :  { %2959 = vmatpush3.bf16.msra.mxu1 %v2958_v18  ;;  %v345_v18 = vld [vmem:[%s5106_s1 + $0x9b0] sm:$0xff] }
  0x7c   :  { %2961 = vmatprep.subr.bf16.mxu1 %v2960_v23  ;;  %v297_v23 = vld [vmem:[%s5106_s1 + $0x830] sm:$0xff]  ;;  %v3012_v26 = vpack.c.bf16 %v346_v19, %v345_v18  ;;  %v403_v18 = vld [vmem:[%s5106_s1 + $0xb80] sm:$0xff]  ;;  %v404_v19 = vld [vmem:[%s5106_s1 + $0xb88] sm:$0xff] }
  0x7d   :  { %2931 = vmatpush3.bf16.msra.mxu0 %v2930_v29  ;;  %v316_v29 = vld [vmem:[%s5106_s1 + $0x8c8] sm:$0xff]  ;;  %v3064_v27 = vpack.c.bf16 %v404_v19, %v403_v18 }
  0x7e   :  { %2933 = vmatprep.subr.bf16.mxu0 %v2932_v32  ;;  %v2982_v32 = vpack.c.bf16 %v298_v24, %v297_v23  ;;  %v2984_v34 = vpack.c.bf16 %v316_v29, %v315_v28  ;;  %v3032_v23 = vpack.c.bf16 %v372_v17, %v371_v16  ;;  %v355_v24 = vld [vmem:[%s5106_s1 + $0xa00] sm:$0xff]  ;;  %v388_v28 = vld [vmem:[%s5106_s1 + $0xb08] sm:$0xff]  ;;  %v373_v29 = vld [vmem:[%s5106_s1 + $0xa90] sm:$0xff] }
  0x7f   :  { %2963 = vmatpush3.bf16.msra.mxu1 %v2962_v31  ;;  %v348_v31 = vld [vmem:[%s5106_s1 + $0x9c8] sm:$0xff] }
  0x80   :  { %2965 = vmatprep.subr.bf16.mxu1 %v2964_v36  ;;  %v300_v36 = vld [vmem:[%s5106_s1 + $0x848] sm:$0xff]  ;;  %v3016_v37 = vpack.c.bf16 %v348_v31, %v347_v30  ;;  %v374_v30 = vld [vmem:[%s5106_s1 + $0xa98] sm:$0xff] }
  0x81   :  { %2935 = vmatpush3.bf16.msra.mxu0 %v2934_v43  ;;  %v350_v43 = vld [vmem:[%s5106_s1 + $0x9d8] sm:$0xff] }
  0x82   :  { %2969 = vmatprep.subr.bf16.mxu0 %v2968_v46  ;;  %v3018_v46 = vpack.c.bf16 %v332_v38, %v331_v52  ;;  %v3020_v51 = vpack.c.bf16 %v350_v43, %v349_v41  ;;  %v3036_v52 = vpack.c.bf16 %v374_v30, %v373_v29  ;;  %v358_v38 = vld [vmem:[%s5106_s1 + $0xa18] sm:$0xff]  ;;  %v375_v43 = vld [vmem:[%s5106_s1 + $0xaa0] sm:$0xff] }
  0x83   :  { %2967 = vmatpush3.bf16.msra.mxu1 %v2966_v44  ;;  %v2986_v44 = vpack.c.bf16 %v300_v36, %v299_v35  ;;  %v3034_v35 = vpack.c.bf16 %v356_v25, %v355_v24  ;;  %v390_v41 = vld [vmem:[%s5106_s1 + $0xb18] sm:$0xff] }
  0x84   :  { %3001 = vmatprep.subr.bf16.mxu1 %v3000_v50  ;;  %1215 = vmatmul.mubr.f32.vlgmr.msra.gmra.mrb[6].mxu0 %v3987_v11  ;;  %v295_v11 = vld [vmem:[%s5106_s1 + $0x820] sm:$0xff]  ;;  %v333_v50 = vld [vmem:[%s5106_s1 + $0x950] sm:$0xff] }
  0x85   :  { %2971 = vmatpush3.bf16.msra.mxu0 %v2970_v45  ;;  %1354 = vmatprep.mubr.f32.mxu0 %v645_v3  ;;  %v2978_v20 = vpack.c.bf16 %v296_v10, %v295_v11  ;;  %v352_v45 = vld [vmem:[%s5106_s1 + $0x9e8] sm:$0xff]  ;;  %v322_v3 = vld [vmem:[%s5106_s1 + $0x8f8] sm:$0xff]  ;;  %v305_v11 = vld [vmem:[%s5106_s1 + $0x870] sm:$0xff] }
  0x86   :  { %1285 = vmatmul.mubr.f32.vlgmr.msra.gmra.mrb[6].mxu1 %v3996_v15  ;;  %2973 = vmatprep.subr.bf16.mxu0 %v2972_v59  ;;  %v328_v15 = vld [vmem:[%s5106_s1 + $0x928] sm:$0xff]  ;;  %v3022_v59 = vpack.c.bf16 %v334_v53, %v333_v50  ;;  %v3024_v0 = vpack.c.bf16 %v352_v45, %v351_v56  ;;  %v306_v10 = vld [vmem:[%s5106_s1 + $0x878] sm:$0xff]  ;;  %v377_v45 = vld [vmem:[%s5106_s1 + $0xab0] sm:$0xff] }
  0x87   :  { %3003 = vmatpush3.bf16.msra.mxu1 %v3002_v58  ;;  %1424 = vmatprep.mubr.f32.mxu1 %v646_v6  ;;  %v3010_v21 = vpack.c.bf16 %v328_v15, %v327_v12  ;;  %v2990_v58 = vpack.c.bf16 %v302_v49, %v301_v48  ;;  %v2994_v6 = vpack.c.bf16 %v304_v62, %v303_v61  ;;  %v337_v12 = vld [vmem:[%s5106_s1 + $0x970] sm:$0xff]  ;;  %v338_v15 = vld [vmem:[%s5106_s1 + $0x978] sm:$0xff]  ;;  %v408_v48 = vld [vmem:[%s5106_s1 + $0xba8] sm:$0xff] }
  0x88   :  { %3005 = vmatprep.subr.bf16.mxu1 %v3004_v63  ;;  %v335_v63 = vld [vmem:[%s5106_s1 + $0x960] sm:$0xff] }
  0x89   :  { %2975 = vmatpush3.bf16.msra.mxu0 %v2974_v7  ;;  %v32_v7 = vld [vmem:[%s5105_s0 + $0x28] sm:$0xff] }
  0x8a   :  { %2977 = vmatprep.subr.bf16.mxu0 %v2976_v9  ;;  %v2996_v9 = vpack.c.bf16 %v322_v3, %v321_v2  ;;  %v4401_v31 = vrot.slane %v32_v7, %v3492_v13  ;;  %v393_v2 = vld [vmem:[%s5106_s1 + $0xb30] sm:$0xff] }
  0x8b   :  { %3007 = vmatpush3.bf16.msra.mxu1 %v3006_v8  ;;  %v3026_v8 = vpack.c.bf16 %v336_v1, %v335_v63  ;;  %v362_v1 = vld [vmem:[%s5106_s1 + $0xa38] sm:$0xff] }
  0x8c   :  { %3009 = vmatprep.subr.bf16.mxu1 %v3008_v14  ;;  %v3028_v14 = vpack.c.bf16 %v354_v5, %v353_v4  ;;  %v394_v4 = vld [vmem:[%s5106_s1 + $0xb38] sm:$0xff]  ;;  %v379_v5 = vld [vmem:[%s5106_s1 + $0xac0] sm:$0xff] }
  0x8d   :  { %2979 = vmatpush3.bf16.msra.mxu0 %v2978_v20  ;;  %v647_v20 = vcombine.high %v32_v7, %v32_v7  ;;  %v411_v7 = vld [vmem:[%s5106_s1 + $0xbc0] sm:$0xff] }
  0x8e   :  { %2981 = vmatprep.subr.bf16.mxu0 %v2980_v22  ;;  %v3030_v22 = vpack.c.bf16 %v338_v15, %v337_v12  ;;  %v395_v15 = vld [vmem:[%s5106_s1 + $0xb40] sm:$0xff] }
  0x8f   :  { %3011 = vmatpush3.bf16.msra.mxu1 %v3010_v21  ;;  %v2998_v21 = vpack.c.bf16 %v306_v10, %v305_v11  ;;  %v363_v11 = vld [vmem:[%s5106_s1 + $0xa40] sm:$0xff]  ;;  %v3078_v10 = vpack.c.bf16 %v394_v4, %v393_v2 }
  0x90   :  { %3013 = vmatprep.subr.bf16.mxu1 %v3012_v26  ;;  %v387_v26 = vld [vmem:[%s5106_s1 + $0xb00] sm:$0xff] }
  0x91   :  { %2983 = vmatpush3.bf16.msra.mxu0 %v2982_v32  ;;  %v405_v32 = vld [vmem:[%s5106_s1 + $0xb90] sm:$0xff]  ;;  %v3066_v36 = vpack.c.bf16 %v388_v28, %v387_v26 }
  0x92   :  { %2985 = vmatprep.subr.bf16.mxu0 %v2984_v34  ;;  %v4410_v34 = vrot.slane %v647_v20, %v3492_v13 }
  0x93   :  { %3015 = vmatpush3.bf16.msra.mxu1 %v3014_v42  ;;  %v406_v42 = vld [vmem:[%s5106_s1 + $0xb98] sm:$0xff] }
  0x94   :  { %3017 = vmatprep.subr.bf16.mxu1 %v3016_v37  ;;  %v357_v37 = vld [vmem:[%s5106_s1 + $0xa10] sm:$0xff]  ;;  %v3068_v40 = vpack.c.bf16 %v406_v42, %v405_v32  ;;  %v663_v49 = vcombine.high %v4410_v34, %v4410_v34 }
  0x95   :  { %2987 = vmatpush3.bf16.msra.mxu0 %v2986_v44  ;;  %v376_v44 = vld [vmem:[%s5106_s1 + $0xaa8] sm:$0xff]  ;;  %v3038_v50 = vpack.c.bf16 %v358_v38, %v357_v37 }
  0x96   :  { %2989 = vmatprep.subr.bf16.mxu0 %v2988_v47  ;;  %v407_v47 = vld [vmem:[%s5106_s1 + $0xba0] sm:$0xff]  ;;  %v3040_v53 = vpack.c.bf16 %v376_v44, %v375_v43 }
  0x97   :  { %3019 = vmatpush3.bf16.msra.mxu1 %v3018_v46  ;;  %v662_v46 = vcombine.high %v4401_v31, %v4401_v31  ;;  %v3072_v56 = vpack.c.bf16 %v408_v48, %v407_v47 }
  0x98   :  { %3021 = vmatprep.subr.bf16.mxu1 %v3020_v51  ;;  %v3070_v51 = vpack.c.bf16 %v390_v41, %v389_v39 }
  0x99   :  { %2991 = vmatpush3.bf16.msra.mxu0 %v2990_v58  ;;  %v378_v58 = vld [vmem:[%s5106_s1 + $0xab8] sm:$0xff] }
  0x9a   :  { %2993 = vmatprep.subr.bf16.mxu0 %v2992_v60  ;;  %v410_v60 = vld [vmem:[%s5106_s1 + $0xbb8] sm:$0xff]  ;;  %v3044_v63 = vpack.c.bf16 %v378_v58, %v377_v45 }
  0x9b   :  { %3023 = vmatpush3.bf16.msra.mxu1 %v3022_v59  ;;  %v409_v59 = vld [vmem:[%s5106_s1 + $0xbb0] sm:$0xff] }
  0x9c   :  { %3025 = vmatprep.subr.bf16.mxu1 %v3024_v0  ;;  %v361_v0 = vld [vmem:[%s5106_s1 + $0xa30] sm:$0xff]  ;;  %v3076_v3 = vpack.c.bf16 %v410_v60, %v409_v59 }
  0x9d   :  { %2995 = vmatpush3.bf16.msra.mxu0 %v2994_v6  ;;  %v380_v6 = vld [vmem:[%s5106_s1 + $0xac8] sm:$0xff] }
  0x9e   :  { %2997 = vmatprep.subr.bf16.mxu0 %v2996_v9  ;;  %v3046_v9 = vpack.c.bf16 %v362_v1, %v361_v0  ;;  %v3048_v12 = vpack.c.bf16 %v380_v6, %v379_v5 }
  0x9f   :  { %3027 = vmatpush3.bf16.msra.mxu1 %v3026_v8  ;;  %v412_v8 = vld [vmem:[%s5106_s1 + $0xbc8] sm:$0xff] }
  0xa0   :  { %3029 = vmatprep.subr.bf16.mxu1 %v3028_v14  ;;  %v364_v14 = vld [vmem:[%s5106_s1 + $0xa48] sm:$0xff] }
  0xa1   :  { %2999 = vmatpush3.bf16.msra.mxu0 %v2998_v21 }
  0xa2   :  { %3033 = vmatprep.subr.bf16.mxu0 %v3032_v23 }
  0xa3   :  { %3031 = vmatpush3.bf16.msra.mxu1 %v3030_v22 }
  0xa4   :  { %3065 = vmatprep.subr.bf16.mxu1 %v3064_v27  ;;  %1355 = vmatmul.mubr.f32.vlgmr.msra.gmra.mrb[8].mxu0 %v4194_v54  ;;  %v359_v54 = vld [vmem:[%s5106_s1 + $0xa20] sm:$0xff] }
  0xa5   :  { %3035 = vmatpush3.bf16.msra.mxu0 %v3034_v35  ;;  %1494 = vmatprep.mubr.f32.mxu0 %v662_v46  ;;  %v3042_v61 = vpack.c.bf16 %v360_v33, %v359_v54 }
  0xa6   :  { %1425 = vmatmul.mubr.f32.vlgmr.msra.gmra.mrb[8].mxu1 %v4203_v57  ;;  %3037 = vmatprep.subr.bf16.mxu0 %v3036_v52  ;;  %v392_v57 = vld [vmem:[%s5106_s1 + $0xb28] sm:$0xff] }
  0xa7   :  { %3067 = vmatpush3.bf16.msra.mxu1 %v3066_v36  ;;  %1564 = vmatprep.mubr.f32.mxu1 %v663_v49  ;;  %v3074_v62 = vpack.c.bf16 %v392_v57, %v391_v55 }
  0xa8   :  { %3069 = vmatprep.subr.bf16.mxu1 %v3068_v40 }
  0xa9   :  { %3039 = vmatpush3.bf16.msra.mxu0 %v3038_v50 }
  0xaa   :  { %3041 = vmatprep.subr.bf16.mxu0 %v3040_v53 }
  0xab   :  { %3071 = vmatpush3.bf16.msra.mxu1 %v3070_v51 }
  0xac   :  { %3073 = vmatprep.subr.bf16.mxu1 %v3072_v56 }
  0xad   :  { %3043 = vmatpush3.bf16.msra.mxu0 %v3042_v61 }
  0xae   :  { %3045 = vmatprep.subr.bf16.mxu0 %v3044_v63 }
  0xaf   :  { %3075 = vmatpush3.bf16.msra.mxu1 %v3074_v62 }
  0xb0   :  { %12 = vsyncpa [#allocation3], 0  ;;  %3077 = vmatprep.subr.bf16.mxu1 %v3076_v3  ;;  %v3080_v16 = vpack.c.bf16 %v412_v8, %v411_v7  ;;  %v396_v17 = vld [vmem:[%s5106_s1 + $0xb48] sm:$0xff]  ;;  %v381_v18 = vld [vmem:[%s5106_s1 + $0xad0] sm:$0xff]  ;;  %v3050_v22 = vpack.c.bf16 %v364_v14, %v363_v11  ;;  %vm3300_vm0 = vmmov 0   ;;  %vm1873_vm1 = vcmask 982016  }
  0xb1   :  { %v382_v19 = vld [vmem:[%s5106_s1 + $0xad8] sm:$0xff]  ;;  %v413_v20 = vld [vmem:[%s5106_s1 + $0xbd0] sm:$0xff]  ;;  %3047 = vmatpush3.bf16.msra.mxu0 %v3046_v9  ;;  %v3082_v23 = vpack.c.bf16 %v396_v17, %v395_v15  ;;  %v383_v30 = vld [vmem:[%s5106_s1 + $0xae0] sm:$0xff]  ;;  %vm1970_vm2 = vcmask 1043456   ;;  %vm1966_vm3 = vcmask 687104   ;;  %s3301_s26 = smov [#allocation2]  }
  0xb2   :  { %v414_v21 = vld [vmem:[%s5106_s1 + $0xbd8] sm:$0xff]  ;;  %3049 = vmatprep.subr.bf16.mxu0 %v3048_v12  ;;  %v3052_v24 = vpack.c.bf16 %v382_v19, %v381_v18  ;;  %v365_v25 = vld [vmem:[%s5106_s1 + $0xa50] sm:$0xff]  ;;  %v384_v32 = vld [vmem:[%s5106_s1 + $0xae8] sm:$0xff]  ;;  %s2052_s27 = sshll.u32 %s3301_s26, 4  ;;  %vm2044_vm4 = vcmask 74752   ;;  %s2053_s27 = int_to_ptr.vmem [resolvable:$true] %s2052_s27 }
  0xb3   :  { %3079 = vmatpush3.bf16.msra.mxu1 %v3078_v10  ;;  %v366_v26 = vld [vmem:[%s5106_s1 + $0xa58] sm:$0xff]  ;;  %v397_v27 = vld [vmem:[%s5106_s1 + $0xb50] sm:$0xff]  ;;  %v3084_v28 = vpack.c.bf16 %v414_v21, %v413_v20  ;;  %v415_v42 = vld [vmem:[%s5106_s1 + $0xbe0] sm:$0xff]  ;;  %v3056_v37 = vpack.c.bf16 %v384_v32, %v383_v30  ;;  %p3278_p1 = scmp.lt.s32.totalorder %s2053_s27, %s2053_s27 }
  0xb4   :  { %3081 = vmatprep.subr.bf16.mxu1 %v3080_v16  ;;  %v398_v29 = vld [vmem:[%s5106_s1 + $0xb58] sm:$0xff]  ;;  %v416_v35 = vld [vmem:[%s5106_s1 + $0xbe8] sm:$0xff]  ;;  %v3054_v36 = vpack.c.bf16 %v366_v26, %v365_v25  ;;  %v367_v38 = vld [vmem:[%s5106_s1 + $0xa60] sm:$0xff] }
  0xb5   :  { %3051 = vmatpush3.bf16.msra.mxu0 %v3050_v22  ;;  %v3086_v52 = vpack.c.bf16 %v398_v29, %v397_v27  ;;  %v368_v39 = vld [vmem:[%s5106_s1 + $0xa68] sm:$0xff]  ;;  %v399_v40 = vld [vmem:[%s5106_s1 + $0xb60] sm:$0xff]  ;;  %v3088_v41 = vpack.c.bf16 %v416_v35, %v415_v42  ;;  %v385_v44 = vld [vmem:[%s5106_s1 + $0xaf0] sm:$0xff] }
  0xb6   :  { %3053 = vmatprep.subr.bf16.mxu0 %v3052_v24  ;;  %v400_v43 = vld [vmem:[%s5106_s1 + $0xb68] sm:$0xff]  ;;  %v386_v46 = vld [vmem:[%s5106_s1 + $0xaf8] sm:$0xff]  ;;  %v417_v47 = vld [vmem:[%s5106_s1 + $0xbf0] sm:$0xff]  ;;  %v3058_v49 = vpack.c.bf16 %v368_v39, %v367_v38 }
  0xb7   :  { %3083 = vmatpush3.bf16.msra.mxu1 %v3082_v23  ;;  %v418_v48 = vld [vmem:[%s5106_s1 + $0xbf8] sm:$0xff]  ;;  %v33_v50 = vld [vmem:[%s5105_s0 + $0x30] sm:$0xff]  ;;  %v3090_v51 = vpack.c.bf16 %v400_v43, %v399_v40  ;;  %v3060_v53 = vpack.c.bf16 %v386_v46, %v385_v44  ;;  %v435_v45 = vld [vmem:[%s5106_s1 + $0xc80] sm:$0xff] }
  0xb8   :  { %3085 = vmatprep.subr.bf16.mxu1 %v3084_v28  ;;  %v369_v54 = vld [vmem:[%s5106_s1 + $0xa70] sm:$0xff]  ;;  %v370_v33 = vld [vmem:[%s5106_s1 + $0xa78] sm:$0xff]  ;;  %v3092_v56 = vpack.c.bf16 %v418_v48, %v417_v47  ;;  %v436_v58 = vld [vmem:[%s5106_s1 + $0xc88] sm:$0xff]  ;;  %v664_v61 = vcombine.high %v33_v50, %v33_v50  ;;  %v4608_v8 = vrot.slane %v33_v50, %v3492_v13 }
  0xb9   :  { %3055 = vmatpush3.bf16.msra.mxu0 %v3054_v36  ;;  %v401_v55 = vld [vmem:[%s5106_s1 + $0xb70] sm:$0xff]  ;;  %v402_v57 = vld [vmem:[%s5106_s1 + $0xb78] sm:$0xff]  ;;  %v467_v59 = vld [vmem:[%s5106_s1 + $0xd80] sm:$0xff]  ;;  %v3062_v62 = vpack.c.bf16 %v370_v33, %v369_v54  ;;  %v3096_v0 = vpack.c.bf16 %v436_v58, %v435_v45 }
  0xba   :  { %3057 = vmatprep.subr.bf16.mxu0 %v3056_v37  ;;  %v468_v60 = vld [vmem:[%s5106_s1 + $0xd88] sm:$0xff]  ;;  %v3094_v63 = vpack.c.bf16 %v402_v57, %v401_v55  ;;  %v419_v1 = vld [vmem:[%s5106_s1 + $0xc00] sm:$0xff]  ;;  %v437_v6 = vld [vmem:[%s5106_s1 + $0xc90] sm:$0xff]  ;;  %v4617_v10 = vrot.slane %v664_v61, %v3492_v13  ;;  %v679_v23 = vcombine.high %v4608_v8, %v4608_v8 }
  0xbb   :  { %3087 = vmatpush3.bf16.msra.mxu1 %v3086_v52  ;;  %v420_v2 = vld [vmem:[%s5106_s1 + $0xc08] sm:$0xff]  ;;  %v451_v3 = vld [vmem:[%s5106_s1 + $0xd00] sm:$0xff]  ;;  %v3128_v4 = vpack.c.bf16 %v468_v60, %v467_v59  ;;  %v438_v7 = vld [vmem:[%s5106_s1 + $0xc98] sm:$0xff] }
  0xbc   :  { %3089 = vmatprep.subr.bf16.mxu1 %v3088_v41  ;;  %v452_v5 = vld [vmem:[%s5106_s1 + $0xd08] sm:$0xff]  ;;  %v469_v9 = vld [vmem:[%s5106_s1 + $0xd90] sm:$0xff]  ;;  %v470_v11 = vld [vmem:[%s5106_s1 + $0xd98] sm:$0xff]  ;;  %v3098_v12 = vpack.c.bf16 %v420_v2, %v419_v1  ;;  %v3100_v15 = vpack.c.bf16 %v438_v7, %v437_v6  ;;  %v680_v26 = vcombine.high %v4617_v10, %v4617_v10 }
  0xbd   :  { %3059 = vmatpush3.bf16.msra.mxu0 %v3058_v49  ;;  %v3130_v14 = vpack.c.bf16 %v452_v5, %v451_v3  ;;  %v421_v16 = vld [vmem:[%s5106_s1 + $0xc10] sm:$0xff]  ;;  %v422_v17 = vld [vmem:[%s5106_s1 + $0xc18] sm:$0xff]  ;;  %v3132_v19 = vpack.c.bf16 %v470_v11, %v469_v9  ;;  %v439_v21 = vld [vmem:[%s5106_s1 + $0xca0] sm:$0xff] }
  0xbe   :  { %3061 = vmatprep.subr.bf16.mxu0 %v3060_v53  ;;  %v453_v18 = vld [vmem:[%s5106_s1 + $0xd10] sm:$0xff]  ;;  %v454_v20 = vld [vmem:[%s5106_s1 + $0xd18] sm:$0xff]  ;;  %v440_v22 = vld [vmem:[%s5106_s1 + $0xca8] sm:$0xff]  ;;  %v3102_v27 = vpack.c.bf16 %v422_v17, %v421_v16 }
  0xbf   :  { %3091 = vmatpush3.bf16.msra.mxu1 %v3090_v51  ;;  %v471_v24 = vld [vmem:[%s5106_s1 + $0xda0] sm:$0xff]  ;;  %v472_v25 = vld [vmem:[%s5106_s1 + $0xda8] sm:$0xff]  ;;  %v3134_v28 = vpack.c.bf16 %v454_v20, %v453_v18  ;;  %v3104_v29 = vpack.c.bf16 %v440_v22, %v439_v21  ;;  %v441_v35 = vld [vmem:[%s5106_s1 + $0xcb0] sm:$0xff] }
  0xc0   :  { %3093 = vmatprep.subr.bf16.mxu1 %v3092_v56  ;;  %v424_v30 = vld [vmem:[%s5106_s1 + $0xc28] sm:$0xff]  ;;  %v455_v32 = vld [vmem:[%s5106_s1 + $0xd20] sm:$0xff]  ;;  %v3136_v42 = vpack.c.bf16 %v472_v25, %v471_v24  ;;  %v442_v36 = vld [vmem:[%s5106_s1 + $0xcb8] sm:$0xff] }
  0xc1   :  { %3063 = vmatpush3.bf16.msra.mxu0 %v3062_v62  ;;  %v473_v52 = vld [vmem:[%s5106_s1 + $0xdb0] sm:$0xff]  ;;  %v474_v37 = vld [vmem:[%s5106_s1 + $0xdb8] sm:$0xff]  ;;  %v3108_v40 = vpack.c.bf16 %v442_v36, %v441_v35  ;;  %v443_v48 = vld [vmem:[%s5106_s1 + $0xcc0] sm:$0xff] }
  0xc2   :  { %3097 = vmatprep.subr.bf16.mxu0 %v3096_v0  ;;  %v425_v41 = vld [vmem:[%s5106_s1 + $0xc30] sm:$0xff]  ;;  %v426_v43 = vld [vmem:[%s5106_s1 + $0xc38] sm:$0xff]  ;;  %v3140_v46 = vpack.c.bf16 %v474_v37, %v473_v52  ;;  %v444_v49 = vld [vmem:[%s5106_s1 + $0xcc8] sm:$0xff] }
  0xc3   :  { %3095 = vmatpush3.bf16.msra.mxu1 %v3094_v63  ;;  %v457_v44 = vld [vmem:[%s5106_s1 + $0xd30] sm:$0xff]  ;;  %v458_v47 = vld [vmem:[%s5106_s1 + $0xd38] sm:$0xff]  ;;  %v475_v50 = vld [vmem:[%s5106_s1 + $0xdc0] sm:$0xff]  ;;  %v3110_v53 = vpack.c.bf16 %v426_v43, %v425_v41  ;;  %v3112_v33 = vpack.c.bf16 %v444_v49, %v443_v48 }
  0xc4   :  { %3129 = vmatprep.subr.bf16.mxu1 %v3128_v4  ;;  %1495 = vmatmul.mubr.f32.vlgmr.msra.gmra.mrb[10].mxu0 %v4401_v31  ;;  %v423_v31 = vld [vmem:[%s5106_s1 + $0xc20] sm:$0xff]  ;;  %v476_v51 = vld [vmem:[%s5106_s1 + $0xdc8] sm:$0xff]  ;;  %v3142_v54 = vpack.c.bf16 %v458_v47, %v457_v44  ;;  %v445_v59 = vld [vmem:[%s5106_s1 + $0xcd0] sm:$0xff] }
  0xc5   :  { %3099 = vmatpush3.bf16.msra.mxu0 %v3098_v12  ;;  %1634 = vmatprep.mubr.f32.mxu0 %v679_v23  ;;  %v3106_v38 = vpack.c.bf16 %v424_v30, %v423_v31  ;;  %v427_v55 = vld [vmem:[%s5106_s1 + $0xc40] sm:$0xff]  ;;  %v428_v56 = vld [vmem:[%s5106_s1 + $0xc48] sm:$0xff]  ;;  %v3144_v45 = vpack.c.bf16 %v476_v51, %v475_v50  ;;  %v446_v60 = vld [vmem:[%s5106_s1 + $0xcd8] sm:$0xff] }
  0xc6   :  { %1565 = vmatmul.mubr.f32.vlgmr.msra.gmra.mrb[10].mxu1 %v4410_v34  ;;  %3101 = vmatprep.subr.bf16.mxu0 %v3100_v15  ;;  %v456_v34 = vld [vmem:[%s5106_s1 + $0xd28] sm:$0xff]  ;;  %v459_v57 = vld [vmem:[%s5106_s1 + $0xd40] sm:$0xff]  ;;  %v477_v61 = vld [vmem:[%s5106_s1 + $0xdd0] sm:$0xff]  ;;  %v3114_v63 = vpack.c.bf16 %v428_v56, %v427_v55  ;;  %v3116_v1 = vpack.c.bf16 %v446_v60, %v445_v59 }
  0xc7   :  { %3131 = vmatpush3.bf16.msra.mxu1 %v3130_v14  ;;  %1704 = vmatprep.mubr.f32.mxu1 %v680_v26  ;;  %v3138_v39 = vpack.c.bf16 %v456_v34, %v455_v32  ;;  %v460_v58 = vld [vmem:[%s5106_s1 + $0xd48] sm:$0xff]  ;;  %v478_v62 = vld [vmem:[%s5106_s1 + $0xdd8] sm:$0xff]  ;;  %v429_v2 = vld [vmem:[%s5106_s1 + $0xc50] sm:$0xff] }
  0xc8   :  { %3133 = vmatprep.subr.bf16.mxu1 %v3132_v19  ;;  %v3146_v0 = vpack.c.bf16 %v460_v58, %v459_v57  ;;  %v430_v3 = vld [vmem:[%s5106_s1 + $0xc58] sm:$0xff]  ;;  %v461_v4 = vld [vmem:[%s5106_s1 + $0xd50] sm:$0xff]  ;;  %v3148_v5 = vpack.c.bf16 %v478_v62, %v477_v61  ;;  %v447_v7 = vld [vmem:[%s5106_s1 + $0xce0] sm:$0xff] }
  0xc9   :  { %3103 = vmatpush3.bf16.msra.mxu0 %v3102_v27  ;;  %v462_v6 = vld [vmem:[%s5106_s1 + $0xd58] sm:$0xff]  ;;  %v448_v9 = vld [vmem:[%s5106_s1 + $0xce8] sm:$0xff]  ;;  %v479_v11 = vld [vmem:[%s5106_s1 + $0xde0] sm:$0xff]  ;;  %v3118_v14 = vpack.c.bf16 %v430_v3, %v429_v2 }
  0xca   :  { %3105 = vmatprep.subr.bf16.mxu0 %v3104_v29  ;;  %v480_v12 = vld [vmem:[%s5106_s1 + $0xde8] sm:$0xff]  ;;  %v3150_v15 = vpack.c.bf16 %v462_v6, %v461_v4  ;;  %v3120_v16 = vpack.c.bf16 %v448_v9, %v447_v7  ;;  %v431_v17 = vld [vmem:[%s5106_s1 + $0xc60] sm:$0xff]  ;;  %v449_v22 = vld [vmem:[%s5106_s1 + $0xcf0] sm:$0xff] }
  0xcb   :  { %3135 = vmatpush3.bf16.msra.mxu1 %v3134_v28  ;;  %v432_v18 = vld [vmem:[%s5106_s1 + $0xc68] sm:$0xff]  ;;  %v463_v19 = vld [vmem:[%s5106_s1 + $0xd60] sm:$0xff]  ;;  %v3152_v20 = vpack.c.bf16 %v480_v12, %v479_v11  ;;  %v450_v23 = vld [vmem:[%s5106_s1 + $0xcf8] sm:$0xff] }
  0xcc   :  { %3137 = vmatprep.subr.bf16.mxu1 %v3136_v42  ;;  %v464_v21 = vld [vmem:[%s5106_s1 + $0xd68] sm:$0xff]  ;;  %v481_v24 = vld [vmem:[%s5106_s1 + $0xdf0] sm:$0xff]  ;;  %v482_v25 = vld [vmem:[%s5106_s1 + $0xdf8] sm:$0xff]  ;;  %v3122_v26 = vpack.c.bf16 %v432_v18, %v431_v17  ;;  %v3124_v29 = vpack.c.bf16 %v450_v23, %v449_v22 }
  0xcd   :  { %3107 = vmatpush3.bf16.msra.mxu0 %v3106_v38  ;;  %v34_v27 = vld [vmem:[%s5105_s0 + $0x38] sm:$0xff]  ;;  %v3154_v28 = vpack.c.bf16 %v464_v21, %v463_v19  ;;  %v433_v31 = vld [vmem:[%s5106_s1 + $0xc70] sm:$0xff]  ;;  %v3156_v42 = vpack.c.bf16 %v482_v25, %v481_v24  ;;  %v499_v35 = vld [vmem:[%s5106_s1 + $0xe80] sm:$0xff] }
  0xce   :  { %3109 = vmatprep.subr.bf16.mxu0 %v3108_v40  ;;  %v434_v30 = vld [vmem:[%s5106_s1 + $0xc78] sm:$0xff]  ;;  %v465_v32 = vld [vmem:[%s5106_s1 + $0xd70] sm:$0xff]  ;;  %v500_v36 = vld [vmem:[%s5106_s1 + $0xe88] sm:$0xff]  ;;  %v681_v38 = vcombine.high %v34_v27, %v34_v27  ;;  %v4815_v51 = vrot.slane %v34_v27, %v3492_v13 }
  0xcf   :  { %3139 = vmatpush3.bf16.msra.mxu1 %v3138_v39  ;;  %v466_v34 = vld [vmem:[%s5106_s1 + $0xd78] sm:$0xff]  ;;  %v531_v52 = vld [vmem:[%s5106_s1 + $0xf80] sm:$0xff]  ;;  %v532_v37 = vld [vmem:[%s5106_s1 + $0xf88] sm:$0xff]  ;;  %v3126_v39 = vpack.c.bf16 %v434_v30, %v433_v31  ;;  %v3160_v41 = vpack.c.bf16 %v500_v36, %v499_v35 }
  0xd0   :  { %3141 = vmatprep.subr.bf16.mxu1 %v3140_v46  ;;  %v3158_v40 = vpack.c.bf16 %v466_v34, %v465_v32  ;;  %v483_v43 = vld [vmem:[%s5106_s1 + $0xe00] sm:$0xff]  ;;  %v484_v44 = vld [vmem:[%s5106_s1 + $0xe08] sm:$0xff]  ;;  %v3192_v47 = vpack.c.bf16 %v532_v37, %v531_v52  ;;  %v501_v49 = vld [vmem:[%s5106_s1 + $0xe90] sm:$0xff] }
  0xd1   :  { %3111 = vmatpush3.bf16.msra.mxu0 %v3110_v53  ;;  %v515_v46 = vld [vmem:[%s5106_s1 + $0xf00] sm:$0xff]  ;;  %v516_v48 = vld [vmem:[%s5106_s1 + $0xf08] sm:$0xff]  ;;  %v502_v50 = vld [vmem:[%s5106_s1 + $0xe98] sm:$0xff]  ;;  %v3162_v55 = vpack.c.bf16 %v484_v44, %v483_v43 }
  0xd2   :  { %3113 = vmatprep.subr.bf16.mxu0 %v3112_v33  ;;  %v533_v53 = vld [vmem:[%s5106_s1 + $0xf90] sm:$0xff]  ;;  %v4824_v33 = vrot.slane %v681_v38, %v3492_v13  ;;  %v3194_v56 = vpack.c.bf16 %v516_v48, %v515_v46  ;;  %v3164_v57 = vpack.c.bf16 %v502_v50, %v501_v49  ;;  %v486_v58 = vld [vmem:[%s5106_s1 + $0xe18] sm:$0xff]  ;;  %v503_v61 = vld [vmem:[%s5106_s1 + $0xea0] sm:$0xff] }
  0xd3   :  { %3143 = vmatpush3.bf16.msra.mxu1 %v3142_v54  ;;  %v534_v54 = vld [vmem:[%s5106_s1 + $0xf98] sm:$0xff]  ;;  %v517_v59 = vld [vmem:[%s5106_s1 + $0xf10] sm:$0xff]  ;;  %v504_v62 = vld [vmem:[%s5106_s1 + $0xea8] sm:$0xff] }
  0xd4   :  { %3145 = vmatprep.subr.bf16.mxu1 %v3144_v45  ;;  %v485_v45 = vld [vmem:[%s5106_s1 + $0xe10] sm:$0xff]  ;;  %v3196_v13 = vpack.c.bf16 %v534_v54, %v533_v53  ;;  %v518_v60 = vld [vmem:[%s5106_s1 + $0xf18] sm:$0xff]  ;;  %v697_v2 = vcombine.high %v4824_v33, %v4824_v33  ;;  %v488_v6 = vld [vmem:[%s5106_s1 + $0xe28] sm:$0xff] }
  0xd5   :  { %3115 = vmatpush3.bf16.msra.mxu0 %v3114_v63  ;;  %v696_v63 = vcombine.high %v4815_v51, %v4815_v51  ;;  %v3166_v3 = vpack.c.bf16 %v486_v58, %v485_v45  ;;  %v3198_v4 = vpack.c.bf16 %v518_v60, %v517_v59  ;;  %v519_v7 = vld [vmem:[%s5106_s1 + $0xf20] sm:$0xff]  ;;  %v505_v11 = vld [vmem:[%s5106_s1 + $0xeb0] sm:$0xff]  ;;  %v506_v12 = vld [vmem:[%s5106_s1 + $0xeb8] sm:$0xff] }
  0xd6   :  { %3117 = vmatprep.subr.bf16.mxu0 %v3116_v1  ;;  %v536_v1 = vld [vmem:[%s5106_s1 + $0xfa8] sm:$0xff]  ;;  %v3172_v18 = vpack.c.bf16 %v506_v12, %v505_v11  ;;  %v489_v19 = vld [vmem:[%s5106_s1 + $0xe30] sm:$0xff]  ;;  %v522_v23 = vld [vmem:[%s5106_s1 + $0xf38] sm:$0xff] }
  0xd7   :  { %3147 = vmatpush3.bf16.msra.mxu1 %v3146_v0  ;;  %v535_v0 = vld [vmem:[%s5106_s1 + $0xfa0] sm:$0xff]  ;;  %v521_v21 = vld [vmem:[%s5106_s1 + $0xf30] sm:$0xff]  ;;  %v508_v25 = vld [vmem:[%s5106_s1 + $0xec8] sm:$0xff] }
  0xd8   :  { %3149 = vmatprep.subr.bf16.mxu1 %v3148_v5  ;;  %v3168_v5 = vpack.c.bf16 %v504_v62, %v503_v61  ;;  %v3200_v9 = vpack.c.bf16 %v536_v1, %v535_v0  ;;  %v507_v24 = vld [vmem:[%s5106_s1 + $0xec0] sm:$0xff]  ;;  %v540_v27 = vld [vmem:[%s5106_s1 + $0xfc8] sm:$0xff]  ;;  %v509_v36 = vld [vmem:[%s5106_s1 + $0xed0] sm:$0xff] }
  0xd9   :  { %3119 = vmatpush3.bf16.msra.mxu0 %v3118_v14  ;;  %v537_v14 = vld [vmem:[%s5106_s1 + $0xfb0] sm:$0xff]  ;;  %v3176_v31 = vpack.c.bf16 %v508_v25, %v507_v24  ;;  %v491_v30 = vld [vmem:[%s5106_s1 + $0xe40] sm:$0xff]  ;;  %v492_v32 = vld [vmem:[%s5106_s1 + $0xe48] sm:$0xff] }
  0xda   :  { %3121 = vmatprep.subr.bf16.mxu0 %v3120_v16  ;;  %v524_v35 = vld [vmem:[%s5106_s1 + $0xf48] sm:$0xff]  ;;  %v510_v52 = vld [vmem:[%s5106_s1 + $0xed8] sm:$0xff]  ;;  %v541_v37 = vld [vmem:[%s5106_s1 + $0xfd0] sm:$0xff] }
  0xdb   :  { %3151 = vmatpush3.bf16.msra.mxu1 %v3150_v15  ;;  %v538_v15 = vld [vmem:[%s5106_s1 + $0xfb8] sm:$0xff]  ;;  %v493_v43 = vld [vmem:[%s5106_s1 + $0xe50] sm:$0xff]  ;;  %v511_v49 = vld [vmem:[%s5106_s1 + $0xee0] sm:$0xff] }
  0xdc   :  { %3153 = vmatprep.subr.bf16.mxu1 %v3152_v20  ;;  %v490_v20 = vld [vmem:[%s5106_s1 + $0xe38] sm:$0xff]  ;;  %v3204_v22 = vpack.c.bf16 %v538_v15, %v537_v14  ;;  %v525_v46 = vld [vmem:[%s5106_s1 + $0xf50] sm:$0xff]  ;;  %v512_v50 = vld [vmem:[%s5106_s1 + $0xee8] sm:$0xff] }
  0xdd   :  { %3123 = vmatpush3.bf16.msra.mxu0 %v3122_v26  ;;  %v539_v26 = vld [vmem:[%s5106_s1 + $0xfc0] sm:$0xff]  ;;  %v542_v38 = vld [vmem:[%s5106_s1 + $0xfd8] sm:$0xff]  ;;  %v544_v54 = vld [vmem:[%s5106_s1 + $0xfe8] sm:$0xff] }
  0xde   :  { %3125 = vmatprep.subr.bf16.mxu0 %v3124_v29  ;;  %v3206_v29 = vpack.c.bf16 %v522_v23, %v521_v21  ;;  %v3208_v34 = vpack.c.bf16 %v540_v27, %v539_v26  ;;  %v494_v44 = vld [vmem:[%s5106_s1 + $0xe58] sm:$0xff]  ;;  %v543_v53 = vld [vmem:[%s5106_s1 + $0xfe0] sm:$0xff]  ;;  %v496_v58 = vld [vmem:[%s5106_s1 + $0xe68] sm:$0xff] }
  0xdf   :  { %3155 = vmatpush3.bf16.msra.mxu1 %v3154_v28  ;;  %v3174_v28 = vpack.c.bf16 %v490_v20, %v489_v19  ;;  %v526_v48 = vld [vmem:[%s5106_s1 + $0xf58] sm:$0xff]  ;;  %v495_v45 = vld [vmem:[%s5106_s1 + $0xe60] sm:$0xff]  ;;  %v3216_v60 = vpack.c.bf16 %v544_v54, %v543_v53  ;;  %v528_v61 = vld [vmem:[%s5106_s1 + $0xf68] sm:$0xff] }
  0xe0   :  { %3157 = vmatprep.subr.bf16.mxu1 %v3156_v42  ;;  %v523_v42 = vld [vmem:[%s5106_s1 + $0xf40] sm:$0xff]  ;;  %v513_v62 = vld [vmem:[%s5106_s1 + $0xef0] sm:$0xff]  ;;  %v498_v12 = vld [vmem:[%s5106_s1 + $0xe78] sm:$0xff] }
  0xe1   :  { %3127 = vmatpush3.bf16.msra.mxu0 %v3126_v39  ;;  %v3178_v39 = vpack.c.bf16 %v492_v32, %v491_v30  ;;  %v527_v59 = vld [vmem:[%s5106_s1 + $0xf60] sm:$0xff]  ;;  %v497_v11 = vld [vmem:[%s5106_s1 + $0xe70] sm:$0xff] }
  0xe2   :  { %3161 = vmatprep.subr.bf16.mxu0 %v3160_v41  ;;  %v3180_v41 = vpack.c.bf16 %v510_v52, %v509_v36  ;;  %v2060_v0 = vld [vmem:[%s5107_s2] ss:$0 sm:$0xff]  ;;  %v3190_v19 = vpack.c.bf16 %v498_v12, %v497_v11  ;;  %v1853_v52 = vld [vmem:[%s5108_s3 + $0x10] sm:$0xff]  ;;  %v1953_v11 = vld [vmem:[%s5110_s5 + $0x28] sm:$0xff] }
  0xe3   :  { %3159 = vmatpush3.bf16.msra.mxu1 %v3158_v40  ;;  %v3210_v40 = vpack.c.bf16 %v524_v35, %v523_v42  ;;  %v1861_v54 = vld [vmem:[%s5108_s3 + $0x50] sm:$0xff] }
  0xe4   :  { %3193 = vmatprep.subr.bf16.mxu1 %v3192_v47  ;;  %1635 = vmatmul.mubr.f32.vlgmr.msra.gmra.mrb[12].mxu0 %v4608_v8  ;;  %v487_v8 = vld [vmem:[%s5106_s1 + $0xe20] sm:$0xff]  ;;  %v3212_v47 = vpack.c.bf16 %v542_v38, %v541_v37  ;;  %v3298_v37 = vmov 0.0|0.0  }
  0xe5   :  { %3163 = vmatpush3.bf16.msra.mxu0 %v3162_v55  ;;  %1774 = vmatprep.mubr.f32.mxu0 %v696_v63  ;;  %v3170_v16 = vpack.c.bf16 %v488_v6, %v487_v8  ;;  %v3182_v55 = vpack.c.bf16 %v494_v44, %v493_v43  ;;  %v514_v63 = vld [vmem:[%s5106_s1 + $0xef8] sm:$0xff]  ;;  %v3186_v6 = vpack.c.bf16 %v496_v58, %v495_v45  ;;  %v1856_v43 = vld [vmem:[%s5108_s3 + $0x28] sm:$0xff] }
  0xe6   :  { %1705 = vmatmul.mubr.f32.vlgmr.msra.gmra.mrb[12].mxu1 %v4617_v10  ;;  %3165 = vmatprep.subr.bf16.mxu0 %v3164_v57  ;;  %v520_v10 = vld [vmem:[%s5106_s1 + $0xf28] sm:$0xff]  ;;  %v3184_v57 = vpack.c.bf16 %v512_v50, %v511_v49  ;;  %v1859_v49 = vld [vmem:[%s5108_s3 + $0x40] sm:$0xff] }
  0xe7   :  { %3195 = vmatpush3.bf16.msra.mxu1 %v3194_v56  ;;  %1844 = vmatprep.mubr.f32.mxu1 %v697_v2  ;;  %v3202_v17 = vpack.c.bf16 %v520_v10, %v519_v7  ;;  %v3214_v56 = vpack.c.bf16 %v526_v48, %v525_v46  ;;  %v3188_v10 = vpack.c.bf16 %v514_v63, %v513_v62  ;;  %v1857_v46 = vld [vmem:[%s5108_s3 + $0x30] sm:$0xff]  ;;  %v1860_v50 = vld [vmem:[%s5108_s3 + $0x48] sm:$0xff] }
  0xe8   :  { %3197 = vmatprep.subr.bf16.mxu1 %v3196_v13  ;;  %v3237_v53 = vpack.c.bf16 %v1860_v50, %v1859_v49  ;;  %v1956_v49 = vld [vmem:[%s5110_s5 + $0x40] sm:$0xff]  ;;  %v1957_v50 = vld [vmem:[%s5110_s5 + $0x48] sm:$0xff] }
  0xe9   :  { %3167 = vmatpush3.bf16.msra.mxu0 %v3166_v3  ;;  %v545_v3 = vld [vmem:[%s5106_s1 + $0xff0] sm:$0xff] }
  0xea   :  { %3169 = vmatprep.subr.bf16.mxu0 %v3168_v5 }
  0xeb   :  { %3199 = vmatpush3.bf16.msra.mxu1 %v3198_v4  ;;  %v546_v4 = vld [vmem:[%s5106_s1 + $0xff8] sm:$0xff] }
  0xec   :  { %3201 = vmatprep.subr.bf16.mxu1 %v3200_v9  ;;  %v3218_v9 = vpack.c.bf16 %v528_v61, %v527_v59  ;;  %v3220_v15 = vpack.c.bf16 %v546_v4, %v545_v3  ;;  %v1864_v61 = vld [vmem:[%s5108_s3 + $0x68] sm:$0xff]  ;;  %v1865_v3 = vld [vmem:[%s5108_s3 + $0x70] sm:$0xff]  ;;  %v1948_v4 = vld [vmem:[%s5110_s5] sm:$0xff] }
  0xed   :  { %3171 = vmatpush3.bf16.msra.mxu0 %v3170_v16  ;;  %v529_v16 = vld [vmem:[%s5106_s1 + $0xf70] sm:$0xff] }
  0xee   :  { %3173 = vmatprep.subr.bf16.mxu0 %v3172_v18 }
  0xef   :  { %3203 = vmatpush3.bf16.msra.mxu1 %v3202_v17  ;;  %v530_v17 = vld [vmem:[%s5106_s1 + $0xf78] sm:$0xff] }
  0xf0   :  { %3205 = vmatprep.subr.bf16.mxu1 %v3204_v22  ;;  %v3222_v20 = vpack.c.bf16 %v530_v17, %v529_v16 }
  0xf1   :  { %3175 = vmatpush3.bf16.msra.mxu0 %v3174_v28 }
  0xf2   :  { %3177 = vmatprep.subr.bf16.mxu0 %v3176_v31 }
  0xf3   :  { %3207 = vmatpush3.bf16.msra.mxu1 %v3206_v29 }
  0xf4   :  { %3209 = vmatprep.subr.bf16.mxu1 %v3208_v34 }
  0xf5   :  { %3179 = vmatpush3.bf16.msra.mxu0 %v3178_v39  ;;  %v1854_v39 = vld [vmem:[%s5108_s3 + $0x18] sm:$0xff] }
  0xf6   :  { %3181 = vmatprep.subr.bf16.mxu0 %v3180_v41  ;;  %v1855_v41 = vld [vmem:[%s5108_s3 + $0x20] sm:$0xff] }
  0xf7   :  { %3211 = vmatpush3.bf16.msra.mxu1 %v3210_v40  ;;  %v2098_v13 = vpop.f32.mrb[0].mxu0  ;;  %v3228_v40 = vpack.c.bf16 %v1854_v39, %v1853_v52  ;;  %v3231_v44 = vpack.c.bf16 %v1856_v43, %v1855_v41 }
  0xf8   :  { %3213 = vmatprep.subr.bf16.mxu1 %v3212_v47  ;;  %v2099_v1 = vpop.f32.mrb[1].mxu0  ;;  %v1858_v47 = vld [vmem:[%s5108_s3 + $0x38] sm:$0xff] }
  0xf9   :  { %v2133_v2 = vpop.f32.mrb[0].mxu1  ;;  %v2100_v5 = vadd.f32 %v2099_v1, %v2098_v13  ;;  %3183 = vmatpush3.bf16.msra.mxu0 %v3182_v55  ;;  %v3234_v48 = vpack.c.bf16 %v1858_v47, %v1857_v46  ;;  %v1862_v55 = vld [vmem:[%s5108_s3 + $0x58] sm:$0xff] }
  0xfa   :  { %v2134_v8 = vpop.f32.mrb[1].mxu1  ;;  %3185 = vmatprep.subr.bf16.mxu0 %v3184_v57 }
  0xfb   :  { %v2135_v7 = vadd.f32 %v2134_v8, %v2133_v2  ;;  %3215 = vmatpush3.bf16.msra.mxu1 %v3214_v56  ;;  %v797_v14 = vadd.f32 %v2100_v5, %v2060_v0  ;;  %v3240_v56 = vpack.c.bf16 %v1862_v55, %v1861_v54  ;;  %v3299_v2 = vmov 0.0   ;;  %v1949_v5 = vld [vmem:[%s5110_s5 + $0x8] sm:$0xff]  ;;  %v1950_v8 = vld [vmem:[%s5110_s5 + $0x10] sm:$0xff]  ;;  %v2061_v55 = vld [vmem:[%s5109_s4] ss:$0 sm:$0xff] }
  0xfc   :  { %3217 = vmatprep.subr.bf16.mxu1 %v3216_v60  ;;  %v1863_v60 = vld [vmem:[%s5108_s3 + $0x60] sm:$0xff]  ;;  %v1958_v54 = vld [vmem:[%s5110_s5 + $0x50] sm:$0xf] }
  0xfd   :  { %v867_v18 = vadd.f32 %v2135_v7, %v797_v14  ;;  %3187 = vmatpush3.bf16.msra.mxu0 %v3186_v6  ;;  %v3243_v63 = vpack.c.bf16 %v1864_v61, %v1863_v60  ;;  %v3246_v6 = vpack.c.bf16 %v1949_v5, %v1948_v4  ;;  %v1951_v7 = vld [vmem:[%s5110_s5 + $0x18] sm:$0xff]  ;;  %v1954_v14 = vld [vmem:[%s5110_s5 + $0x30] sm:$0xff] }
  0xfe   :  { %3189 = vmatprep.subr.bf16.mxu0 %v3188_v10  ;;  %v1952_v10 = vld [vmem:[%s5110_s5 + $0x20] sm:$0xff] }
  0xff   :  { %3219 = vmatpush3.bf16.msra.mxu1 %v3218_v9  ;;  %v3249_v9 = vpack.c.bf16 %v1951_v7, %v1950_v8  ;;  %v3252_v12 = vpack.c.bf16 %v1953_v11, %v1952_v10 }
 0x100   :  { %3221 = vmatprep.subr.bf16.mxu1 %v3220_v15  ;;  %v1955_v15 = vld [vmem:[%s5110_s5 + $0x38] sm:$0xff]  ;;  %s3273_s5 = scalar_lea.vmem %s2053_s27, 32 }
 0x101   :  { %3191 = vmatpush3.bf16.msra.mxu0 %v3190_v19  ;;  %v3255_v16 = vpack.c.bf16 %v1955_v15, %v1954_v14  ;;  %p3274_p0 = scmp.ne.s32.totalorder %s2053_s27, %s3273_s5  ;;  %p3279_p2 = scmp.lt.s32.totalorder %s3273_s5, %s3273_s5 }
 0x102   :  { %3224 = vmatprep.subr.bf16.mxu0 %v3298_v37 }
 0x103   :  { %3223 = vmatpush3.bf16.msra.mxu1 %v3222_v20  ;;  %p3280_p3 = por %p3279_p2, %p3278_p1 }
 0x104   :  { %1775 = vmatmul.mubr.f32.vlgmr.msra.gmra.mrb[14].mxu0 %v4815_v51  ;;  %v1851_v51 = vld [vmem:[%s5108_s3] sm:$0xff]  ;;  %3245 = vmatprep.subr.bf16.mxu1 %v3298_v37 }
 0x105   :  { %2684 = vmatprep.mubr.msk.f32.mxu0 %vm3300_vm0, %v3299_v2  ;;  %p3281_p4 = pnand %p3280_p3, %p3274_p0 }
 0x106   :  { %1845 = vmatmul.mubr.f32.vlgmr.msra.gmra.mrb[14].mxu1 %v4824_v33  ;;  %v1852_v33 = vld [vmem:[%s5108_s3 + $0x8] sm:$0xff] }
 0x107   :  { %v3225_v38 = vpack.c.bf16 %v1852_v33, %v1851_v51  ;;  %2709 = vmatprep.mubr.msk.f32.mxu1 %vm3300_vm0, %v3299_v2  ;;  %3247 = vmatpush3.bf16.msra.mxu1 %v3246_v6 }
 0x108   :  { %3248 = vmatprep.subr.bf16.mxu1 %v3298_v37 }
 0x109   :  { %3226 = vmatpush3.bf16.msra.mxu0 %v3225_v38 }
 0x10a   :  { %3227 = vmatprep.subr.bf16.mxu0 %v3298_v37 }
 0x10b   :  { %3250 = vmatpush3.bf16.msra.mxu1 %v3249_v9 }
 0x10c   :  { %3251 = vmatprep.subr.bf16.mxu1 %v3298_v37 }
 0x10d   :  { %3229 = vmatpush3.bf16.msra.mxu0 %v3228_v40 }
 0x10e   :  { %3230 = vmatprep.subr.bf16.mxu0 %v3298_v37 }
 0x10f   :  { %3253 = vmatpush3.bf16.msra.mxu1 %v3252_v12 }
 0x110   :  { %3254 = vmatprep.subr.bf16.mxu1 %v3298_v37 }
 0x111   :  { %3232 = vmatpush3.bf16.msra.mxu0 %v3231_v44 }
 0x112   :  { %3233 = vmatprep.subr.bf16.mxu0 %v3298_v37 }
 0x113   :  { %3256 = vmatpush3.bf16.msra.mxu1 %v3255_v16 }
 0x114   :  { %3257 = vmatprep.subr.bf16.mxu1 %v3298_v37 }
 0x115   :  { %3235 = vmatpush3.bf16.msra.mxu0 %v3234_v48 }
 0x116   :  { %3236 = vmatprep.subr.bf16.mxu0 %v3298_v37 }
 0x117   :  { %v2168_v21 = vpop.f32.mrb[2].mxu0 }
 0x118   :  { %v2169_v22 = vpop.f32.mrb[3].mxu0 }
 0x119   :  { %v2203_v23 = vpop.f32.mrb[2].mxu1  ;;  %v2170_v24 = vadd.f32 %v2169_v22, %v2168_v21  ;;  %3238 = vmatpush3.bf16.msra.mxu0 %v3237_v53  ;;  %v3258_v53 = vpack.c.bf16 %v1957_v50, %v1956_v49 }
 0x11a   :  { %v2204_v25 = vpop.f32.mrb[3].mxu1  ;;  %3239 = vmatprep.subr.bf16.mxu0 %v3298_v37 }
 0x11b   :  { %v2205_v26 = vadd.f32 %v2204_v25, %v2203_v23  ;;  %v937_v27 = vadd.f32 %v2170_v24, %v867_v18  ;;  %3259 = vmatpush3.bf16.msra.mxu1 %v3258_v53 }
 0x11c   :  { %2707 = vmatprep.subr.mxu1 %v3299_v2 }
 0x11d   :  { %v1007_v28 = vadd.f32 %v2205_v26, %v937_v27  ;;  %3241 = vmatpush3.bf16.msra.mxu0 %v3240_v56 }
 0x11e   :  { %3242 = vmatprep.subr.bf16.mxu0 %v3298_v37 }
 0x11f   :  { %2708 = vmatpush3.msk.msra.mxu1 %vm1970_vm2, %v1958_v54 }
 0x121   :  { %3244 = vmatpush3.bf16.msra.mxu0 %v3243_v63 }
 0x122   :  { %2682 = vmatprep.subr.mxu0 %v3299_v2 }
 0x125   :  { %2683 = vmatpush3.msra.mxu0 %v1865_v3 }
 0x137   :  { %v2238_v29 = vpop.f32.mrb[4].mxu0 }
 0x138   :  { %v2239_v31 = vpop.f32.mrb[5].mxu0 }
 0x139   :  { %v2273_v30 = vpop.f32.mrb[4].mxu1  ;;  %v2240_v32 = vadd.f32 %v2239_v31, %v2238_v29 }
 0x13a   :  { %v2274_v42 = vpop.f32.mrb[5].mxu1 }
 0x13b   :  { %v2275_v34 = vadd.f32 %v2274_v42, %v2273_v30  ;;  %v1077_v35 = vadd.f32 %v2240_v32, %v1007_v28 }
 0x13d   :  { %v1147_v36 = vadd.f32 %v2275_v34, %v1077_v35 }
 0x157   :  { %v2308_v57 = vpop.f32.mrb[6].mxu0 }
 0x158   :  { %v2309_v45 = vpop.f32.mrb[7].mxu0 }
 0x159   :  { %v2343_v58 = vpop.f32.mrb[6].mxu1  ;;  %v2310_v59 = vadd.f32 %v2309_v45, %v2308_v57 }
 0x15a   :  { %v2344_v13 = vpop.f32.mrb[7].mxu1 }
 0x15b   :  { %v2345_v62 = vadd.f32 %v2344_v13, %v2343_v58  ;;  %v1217_v0 = vadd.f32 %v2310_v59, %v1147_v36  ;;  %v2063_v59 = vld [vmem:[%s5111_s6] ss:$0 sm:$0xff] }
 0x15d   :  { %v1287_v1 = vadd.f32 %v2345_v62, %v1217_v0 }
 0x177   :  { %v2378_v17 = vpop.f32.mrb[8].mxu0 }
 0x178   :  { %v2379_v18 = vpop.f32.mrb[9].mxu0 }
 0x179   :  { %v2413_v19 = vpop.f32.mrb[8].mxu1  ;;  %v2380_v20 = vadd.f32 %v2379_v18, %v2378_v17 }
 0x17a   :  { %v2414_v21 = vpop.f32.mrb[9].mxu1 }
 0x17b   :  { %v2415_v22 = vadd.f32 %v2414_v21, %v2413_v19  ;;  %v1357_v23 = vadd.f32 %v2380_v20, %v1287_v1 }
 0x17d   :  { %v1427_v24 = vadd.f32 %v2415_v22, %v1357_v23 }
 0x197   :  { %v2448_v25 = vpop.f32.mrb[10].mxu0 }
 0x198   :  { %v2449_v26 = vpop.f32.mrb[11].mxu0 }
 0x199   :  { %v2483_v27 = vpop.f32.mrb[10].mxu1  ;;  %v2450_v28 = vadd.f32 %v2449_v26, %v2448_v25 }
 0x19a   :  { %v2484_v29 = vpop.f32.mrb[11].mxu1 }
 0x19b   :  { %v2485_v31 = vadd.f32 %v2484_v29, %v2483_v27  ;;  %v1497_v30 = vadd.f32 %v2450_v28, %v1427_v24 }
 0x19d   :  { %v1567_v32 = vadd.f32 %v2485_v31, %v1497_v30 }
 0x1b7   :  { %v2518_v42 = vpop.f32.mrb[12].mxu0 }
 0x1b8   :  { %v2519_v34 = vpop.f32.mrb[13].mxu0 }
 0x1b9   :  { %v2553_v35 = vpop.f32.mrb[12].mxu1  ;;  %v2520_v36 = vadd.f32 %v2519_v34, %v2518_v42 }
 0x1ba   :  { %v2554_v51 = vpop.f32.mrb[13].mxu1 }
 0x1bb   :  { %v2555_v33 = vadd.f32 %v2554_v51, %v2553_v35  ;;  %v1637_v52 = vadd.f32 %v2520_v36, %v1567_v32 }
 0x1bd   :  { %v1707_v37 = vadd.f32 %v2555_v33, %v1637_v52 }
 0x1d7   :  { %v2588_v38 = vpop.f32.mrb[14].mxu0 }
 0x1d8   :  { %v2589_v39 = vpop.f32.mrb[15].mxu0 }
 0x1d9   :  { %v2623_v40 = vpop.f32.mrb[14].mxu1  ;;  %v2590_v41 = vadd.f32 %v2589_v39, %v2588_v38 }
 0x1da   :  { %v2624_v43 = vpop.f32.mrb[15].mxu1 }
 0x1db   :  { %v2625_v44 = vadd.f32 %v2624_v43, %v2623_v40  ;;  %v1777_v46 = vadd.f32 %v2590_v41, %v1707_v37 }
 0x1dd   :  { %v1847_v47 = vadd.f32 %v2625_v44, %v1777_v46 }
 0x1df   :  { %v1850_v48 = vmax.f32 %v1847_v47, 0.0 }
 0x1e1   :  { %2685 = vmatmul.mubr.msk.f32.vlgmr.msra.gmra.mrb[16].mxu0 %vm1873_vm1, %v1850_v48 }
 0x2b4   :  { %v1943_v56 = vpop.f32.mrb[16].mxu0 }
 0x2b5   :  { %v1944_v57 = vadd.f32 %v2061_v55, %v1943_v56  ;;  %v2686_v45 = vpop.f32.mrb[17].mxu0 }
 0x2b7   :  { %v1947_v58 = vmax.f32 %v1944_v57, 0.0 }
 0x2b9   :  { %2710 = vmatmul.mubr.msk.f32.vlgmr.msra.gmra.mrb[16].mxu1 %vm1966_vm3, %v1947_v58 }
 0x38c   :  { %v2040_v13 = vpop.f32.mrb[16].mxu1 }
 0x38d   :  { %v2041_v60 = vadd.f32 %v2063_v59, %v2040_v13  ;;  %v2711_v61 = vpop.f32.mrb[17].mxu1 }
 0x38f   :  { %2045 = vst.msk [vmem:[#allocation2] sm:$0x3] %vm2044_vm4, %v2041_v60 }
 0x390   :  { %3284 = shalt.err (!%p3281_p4)
}
 0x391   :  { %s3285_s29 = scalar_lea.hbm %s5112_s7, 32 }
 0x392   :  { %p3286_p5 = scmp.ne.s32.totalorder %s5112_s7, %s3285_s29  ;;  %p3289_p6 = scmp.lt.u32.totalorder %s3285_s29, %s5112_s7 }
 0x394   :  { %p3291_p7 = pnand %p3289_p6, %p3286_p5 }
 0x396   :  { %3294 = shalt.err (!%p3291_p7)
}
 0x397   :  { %2055 = dma.vmem_to_hbm [thread:$0]  %s2053_s27, 32, %s5112_s7, [#allocation3]  }
 0x398   :  { %3295 = dma.done.wait [#allocation3], 32  }
 0x399   :  { %3296 = vsyncadd [#allocation3], 4294967264 }
 0x39a   :  { %2059 = vsyncpa [#allocation3], 1 }

</bundles_post_ra>
